<compile_context>
chip_gen: v6e
topology: v6e:2x2x1
jax: 0.10.0
libtpu: 0.0.40
codegen_flags: <defaults>
</compile_context>

<pallas_src>
import functools
import math

import jax
import jax.numpy as jnp
from jax.experimental import pallas as pl
from jax.experimental.pallas import tpu as pltpu


# ----------------------------- in-kernel helpers -----------------------------

def _layer_norm(x, g_ref, b_ref, eps=1e-5):
    """x: (T, D) f32. gamma/beta refs: (1, D) f32."""
    mu = jnp.mean(x, axis=-1, keepdims=True)
    var = jnp.mean((x - mu) ** 2, axis=-1, keepdims=True)
    return (x - mu) * jax.lax.rsqrt(var + eps) * g_ref[...] + b_ref[...]


def _gelu_tanh(x):
    c = math.sqrt(2.0 / math.pi)
    return 0.5 * x * (1.0 + jnp.tanh(c * (x + 0.044715 * x * x * x)))


def _mha(q, k, v, wo_ref, num_heads):
    """q: (Tq, E) f32, k/v: (Tk, E) f32 -> (Tq, E) f32 AFTER the output projection
    (bias not included).  Heads are statically unrolled; the per-head output
    projection is accumulated (no concatenate / lane re-layout)."""
    E = q.shape[-1]
    dh = E // num_heads
    q = q * (1.0 / math.sqrt(dh))                 # scale folded into q once
    qb = q.astype(jnp.bfloat16)
    kb = k.astype(jnp.bfloat16)
    vb = v.astype(jnp.bfloat16)
    wo = wo_ref[...]                              # (E, E) bf16
    acc = jnp.zeros((q.shape[0], wo.shape[-1]), jnp.float32)
    for h in range(num_heads):
        lo = h * dh
        qh = qb[:, lo:lo + dh]
        kh = kb[:, lo:lo + dh]
        vh = vb[:, lo:lo + dh]
        s = jax.lax.dot_general(
            qh, kh, (((1,), (1,)), ((), ())), preferred_element_type=jnp.float32
        )                                         # (Tq, Tk) f32
        s = s - jnp.max(s, axis=-1, keepdims=True)
        p = jnp.exp(s)
        p = p * pl.reciprocal(jnp.sum(p, axis=-1, keepdims=True), approx=True)
        oh = jnp.dot(p.astype(jnp.bfloat16), vh,
                     preferred_element_type=jnp.float32)          # (Tq, dh)
        acc = acc + jnp.dot(oh.astype(jnp.bfloat16), wo[lo:lo + dh, :],
                            preferred_element_type=jnp.float32)   # (Tq, E)
    return acc


def _self_attn(x, g_ref, b_ref, wqkv_ref, bqkv_ref, wo_ref, bo_ref, num_heads):
    """x: (T, E) f32 -> x + MHA(LN(x))."""
    E = x.shape[-1]
    xn = _layer_norm(x, g_ref, b_ref)
    qkv = jnp.dot(xn.astype(jnp.bfloat16), wqkv_ref[...],
                  preferred_element_type=jnp.float32) + bqkv_ref[...]
    q, k, v = qkv[:, :E], qkv[:, E:2 * E], qkv[:, 2 * E:]
    return x + _mha(q, k, v, wo_ref, num_heads) + bo_ref[...]


def _cross_attn(x, ctx, g_ref, b_ref, wq_ref, bq_ref, wkv_ref, bkv_ref,
                wo_ref, bo_ref, num_heads):
    """x: (T, E) f32, ctx: (L, Cd) f32 -> x + MHA(LN(x), ctx)."""
    E = x.shape[-1]
    xn = _layer_norm(x, g_ref, b_ref)
    q = jnp.dot(xn.astype(jnp.bfloat16), wq_ref[...],
                preferred_element_type=jnp.float32) + bq_ref[...]
    kv = jnp.dot(ctx.astype(jnp.bfloat16), wkv_ref[...],
                 preferred_element_type=jnp.float32) + bkv_ref[...]
    k, v = kv[:, :E], kv[:, E:]
    return x + _mha(q, k, v, wo_ref, num_heads) + bo_ref[...]


def _feed_forward(x, g_ref, b_ref, w1_ref, b1_ref, w2_ref, b2_ref):
    """x: (T, E) f32 -> x + W2(GeGLU(W1(LN(x))))."""
    xn = _layer_norm(x, g_ref, b_ref)
    h = jnp.dot(xn.astype(jnp.bfloat16), w1_ref[...],
                preferred_element_type=jnp.float32) + b1_ref[...]
    F = w2_ref.shape[0]                           # 4*E
    a, gate = h[:, :F], h[:, F:]
    act = a * _gelu_tanh(gate)
    out = jnp.dot(act.astype(jnp.bfloat16), w2_ref[...],
                  preferred_element_type=jnp.float32) + b2_ref[...]
    return x + out


def _group_norm(t, g_ref, b_ref, gmap_ref, gmap_t_ref, group_size, eps=1e-5):
    """t: (HW, C) f32.  Per-group stats via one-hot (C,G)/(G,C) matmuls (no
    lane-splitting reshape); two-pass variance for numerical parity."""
    hw = t.shape[0]
    n = float(hw * group_size)
    csum = jnp.sum(t, axis=0, keepdims=True)                                  # (1, C)
    mean_g = jnp.dot(csum, gmap_ref[...], preferred_element_type=jnp.float32) / n
    mean_c = jnp.dot(mean_g, gmap_t_ref[...], preferred_element_type=jnp.float32)
    d = t - mean_c
    dsq = jnp.sum(d * d, axis=0, keepdims=True)                               # (1, C)
    var_g = jnp.dot(dsq, gmap_ref[...], preferred_element_type=jnp.float32) / n
    rstd_c = jnp.dot(jax.lax.rsqrt(var_g + eps), gmap_t_ref[...],
                     preferred_element_type=jnp.float32)                      # (1, C)
    return d * rstd_c * g_ref[...] + b_ref[...]


# ----------------------------- the single fused kernel -----------------------------

def _spatial_transformer_kernel(x_ref, ctx_ref, pe2d_ref, pe1d_ref, *rest,
                                num_heads, group_size):
    p = rest[:-1]
    o_ref = rest[-1]
    (e_sa_g, e_sa_b, e_wqkv, e_bqkv, e_wo, e_bo,
     e_ff_g, e_ff_b, e_w1, e_b1, e_w2, e_b2,
     gn_g, gn_b, gmap, gmap_t, w_in, b_in,
     d_sa_g, d_sa_b, d_wqkv, d_bqkv, d_wo, d_bo,
     ca_g, ca_b, ca_wq, ca_bq, ca_wkv, ca_bkv, ca_wo, ca_bo,
     d_ff_g, d_ff_b, d_w1, d_b1, d_w2, d_b2,
     w_out, b_out) = p

    # ---- context encoder ----
    ctx = ctx_ref[0].astype(jnp.float32) + pe1d_ref[...]                      # (L, Cd)
    ctx = _self_attn(ctx, e_sa_g, e_sa_b, e_wqkv, e_bqkv, e_wo, e_bo, num_heads)
    ctx = _feed_forward(ctx, e_ff_g, e_ff_b, e_w1, e_b1, e_w2, e_b2)

    # ---- image path (token-major inside the kernel) ----
    x_cm = x_ref[0].astype(jnp.float32)                                       # (C, HW)
    t = jnp.transpose(x_cm + pe2d_ref[...])                                   # (HW, C)
    t = _group_norm(t, gn_g, gn_b, gmap, gmap_t, group_size)
    t = jnp.dot(t.astype(jnp.bfloat16), w_in[...],
                preferred_element_type=jnp.float32) + b_in[...]               # conv_in 1x1
    t = _self_attn(t, d_sa_g, d_sa_b, d_wqkv, d_bqkv, d_wo, d_bo, num_heads)
    t = _cross_attn(t, ctx, ca_g, ca_b, ca_wq, ca_bq, ca_wkv, ca_bkv,
                    ca_wo, ca_bo, num_heads)
    t = _feed_forward(t, d_ff_g, d_ff_b, d_w1, d_b1, d_w2, d_b2)
    t = jnp.dot(t.astype(jnp.bfloat16), w_out[...],
                preferred_element_type=jnp.float32) + b_out[...]              # conv_out 1x1

    # back to channel-major + residual with the ORIGINAL input (before PE)
    o_ref[0] = (jnp.transpose(t) + x_cm).astype(o_ref.dtype)


# ----------------------------- positional encodings (plain-JAX constants) -----------------------------

def pos_encoding_1d(L, D):
    """Standard sinusoidal 1D PE, shape (L, D)."""
    pos = jnp.arange(L, dtype=jnp.float32)[:, None]
    div = jnp.exp(jnp.arange(0, D, 2, dtype=jnp.float32) * (-math.log(10000.0) / D))
    pe = jnp.zeros((L, D), jnp.float32)
    pe = pe.at[:, 0::2].set(jnp.sin(pos * div))
    pe = pe.at[:, 1::2].set(jnp.cos(pos * div))
    return pe


def pos_encoding_2d(C, H, W):
    """Standard sinusoidal 2D PE, shape (C, H, W) (C divisible by 4)."""
    c4 = C // 4
    div = jnp.exp(jnp.arange(c4, dtype=jnp.float32) * (-math.log(10000.0) / c4))
    pos_h = jnp.arange(H, dtype=jnp.float32)[:, None] * div[None, :]
    pos_w = jnp.arange(W, dtype=jnp.float32)[:, None] * div[None, :]
    pe_h = jnp.concatenate([jnp.sin(pos_h), jnp.cos(pos_h)], axis=-1)  # (H, C//2)
    pe_w = jnp.concatenate([jnp.sin(pos_w), jnp.cos(pos_w)], axis=-1)  # (W, C//2)
    pe = jnp.concatenate(
        [
            jnp.broadcast_to(pe_h[:, None, :], (H, W, C // 2)),
            jnp.broadcast_to(pe_w[None, :, :], (H, W, C // 2)),
        ],
        axis=-1,
    )
    return pe.transpose(2, 0, 1)  # (C, H, W)


# ----------------------------- driver -----------------------------

def _flatten_params(p, gmap, gmap_t):
    """Fixed flat ordering matching the kernel unpack."""
    def v(a):
        return a.reshape(1, -1)
    esa, eff = p["enc"]["sa"], p["enc"]["ff"]
    dsa, dca, dff = p["dec"]["sa"], p["dec"]["ca"], p["dec"]["ff"]
    return [
        v(esa["ln_g"]), v(esa["ln_b"]), esa["wqkv"], v(esa["bqkv"]), esa["wo"], v(esa["bo"]),
        v(eff["ln_g"]), v(eff["ln_b"]), eff["w1"], v(eff["b1"]), eff["w2"], v(eff["b2"]),
        v(p["gn_g"]), v(p["gn_b"]), gmap, gmap_t, p["conv_in_w"], v(p["conv_in_b"]),
        v(dsa["ln_g"]), v(dsa["ln_b"]), dsa["wqkv"], v(dsa["bqkv"]), dsa["wo"], v(dsa["bo"]),
        v(dca["ln_g"]), v(dca["ln_b"]), dca["wq"], v(dca["bq"]), dca["wkv"], v(dca["bkv"]),
        dca["wo"], v(dca["bo"]),
        v(dff["ln_g"]), v(dff["ln_b"]), dff["w1"], v(dff["b1"]), dff["w2"], v(dff["b2"]),
        p["conv_out_w"], v(p["conv_out_b"]),
    ]


def spatial_transformer(params, x, context, num_heads, num_groups=32):
    B, C, H, W = x.shape
    HW = H * W
    L, Cd = context.shape[1], context.shape[2]
    group_size = C // num_groups

    # constants (computed once per compile, tiny)
    pe2d = pos_encoding_2d(C, H, W).reshape(C, HW)
    pe1d = pos_encoding_1d(L, Cd)
    ch = jnp.arange(C) // group_size
    gmap = (ch[:, None] == jnp.arange(num_groups)[None, :]).astype(jnp.float32)  # (C, G)
    gmap_t = jnp.transpose(gmap)                                                 # (G, C)

    x_flat = x.reshape(B, C, HW)                      # free: merges last two dims
    flat = _flatten_params(params, gmap, gmap_t)

    def const_spec(a):
        nd = a.ndim
        return pl.BlockSpec(a.shape, lambda i, _nd=nd: (0,) * _nd)

    in_specs = [
        pl.BlockSpec((1, C, HW), lambda i: (i, 0, 0)),
        pl.BlockSpec((1, L, Cd), lambda i: (i, 0, 0)),
        const_spec(pe2d),
        const_spec(pe1d),
    ] + [const_spec(a) for a in flat]

    kern = functools.partial(_spatial_transformer_kernel,
                             num_heads=num_heads, group_size=group_size)

    out = pl.pallas_call(
        kern,
        out_shape=jax.ShapeDtypeStruct((B, C, HW), x.dtype),
        grid=(B,),
        in_specs=in_specs,
        out_specs=pl.BlockSpec((1, C, HW), lambda i: (i, 0, 0)),
        compiler_params=pltpu.CompilerParams(
            dimension_semantics=("parallel",),
            vmem_limit_bytes=32 * 1024 * 1024,
        ),
    )(x_flat, context, pe2d, pe1d, *flat)
    return out.reshape(B, C, H, W)


# ----------------------------- deterministic init -----------------------------

def _dense(key, fan_in, fan_out):
    kw, kb = jax.random.split(key)
    lim = 1.0 / math.sqrt(fan_in)
    w = jax.random.uniform(kw, (fan_in, fan_out), jnp.float32, -lim, lim)
    b = jax.random.uniform(kb, (fan_out,), jnp.float32, -lim, lim)
    return w, b


def _init_self_attn(key, dim):
    ks = jax.random.split(key, 4)
    wq, bq = _dense(ks[0], dim, dim)
    wk, bk = _dense(ks[1], dim, dim)
    wv, bv = _dense(ks[2], dim, dim)
    wo, bo = _dense(ks[3], dim, dim)
    return dict(
        ln_g=jnp.ones((dim,), jnp.float32),
        ln_b=jnp.zeros((dim,), jnp.float32),
        wqkv=jnp.concatenate([wq, wk, wv], axis=1).astype(jnp.bfloat16),   # (E, 3E)
        bqkv=jnp.concatenate([bq, bk, bv], axis=0),
        wo=wo.astype(jnp.bfloat16), bo=bo,
    )


def _init_cross_attn(key, q_dim, kv_dim):
    ks = jax.random.split(key, 4)
    wq, bq = _dense(ks[0], q_dim, q_dim)
    wk, bk = _dense(ks[1], kv_dim, q_dim)
    wv, bv = _dense(ks[2], kv_dim, q_dim)
    wo, bo = _dense(ks[3], q_dim, q_dim)
    return dict(
        ln_g=jnp.ones((q_dim,), jnp.float32),
        ln_b=jnp.zeros((q_dim,), jnp.float32),
        wq=wq.astype(jnp.bfloat16), bq=bq,
        wkv=jnp.concatenate([wk, wv], axis=1).astype(jnp.bfloat16),        # (Cd, 2E)
        bkv=jnp.concatenate([bk, bv], axis=0),
        wo=wo.astype(jnp.bfloat16), bo=bo,
    )


def _init_ff(key, dim):
    k1, k2 = jax.random.split(key)
    w1, b1 = _dense(k1, dim, dim * 8)          # GeGLU proj: Linear(dim, 4*dim*2)
    w2, b2 = _dense(k2, dim * 4, dim)          # Linear(4*dim, dim)
    return dict(
        ln_g=jnp.ones((dim,), jnp.float32),
        ln_b=jnp.zeros((dim,), jnp.float32),
        w1=w1.astype(jnp.bfloat16), b1=b1,
        w2=w2.astype(jnp.bfloat16), b2=b2,
    )


def init_params(key, embed_dim, context_dim):
    ks = jax.random.split(key, 8)
    params = {
        "enc": {
            "sa": _init_self_attn(ks[0], context_dim),
            "ff": _init_ff(ks[1], context_dim),
        },
        "dec": {
            "sa": _init_self_attn(ks[2], embed_dim),
            "ca": _init_cross_attn(ks[3], embed_dim, context_dim),
            "ff": _init_ff(ks[4], embed_dim),
        },
        "gn_g": jnp.ones((embed_dim,), jnp.float32),
        "gn_b": jnp.zeros((embed_dim,), jnp.float32),
    }
    w_in, b_in = _dense(ks[5], embed_dim, embed_dim)
    w_out, b_out = _dense(ks[6], embed_dim, embed_dim)
    params["conv_in_w"], params["conv_in_b"] = w_in.astype(jnp.bfloat16), b_in
    params["conv_out_w"], params["conv_out_b"] = w_out.astype(jnp.bfloat16), b_out
    return params


# ----------------------------- main -----------------------------

if __name__ == "__main__":
    embed_dim = 64      # divisible by 32 (GroupNorm) and by num_heads
    context_dim = 32
    num_heads = 4
    B, H, W, L = 2, 8, 8, 8

    key = jax.random.PRNGKey(0)
    k_par, k_x, k_ctx = jax.random.split(key, 3)
    params = init_params(k_par, embed_dim, context_dim)

    x = jax.random.normal(k_x, (B, embed_dim, H, W), jnp.float32)          # NCHW
    context = jax.random.normal(k_ctx, (B, L, context_dim), jnp.float32)   # (B, L, Cd)

    fwd = jax.jit(functools.partial(spatial_transformer, num_heads=num_heads))
    out = fwd(params, x, context)
    out = jax.block_until_ready(out)

    assert out.shape == x.shape and out.dtype == x.dtype
    assert bool(jnp.all(jnp.isfinite(out)))
    print("KERNEL_OK")
</pallas_src>

<mosaic_0001>
module attributes {stable_mosaic.version = 11 : i64} {
  func.func @_spatial_transformer_kernel(%arg0: i32, %arg1: memref<1x64x64xf32, #tpu.memory_space<vmem>>, %arg2: memref<1x8x32xf32, #tpu.memory_space<vmem>>, %arg3: memref<64x64xf32, #tpu.memory_space<vmem>>, %arg4: memref<8x32xf32, #tpu.memory_space<vmem>>, %arg5: memref<1x32xf32, #tpu.memory_space<vmem>>, %arg6: memref<1x32xf32, #tpu.memory_space<vmem>>, %arg7: memref<32x96xbf16, #tpu.memory_space<vmem>>, %arg8: memref<1x96xf32, #tpu.memory_space<vmem>>, %arg9: memref<32x32xbf16, #tpu.memory_space<vmem>>, %arg10: memref<1x32xf32, #tpu.memory_space<vmem>>, %arg11: memref<1x32xf32, #tpu.memory_space<vmem>>, %arg12: memref<1x32xf32, #tpu.memory_space<vmem>>, %arg13: memref<32x256xbf16, #tpu.memory_space<vmem>>, %arg14: memref<1x256xf32, #tpu.memory_space<vmem>>, %arg15: memref<128x32xbf16, #tpu.memory_space<vmem>>, %arg16: memref<1x32xf32, #tpu.memory_space<vmem>>, %arg17: memref<1x64xf32, #tpu.memory_space<vmem>>, %arg18: memref<1x64xf32, #tpu.memory_space<vmem>>, %arg19: memref<64x32xf32, #tpu.memory_space<vmem>>, %arg20: memref<32x64xf32, #tpu.memory_space<vmem>>, %arg21: memref<64x64xbf16, #tpu.memory_space<vmem>>, %arg22: memref<1x64xf32, #tpu.memory_space<vmem>>, %arg23: memref<1x64xf32, #tpu.memory_space<vmem>>, %arg24: memref<1x64xf32, #tpu.memory_space<vmem>>, %arg25: memref<64x192xbf16, #tpu.memory_space<vmem>>, %arg26: memref<1x192xf32, #tpu.memory_space<vmem>>, %arg27: memref<64x64xbf16, #tpu.memory_space<vmem>>, %arg28: memref<1x64xf32, #tpu.memory_space<vmem>>, %arg29: memref<1x64xf32, #tpu.memory_space<vmem>>, %arg30: memref<1x64xf32, #tpu.memory_space<vmem>>, %arg31: memref<64x64xbf16, #tpu.memory_space<vmem>>, %arg32: memref<1x64xf32, #tpu.memory_space<vmem>>, %arg33: memref<32x128xbf16, #tpu.memory_space<vmem>>, %arg34: memref<1x128xf32, #tpu.memory_space<vmem>>, %arg35: memref<64x64xbf16, #tpu.memory_space<vmem>>, %arg36: memref<1x64xf32, #tpu.memory_space<vmem>>, %arg37: memref<1x64xf32, #tpu.memory_space<vmem>>, %arg38: memref<1x64xf32, #tpu.memory_space<vmem>>, %arg39: memref<64x512xbf16, #tpu.memory_space<vmem>>, %arg40: memref<1x512xf32, #tpu.memory_space<vmem>>, %arg41: memref<256x64xbf16, #tpu.memory_space<vmem>>, %arg42: memref<1x64xf32, #tpu.memory_space<vmem>>, %arg43: memref<64x64xbf16, #tpu.memory_space<vmem>>, %arg44: memref<1x64xf32, #tpu.memory_space<vmem>>, %arg45: memref<1x64x64xf32, #tpu.memory_space<vmem>>) attributes {dimension_semantics = [#tpu.dimension_semantics<parallel>], iteration_bounds = array<i64: 2>, scalar_prefetch = 0 : i64, scratch_operands = 0 : i64, tpu.core_type = #tpu.core_type<tc>, window_params = [{transform_indices = @transform_0, window_bounds = array<i64: 1, 64, 64>}, {transform_indices = @transform_1, window_bounds = array<i64: 1, 8, 32>}, {pipeline_mode = #tpu.pipeline_mode<synchronous>, transform_indices = @transform_2, window_bounds = array<i64: 64, 64>}, {pipeline_mode = #tpu.pipeline_mode<synchronous>, transform_indices = @transform_3, window_bounds = array<i64: 8, 32>}, {pipeline_mode = #tpu.pipeline_mode<synchronous>, transform_indices = @transform_4, window_bounds = array<i64: 1, 32>}, {pipeline_mode = #tpu.pipeline_mode<synchronous>, transform_indices = @transform_5, window_bounds = array<i64: 1, 32>}, {pipeline_mode = #tpu.pipeline_mode<synchronous>, transform_indices = @transform_6, window_bounds = array<i64: 32, 96>}, {pipeline_mode = #tpu.pipeline_mode<synchronous>, transform_indices = @transform_7, window_bounds = array<i64: 1, 96>}, {pipeline_mode = #tpu.pipeline_mode<synchronous>, transform_indices = @transform_8, window_bounds = array<i64: 32, 32>}, {pipeline_mode = #tpu.pipeline_mode<synchronous>, transform_indices = @transform_9, window_bounds = array<i64: 1, 32>}, {pipeline_mode = #tpu.pipeline_mode<synchronous>, transform_indices = @transform_10, window_bounds = array<i64: 1, 32>}, {pipeline_mode = #tpu.pipeline_mode<synchronous>, transform_indices = @transform_11, window_bounds = array<i64: 1, 32>}, {pipeline_mode = #tpu.pipeline_mode<synchronous>, transform_indices = @transform_12, window_bounds = array<i64: 32, 256>}, {pipeline_mode = #tpu.pipeline_mode<synchronous>, transform_indices = @transform_13, window_bounds = array<i64: 1, 256>}, {pipeline_mode = #tpu.pipeline_mode<synchronous>, transform_indices = @transform_14, window_bounds = array<i64: 128, 32>}, {pipeline_mode = #tpu.pipeline_mode<synchronous>, transform_indices = @transform_15, window_bounds = array<i64: 1, 32>}, {pipeline_mode = #tpu.pipeline_mode<synchronous>, transform_indices = @transform_16, window_bounds = array<i64: 1, 64>}, {pipeline_mode = #tpu.pipeline_mode<synchronous>, transform_indices = @transform_17, window_bounds = array<i64: 1, 64>}, {pipeline_mode = #tpu.pipeline_mode<synchronous>, transform_indices = @transform_18, window_bounds = array<i64: 64, 32>}, {pipeline_mode = #tpu.pipeline_mode<synchronous>, transform_indices = @transform_19, window_bounds = array<i64: 32, 64>}, {pipeline_mode = #tpu.pipeline_mode<synchronous>, transform_indices = @transform_20, window_bounds = array<i64: 64, 64>}, {pipeline_mode = #tpu.pipeline_mode<synchronous>, transform_indices = @transform_21, window_bounds = array<i64: 1, 64>}, {pipeline_mode = #tpu.pipeline_mode<synchronous>, transform_indices = @transform_22, window_bounds = array<i64: 1, 64>}, {pipeline_mode = #tpu.pipeline_mode<synchronous>, transform_indices = @transform_23, window_bounds = array<i64: 1, 64>}, {pipeline_mode = #tpu.pipeline_mode<synchronous>, transform_indices = @transform_24, window_bounds = array<i64: 64, 192>}, {pipeline_mode = #tpu.pipeline_mode<synchronous>, transform_indices = @transform_25, window_bounds = array<i64: 1, 192>}, {pipeline_mode = #tpu.pipeline_mode<synchronous>, transform_indices = @transform_26, window_bounds = array<i64: 64, 64>}, {pipeline_mode = #tpu.pipeline_mode<synchronous>, transform_indices = @transform_27, window_bounds = array<i64: 1, 64>}, {pipeline_mode = #tpu.pipeline_mode<synchronous>, transform_indices = @transform_28, window_bounds = array<i64: 1, 64>}, {pipeline_mode = #tpu.pipeline_mode<synchronous>, transform_indices = @transform_29, window_bounds = array<i64: 1, 64>}, {pipeline_mode = #tpu.pipeline_mode<synchronous>, transform_indices = @transform_30, window_bounds = array<i64: 64, 64>}, {pipeline_mode = #tpu.pipeline_mode<synchronous>, transform_indices = @transform_31, window_bounds = array<i64: 1, 64>}, {pipeline_mode = #tpu.pipeline_mode<synchronous>, transform_indices = @transform_32, window_bounds = array<i64: 32, 128>}, {pipeline_mode = #tpu.pipeline_mode<synchronous>, transform_indices = @transform_33, window_bounds = array<i64: 1, 128>}, {pipeline_mode = #tpu.pipeline_mode<synchronous>, transform_indices = @transform_34, window_bounds = array<i64: 64, 64>}, {pipeline_mode = #tpu.pipeline_mode<synchronous>, transform_indices = @transform_35, window_bounds = array<i64: 1, 64>}, {pipeline_mode = #tpu.pipeline_mode<synchronous>, transform_indices = @transform_36, window_bounds = array<i64: 1, 64>}, {pipeline_mode = #tpu.pipeline_mode<synchronous>, transform_indices = @transform_37, window_bounds = array<i64: 1, 64>}, {pipeline_mode = #tpu.pipeline_mode<synchronous>, transform_indices = @transform_38, window_bounds = array<i64: 64, 512>}, {pipeline_mode = #tpu.pipeline_mode<synchronous>, transform_indices = @transform_39, window_bounds = array<i64: 1, 512>}, {pipeline_mode = #tpu.pipeline_mode<synchronous>, transform_indices = @transform_40, window_bounds = array<i64: 256, 64>}, {pipeline_mode = #tpu.pipeline_mode<synchronous>, transform_indices = @transform_41, window_bounds = array<i64: 1, 64>}, {pipeline_mode = #tpu.pipeline_mode<synchronous>, transform_indices = @transform_42, window_bounds = array<i64: 64, 64>}, {pipeline_mode = #tpu.pipeline_mode<synchronous>, transform_indices = @transform_43, window_bounds = array<i64: 1, 64>}, {transform_indices = @transform_44, window_bounds = array<i64: 1, 64, 64>}]} {
    %c0 = arith.constant 0 : index
    %c0_0 = arith.constant 0 : index
    %c0_1 = arith.constant 0 : index
    %0 = vector.load %arg2[%c0, %c0_0, %c0_1] : memref<1x8x32xf32, #tpu.memory_space<vmem>>, vector<1x8x32xf32>
    %1 = vector.shape_cast %0 : vector<1x8x32xf32> to vector<8x32xf32>
    %c0_2 = arith.constant 0 : index
    %c0_3 = arith.constant 0 : index
    %2 = vector.load %arg4[%c0_2, %c0_3] : memref<8x32xf32, #tpu.memory_space<vmem>>, vector<8x32xf32>
    %3 = arith.addf %1, %2 : vector<8x32xf32>
    %cst = arith.constant dense<0.000000e+00> : vector<8xf32>
    %4 = vector.multi_reduction <add>, %3, %cst [1] : vector<8x32xf32> to vector<8xf32>
    %5 = vector.shape_cast %4 : vector<8xf32> to vector<8x1xf32>
    %cst_4 = arith.constant 3.200000e+01 : f32
    %6 = vector.broadcast %cst_4 : f32 to vector<8x1xf32>
    %7 = arith.divf %5, %6 : vector<8x1xf32>
    %8 = vector.broadcast %7 : vector<8x1xf32> to vector<8x32xf32>
    %9 = arith.subf %3, %8 : vector<8x32xf32>
    %10 = arith.mulf %9, %9 : vector<8x32xf32>
    %cst_5 = arith.constant dense<0.000000e+00> : vector<8xf32>
    %11 = vector.multi_reduction <add>, %10, %cst_5 [1] : vector<8x32xf32> to vector<8xf32>
    %12 = vector.shape_cast %11 : vector<8xf32> to vector<8x1xf32>
    %cst_6 = arith.constant 3.200000e+01 : f32
    %13 = vector.broadcast %cst_6 : f32 to vector<8x1xf32>
    %14 = arith.divf %12, %13 : vector<8x1xf32>
    %15 = vector.broadcast %7 : vector<8x1xf32> to vector<8x32xf32>
    %16 = arith.subf %3, %15 : vector<8x32xf32>
    %cst_7 = arith.constant 9.99999974E-6 : f32
    %17 = vector.broadcast %cst_7 : f32 to vector<8x1xf32>
    %18 = arith.addf %14, %17 : vector<8x1xf32>
    %19 = math.rsqrt %18 : vector<8x1xf32>
    %20 = vector.broadcast %19 : vector<8x1xf32> to vector<8x32xf32>
    %21 = arith.mulf %16, %20 : vector<8x32xf32>
    %c0_8 = arith.constant 0 : index
    %c0_9 = arith.constant 0 : index
    %22 = vector.load %arg5[%c0_8, %c0_9] : memref<1x32xf32, #tpu.memory_space<vmem>>, vector<1x32xf32>
    %23 = vector.broadcast %22 : vector<1x32xf32> to vector<8x32xf32>
    %24 = arith.mulf %21, %23 : vector<8x32xf32>
    %c0_10 = arith.constant 0 : index
    %c0_11 = arith.constant 0 : index
    %25 = vector.load %arg6[%c0_10, %c0_11] : memref<1x32xf32, #tpu.memory_space<vmem>>, vector<1x32xf32>
    %26 = vector.broadcast %25 : vector<1x32xf32> to vector<8x32xf32>
    %27 = arith.addf %24, %26 : vector<8x32xf32>
    %28 = arith.truncf %27 : vector<8x32xf32> to vector<8x32xbf16>
    %c0_12 = arith.constant 0 : index
    %c0_13 = arith.constant 0 : index
    %29 = vector.load %arg7[%c0_12, %c0_13] : memref<32x96xbf16, #tpu.memory_space<vmem>>, vector<32x96xbf16>
    %cst_14 = arith.constant dense<0.000000e+00> : vector<8x96xf32>
    %30 = tpu.matmul %28, %29, %cst_14 {dimension_numbers = #tpu.dot_dimension_numbers<[1], [0], [0], [1], [0, 0, 1, 1], [], []>} : vector<8x32xbf16>, vector<32x96xbf16>, vector<8x96xf32> -> vector<8x96xf32>
    %c0_15 = arith.constant 0 : index
    %c0_16 = arith.constant 0 : index
    %31 = vector.load %arg8[%c0_15, %c0_16] : memref<1x96xf32, #tpu.memory_space<vmem>>, vector<1x96xf32>
    %32 = vector.broadcast %31 : vector<1x96xf32> to vector<8x96xf32>
    %33 = arith.addf %30, %32 : vector<8x96xf32>
    %34 = vector.extract_strided_slice %33 {offsets = [0, 0], sizes = [8, 32], strides = [1, 1]} : vector<8x96xf32> to vector<8x32xf32>
    %35 = vector.extract_strided_slice %33 {offsets = [0, 32], sizes = [8, 32], strides = [1, 1]} : vector<8x96xf32> to vector<8x32xf32>
    %36 = vector.extract_strided_slice %33 {offsets = [0, 64], sizes = [8, 32], strides = [1, 1]} : vector<8x96xf32> to vector<8x32xf32>
    %cst_17 = arith.constant 0.353553385 : f32
    %37 = vector.broadcast %cst_17 : f32 to vector<8x32xf32>
    %38 = arith.mulf %34, %37 : vector<8x32xf32>
    %39 = arith.truncf %38 : vector<8x32xf32> to vector<8x32xbf16>
    %40 = arith.truncf %35 : vector<8x32xf32> to vector<8x32xbf16>
    %41 = arith.truncf %36 : vector<8x32xf32> to vector<8x32xbf16>
    %c0_18 = arith.constant 0 : index
    %c0_19 = arith.constant 0 : index
    %42 = vector.load %arg9[%c0_18, %c0_19] : memref<32x32xbf16, #tpu.memory_space<vmem>>, vector<32x32xbf16>
    %cst_20 = arith.constant 0.000000e+00 : f32
    %43 = vector.broadcast %cst_20 : f32 to vector<8x32xf32>
    %44 = vector.extract_strided_slice %39 {offsets = [0, 0], sizes = [8, 8], strides = [1, 1]} : vector<8x32xbf16> to vector<8x8xbf16>
    %45 = vector.extract_strided_slice %40 {offsets = [0, 0], sizes = [8, 8], strides = [1, 1]} : vector<8x32xbf16> to vector<8x8xbf16>
    %46 = vector.extract_strided_slice %41 {offsets = [0, 0], sizes = [8, 8], strides = [1, 1]} : vector<8x32xbf16> to vector<8x8xbf16>
    %cst_21 = arith.constant dense<0.000000e+00> : vector<8x8xf32>
    %47 = tpu.matmul %44, %45, %cst_21 {dimension_numbers = #tpu.dot_dimension_numbers<[1], [1], [0], [0], [0, 0, 1, 0], [], []>} : vector<8x8xbf16>, vector<8x8xbf16>, vector<8x8xf32> -> vector<8x8xf32>
    %cst_22 = arith.constant dense<0xFF800000> : vector<8xf32>
    %48 = vector.multi_reduction <maximumf>, %47, %cst_22 [1] : vector<8x8xf32> to vector<8xf32>
    %49 = vector.shape_cast %48 : vector<8xf32> to vector<8x1xf32>
    %50 = vector.broadcast %49 : vector<8x1xf32> to vector<8x8xf32>
    %51 = arith.subf %47, %50 : vector<8x8xf32>
    %52 = math.exp %51 : vector<8x8xf32>
    %cst_23 = arith.constant dense<0.000000e+00> : vector<8xf32>
    %53 = vector.multi_reduction <add>, %52, %cst_23 [1] : vector<8x8xf32> to vector<8xf32>
    %54 = vector.shape_cast %53 : vector<8xf32> to vector<8x1xf32>
    %55 = tpu.reciprocal %54 {approx = true} : vector<8x1xf32> -> vector<8x1xf32>
    %56 = vector.broadcast %55 : vector<8x1xf32> to vector<8x8xf32>
    %57 = arith.mulf %52, %56 : vector<8x8xf32>
    %58 = arith.truncf %57 : vector<8x8xf32> to vector<8x8xbf16>
    %cst_24 = arith.constant dense<0.000000e+00> : vector<8x8xf32>
    %59 = tpu.matmul %58, %46, %cst_24 {dimension_numbers = #tpu.dot_dimension_numbers<[1], [0], [0], [1], [0, 0, 1, 1], [], []>} : vector<8x8xbf16>, vector<8x8xbf16>, vector<8x8xf32> -> vector<8x8xf32>
    %60 = arith.truncf %59 : vector<8x8xf32> to vector<8x8xbf16>
    %61 = vector.extract_strided_slice %42 {offsets = [0, 0], sizes = [8, 32], strides = [1, 1]} : vector<32x32xbf16> to vector<8x32xbf16>
    %cst_25 = arith.constant dense<0.000000e+00> : vector<8x32xf32>
    %62 = tpu.matmul %60, %61, %cst_25 {dimension_numbers = #tpu.dot_dimension_numbers<[1], [0], [0], [1], [0, 0, 1, 1], [], []>} : vector<8x8xbf16>, vector<8x32xbf16>, vector<8x32xf32> -> vector<8x32xf32>
    %63 = arith.addf %43, %62 : vector<8x32xf32>
    %64 = vector.extract_strided_slice %39 {offsets = [0, 8], sizes = [8, 8], strides = [1, 1]} : vector<8x32xbf16> to vector<8x8xbf16>
    %65 = vector.extract_strided_slice %40 {offsets = [0, 8], sizes = [8, 8], strides = [1, 1]} : vector<8x32xbf16> to vector<8x8xbf16>
    %66 = vector.extract_strided_slice %41 {offsets = [0, 8], sizes = [8, 8], strides = [1, 1]} : vector<8x32xbf16> to vector<8x8xbf16>
    %cst_26 = arith.constant dense<0.000000e+00> : vector<8x8xf32>
    %67 = tpu.matmul %64, %65, %cst_26 {dimension_numbers = #tpu.dot_dimension_numbers<[1], [1], [0], [0], [0, 0, 1, 0], [], []>} : vector<8x8xbf16>, vector<8x8xbf16>, vector<8x8xf32> -> vector<8x8xf32>
    %cst_27 = arith.constant dense<0xFF800000> : vector<8xf32>
    %68 = vector.multi_reduction <maximumf>, %67, %cst_27 [1] : vector<8x8xf32> to vector<8xf32>
    %69 = vector.shape_cast %68 : vector<8xf32> to vector<8x1xf32>
    %70 = vector.broadcast %69 : vector<8x1xf32> to vector<8x8xf32>
    %71 = arith.subf %67, %70 : vector<8x8xf32>
    %72 = math.exp %71 : vector<8x8xf32>
    %cst_28 = arith.constant dense<0.000000e+00> : vector<8xf32>
    %73 = vector.multi_reduction <add>, %72, %cst_28 [1] : vector<8x8xf32> to vector<8xf32>
    %74 = vector.shape_cast %73 : vector<8xf32> to vector<8x1xf32>
    %75 = tpu.reciprocal %74 {approx = true} : vector<8x1xf32> -> vector<8x1xf32>
    %76 = vector.broadcast %75 : vector<8x1xf32> to vector<8x8xf32>
    %77 = arith.mulf %72, %76 : vector<8x8xf32>
    %78 = arith.truncf %77 : vector<8x8xf32> to vector<8x8xbf16>
    %cst_29 = arith.constant dense<0.000000e+00> : vector<8x8xf32>
    %79 = tpu.matmul %78, %66, %cst_29 {dimension_numbers = #tpu.dot_dimension_numbers<[1], [0], [0], [1], [0, 0, 1, 1], [], []>} : vector<8x8xbf16>, vector<8x8xbf16>, vector<8x8xf32> -> vector<8x8xf32>
    %80 = arith.truncf %79 : vector<8x8xf32> to vector<8x8xbf16>
    %81 = vector.extract_strided_slice %42 {offsets = [8, 0], sizes = [8, 32], strides = [1, 1]} : vector<32x32xbf16> to vector<8x32xbf16>
    %cst_30 = arith.constant dense<0.000000e+00> : vector<8x32xf32>
    %82 = tpu.matmul %80, %81, %cst_30 {dimension_numbers = #tpu.dot_dimension_numbers<[1], [0], [0], [1], [0, 0, 1, 1], [], []>} : vector<8x8xbf16>, vector<8x32xbf16>, vector<8x32xf32> -> vector<8x32xf32>
    %83 = arith.addf %63, %82 : vector<8x32xf32>
    %84 = vector.extract_strided_slice %39 {offsets = [0, 16], sizes = [8, 8], strides = [1, 1]} : vector<8x32xbf16> to vector<8x8xbf16>
    %85 = vector.extract_strided_slice %40 {offsets = [0, 16], sizes = [8, 8], strides = [1, 1]} : vector<8x32xbf16> to vector<8x8xbf16>
    %86 = vector.extract_strided_slice %41 {offsets = [0, 16], sizes = [8, 8], strides = [1, 1]} : vector<8x32xbf16> to vector<8x8xbf16>
    %cst_31 = arith.constant dense<0.000000e+00> : vector<8x8xf32>
    %87 = tpu.matmul %84, %85, %cst_31 {dimension_numbers = #tpu.dot_dimension_numbers<[1], [1], [0], [0], [0, 0, 1, 0], [], []>} : vector<8x8xbf16>, vector<8x8xbf16>, vector<8x8xf32> -> vector<8x8xf32>
    %cst_32 = arith.constant dense<0xFF800000> : vector<8xf32>
    %88 = vector.multi_reduction <maximumf>, %87, %cst_32 [1] : vector<8x8xf32> to vector<8xf32>
    %89 = vector.shape_cast %88 : vector<8xf32> to vector<8x1xf32>
    %90 = vector.broadcast %89 : vector<8x1xf32> to vector<8x8xf32>
    %91 = arith.subf %87, %90 : vector<8x8xf32>
    %92 = math.exp %91 : vector<8x8xf32>
    %cst_33 = arith.constant dense<0.000000e+00> : vector<8xf32>
    %93 = vector.multi_reduction <add>, %92, %cst_33 [1] : vector<8x8xf32> to vector<8xf32>
    %94 = vector.shape_cast %93 : vector<8xf32> to vector<8x1xf32>
    %95 = tpu.reciprocal %94 {approx = true} : vector<8x1xf32> -> vector<8x1xf32>
    %96 = vector.broadcast %95 : vector<8x1xf32> to vector<8x8xf32>
    %97 = arith.mulf %92, %96 : vector<8x8xf32>
    %98 = arith.truncf %97 : vector<8x8xf32> to vector<8x8xbf16>
    %cst_34 = arith.constant dense<0.000000e+00> : vector<8x8xf32>
    %99 = tpu.matmul %98, %86, %cst_34 {dimension_numbers = #tpu.dot_dimension_numbers<[1], [0], [0], [1], [0, 0, 1, 1], [], []>} : vector<8x8xbf16>, vector<8x8xbf16>, vector<8x8xf32> -> vector<8x8xf32>
    %100 = arith.truncf %99 : vector<8x8xf32> to vector<8x8xbf16>
    %101 = vector.extract_strided_slice %42 {offsets = [16, 0], sizes = [8, 32], strides = [1, 1]} : vector<32x32xbf16> to vector<8x32xbf16>
    %cst_35 = arith.constant dense<0.000000e+00> : vector<8x32xf32>
    %102 = tpu.matmul %100, %101, %cst_35 {dimension_numbers = #tpu.dot_dimension_numbers<[1], [0], [0], [1], [0, 0, 1, 1], [], []>} : vector<8x8xbf16>, vector<8x32xbf16>, vector<8x32xf32> -> vector<8x32xf32>
    %103 = arith.addf %83, %102 : vector<8x32xf32>
    %104 = vector.extract_strided_slice %39 {offsets = [0, 24], sizes = [8, 8], strides = [1, 1]} : vector<8x32xbf16> to vector<8x8xbf16>
    %105 = vector.extract_strided_slice %40 {offsets = [0, 24], sizes = [8, 8], strides = [1, 1]} : vector<8x32xbf16> to vector<8x8xbf16>
    %106 = vector.extract_strided_slice %41 {offsets = [0, 24], sizes = [8, 8], strides = [1, 1]} : vector<8x32xbf16> to vector<8x8xbf16>
    %cst_36 = arith.constant dense<0.000000e+00> : vector<8x8xf32>
    %107 = tpu.matmul %104, %105, %cst_36 {dimension_numbers = #tpu.dot_dimension_numbers<[1], [1], [0], [0], [0, 0, 1, 0], [], []>} : vector<8x8xbf16>, vector<8x8xbf16>, vector<8x8xf32> -> vector<8x8xf32>
    %cst_37 = arith.constant dense<0xFF800000> : vector<8xf32>
    %108 = vector.multi_reduction <maximumf>, %107, %cst_37 [1] : vector<8x8xf32> to vector<8xf32>
    %109 = vector.shape_cast %108 : vector<8xf32> to vector<8x1xf32>
    %110 = vector.broadcast %109 : vector<8x1xf32> to vector<8x8xf32>
    %111 = arith.subf %107, %110 : vector<8x8xf32>
    %112 = math.exp %111 : vector<8x8xf32>
    %cst_38 = arith.constant dense<0.000000e+00> : vector<8xf32>
    %113 = vector.multi_reduction <add>, %112, %cst_38 [1] : vector<8x8xf32> to vector<8xf32>
    %114 = vector.shape_cast %113 : vector<8xf32> to vector<8x1xf32>
    %115 = tpu.reciprocal %114 {approx = true} : vector<8x1xf32> -> vector<8x1xf32>
    %116 = vector.broadcast %115 : vector<8x1xf32> to vector<8x8xf32>
    %117 = arith.mulf %112, %116 : vector<8x8xf32>
    %118 = arith.truncf %117 : vector<8x8xf32> to vector<8x8xbf16>
    %cst_39 = arith.constant dense<0.000000e+00> : vector<8x8xf32>
    %119 = tpu.matmul %118, %106, %cst_39 {dimension_numbers = #tpu.dot_dimension_numbers<[1], [0], [0], [1], [0, 0, 1, 1], [], []>} : vector<8x8xbf16>, vector<8x8xbf16>, vector<8x8xf32> -> vector<8x8xf32>
    %120 = arith.truncf %119 : vector<8x8xf32> to vector<8x8xbf16>
    %121 = vector.extract_strided_slice %42 {offsets = [24, 0], sizes = [8, 32], strides = [1, 1]} : vector<32x32xbf16> to vector<8x32xbf16>
    %cst_40 = arith.constant dense<0.000000e+00> : vector<8x32xf32>
    %122 = tpu.matmul %120, %121, %cst_40 {dimension_numbers = #tpu.dot_dimension_numbers<[1], [0], [0], [1], [0, 0, 1, 1], [], []>} : vector<8x8xbf16>, vector<8x32xbf16>, vector<8x32xf32> -> vector<8x32xf32>
    %123 = arith.addf %103, %122 : vector<8x32xf32>
    %124 = arith.addf %3, %123 : vector<8x32xf32>
    %c0_41 = arith.constant 0 : index
    %c0_42 = arith.constant 0 : index
    %125 = vector.load %arg10[%c0_41, %c0_42] : memref<1x32xf32, #tpu.memory_space<vmem>>, vector<1x32xf32>
    %126 = vector.broadcast %125 : vector<1x32xf32> to vector<8x32xf32>
    %127 = arith.addf %124, %126 : vector<8x32xf32>
    %cst_43 = arith.constant dense<0.000000e+00> : vector<8xf32>
    %128 = vector.multi_reduction <add>, %127, %cst_43 [1] : vector<8x32xf32> to vector<8xf32>
    %129 = vector.shape_cast %128 : vector<8xf32> to vector<8x1xf32>
    %cst_44 = arith.constant 3.200000e+01 : f32
    %130 = vector.broadcast %cst_44 : f32 to vector<8x1xf32>
    %131 = arith.divf %129, %130 : vector<8x1xf32>
    %132 = vector.broadcast %131 : vector<8x1xf32> to vector<8x32xf32>
    %133 = arith.subf %127, %132 : vector<8x32xf32>
    %134 = arith.mulf %133, %133 : vector<8x32xf32>
    %cst_45 = arith.constant dense<0.000000e+00> : vector<8xf32>
    %135 = vector.multi_reduction <add>, %134, %cst_45 [1] : vector<8x32xf32> to vector<8xf32>
    %136 = vector.shape_cast %135 : vector<8xf32> to vector<8x1xf32>
    %cst_46 = arith.constant 3.200000e+01 : f32
    %137 = vector.broadcast %cst_46 : f32 to vector<8x1xf32>
    %138 = arith.divf %136, %137 : vector<8x1xf32>
    %139 = vector.broadcast %131 : vector<8x1xf32> to vector<8x32xf32>
    %140 = arith.subf %127, %139 : vector<8x32xf32>
    %cst_47 = arith.constant 9.99999974E-6 : f32
    %141 = vector.broadcast %cst_47 : f32 to vector<8x1xf32>
    %142 = arith.addf %138, %141 : vector<8x1xf32>
    %143 = math.rsqrt %142 : vector<8x1xf32>
    %144 = vector.broadcast %143 : vector<8x1xf32> to vector<8x32xf32>
    %145 = arith.mulf %140, %144 : vector<8x32xf32>
    %c0_48 = arith.constant 0 : index
    %c0_49 = arith.constant 0 : index
    %146 = vector.load %arg11[%c0_48, %c0_49] : memref<1x32xf32, #tpu.memory_space<vmem>>, vector<1x32xf32>
    %147 = vector.broadcast %146 : vector<1x32xf32> to vector<8x32xf32>
    %148 = arith.mulf %145, %147 : vector<8x32xf32>
    %c0_50 = arith.constant 0 : index
    %c0_51 = arith.constant 0 : index
    %149 = vector.load %arg12[%c0_50, %c0_51] : memref<1x32xf32, #tpu.memory_space<vmem>>, vector<1x32xf32>
    %150 = vector.broadcast %149 : vector<1x32xf32> to vector<8x32xf32>
    %151 = arith.addf %148, %150 : vector<8x32xf32>
    %152 = arith.truncf %151 : vector<8x32xf32> to vector<8x32xbf16>
    %c0_52 = arith.constant 0 : index
    %c0_53 = arith.constant 0 : index
    %153 = vector.load %arg13[%c0_52, %c0_53] : memref<32x256xbf16, #tpu.memory_space<vmem>>, vector<32x256xbf16>
    %cst_54 = arith.constant dense<0.000000e+00> : vector<8x256xf32>
    %154 = tpu.matmul %152, %153, %cst_54 {dimension_numbers = #tpu.dot_dimension_numbers<[1], [0], [0], [1], [0, 0, 1, 1], [], []>} : vector<8x32xbf16>, vector<32x256xbf16>, vector<8x256xf32> -> vector<8x256xf32>
    %c0_55 = arith.constant 0 : index
    %c0_56 = arith.constant 0 : index
    %155 = vector.load %arg14[%c0_55, %c0_56] : memref<1x256xf32, #tpu.memory_space<vmem>>, vector<1x256xf32>
    %156 = vector.broadcast %155 : vector<1x256xf32> to vector<8x256xf32>
    %157 = arith.addf %154, %156 : vector<8x256xf32>
    %158 = vector.extract_strided_slice %157 {offsets = [0, 0], sizes = [8, 128], strides = [1, 1]} : vector<8x256xf32> to vector<8x128xf32>
    %159 = vector.extract_strided_slice %157 {offsets = [0, 128], sizes = [8, 128], strides = [1, 1]} : vector<8x256xf32> to vector<8x128xf32>
    %cst_57 = arith.constant 5.000000e-01 : f32
    %160 = vector.broadcast %cst_57 : f32 to vector<8x128xf32>
    %161 = arith.mulf %160, %159 : vector<8x128xf32>
    %cst_58 = arith.constant 4.471500e-02 : f32
    %162 = vector.broadcast %cst_58 : f32 to vector<8x128xf32>
    %163 = arith.mulf %162, %159 : vector<8x128xf32>
    %164 = arith.mulf %163, %159 : vector<8x128xf32>
    %165 = arith.mulf %164, %159 : vector<8x128xf32>
    %166 = arith.addf %159, %165 : vector<8x128xf32>
    %cst_59 = arith.constant 0.797884583 : f32
    %167 = vector.broadcast %cst_59 : f32 to vector<8x128xf32>
    %168 = arith.mulf %167, %166 : vector<8x128xf32>
    %169 = math.tanh %168 : vector<8x128xf32>
    %cst_60 = arith.constant 1.000000e+00 : f32
    %170 = vector.broadcast %cst_60 : f32 to vector<8x128xf32>
    %171 = arith.addf %170, %169 : vector<8x128xf32>
    %172 = arith.mulf %161, %171 : vector<8x128xf32>
    %173 = arith.mulf %158, %172 : vector<8x128xf32>
    %174 = arith.truncf %173 : vector<8x128xf32> to vector<8x128xbf16>
    %c0_61 = arith.constant 0 : index
    %c0_62 = arith.constant 0 : index
    %175 = vector.load %arg15[%c0_61, %c0_62] : memref<128x32xbf16, #tpu.memory_space<vmem>>, vector<128x32xbf16>
    %cst_63 = arith.constant dense<0.000000e+00> : vector<8x32xf32>
    %176 = tpu.matmul %174, %175, %cst_63 {dimension_numbers = #tpu.dot_dimension_numbers<[1], [0], [0], [1], [0, 0, 1, 1], [], []>} : vector<8x128xbf16>, vector<128x32xbf16>, vector<8x32xf32> -> vector<8x32xf32>
    %c0_64 = arith.constant 0 : index
    %c0_65 = arith.constant 0 : index
    %177 = vector.load %arg16[%c0_64, %c0_65] : memref<1x32xf32, #tpu.memory_space<vmem>>, vector<1x32xf32>
    %178 = vector.broadcast %177 : vector<1x32xf32> to vector<8x32xf32>
    %179 = arith.addf %176, %178 : vector<8x32xf32>
    %180 = arith.addf %127, %179 : vector<8x32xf32>
    %c0_66 = arith.constant 0 : index
    %c0_67 = arith.constant 0 : index
    %c0_68 = arith.constant 0 : index
    %181 = vector.load %arg1[%c0_66, %c0_67, %c0_68] : memref<1x64x64xf32, #tpu.memory_space<vmem>>, vector<1x64x64xf32>
    %182 = vector.shape_cast %181 : vector<1x64x64xf32> to vector<64x64xf32>
    %c0_69 = arith.constant 0 : index
    %c0_70 = arith.constant 0 : index
    %183 = vector.load %arg3[%c0_69, %c0_70] : memref<64x64xf32, #tpu.memory_space<vmem>>, vector<64x64xf32>
    %184 = arith.addf %182, %183 : vector<64x64xf32>
    %185 = tpu.transpose %184, [1, 0] : vector<64x64xf32> -> vector<64x64xf32>
    %cst_71 = arith.constant dense<0.000000e+00> : vector<64xf32>
    %186 = vector.multi_reduction <add>, %185, %cst_71 [0] : vector<64x64xf32> to vector<64xf32>
    %187 = vector.shape_cast %186 : vector<64xf32> to vector<1x64xf32>
    %c0_72 = arith.constant 0 : index
    %c0_73 = arith.constant 0 : index
    %188 = vector.load %arg19[%c0_72, %c0_73] : memref<64x32xf32, #tpu.memory_space<vmem>>, vector<64x32xf32>
    %cst_74 = arith.constant dense<0.000000e+00> : vector<1x32xf32>
    %189 = tpu.matmul %187, %188, %cst_74 {dimension_numbers = #tpu.dot_dimension_numbers<[1], [0], [0], [1], [0, 0, 1, 1], [], []>} : vector<1x64xf32>, vector<64x32xf32>, vector<1x32xf32> -> vector<1x32xf32>
    %cst_75 = arith.constant 1.280000e+02 : f32
    %190 = vector.broadcast %cst_75 : f32 to vector<1x32xf32>
    %191 = arith.divf %189, %190 : vector<1x32xf32>
    %c0_76 = arith.constant 0 : index
    %c0_77 = arith.constant 0 : index
    %192 = vector.load %arg20[%c0_76, %c0_77] : memref<32x64xf32, #tpu.memory_space<vmem>>, vector<32x64xf32>
    %cst_78 = arith.constant dense<0.000000e+00> : vector<1x64xf32>
    %193 = tpu.matmul %191, %192, %cst_78 {dimension_numbers = #tpu.dot_dimension_numbers<[1], [0], [0], [1], [0, 0, 1, 1], [], []>} : vector<1x32xf32>, vector<32x64xf32>, vector<1x64xf32> -> vector<1x64xf32>
    %194 = vector.broadcast %193 : vector<1x64xf32> to vector<64x64xf32>
    %195 = arith.subf %185, %194 : vector<64x64xf32>
    %196 = arith.mulf %195, %195 : vector<64x64xf32>
    %cst_79 = arith.constant dense<0.000000e+00> : vector<64xf32>
    %197 = vector.multi_reduction <add>, %196, %cst_79 [0] : vector<64x64xf32> to vector<64xf32>
    %198 = vector.shape_cast %197 : vector<64xf32> to vector<1x64xf32>
    %c0_80 = arith.constant 0 : index
    %c0_81 = arith.constant 0 : index
    %199 = vector.load %arg19[%c0_80, %c0_81] : memref<64x32xf32, #tpu.memory_space<vmem>>, vector<64x32xf32>
    %cst_82 = arith.constant dense<0.000000e+00> : vector<1x32xf32>
    %200 = tpu.matmul %198, %199, %cst_82 {dimension_numbers = #tpu.dot_dimension_numbers<[1], [0], [0], [1], [0, 0, 1, 1], [], []>} : vector<1x64xf32>, vector<64x32xf32>, vector<1x32xf32> -> vector<1x32xf32>
    %cst_83 = arith.constant 1.280000e+02 : f32
    %201 = vector.broadcast %cst_83 : f32 to vector<1x32xf32>
    %202 = arith.divf %200, %201 : vector<1x32xf32>
    %cst_84 = arith.constant 9.99999974E-6 : f32
    %203 = vector.broadcast %cst_84 : f32 to vector<1x32xf32>
    %204 = arith.addf %202, %203 : vector<1x32xf32>
    %205 = math.rsqrt %204 : vector<1x32xf32>
    %c0_85 = arith.constant 0 : index
    %c0_86 = arith.constant 0 : index
    %206 = vector.load %arg20[%c0_85, %c0_86] : memref<32x64xf32, #tpu.memory_space<vmem>>, vector<32x64xf32>
    %cst_87 = arith.constant dense<0.000000e+00> : vector<1x64xf32>
    %207 = tpu.matmul %205, %206, %cst_87 {dimension_numbers = #tpu.dot_dimension_numbers<[1], [0], [0], [1], [0, 0, 1, 1], [], []>} : vector<1x32xf32>, vector<32x64xf32>, vector<1x64xf32> -> vector<1x64xf32>
    %208 = vector.broadcast %207 : vector<1x64xf32> to vector<64x64xf32>
    %209 = arith.mulf %195, %208 : vector<64x64xf32>
    %c0_88 = arith.constant 0 : index
    %c0_89 = arith.constant 0 : index
    %210 = vector.load %arg17[%c0_88, %c0_89] : memref<1x64xf32, #tpu.memory_space<vmem>>, vector<1x64xf32>
    %211 = vector.broadcast %210 : vector<1x64xf32> to vector<64x64xf32>
    %212 = arith.mulf %209, %211 : vector<64x64xf32>
    %c0_90 = arith.constant 0 : index
    %c0_91 = arith.constant 0 : index
    %213 = vector.load %arg18[%c0_90, %c0_91] : memref<1x64xf32, #tpu.memory_space<vmem>>, vector<1x64xf32>
    %214 = vector.broadcast %213 : vector<1x64xf32> to vector<64x64xf32>
    %215 = arith.addf %212, %214 : vector<64x64xf32>
    %216 = arith.truncf %215 : vector<64x64xf32> to vector<64x64xbf16>
    %c0_92 = arith.constant 0 : index
    %c0_93 = arith.constant 0 : index
    %217 = vector.load %arg21[%c0_92, %c0_93] : memref<64x64xbf16, #tpu.memory_space<vmem>>, vector<64x64xbf16>
    %cst_94 = arith.constant dense<0.000000e+00> : vector<64x64xf32>
    %218 = tpu.matmul %216, %217, %cst_94 {dimension_numbers = #tpu.dot_dimension_numbers<[1], [0], [0], [1], [0, 0, 1, 1], [], []>} : vector<64x64xbf16>, vector<64x64xbf16>, vector<64x64xf32> -> vector<64x64xf32>
    %c0_95 = arith.constant 0 : index
    %c0_96 = arith.constant 0 : index
    %219 = vector.load %arg22[%c0_95, %c0_96] : memref<1x64xf32, #tpu.memory_space<vmem>>, vector<1x64xf32>
    %220 = vector.broadcast %219 : vector<1x64xf32> to vector<64x64xf32>
    %221 = arith.addf %218, %220 : vector<64x64xf32>
    %cst_97 = arith.constant dense<0.000000e+00> : vector<64xf32>
    %222 = vector.multi_reduction <add>, %221, %cst_97 [1] : vector<64x64xf32> to vector<64xf32>
    %223 = vector.shape_cast %222 : vector<64xf32> to vector<64x1xf32>
    %cst_98 = arith.constant 6.400000e+01 : f32
    %224 = vector.broadcast %cst_98 : f32 to vector<64x1xf32>
    %225 = arith.divf %223, %224 : vector<64x1xf32>
    %226 = vector.broadcast %225 : vector<64x1xf32> to vector<64x64xf32>
    %227 = arith.subf %221, %226 : vector<64x64xf32>
    %228 = arith.mulf %227, %227 : vector<64x64xf32>
    %cst_99 = arith.constant dense<0.000000e+00> : vector<64xf32>
    %229 = vector.multi_reduction <add>, %228, %cst_99 [1] : vector<64x64xf32> to vector<64xf32>
    %230 = vector.shape_cast %229 : vector<64xf32> to vector<64x1xf32>
    %cst_100 = arith.constant 6.400000e+01 : f32
    %231 = vector.broadcast %cst_100 : f32 to vector<64x1xf32>
    %232 = arith.divf %230, %231 : vector<64x1xf32>
    %233 = vector.broadcast %225 : vector<64x1xf32> to vector<64x64xf32>
    %234 = arith.subf %221, %233 : vector<64x64xf32>
    %cst_101 = arith.constant 9.99999974E-6 : f32
    %235 = vector.broadcast %cst_101 : f32 to vector<64x1xf32>
    %236 = arith.addf %232, %235 : vector<64x1xf32>
    %237 = math.rsqrt %236 : vector<64x1xf32>
    %238 = vector.broadcast %237 : vector<64x1xf32> to vector<64x64xf32>
    %239 = arith.mulf %234, %238 : vector<64x64xf32>
    %c0_102 = arith.constant 0 : index
    %c0_103 = arith.constant 0 : index
    %240 = vector.load %arg23[%c0_102, %c0_103] : memref<1x64xf32, #tpu.memory_space<vmem>>, vector<1x64xf32>
    %241 = vector.broadcast %240 : vector<1x64xf32> to vector<64x64xf32>
    %242 = arith.mulf %239, %241 : vector<64x64xf32>
    %c0_104 = arith.constant 0 : index
    %c0_105 = arith.constant 0 : index
    %243 = vector.load %arg24[%c0_104, %c0_105] : memref<1x64xf32, #tpu.memory_space<vmem>>, vector<1x64xf32>
    %244 = vector.broadcast %243 : vector<1x64xf32> to vector<64x64xf32>
    %245 = arith.addf %242, %244 : vector<64x64xf32>
    %246 = arith.truncf %245 : vector<64x64xf32> to vector<64x64xbf16>
    %c0_106 = arith.constant 0 : index
    %c0_107 = arith.constant 0 : index
    %247 = vector.load %arg25[%c0_106, %c0_107] : memref<64x192xbf16, #tpu.memory_space<vmem>>, vector<64x192xbf16>
    %cst_108 = arith.constant dense<0.000000e+00> : vector<64x192xf32>
    %248 = tpu.matmul %246, %247, %cst_108 {dimension_numbers = #tpu.dot_dimension_numbers<[1], [0], [0], [1], [0, 0, 1, 1], [], []>} : vector<64x64xbf16>, vector<64x192xbf16>, vector<64x192xf32> -> vector<64x192xf32>
    %c0_109 = arith.constant 0 : index
    %c0_110 = arith.constant 0 : index
    %249 = vector.load %arg26[%c0_109, %c0_110] : memref<1x192xf32, #tpu.memory_space<vmem>>, vector<1x192xf32>
    %250 = vector.broadcast %249 : vector<1x192xf32> to vector<64x192xf32>
    %251 = arith.addf %248, %250 : vector<64x192xf32>
    %252 = vector.extract_strided_slice %251 {offsets = [0, 0], sizes = [64, 64], strides = [1, 1]} : vector<64x192xf32> to vector<64x64xf32>
    %253 = vector.extract_strided_slice %251 {offsets = [0, 64], sizes = [64, 64], strides = [1, 1]} : vector<64x192xf32> to vector<64x64xf32>
    %254 = vector.extract_strided_slice %251 {offsets = [0, 128], sizes = [64, 64], strides = [1, 1]} : vector<64x192xf32> to vector<64x64xf32>
    %cst_111 = arith.constant 2.500000e-01 : f32
    %255 = vector.broadcast %cst_111 : f32 to vector<64x64xf32>
    %256 = arith.mulf %252, %255 : vector<64x64xf32>
    %257 = arith.truncf %256 : vector<64x64xf32> to vector<64x64xbf16>
    %258 = arith.truncf %253 : vector<64x64xf32> to vector<64x64xbf16>
    %259 = arith.truncf %254 : vector<64x64xf32> to vector<64x64xbf16>
    %c0_112 = arith.constant 0 : index
    %c0_113 = arith.constant 0 : index
    %260 = vector.load %arg27[%c0_112, %c0_113] : memref<64x64xbf16, #tpu.memory_space<vmem>>, vector<64x64xbf16>
    %cst_114 = arith.constant 0.000000e+00 : f32
    %261 = vector.broadcast %cst_114 : f32 to vector<64x64xf32>
    %262 = vector.extract_strided_slice %257 {offsets = [0, 0], sizes = [64, 16], strides = [1, 1]} : vector<64x64xbf16> to vector<64x16xbf16>
    %263 = vector.extract_strided_slice %258 {offsets = [0, 0], sizes = [64, 16], strides = [1, 1]} : vector<64x64xbf16> to vector<64x16xbf16>
    %264 = vector.extract_strided_slice %259 {offsets = [0, 0], sizes = [64, 16], strides = [1, 1]} : vector<64x64xbf16> to vector<64x16xbf16>
    %cst_115 = arith.constant dense<0.000000e+00> : vector<64x64xf32>
    %265 = tpu.matmul %262, %263, %cst_115 {dimension_numbers = #tpu.dot_dimension_numbers<[1], [1], [0], [0], [0, 0, 1, 0], [], []>} : vector<64x16xbf16>, vector<64x16xbf16>, vector<64x64xf32> -> vector<64x64xf32>
    %cst_116 = arith.constant dense<0xFF800000> : vector<64xf32>
    %266 = vector.multi_reduction <maximumf>, %265, %cst_116 [1] : vector<64x64xf32> to vector<64xf32>
    %267 = vector.shape_cast %266 : vector<64xf32> to vector<64x1xf32>
    %268 = vector.broadcast %267 : vector<64x1xf32> to vector<64x64xf32>
    %269 = arith.subf %265, %268 : vector<64x64xf32>
    %270 = math.exp %269 : vector<64x64xf32>
    %cst_117 = arith.constant dense<0.000000e+00> : vector<64xf32>
    %271 = vector.multi_reduction <add>, %270, %cst_117 [1] : vector<64x64xf32> to vector<64xf32>
    %272 = vector.shape_cast %271 : vector<64xf32> to vector<64x1xf32>
    %273 = tpu.reciprocal %272 {approx = true} : vector<64x1xf32> -> vector<64x1xf32>
    %274 = vector.broadcast %273 : vector<64x1xf32> to vector<64x64xf32>
    %275 = arith.mulf %270, %274 : vector<64x64xf32>
    %276 = arith.truncf %275 : vector<64x64xf32> to vector<64x64xbf16>
    %cst_118 = arith.constant dense<0.000000e+00> : vector<64x16xf32>
    %277 = tpu.matmul %276, %264, %cst_118 {dimension_numbers = #tpu.dot_dimension_numbers<[1], [0], [0], [1], [0, 0, 1, 1], [], []>} : vector<64x64xbf16>, vector<64x16xbf16>, vector<64x16xf32> -> vector<64x16xf32>
    %278 = arith.truncf %277 : vector<64x16xf32> to vector<64x16xbf16>
    %279 = vector.extract_strided_slice %260 {offsets = [0, 0], sizes = [16, 64], strides = [1, 1]} : vector<64x64xbf16> to vector<16x64xbf16>
    %cst_119 = arith.constant dense<0.000000e+00> : vector<64x64xf32>
    %280 = tpu.matmul %278, %279, %cst_119 {dimension_numbers = #tpu.dot_dimension_numbers<[1], [0], [0], [1], [0, 0, 1, 1], [], []>} : vector<64x16xbf16>, vector<16x64xbf16>, vector<64x64xf32> -> vector<64x64xf32>
    %281 = arith.addf %261, %280 : vector<64x64xf32>
    %282 = vector.extract_strided_slice %257 {offsets = [0, 16], sizes = [64, 16], strides = [1, 1]} : vector<64x64xbf16> to vector<64x16xbf16>
    %283 = vector.extract_strided_slice %258 {offsets = [0, 16], sizes = [64, 16], strides = [1, 1]} : vector<64x64xbf16> to vector<64x16xbf16>
    %284 = vector.extract_strided_slice %259 {offsets = [0, 16], sizes = [64, 16], strides = [1, 1]} : vector<64x64xbf16> to vector<64x16xbf16>
    %cst_120 = arith.constant dense<0.000000e+00> : vector<64x64xf32>
    %285 = tpu.matmul %282, %283, %cst_120 {dimension_numbers = #tpu.dot_dimension_numbers<[1], [1], [0], [0], [0, 0, 1, 0], [], []>} : vector<64x16xbf16>, vector<64x16xbf16>, vector<64x64xf32> -> vector<64x64xf32>
    %cst_121 = arith.constant dense<0xFF800000> : vector<64xf32>
    %286 = vector.multi_reduction <maximumf>, %285, %cst_121 [1] : vector<64x64xf32> to vector<64xf32>
    %287 = vector.shape_cast %286 : vector<64xf32> to vector<64x1xf32>
    %288 = vector.broadcast %287 : vector<64x1xf32> to vector<64x64xf32>
    %289 = arith.subf %285, %288 : vector<64x64xf32>
    %290 = math.exp %289 : vector<64x64xf32>
    %cst_122 = arith.constant dense<0.000000e+00> : vector<64xf32>
    %291 = vector.multi_reduction <add>, %290, %cst_122 [1] : vector<64x64xf32> to vector<64xf32>
    %292 = vector.shape_cast %291 : vector<64xf32> to vector<64x1xf32>
    %293 = tpu.reciprocal %292 {approx = true} : vector<64x1xf32> -> vector<64x1xf32>
    %294 = vector.broadcast %293 : vector<64x1xf32> to vector<64x64xf32>
    %295 = arith.mulf %290, %294 : vector<64x64xf32>
    %296 = arith.truncf %295 : vector<64x64xf32> to vector<64x64xbf16>
    %cst_123 = arith.constant dense<0.000000e+00> : vector<64x16xf32>
    %297 = tpu.matmul %296, %284, %cst_123 {dimension_numbers = #tpu.dot_dimension_numbers<[1], [0], [0], [1], [0, 0, 1, 1], [], []>} : vector<64x64xbf16>, vector<64x16xbf16>, vector<64x16xf32> -> vector<64x16xf32>
    %298 = arith.truncf %297 : vector<64x16xf32> to vector<64x16xbf16>
    %299 = vector.extract_strided_slice %260 {offsets = [16, 0], sizes = [16, 64], strides = [1, 1]} : vector<64x64xbf16> to vector<16x64xbf16>
    %cst_124 = arith.constant dense<0.000000e+00> : vector<64x64xf32>
    %300 = tpu.matmul %298, %299, %cst_124 {dimension_numbers = #tpu.dot_dimension_numbers<[1], [0], [0], [1], [0, 0, 1, 1], [], []>} : vector<64x16xbf16>, vector<16x64xbf16>, vector<64x64xf32> -> vector<64x64xf32>
    %301 = arith.addf %281, %300 : vector<64x64xf32>
    %302 = vector.extract_strided_slice %257 {offsets = [0, 32], sizes = [64, 16], strides = [1, 1]} : vector<64x64xbf16> to vector<64x16xbf16>
    %303 = vector.extract_strided_slice %258 {offsets = [0, 32], sizes = [64, 16], strides = [1, 1]} : vector<64x64xbf16> to vector<64x16xbf16>
    %304 = vector.extract_strided_slice %259 {offsets = [0, 32], sizes = [64, 16], strides = [1, 1]} : vector<64x64xbf16> to vector<64x16xbf16>
    %cst_125 = arith.constant dense<0.000000e+00> : vector<64x64xf32>
    %305 = tpu.matmul %302, %303, %cst_125 {dimension_numbers = #tpu.dot_dimension_numbers<[1], [1], [0], [0], [0, 0, 1, 0], [], []>} : vector<64x16xbf16>, vector<64x16xbf16>, vector<64x64xf32> -> vector<64x64xf32>
    %cst_126 = arith.constant dense<0xFF800000> : vector<64xf32>
    %306 = vector.multi_reduction <maximumf>, %305, %cst_126 [1] : vector<64x64xf32> to vector<64xf32>
    %307 = vector.shape_cast %306 : vector<64xf32> to vector<64x1xf32>
    %308 = vector.broadcast %307 : vector<64x1xf32> to vector<64x64xf32>
    %309 = arith.subf %305, %308 : vector<64x64xf32>
    %310 = math.exp %309 : vector<64x64xf32>
    %cst_127 = arith.constant dense<0.000000e+00> : vector<64xf32>
    %311 = vector.multi_reduction <add>, %310, %cst_127 [1] : vector<64x64xf32> to vector<64xf32>
    %312 = vector.shape_cast %311 : vector<64xf32> to vector<64x1xf32>
    %313 = tpu.reciprocal %312 {approx = true} : vector<64x1xf32> -> vector<64x1xf32>
    %314 = vector.broadcast %313 : vector<64x1xf32> to vector<64x64xf32>
    %315 = arith.mulf %310, %314 : vector<64x64xf32>
    %316 = arith.truncf %315 : vector<64x64xf32> to vector<64x64xbf16>
    %cst_128 = arith.constant dense<0.000000e+00> : vector<64x16xf32>
    %317 = tpu.matmul %316, %304, %cst_128 {dimension_numbers = #tpu.dot_dimension_numbers<[1], [0], [0], [1], [0, 0, 1, 1], [], []>} : vector<64x64xbf16>, vector<64x16xbf16>, vector<64x16xf32> -> vector<64x16xf32>
    %318 = arith.truncf %317 : vector<64x16xf32> to vector<64x16xbf16>
    %319 = vector.extract_strided_slice %260 {offsets = [32, 0], sizes = [16, 64], strides = [1, 1]} : vector<64x64xbf16> to vector<16x64xbf16>
    %cst_129 = arith.constant dense<0.000000e+00> : vector<64x64xf32>
    %320 = tpu.matmul %318, %319, %cst_129 {dimension_numbers = #tpu.dot_dimension_numbers<[1], [0], [0], [1], [0, 0, 1, 1], [], []>} : vector<64x16xbf16>, vector<16x64xbf16>, vector<64x64xf32> -> vector<64x64xf32>
    %321 = arith.addf %301, %320 : vector<64x64xf32>
    %322 = vector.extract_strided_slice %257 {offsets = [0, 48], sizes = [64, 16], strides = [1, 1]} : vector<64x64xbf16> to vector<64x16xbf16>
    %323 = vector.extract_strided_slice %258 {offsets = [0, 48], sizes = [64, 16], strides = [1, 1]} : vector<64x64xbf16> to vector<64x16xbf16>
    %324 = vector.extract_strided_slice %259 {offsets = [0, 48], sizes = [64, 16], strides = [1, 1]} : vector<64x64xbf16> to vector<64x16xbf16>
    %cst_130 = arith.constant dense<0.000000e+00> : vector<64x64xf32>
    %325 = tpu.matmul %322, %323, %cst_130 {dimension_numbers = #tpu.dot_dimension_numbers<[1], [1], [0], [0], [0, 0, 1, 0], [], []>} : vector<64x16xbf16>, vector<64x16xbf16>, vector<64x64xf32> -> vector<64x64xf32>
    %cst_131 = arith.constant dense<0xFF800000> : vector<64xf32>
    %326 = vector.multi_reduction <maximumf>, %325, %cst_131 [1] : vector<64x64xf32> to vector<64xf32>
    %327 = vector.shape_cast %326 : vector<64xf32> to vector<64x1xf32>
    %328 = vector.broadcast %327 : vector<64x1xf32> to vector<64x64xf32>
    %329 = arith.subf %325, %328 : vector<64x64xf32>
    %330 = math.exp %329 : vector<64x64xf32>
    %cst_132 = arith.constant dense<0.000000e+00> : vector<64xf32>
    %331 = vector.multi_reduction <add>, %330, %cst_132 [1] : vector<64x64xf32> to vector<64xf32>
    %332 = vector.shape_cast %331 : vector<64xf32> to vector<64x1xf32>
    %333 = tpu.reciprocal %332 {approx = true} : vector<64x1xf32> -> vector<64x1xf32>
    %334 = vector.broadcast %333 : vector<64x1xf32> to vector<64x64xf32>
    %335 = arith.mulf %330, %334 : vector<64x64xf32>
    %336 = arith.truncf %335 : vector<64x64xf32> to vector<64x64xbf16>
    %cst_133 = arith.constant dense<0.000000e+00> : vector<64x16xf32>
    %337 = tpu.matmul %336, %324, %cst_133 {dimension_numbers = #tpu.dot_dimension_numbers<[1], [0], [0], [1], [0, 0, 1, 1], [], []>} : vector<64x64xbf16>, vector<64x16xbf16>, vector<64x16xf32> -> vector<64x16xf32>
    %338 = arith.truncf %337 : vector<64x16xf32> to vector<64x16xbf16>
    %339 = vector.extract_strided_slice %260 {offsets = [48, 0], sizes = [16, 64], strides = [1, 1]} : vector<64x64xbf16> to vector<16x64xbf16>
    %cst_134 = arith.constant dense<0.000000e+00> : vector<64x64xf32>
    %340 = tpu.matmul %338, %339, %cst_134 {dimension_numbers = #tpu.dot_dimension_numbers<[1], [0], [0], [1], [0, 0, 1, 1], [], []>} : vector<64x16xbf16>, vector<16x64xbf16>, vector<64x64xf32> -> vector<64x64xf32>
    %341 = arith.addf %321, %340 : vector<64x64xf32>
    %342 = arith.addf %221, %341 : vector<64x64xf32>
    %c0_135 = arith.constant 0 : index
    %c0_136 = arith.constant 0 : index
    %343 = vector.load %arg28[%c0_135, %c0_136] : memref<1x64xf32, #tpu.memory_space<vmem>>, vector<1x64xf32>
    %344 = vector.broadcast %343 : vector<1x64xf32> to vector<64x64xf32>
    %345 = arith.addf %342, %344 : vector<64x64xf32>
    %cst_137 = arith.constant dense<0.000000e+00> : vector<64xf32>
    %346 = vector.multi_reduction <add>, %345, %cst_137 [1] : vector<64x64xf32> to vector<64xf32>
    %347 = vector.shape_cast %346 : vector<64xf32> to vector<64x1xf32>
    %cst_138 = arith.constant 6.400000e+01 : f32
    %348 = vector.broadcast %cst_138 : f32 to vector<64x1xf32>
    %349 = arith.divf %347, %348 : vector<64x1xf32>
    %350 = vector.broadcast %349 : vector<64x1xf32> to vector<64x64xf32>
    %351 = arith.subf %345, %350 : vector<64x64xf32>
    %352 = arith.mulf %351, %351 : vector<64x64xf32>
    %cst_139 = arith.constant dense<0.000000e+00> : vector<64xf32>
    %353 = vector.multi_reduction <add>, %352, %cst_139 [1] : vector<64x64xf32> to vector<64xf32>
    %354 = vector.shape_cast %353 : vector<64xf32> to vector<64x1xf32>
    %cst_140 = arith.constant 6.400000e+01 : f32
    %355 = vector.broadcast %cst_140 : f32 to vector<64x1xf32>
    %356 = arith.divf %354, %355 : vector<64x1xf32>
    %357 = vector.broadcast %349 : vector<64x1xf32> to vector<64x64xf32>
    %358 = arith.subf %345, %357 : vector<64x64xf32>
    %cst_141 = arith.constant 9.99999974E-6 : f32
    %359 = vector.broadcast %cst_141 : f32 to vector<64x1xf32>
    %360 = arith.addf %356, %359 : vector<64x1xf32>
    %361 = math.rsqrt %360 : vector<64x1xf32>
    %362 = vector.broadcast %361 : vector<64x1xf32> to vector<64x64xf32>
    %363 = arith.mulf %358, %362 : vector<64x64xf32>
    %c0_142 = arith.constant 0 : index
    %c0_143 = arith.constant 0 : index
    %364 = vector.load %arg29[%c0_142, %c0_143] : memref<1x64xf32, #tpu.memory_space<vmem>>, vector<1x64xf32>
    %365 = vector.broadcast %364 : vector<1x64xf32> to vector<64x64xf32>
    %366 = arith.mulf %363, %365 : vector<64x64xf32>
    %c0_144 = arith.constant 0 : index
    %c0_145 = arith.constant 0 : index
    %367 = vector.load %arg30[%c0_144, %c0_145] : memref<1x64xf32, #tpu.memory_space<vmem>>, vector<1x64xf32>
    %368 = vector.broadcast %367 : vector<1x64xf32> to vector<64x64xf32>
    %369 = arith.addf %366, %368 : vector<64x64xf32>
    %370 = arith.truncf %369 : vector<64x64xf32> to vector<64x64xbf16>
    %c0_146 = arith.constant 0 : index
    %c0_147 = arith.constant 0 : index
    %371 = vector.load %arg31[%c0_146, %c0_147] : memref<64x64xbf16, #tpu.memory_space<vmem>>, vector<64x64xbf16>
    %cst_148 = arith.constant dense<0.000000e+00> : vector<64x64xf32>
    %372 = tpu.matmul %370, %371, %cst_148 {dimension_numbers = #tpu.dot_dimension_numbers<[1], [0], [0], [1], [0, 0, 1, 1], [], []>} : vector<64x64xbf16>, vector<64x64xbf16>, vector<64x64xf32> -> vector<64x64xf32>
    %c0_149 = arith.constant 0 : index
    %c0_150 = arith.constant 0 : index
    %373 = vector.load %arg32[%c0_149, %c0_150] : memref<1x64xf32, #tpu.memory_space<vmem>>, vector<1x64xf32>
    %374 = vector.broadcast %373 : vector<1x64xf32> to vector<64x64xf32>
    %375 = arith.addf %372, %374 : vector<64x64xf32>
    %376 = arith.truncf %180 : vector<8x32xf32> to vector<8x32xbf16>
    %c0_151 = arith.constant 0 : index
    %c0_152 = arith.constant 0 : index
    %377 = vector.load %arg33[%c0_151, %c0_152] : memref<32x128xbf16, #tpu.memory_space<vmem>>, vector<32x128xbf16>
    %cst_153 = arith.constant dense<0.000000e+00> : vector<8x128xf32>
    %378 = tpu.matmul %376, %377, %cst_153 {dimension_numbers = #tpu.dot_dimension_numbers<[1], [0], [0], [1], [0, 0, 1, 1], [], []>} : vector<8x32xbf16>, vector<32x128xbf16>, vector<8x128xf32> -> vector<8x128xf32>
    %c0_154 = arith.constant 0 : index
    %c0_155 = arith.constant 0 : index
    %379 = vector.load %arg34[%c0_154, %c0_155] : memref<1x128xf32, #tpu.memory_space<vmem>>, vector<1x128xf32>
    %380 = vector.broadcast %379 : vector<1x128xf32> to vector<8x128xf32>
    %381 = arith.addf %378, %380 : vector<8x128xf32>
    %382 = vector.extract_strided_slice %381 {offsets = [0, 0], sizes = [8, 64], strides = [1, 1]} : vector<8x128xf32> to vector<8x64xf32>
    %383 = vector.extract_strided_slice %381 {offsets = [0, 64], sizes = [8, 64], strides = [1, 1]} : vector<8x128xf32> to vector<8x64xf32>
    %cst_156 = arith.constant 2.500000e-01 : f32
    %384 = vector.broadcast %cst_156 : f32 to vector<64x64xf32>
    %385 = arith.mulf %375, %384 : vector<64x64xf32>
    %386 = arith.truncf %385 : vector<64x64xf32> to vector<64x64xbf16>
    %387 = arith.truncf %382 : vector<8x64xf32> to vector<8x64xbf16>
    %388 = arith.truncf %383 : vector<8x64xf32> to vector<8x64xbf16>
    %c0_157 = arith.constant 0 : index
    %c0_158 = arith.constant 0 : index
    %389 = vector.load %arg35[%c0_157, %c0_158] : memref<64x64xbf16, #tpu.memory_space<vmem>>, vector<64x64xbf16>
    %cst_159 = arith.constant 0.000000e+00 : f32
    %390 = vector.broadcast %cst_159 : f32 to vector<64x64xf32>
    %391 = vector.extract_strided_slice %386 {offsets = [0, 0], sizes = [64, 16], strides = [1, 1]} : vector<64x64xbf16> to vector<64x16xbf16>
    %392 = vector.extract_strided_slice %387 {offsets = [0, 0], sizes = [8, 16], strides = [1, 1]} : vector<8x64xbf16> to vector<8x16xbf16>
    %393 = vector.extract_strided_slice %388 {offsets = [0, 0], sizes = [8, 16], strides = [1, 1]} : vector<8x64xbf16> to vector<8x16xbf16>
    %cst_160 = arith.constant dense<0.000000e+00> : vector<64x8xf32>
    %394 = tpu.matmul %391, %392, %cst_160 {dimension_numbers = #tpu.dot_dimension_numbers<[1], [1], [0], [0], [0, 0, 1, 0], [], []>} : vector<64x16xbf16>, vector<8x16xbf16>, vector<64x8xf32> -> vector<64x8xf32>
    %cst_161 = arith.constant dense<0xFF800000> : vector<64xf32>
    %395 = vector.multi_reduction <maximumf>, %394, %cst_161 [1] : vector<64x8xf32> to vector<64xf32>
    %396 = vector.shape_cast %395 : vector<64xf32> to vector<64x1xf32>
    %397 = vector.broadcast %396 : vector<64x1xf32> to vector<64x8xf32>
    %398 = arith.subf %394, %397 : vector<64x8xf32>
    %399 = math.exp %398 : vector<64x8xf32>
    %cst_162 = arith.constant dense<0.000000e+00> : vector<64xf32>
    %400 = vector.multi_reduction <add>, %399, %cst_162 [1] : vector<64x8xf32> to vector<64xf32>
    %401 = vector.shape_cast %400 : vector<64xf32> to vector<64x1xf32>
    %402 = tpu.reciprocal %401 {approx = true} : vector<64x1xf32> -> vector<64x1xf32>
    %403 = vector.broadcast %402 : vector<64x1xf32> to vector<64x8xf32>
    %404 = arith.mulf %399, %403 : vector<64x8xf32>
    %405 = arith.truncf %404 : vector<64x8xf32> to vector<64x8xbf16>
    %cst_163 = arith.constant dense<0.000000e+00> : vector<64x16xf32>
    %406 = tpu.matmul %405, %393, %cst_163 {dimension_numbers = #tpu.dot_dimension_numbers<[1], [0], [0], [1], [0, 0, 1, 1], [], []>} : vector<64x8xbf16>, vector<8x16xbf16>, vector<64x16xf32> -> vector<64x16xf32>
    %407 = arith.truncf %406 : vector<64x16xf32> to vector<64x16xbf16>
    %408 = vector.extract_strided_slice %389 {offsets = [0, 0], sizes = [16, 64], strides = [1, 1]} : vector<64x64xbf16> to vector<16x64xbf16>
    %cst_164 = arith.constant dense<0.000000e+00> : vector<64x64xf32>
    %409 = tpu.matmul %407, %408, %cst_164 {dimension_numbers = #tpu.dot_dimension_numbers<[1], [0], [0], [1], [0, 0, 1, 1], [], []>} : vector<64x16xbf16>, vector<16x64xbf16>, vector<64x64xf32> -> vector<64x64xf32>
    %410 = arith.addf %390, %409 : vector<64x64xf32>
    %411 = vector.extract_strided_slice %386 {offsets = [0, 16], sizes = [64, 16], strides = [1, 1]} : vector<64x64xbf16> to vector<64x16xbf16>
    %412 = vector.extract_strided_slice %387 {offsets = [0, 16], sizes = [8, 16], strides = [1, 1]} : vector<8x64xbf16> to vector<8x16xbf16>
    %413 = vector.extract_strided_slice %388 {offsets = [0, 16], sizes = [8, 16], strides = [1, 1]} : vector<8x64xbf16> to vector<8x16xbf16>
    %cst_165 = arith.constant dense<0.000000e+00> : vector<64x8xf32>
    %414 = tpu.matmul %411, %412, %cst_165 {dimension_numbers = #tpu.dot_dimension_numbers<[1], [1], [0], [0], [0, 0, 1, 0], [], []>} : vector<64x16xbf16>, vector<8x16xbf16>, vector<64x8xf32> -> vector<64x8xf32>
    %cst_166 = arith.constant dense<0xFF800000> : vector<64xf32>
    %415 = vector.multi_reduction <maximumf>, %414, %cst_166 [1] : vector<64x8xf32> to vector<64xf32>
    %416 = vector.shape_cast %415 : vector<64xf32> to vector<64x1xf32>
    %417 = vector.broadcast %416 : vector<64x1xf32> to vector<64x8xf32>
    %418 = arith.subf %414, %417 : vector<64x8xf32>
    %419 = math.exp %418 : vector<64x8xf32>
    %cst_167 = arith.constant dense<0.000000e+00> : vector<64xf32>
    %420 = vector.multi_reduction <add>, %419, %cst_167 [1] : vector<64x8xf32> to vector<64xf32>
    %421 = vector.shape_cast %420 : vector<64xf32> to vector<64x1xf32>
    %422 = tpu.reciprocal %421 {approx = true} : vector<64x1xf32> -> vector<64x1xf32>
    %423 = vector.broadcast %422 : vector<64x1xf32> to vector<64x8xf32>
    %424 = arith.mulf %419, %423 : vector<64x8xf32>
    %425 = arith.truncf %424 : vector<64x8xf32> to vector<64x8xbf16>
    %cst_168 = arith.constant dense<0.000000e+00> : vector<64x16xf32>
    %426 = tpu.matmul %425, %413, %cst_168 {dimension_numbers = #tpu.dot_dimension_numbers<[1], [0], [0], [1], [0, 0, 1, 1], [], []>} : vector<64x8xbf16>, vector<8x16xbf16>, vector<64x16xf32> -> vector<64x16xf32>
    %427 = arith.truncf %426 : vector<64x16xf32> to vector<64x16xbf16>
    %428 = vector.extract_strided_slice %389 {offsets = [16, 0], sizes = [16, 64], strides = [1, 1]} : vector<64x64xbf16> to vector<16x64xbf16>
    %cst_169 = arith.constant dense<0.000000e+00> : vector<64x64xf32>
    %429 = tpu.matmul %427, %428, %cst_169 {dimension_numbers = #tpu.dot_dimension_numbers<[1], [0], [0], [1], [0, 0, 1, 1], [], []>} : vector<64x16xbf16>, vector<16x64xbf16>, vector<64x64xf32> -> vector<64x64xf32>
    %430 = arith.addf %410, %429 : vector<64x64xf32>
    %431 = vector.extract_strided_slice %386 {offsets = [0, 32], sizes = [64, 16], strides = [1, 1]} : vector<64x64xbf16> to vector<64x16xbf16>
    %432 = vector.extract_strided_slice %387 {offsets = [0, 32], sizes = [8, 16], strides = [1, 1]} : vector<8x64xbf16> to vector<8x16xbf16>
    %433 = vector.extract_strided_slice %388 {offsets = [0, 32], sizes = [8, 16], strides = [1, 1]} : vector<8x64xbf16> to vector<8x16xbf16>
    %cst_170 = arith.constant dense<0.000000e+00> : vector<64x8xf32>
    %434 = tpu.matmul %431, %432, %cst_170 {dimension_numbers = #tpu.dot_dimension_numbers<[1], [1], [0], [0], [0, 0, 1, 0], [], []>} : vector<64x16xbf16>, vector<8x16xbf16>, vector<64x8xf32> -> vector<64x8xf32>
    %cst_171 = arith.constant dense<0xFF800000> : vector<64xf32>
    %435 = vector.multi_reduction <maximumf>, %434, %cst_171 [1] : vector<64x8xf32> to vector<64xf32>
    %436 = vector.shape_cast %435 : vector<64xf32> to vector<64x1xf32>
    %437 = vector.broadcast %436 : vector<64x1xf32> to vector<64x8xf32>
    %438 = arith.subf %434, %437 : vector<64x8xf32>
    %439 = math.exp %438 : vector<64x8xf32>
    %cst_172 = arith.constant dense<0.000000e+00> : vector<64xf32>
    %440 = vector.multi_reduction <add>, %439, %cst_172 [1] : vector<64x8xf32> to vector<64xf32>
    %441 = vector.shape_cast %440 : vector<64xf32> to vector<64x1xf32>
    %442 = tpu.reciprocal %441 {approx = true} : vector<64x1xf32> -> vector<64x1xf32>
    %443 = vector.broadcast %442 : vector<64x1xf32> to vector<64x8xf32>
    %444 = arith.mulf %439, %443 : vector<64x8xf32>
    %445 = arith.truncf %444 : vector<64x8xf32> to vector<64x8xbf16>
    %cst_173 = arith.constant dense<0.000000e+00> : vector<64x16xf32>
    %446 = tpu.matmul %445, %433, %cst_173 {dimension_numbers = #tpu.dot_dimension_numbers<[1], [0], [0], [1], [0, 0, 1, 1], [], []>} : vector<64x8xbf16>, vector<8x16xbf16>, vector<64x16xf32> -> vector<64x16xf32>
    %447 = arith.truncf %446 : vector<64x16xf32> to vector<64x16xbf16>
    %448 = vector.extract_strided_slice %389 {offsets = [32, 0], sizes = [16, 64], strides = [1, 1]} : vector<64x64xbf16> to vector<16x64xbf16>
    %cst_174 = arith.constant dense<0.000000e+00> : vector<64x64xf32>
    %449 = tpu.matmul %447, %448, %cst_174 {dimension_numbers = #tpu.dot_dimension_numbers<[1], [0], [0], [1], [0, 0, 1, 1], [], []>} : vector<64x16xbf16>, vector<16x64xbf16>, vector<64x64xf32> -> vector<64x64xf32>
    %450 = arith.addf %430, %449 : vector<64x64xf32>
    %451 = vector.extract_strided_slice %386 {offsets = [0, 48], sizes = [64, 16], strides = [1, 1]} : vector<64x64xbf16> to vector<64x16xbf16>
    %452 = vector.extract_strided_slice %387 {offsets = [0, 48], sizes = [8, 16], strides = [1, 1]} : vector<8x64xbf16> to vector<8x16xbf16>
    %453 = vector.extract_strided_slice %388 {offsets = [0, 48], sizes = [8, 16], strides = [1, 1]} : vector<8x64xbf16> to vector<8x16xbf16>
    %cst_175 = arith.constant dense<0.000000e+00> : vector<64x8xf32>
    %454 = tpu.matmul %451, %452, %cst_175 {dimension_numbers = #tpu.dot_dimension_numbers<[1], [1], [0], [0], [0, 0, 1, 0], [], []>} : vector<64x16xbf16>, vector<8x16xbf16>, vector<64x8xf32> -> vector<64x8xf32>
    %cst_176 = arith.constant dense<0xFF800000> : vector<64xf32>
    %455 = vector.multi_reduction <maximumf>, %454, %cst_176 [1] : vector<64x8xf32> to vector<64xf32>
    %456 = vector.shape_cast %455 : vector<64xf32> to vector<64x1xf32>
    %457 = vector.broadcast %456 : vector<64x1xf32> to vector<64x8xf32>
    %458 = arith.subf %454, %457 : vector<64x8xf32>
    %459 = math.exp %458 : vector<64x8xf32>
    %cst_177 = arith.constant dense<0.000000e+00> : vector<64xf32>
    %460 = vector.multi_reduction <add>, %459, %cst_177 [1] : vector<64x8xf32> to vector<64xf32>
    %461 = vector.shape_cast %460 : vector<64xf32> to vector<64x1xf32>
    %462 = tpu.reciprocal %461 {approx = true} : vector<64x1xf32> -> vector<64x1xf32>
    %463 = vector.broadcast %462 : vector<64x1xf32> to vector<64x8xf32>
    %464 = arith.mulf %459, %463 : vector<64x8xf32>
    %465 = arith.truncf %464 : vector<64x8xf32> to vector<64x8xbf16>
    %cst_178 = arith.constant dense<0.000000e+00> : vector<64x16xf32>
    %466 = tpu.matmul %465, %453, %cst_178 {dimension_numbers = #tpu.dot_dimension_numbers<[1], [0], [0], [1], [0, 0, 1, 1], [], []>} : vector<64x8xbf16>, vector<8x16xbf16>, vector<64x16xf32> -> vector<64x16xf32>
    %467 = arith.truncf %466 : vector<64x16xf32> to vector<64x16xbf16>
    %468 = vector.extract_strided_slice %389 {offsets = [48, 0], sizes = [16, 64], strides = [1, 1]} : vector<64x64xbf16> to vector<16x64xbf16>
    %cst_179 = arith.constant dense<0.000000e+00> : vector<64x64xf32>
    %469 = tpu.matmul %467, %468, %cst_179 {dimension_numbers = #tpu.dot_dimension_numbers<[1], [0], [0], [1], [0, 0, 1, 1], [], []>} : vector<64x16xbf16>, vector<16x64xbf16>, vector<64x64xf32> -> vector<64x64xf32>
    %470 = arith.addf %450, %469 : vector<64x64xf32>
    %471 = arith.addf %345, %470 : vector<64x64xf32>
    %c0_180 = arith.constant 0 : index
    %c0_181 = arith.constant 0 : index
    %472 = vector.load %arg36[%c0_180, %c0_181] : memref<1x64xf32, #tpu.memory_space<vmem>>, vector<1x64xf32>
    %473 = vector.broadcast %472 : vector<1x64xf32> to vector<64x64xf32>
    %474 = arith.addf %471, %473 : vector<64x64xf32>
    %cst_182 = arith.constant dense<0.000000e+00> : vector<64xf32>
    %475 = vector.multi_reduction <add>, %474, %cst_182 [1] : vector<64x64xf32> to vector<64xf32>
    %476 = vector.shape_cast %475 : vector<64xf32> to vector<64x1xf32>
    %cst_183 = arith.constant 6.400000e+01 : f32
    %477 = vector.broadcast %cst_183 : f32 to vector<64x1xf32>
    %478 = arith.divf %476, %477 : vector<64x1xf32>
    %479 = vector.broadcast %478 : vector<64x1xf32> to vector<64x64xf32>
    %480 = arith.subf %474, %479 : vector<64x64xf32>
    %481 = arith.mulf %480, %480 : vector<64x64xf32>
    %cst_184 = arith.constant dense<0.000000e+00> : vector<64xf32>
    %482 = vector.multi_reduction <add>, %481, %cst_184 [1] : vector<64x64xf32> to vector<64xf32>
    %483 = vector.shape_cast %482 : vector<64xf32> to vector<64x1xf32>
    %cst_185 = arith.constant 6.400000e+01 : f32
    %484 = vector.broadcast %cst_185 : f32 to vector<64x1xf32>
    %485 = arith.divf %483, %484 : vector<64x1xf32>
    %486 = vector.broadcast %478 : vector<64x1xf32> to vector<64x64xf32>
    %487 = arith.subf %474, %486 : vector<64x64xf32>
    %cst_186 = arith.constant 9.99999974E-6 : f32
    %488 = vector.broadcast %cst_186 : f32 to vector<64x1xf32>
    %489 = arith.addf %485, %488 : vector<64x1xf32>
    %490 = math.rsqrt %489 : vector<64x1xf32>
    %491 = vector.broadcast %490 : vector<64x1xf32> to vector<64x64xf32>
    %492 = arith.mulf %487, %491 : vector<64x64xf32>
    %c0_187 = arith.constant 0 : index
    %c0_188 = arith.constant 0 : index
    %493 = vector.load %arg37[%c0_187, %c0_188] : memref<1x64xf32, #tpu.memory_space<vmem>>, vector<1x64xf32>
    %494 = vector.broadcast %493 : vector<1x64xf32> to vector<64x64xf32>
    %495 = arith.mulf %492, %494 : vector<64x64xf32>
    %c0_189 = arith.constant 0 : index
    %c0_190 = arith.constant 0 : index
    %496 = vector.load %arg38[%c0_189, %c0_190] : memref<1x64xf32, #tpu.memory_space<vmem>>, vector<1x64xf32>
    %497 = vector.broadcast %496 : vector<1x64xf32> to vector<64x64xf32>
    %498 = arith.addf %495, %497 : vector<64x64xf32>
    %499 = arith.truncf %498 : vector<64x64xf32> to vector<64x64xbf16>
    %c0_191 = arith.constant 0 : index
    %c0_192 = arith.constant 0 : index
    %500 = vector.load %arg39[%c0_191, %c0_192] : memref<64x512xbf16, #tpu.memory_space<vmem>>, vector<64x512xbf16>
    %cst_193 = arith.constant dense<0.000000e+00> : vector<64x512xf32>
    %501 = tpu.matmul %499, %500, %cst_193 {dimension_numbers = #tpu.dot_dimension_numbers<[1], [0], [0], [1], [0, 0, 1, 1], [], []>} : vector<64x64xbf16>, vector<64x512xbf16>, vector<64x512xf32> -> vector<64x512xf32>
    %c0_194 = arith.constant 0 : index
    %c0_195 = arith.constant 0 : index
    %502 = vector.load %arg40[%c0_194, %c0_195] : memref<1x512xf32, #tpu.memory_space<vmem>>, vector<1x512xf32>
    %503 = vector.broadcast %502 : vector<1x512xf32> to vector<64x512xf32>
    %504 = arith.addf %501, %503 : vector<64x512xf32>
    %505 = vector.extract_strided_slice %504 {offsets = [0, 0], sizes = [64, 256], strides = [1, 1]} : vector<64x512xf32> to vector<64x256xf32>
    %506 = vector.extract_strided_slice %504 {offsets = [0, 256], sizes = [64, 256], strides = [1, 1]} : vector<64x512xf32> to vector<64x256xf32>
    %cst_196 = arith.constant 5.000000e-01 : f32
    %507 = vector.broadcast %cst_196 : f32 to vector<64x256xf32>
    %508 = arith.mulf %507, %506 : vector<64x256xf32>
    %cst_197 = arith.constant 4.471500e-02 : f32
    %509 = vector.broadcast %cst_197 : f32 to vector<64x256xf32>
    %510 = arith.mulf %509, %506 : vector<64x256xf32>
    %511 = arith.mulf %510, %506 : vector<64x256xf32>
    %512 = arith.mulf %511, %506 : vector<64x256xf32>
    %513 = arith.addf %506, %512 : vector<64x256xf32>
    %cst_198 = arith.constant 0.797884583 : f32
    %514 = vector.broadcast %cst_198 : f32 to vector<64x256xf32>
    %515 = arith.mulf %514, %513 : vector<64x256xf32>
    %516 = math.tanh %515 : vector<64x256xf32>
    %cst_199 = arith.constant 1.000000e+00 : f32
    %517 = vector.broadcast %cst_199 : f32 to vector<64x256xf32>
    %518 = arith.addf %517, %516 : vector<64x256xf32>
    %519 = arith.mulf %508, %518 : vector<64x256xf32>
    %520 = arith.mulf %505, %519 : vector<64x256xf32>
    %521 = arith.truncf %520 : vector<64x256xf32> to vector<64x256xbf16>
    %c0_200 = arith.constant 0 : index
    %c0_201 = arith.constant 0 : index
    %522 = vector.load %arg41[%c0_200, %c0_201] : memref<256x64xbf16, #tpu.memory_space<vmem>>, vector<256x64xbf16>
    %cst_202 = arith.constant dense<0.000000e+00> : vector<64x64xf32>
    %523 = tpu.matmul %521, %522, %cst_202 {dimension_numbers = #tpu.dot_dimension_numbers<[1], [0], [0], [1], [0, 0, 1, 1], [], []>} : vector<64x256xbf16>, vector<256x64xbf16>, vector<64x64xf32> -> vector<64x64xf32>
    %c0_203 = arith.constant 0 : index
    %c0_204 = arith.constant 0 : index
    %524 = vector.load %arg42[%c0_203, %c0_204] : memref<1x64xf32, #tpu.memory_space<vmem>>, vector<1x64xf32>
    %525 = vector.broadcast %524 : vector<1x64xf32> to vector<64x64xf32>
    %526 = arith.addf %523, %525 : vector<64x64xf32>
    %527 = arith.addf %474, %526 : vector<64x64xf32>
    %528 = arith.truncf %527 : vector<64x64xf32> to vector<64x64xbf16>
    %c0_205 = arith.constant 0 : index
    %c0_206 = arith.constant 0 : index
    %529 = vector.load %arg43[%c0_205, %c0_206] : memref<64x64xbf16, #tpu.memory_space<vmem>>, vector<64x64xbf16>
    %cst_207 = arith.constant dense<0.000000e+00> : vector<64x64xf32>
    %530 = tpu.matmul %528, %529, %cst_207 {dimension_numbers = #tpu.dot_dimension_numbers<[1], [0], [0], [1], [0, 0, 1, 1], [], []>} : vector<64x64xbf16>, vector<64x64xbf16>, vector<64x64xf32> -> vector<64x64xf32>
    %c0_208 = arith.constant 0 : index
    %c0_209 = arith.constant 0 : index
    %531 = vector.load %arg44[%c0_208, %c0_209] : memref<1x64xf32, #tpu.memory_space<vmem>>, vector<1x64xf32>
    %532 = vector.broadcast %531 : vector<1x64xf32> to vector<64x64xf32>
    %533 = arith.addf %530, %532 : vector<64x64xf32>
    %534 = tpu.transpose %533, [1, 0] : vector<64x64xf32> -> vector<64x64xf32>
    %535 = arith.addf %534, %182 : vector<64x64xf32>
    %c0_210 = arith.constant 0 : index
    %c0_211 = arith.constant 0 : index
    %c0_212 = arith.constant 0 : index
    %536 = vector.load %arg45[%c0_210, %c0_211, %c0_212] : memref<1x64x64xf32, #tpu.memory_space<vmem>>, vector<1x64x64xf32>
    %537 = vector.shape_cast %536 : vector<1x64x64xf32> to vector<64x64xf32>
    %538 = vector.shape_cast %535 : vector<64x64xf32> to vector<1x64x64xf32>
    tpu.vector_store %arg45[%c0_210, %c0_211, %c0_212], %538 {strides = array<i32>} : memref<1x64x64xf32, #tpu.memory_space<vmem>>, vector<1x64x64xf32>,
    return
  }
  func.func @transform_0(%arg0: i32) -> (i32, i32, i32) {
    %c0_i32 = arith.constant 0 : i32
    %c0_i32_0 = arith.constant 0 : i32
    %c0_i32_1 = arith.constant 0 : i32
    return %arg0, %c0_i32, %c0_i32_0 : i32, i32, i32
  }
  func.func @transform_1(%arg0: i32) -> (i32, i32, i32) {
    %c0_i32 = arith.constant 0 : i32
    %c0_i32_0 = arith.constant 0 : i32
    %c0_i32_1 = arith.constant 0 : i32
    return %arg0, %c0_i32, %c0_i32_0 : i32, i32, i32
  }
  func.func @transform_2(%arg0: i32) -> (i32, i32) {
    %c0_i32 = arith.constant 0 : i32
    %c0_i32_0 = arith.constant 0 : i32
    %c0_i32_1 = arith.constant 0 : i32
    return %c0_i32, %c0_i32_0 : i32, i32
  }
  func.func @transform_3(%arg0: i32) -> (i32, i32) {
    %c0_i32 = arith.constant 0 : i32
    %c0_i32_0 = arith.constant 0 : i32
    %c0_i32_1 = arith.constant 0 : i32
    return %c0_i32, %c0_i32_0 : i32, i32
  }
  func.func @transform_4(%arg0: i32) -> (i32, i32) {
    %c0_i32 = arith.constant 0 : i32
    %c0_i32_0 = arith.constant 0 : i32
    %c0_i32_1 = arith.constant 0 : i32
    return %c0_i32, %c0_i32_0 : i32, i32
  }
  func.func @transform_5(%arg0: i32) -> (i32, i32) {
    %c0_i32 = arith.constant 0 : i32
    %c0_i32_0 = arith.constant 0 : i32
    %c0_i32_1 = arith.constant 0 : i32
    return %c0_i32, %c0_i32_0 : i32, i32
  }
  func.func @transform_6(%arg0: i32) -> (i32, i32) {
    %c0_i32 = arith.constant 0 : i32
    %c0_i32_0 = arith.constant 0 : i32
    %c0_i32_1 = arith.constant 0 : i32
    return %c0_i32, %c0_i32_0 : i32, i32
  }
  func.func @transform_7(%arg0: i32) -> (i32, i32) {
    %c0_i32 = arith.constant 0 : i32
    %c0_i32_0 = arith.constant 0 : i32
    %c0_i32_1 = arith.constant 0 : i32
    return %c0_i32, %c0_i32_0 : i32, i32
  }
  func.func @transform_8(%arg0: i32) -> (i32, i32) {
    %c0_i32 = arith.constant 0 : i32
    %c0_i32_0 = arith.constant 0 : i32
    %c0_i32_1 = arith.constant 0 : i32
    return %c0_i32, %c0_i32_0 : i32, i32
  }
  func.func @transform_9(%arg0: i32) -> (i32, i32) {
    %c0_i32 = arith.constant 0 : i32
    %c0_i32_0 = arith.constant 0 : i32
    %c0_i32_1 = arith.constant 0 : i32
    return %c0_i32, %c0_i32_0 : i32, i32
  }
  func.func @transform_10(%arg0: i32) -> (i32, i32) {
    %c0_i32 = arith.constant 0 : i32
    %c0_i32_0 = arith.constant 0 : i32
    %c0_i32_1 = arith.constant 0 : i32
    return %c0_i32, %c0_i32_0 : i32, i32
  }
  func.func @transform_11(%arg0: i32) -> (i32, i32) {
    %c0_i32 = arith.constant 0 : i32
    %c0_i32_0 = arith.constant 0 : i32
    %c0_i32_1 = arith.constant 0 : i32
    return %c0_i32, %c0_i32_0 : i32, i32
  }
  func.func @transform_12(%arg0: i32) -> (i32, i32) {
    %c0_i32 = arith.constant 0 : i32
    %c0_i32_0 = arith.constant 0 : i32
    %c0_i32_1 = arith.constant 0 : i32
    return %c0_i32, %c0_i32_0 : i32, i32
  }
  func.func @transform_13(%arg0: i32) -> (i32, i32) {
    %c0_i32 = arith.constant 0 : i32
    %c0_i32_0 = arith.constant 0 : i32
    %c0_i32_1 = arith.constant 0 : i32
    return %c0_i32, %c0_i32_0 : i32, i32
  }
  func.func @transform_14(%arg0: i32) -> (i32, i32) {
    %c0_i32 = arith.constant 0 : i32
    %c0_i32_0 = arith.constant 0 : i32
    %c0_i32_1 = arith.constant 0 : i32
    return %c0_i32, %c0_i32_0 : i32, i32
  }
  func.func @transform_15(%arg0: i32) -> (i32, i32) {
    %c0_i32 = arith.constant 0 : i32
    %c0_i32_0 = arith.constant 0 : i32
    %c0_i32_1 = arith.constant 0 : i32
    return %c0_i32, %c0_i32_0 : i32, i32
  }
  func.func @transform_16(%arg0: i32) -> (i32, i32) {
    %c0_i32 = arith.constant 0 : i32
    %c0_i32_0 = arith.constant 0 : i32
    %c0_i32_1 = arith.constant 0 : i32
    return %c0_i32, %c0_i32_0 : i32, i32
  }
  func.func @transform_17(%arg0: i32) -> (i32, i32) {
    %c0_i32 = arith.constant 0 : i32
    %c0_i32_0 = arith.constant 0 : i32
    %c0_i32_1 = arith.constant 0 : i32
    return %c0_i32, %c0_i32_0 : i32, i32
  }
  func.func @transform_18(%arg0: i32) -> (i32, i32) {
    %c0_i32 = arith.constant 0 : i32
    %c0_i32_0 = arith.constant 0 : i32
    %c0_i32_1 = arith.constant 0 : i32
    return %c0_i32, %c0_i32_0 : i32, i32
  }
  func.func @transform_19(%arg0: i32) -> (i32, i32) {
    %c0_i32 = arith.constant 0 : i32
    %c0_i32_0 = arith.constant 0 : i32
    %c0_i32_1 = arith.constant 0 : i32
    return %c0_i32, %c0_i32_0 : i32, i32
  }
  func.func @transform_20(%arg0: i32) -> (i32, i32) {
    %c0_i32 = arith.constant 0 : i32
    %c0_i32_0 = arith.constant 0 : i32
    %c0_i32_1 = arith.constant 0 : i32
    return %c0_i32, %c0_i32_0 : i32, i32
  }
  func.func @transform_21(%arg0: i32) -> (i32, i32) {
    %c0_i32 = arith.constant 0 : i32
    %c0_i32_0 = arith.constant 0 : i32
    %c0_i32_1 = arith.constant 0 : i32
    return %c0_i32, %c0_i32_0 : i32, i32
  }
  func.func @transform_22(%arg0: i32) -> (i32, i32) {
    %c0_i32 = arith.constant 0 : i32
    %c0_i32_0 = arith.constant 0 : i32
    %c0_i32_1 = arith.constant 0 : i32
    return %c0_i32, %c0_i32_0 : i32, i32
  }
  func.func @transform_23(%arg0: i32) -> (i32, i32) {
    %c0_i32 = arith.constant 0 : i32
    %c0_i32_0 = arith.constant 0 : i32
    %c0_i32_1 = arith.constant 0 : i32
    return %c0_i32, %c0_i32_0 : i32, i32
  }
  func.func @transform_24(%arg0: i32) -> (i32, i32) {
    %c0_i32 = arith.constant 0 : i32
    %c0_i32_0 = arith.constant 0 : i32
    %c0_i32_1 = arith.constant 0 : i32
    return %c0_i32, %c0_i32_0 : i32, i32
  }
  func.func @transform_25(%arg0: i32) -> (i32, i32) {
    %c0_i32 = arith.constant 0 : i32
    %c0_i32_0 = arith.constant 0 : i32
    %c0_i32_1 = arith.constant 0 : i32
    return %c0_i32, %c0_i32_0 : i32, i32
  }
  func.func @transform_26(%arg0: i32) -> (i32, i32) {
    %c0_i32 = arith.constant 0 : i32
    %c0_i32_0 = arith.constant 0 : i32
    %c0_i32_1 = arith.constant 0 : i32
    return %c0_i32, %c0_i32_0 : i32, i32
  }
  func.func @transform_27(%arg0: i32) -> (i32, i32) {
    %c0_i32 = arith.constant 0 : i32
    %c0_i32_0 = arith.constant 0 : i32
    %c0_i32_1 = arith.constant 0 : i32
    return %c0_i32, %c0_i32_0 : i32, i32
  }
  func.func @transform_28(%arg0: i32) -> (i32, i32) {
    %c0_i32 = arith.constant 0 : i32
    %c0_i32_0 = arith.constant 0 : i32
    %c0_i32_1 = arith.constant 0 : i32
    return %c0_i32, %c0_i32_0 : i32, i32
  }
  func.func @transform_29(%arg0: i32) -> (i32, i32) {
    %c0_i32 = arith.constant 0 : i32
    %c0_i32_0 = arith.constant 0 : i32
    %c0_i32_1 = arith.constant 0 : i32
    return %c0_i32, %c0_i32_0 : i32, i32
  }
  func.func @transform_30(%arg0: i32) -> (i32, i32) {
    %c0_i32 = arith.constant 0 : i32
    %c0_i32_0 = arith.constant 0 : i32
    %c0_i32_1 = arith.constant 0 : i32
    return %c0_i32, %c0_i32_0 : i32, i32
  }
  func.func @transform_31(%arg0: i32) -> (i32, i32) {
    %c0_i32 = arith.constant 0 : i32
    %c0_i32_0 = arith.constant 0 : i32
    %c0_i32_1 = arith.constant 0 : i32
    return %c0_i32, %c0_i32_0 : i32, i32
  }
  func.func @transform_32(%arg0: i32) -> (i32, i32) {
    %c0_i32 = arith.constant 0 : i32
    %c0_i32_0 = arith.constant 0 : i32
    %c0_i32_1 = arith.constant 0 : i32
    return %c0_i32, %c0_i32_0 : i32, i32
  }
  func.func @transform_33(%arg0: i32) -> (i32, i32) {
    %c0_i32 = arith.constant 0 : i32
    %c0_i32_0 = arith.constant 0 : i32
    %c0_i32_1 = arith.constant 0 : i32
    return %c0_i32, %c0_i32_0 : i32, i32
  }
  func.func @transform_34(%arg0: i32) -> (i32, i32) {
    %c0_i32 = arith.constant 0 : i32
    %c0_i32_0 = arith.constant 0 : i32
    %c0_i32_1 = arith.constant 0 : i32
    return %c0_i32, %c0_i32_0 : i32, i32
  }
  func.func @transform_35(%arg0: i32) -> (i32, i32) {
    %c0_i32 = arith.constant 0 : i32
    %c0_i32_0 = arith.constant 0 : i32
    %c0_i32_1 = arith.constant 0 : i32
    return %c0_i32, %c0_i32_0 : i32, i32
  }
  func.func @transform_36(%arg0: i32) -> (i32, i32) {
    %c0_i32 = arith.constant 0 : i32
    %c0_i32_0 = arith.constant 0 : i32
    %c0_i32_1 = arith.constant 0 : i32
    return %c0_i32, %c0_i32_0 : i32, i32
  }
  func.func @transform_37(%arg0: i32) -> (i32, i32) {
    %c0_i32 = arith.constant 0 : i32
    %c0_i32_0 = arith.constant 0 : i32
    %c0_i32_1 = arith.constant 0 : i32
    return %c0_i32, %c0_i32_0 : i32, i32
  }
  func.func @transform_38(%arg0: i32) -> (i32, i32) {
    %c0_i32 = arith.constant 0 : i32
    %c0_i32_0 = arith.constant 0 : i32
    %c0_i32_1 = arith.constant 0 : i32
    return %c0_i32, %c0_i32_0 : i32, i32
  }
  func.func @transform_39(%arg0: i32) -> (i32, i32) {
    %c0_i32 = arith.constant 0 : i32
    %c0_i32_0 = arith.constant 0 : i32
    %c0_i32_1 = arith.constant 0 : i32
    return %c0_i32, %c0_i32_0 : i32, i32
  }
  func.func @transform_40(%arg0: i32) -> (i32, i32) {
    %c0_i32 = arith.constant 0 : i32
    %c0_i32_0 = arith.constant 0 : i32
    %c0_i32_1 = arith.constant 0 : i32
    return %c0_i32, %c0_i32_0 : i32, i32
  }
  func.func @transform_41(%arg0: i32) -> (i32, i32) {
    %c0_i32 = arith.constant 0 : i32
    %c0_i32_0 = arith.constant 0 : i32
    %c0_i32_1 = arith.constant 0 : i32
    return %c0_i32, %c0_i32_0 : i32, i32
  }
  func.func @transform_42(%arg0: i32) -> (i32, i32) {
    %c0_i32 = arith.constant 0 : i32
    %c0_i32_0 = arith.constant 0 : i32
    %c0_i32_1 = arith.constant 0 : i32
    return %c0_i32, %c0_i32_0 : i32, i32
  }
  func.func @transform_43(%arg0: i32) -> (i32, i32) {
    %c0_i32 = arith.constant 0 : i32
    %c0_i32_0 = arith.constant 0 : i32
    %c0_i32_1 = arith.constant 0 : i32
    return %c0_i32, %c0_i32_0 : i32, i32
  }
  func.func @transform_44(%arg0: i32) -> (i32, i32, i32) {
    %c0_i32 = arith.constant 0 : i32
    %c0_i32_0 = arith.constant 0 : i32
    %c0_i32_1 = arith.constant 0 : i32
    return %arg0, %c0_i32, %c0_i32_0 : i32, i32, i32
  }
}

</mosaic_0001>

<bundles_post_ra>
// kernel: spatial_transformer.1
= control target key start
LH: loop header
LB: loop body
LE: loop exit
PB: predicated region body
PF: predicated region fallthrough
CT: control target
= control target key end

     0   :  { %s9186_s6 = smov 1   ;;  %s9187_s10 = smov 2   ;;  %s11305_s0 = inlined_call_operand.smem [shape: u32[45], index: -1, kind: input, shape index: {}] }
   0x1   :  { %s9254_s5 = sld [smem:[%s11305_s0]]   ;;  %s9188_s14 = smov 3  }
   0x2   :  { %s9259_s9 = sld [smem:[%s11305_s0 + %s9186_s6]]   ;;  %s9189_s18 = smov 4  }
   0x3   :  { %s9264_s13 = sld [smem:[%s11305_s0 + %s9187_s10]]   ;;  %s9190_s22 = smov 5  }
   0x4   :  { %s9269_s17 = sld [smem:[%s11305_s0 + %s9188_s14]]   ;;  %s9191_s26 = smov 6  }
   0x5   :  { %s9274_s21 = sld [smem:[%s11305_s0 + %s9189_s18]]   ;;  %s9192_s30 = smov 7  }
   0x6   :  { %s9279_s25 = sld [smem:[%s11305_s0 + %s9190_s22]]   ;;  %s9193_s4 = smov 8  }
   0x7   :  { %s9284_s29 = sld [smem:[%s11305_s0 + %s9191_s26]]   ;;  %s9194_s10 = smov 9  }
   0x8   :  { %s9289_s3 = sld [smem:[%s11305_s0 + %s9192_s30]]   ;;  %s9195_s15 = smov 10  }
   0x9   :  { %s9294_s8 = sld [smem:[%s11305_s0 + %s9193_s4]]   ;;  %s9196_s20 = smov 11  }
   0xa   :  { %s9299_s14 = sld [smem:[%s11305_s0 + %s9194_s10]]   ;;  %s9197_s26 = smov 12  }
   0xb   :  { %s9304_s19 = sld [smem:[%s11305_s0 + %s9195_s15]]   ;;  %s9198_s1 = smov 13  }
   0xc   :  { %s9309_s24 = sld [smem:[%s11305_s0 + %s9196_s20]]   ;;  %s9199_s7 = smov 14  }
   0xd   :  { %s9314_s30 = sld [smem:[%s11305_s0 + %s9197_s26]]   ;;  %s9200_s15 = smov 15  }
   0xe   :  { %11328 = sst [smem:[#allocation2_spill]] %s9289_s3  ;;  %s9201_s22 = smov 16  }
   0xf   :  { %s9319_s6 = sld [smem:[%s11305_s0 + %s9198_s1]]   ;;  %s9202_s28 = smov 17  }
  0x10   :  { %s9324_s12 = sld [smem:[%s11305_s0 + %s9199_s7]]   ;;  %s9203_s7 = smov 18  }
  0x11   :  { %s9329_s20 = sld [smem:[%s11305_s0 + %s9200_s15]]   ;;  %s9204_s15 = smov 19  }
  0x12   :  { %s9334_s27 = sld [smem:[%s11305_s0 + %s9201_s22]]   ;;  %s9205_s22 = smov 20  }
  0x13   :  { %s9339_s4 = sld [smem:[%s11305_s0 + %s9202_s28]]   ;;  %s9206_s28 = smov 21  }
  0x15   :  { %11329 = sst [smem:[#allocation3_spill]] %s9319_s6 }
  0x16   :  { %11330 = sst [smem:[#allocation4_spill]] %s9324_s12 }
  0x17   :  { %11331 = sst [smem:[#allocation5_spill]] %s9329_s20 }
  0x18   :  { %11332 = sst [smem:[#allocation6_spill]] %s9334_s27 }
  0x19   :  { %11333 = sst [smem:[#allocation7_spill]] %s9339_s4 }
  0x1a   :  { %s9344_s6 = sld [smem:[%s11305_s0 + %s9203_s7]]   ;;  %s9207_s7 = smov 22  }
  0x1b   :  { %s9349_s20 = sld [smem:[%s11305_s0 + %s9204_s15]]   ;;  %s9208_s15 = smov 23  }
  0x1c   :  { %s9354_s27 = sld [smem:[%s11305_s0 + %s9205_s22]]   ;;  %s9209_s22 = smov 24  }
  0x1d   :  { %s9359_s4 = sld [smem:[%s11305_s0 + %s9206_s28]]   ;;  %s9210_s28 = smov 25  }
  0x1e   :  { %s9364_s12 = sld [smem:[%s11305_s0 + %s9207_s7]]   ;;  %s9211_s7 = smov 26  }
  0x21   :  { %11334 = sst [smem:[#allocation8_spill]] %s9349_s20 }
  0x22   :  { %11335 = sst [smem:[#allocation9_spill]] %s9354_s27 }
  0x23   :  { %11336 = sst [smem:[#allocation10_spill]] %s9359_s4 }
  0x24   :  { %11337 = sst [smem:[#allocation11_spill]] %s9364_s12 }
  0x25   :  { %s9369_s20 = sld [smem:[%s11305_s0 + %s9208_s15]]   ;;  %s9212_s15 = smov 27  }
  0x26   :  { %s9374_s27 = sld [smem:[%s11305_s0 + %s9209_s22]]   ;;  %s9213_s22 = smov 28  }
  0x27   :  { %s9379_s4 = sld [smem:[%s11305_s0 + %s9210_s28]]   ;;  %s9214_s28 = smov 29  }
  0x28   :  { %s9384_s12 = sld [smem:[%s11305_s0 + %s9211_s7]]   ;;  %s9215_s7 = smov 30  }
  0x2b   :  { %11338 = sst [smem:[#allocation12_spill]] %s9369_s20 }
  0x2c   :  { %11339 = sst [smem:[#allocation13_spill]] %s9374_s27 }
  0x2d   :  { %11340 = sst [smem:[#allocation14_spill]] %s9379_s4 }
  0x2e   :  { %11341 = sst [smem:[#allocation15_spill]] %s9384_s12 }
  0x2f   :  { %s9389_s20 = sld [smem:[%s11305_s0 + %s9212_s15]]   ;;  %s9216_s15 = smov 31  }
  0x30   :  { %s9394_s27 = sld [smem:[%s11305_s0 + %s9213_s22]]   ;;  %s9217_s22 = smov 32  }
  0x31   :  { %s9399_s4 = sld [smem:[%s11305_s0 + %s9214_s28]]   ;;  %s9218_s28 = smov 33  }
  0x32   :  { %s9404_s12 = sld [smem:[%s11305_s0 + %s9215_s7]]   ;;  %s9219_s7 = smov 34  }
  0x35   :  { %11342 = sst [smem:[#allocation16_spill]] %s9389_s20 }
  0x36   :  { %11343 = sst [smem:[#allocation17_spill]] %s9394_s27 }
  0x37   :  { %11344 = sst [smem:[#allocation18_spill]] %s9399_s4 }
  0x38   :  { %11345 = sst [smem:[#allocation19_spill]] %s9404_s12 }
  0x39   :  { %s9409_s20 = sld [smem:[%s11305_s0 + %s9216_s15]]   ;;  %s9220_s15 = smov 35  }
  0x3a   :  { %s9414_s27 = sld [smem:[%s11305_s0 + %s9217_s22]]   ;;  %s9221_s22 = smov 36  }
  0x3b   :  { %s9419_s4 = sld [smem:[%s11305_s0 + %s9218_s28]]   ;;  %s9222_s28 = smov 37  }
  0x3c   :  { %s9424_s12 = sld [smem:[%s11305_s0 + %s9219_s7]]   ;;  %s9223_s7 = smov 38  }
  0x3f   :  { %11346 = sst [smem:[#allocation20_spill]] %s9409_s20 }
  0x40   :  { %11347 = sst [smem:[#allocation21_spill]] %s9414_s27 }
  0x41   :  { %11348 = sst [smem:[#allocation22_spill]] %s9419_s4 }
  0x42   :  { %11349 = sst [smem:[#allocation23_spill]] %s9424_s12 }
  0x43   :  { %s9429_s20 = sld [smem:[%s11305_s0 + %s9220_s15]]   ;;  %s9224_s15 = smov 39  }
  0x44   :  { %s9434_s27 = sld [smem:[%s11305_s0 + %s9221_s22]]   ;;  %s9225_s22 = smov 40  }
  0x45   :  { %s9439_s4 = sld [smem:[%s11305_s0 + %s9222_s28]]   ;;  %s9226_s28 = smov 41  }
  0x46   :  { %s9444_s12 = sld [smem:[%s11305_s0 + %s9223_s7]]   ;;  %s9227_s7 = smov 42  }
  0x49   :  { %11350 = sst [smem:[#allocation24_spill]] %s9429_s20 }
  0x4a   :  { %11351 = sst [smem:[#allocation25_spill]] %s9434_s27 }
  0x4b   :  { %11352 = sst [smem:[#allocation26_spill]] %s9439_s4 }
  0x4c   :  { %11353 = sst [smem:[#allocation27_spill]] %s9444_s12 }
  0x4d   :  { %s9449_s20 = sld [smem:[%s11305_s0 + %s9224_s15]]   ;;  %s9228_s15 = smov 43  }
  0x4e   :  { %s9454_s27 = sld [smem:[%s11305_s0 + %s9225_s22]]   ;;  %s9229_s22 = smov 44  }
  0x4f   :  { %s9459_s4 = sld [smem:[%s11305_s0 + %s9226_s28]]   ;;  %s9476_s28 = smov 0  }
  0x50   :  { %s9464_s12 = sld [smem:[%s11305_s0 + %s9227_s7]]  }
  0x53   :  { %11354 = sst [smem:[#allocation28_spill]] %s9449_s20 }
  0x54   :  { %11355 = sst [smem:[#allocation29_spill]] %s9454_s27 }
  0x55   :  { %s9469_s20 = sld [smem:[%s11305_s0 + %s9228_s15]]  }
  0x56   :  { %s9474_s27 = sld [smem:[%s11305_s0 + %s9229_s22]]  }
  0x57 LB: > { %s7598_s1 = sadd.s32 4294967295, %s9184_s28   ;;  %p7602_p0 = scmp.ge.s32.totalorder %s9184_s28, 1  ;;  %s9184_s28 = sphi %s9476_s28, %s99_s28  }
  0x58   : > { %p1216_p1 = scmp.lt.s32.totalorder %s9184_s28, 3 }
  0x5a   : > { %p1217_p2 = pnand %p7602_p0, %p1216_p1 }
  0x5b   : > { %p1326_p3 = scmp.lt.s32.totalorder (!%p1217_p2), %s7598_s1, 1  ;;  %s11356_s3 = sld [smem:[#allocation2_spill]] (!%p1217_p2) }
  0x5c   : > { %1220 = sbr.rel (%p1217_p2) target bundleno = 10874 (0x2a7a), region = 196  ;;  %s11321_s7 = smov (!%p1217_p2), 96  }
  0x5d   : > { %s9233_s10 = smov (!%p1217_p2), 120   ;;  %s9234_s11 = smov (!%p1217_p2), 88  }
  0x5e   : > { %s9235_s15 = smov (!%p1217_p2), 56   ;;  %s11323_s16 = smov (!%p1217_p2), 64  }
  0x5f   : > { %s11317_s18 = smov (!%p1217_p2), 80   ;;  %s11325_s22 = smov (!%p1217_p2), 112  }
  0x60   : > { %s11324_s23 = smov (!%p1217_p2), 48   ;;  %s9240_s26 = smov (!%p1217_p2), 104  }
  0x61   : > { %s11393_s1 = smov (!%p1326_p3, %s7598_s1), 1  ;;  %v1342_v0 = vld [vmem:[%s9269_s17] sm:$0xff]  ;;  %vm1344_vm0 = vcmask 261120   ;;  %v8720_v9 = vld [vmem:[%s9284_s29 + $0x8] sm:$0xff]   ;;  %v9230_v10 = vmov 0.0   ;;  %vm9231_vm1 = vmmov 0  }
  0x62   : > { %s7605_s0 = sshll.u32 %s11393_s1, 3  ;;  %8124 = vmatprep.subr.bf16.mxu0 %v9230_v10  ;;  %8128 = vmatprep.mubr.msk.bf16.mxu0 %vm9231_vm1, %v9230_v10  ;;  %v8721_v11 = vld [vmem:[%s9284_s29] sm:$0xff]   ;;  %vm1452_vm2 = vcmask 64512   ;;  %vm1516_vm3 = vcmask 1043456   ;;  %vm2379_vm4 = vcmask 523264   ;;  %vm3237_vm5 = vcmask 130048  }
  0x63   : > { %s1334_s2 = scalar_lea.vmem %s9259_s9, %s7605_s0  ;;  %8125 = vmatpush3.bf16.msra.mxu0 %v8720_v9  ;;  %8132 = vmatprep.subr.bf16.mxu1 %v9230_v10  ;;  %v7608_v16 = vld [vmem:[%s9274_s21] ss:$0 sm:$0xff]  ;;  %s9241_s0 = smov 72  }
  0x64   : > { %v1341_v1 = vld [vmem:[%s1334_s2] sm:$0xff]  ;;  %8126 = vmatprep.subr.bf16.mxu0 %v9230_v10  ;;  %8134 = vmatprep.mubr.msk.bf16.mxu1 %vm9231_vm1, %v9230_v10  ;;  %s9242_s2 = smov 40  }
  0x65   : > { %v9489_v2 = vadd.f32 %v1342_v0, %v1341_v1  ;;  %v7609_v18 = vld [vmem:[%s9279_s25] ss:$0 sm:$0xff] }
  0x66   : > { %v7610_v22 = vld [vmem:[%s11356_s3] ss:$0 sm:$0xff]  ;;  %s11382_s3 = smov 96  }
  0x67   : > { %v1345_v3 = vsel %vm1344_vm0, %v9489_v2, 0.0  ;;  %8127 = vmatpush3.bf16.msra.mxu0 %v8721_v11 }
  0x68   : > { %1346 = vadd.xlane.f32.xlu0 %v1345_v3  ;;  %8138 = vmatprep.subr.bf16.mxu0 %v9230_v10 }
  0xf1   : > { %v1347_v4 = vpop.xlane.xlu0 %1346 }
  0xf2   : > { %v1349_v5 = vmul.f32 0.03125, %v1347_v4 }
  0xf4   : > { %v1350_v6 = vsub.f32 %v9489_v2, %v1349_v5  ;;  %v1445_v5 = vld [vmem:[%s9294_s8] sm:$0xf] }
  0xf6   : > { %v1351_v7 = vmul.f32 %v1350_v6, %v1350_v6 }
  0xf8   : > { %v1352_v8 = vsel %vm1344_vm0, %v1351_v7, 0.0  ;;  %v1446_v7 = vld [vmem:[%s9294_s8 + $0x4] sm:$0xf] }
  0xf9   : > { %1353 = vadd.xlane.f32.xlu0 %v1352_v8  ;;  %v1677_v8 = vsel %vm1516_vm3, %v1446_v7, 0 }
 0x182   : > { %v1354_v12 = vpop.xlane.xlu0 %1353 }
 0x183   : > { %v1355_v13 = vmul.f32 0.03125, %v1354_v12 }
 0x185   : > { %v1356_v14 = vadd.f32 1e-05, %v1355_v13 }
 0x187   : > { %8810 = vrsqrt.f32 %v1356_v14 }
 0x194   : > { %v8811_v15 = vpop.eup %8810 }
 0x195   : > { %v1358_v17 = vmul.f32 %v8811_v15, %v1350_v6  ;;  %v1723_v6 = vsel %vm1516_vm3, %v1445_v5, 0 }
 0x197   : > { %v1366_v19 = vmul.f32 %v7608_v16, %v1358_v17 }
 0x199   : > { %v1374_v20 = vadd.f32 %v7609_v18, %v1366_v19 }
 0x19b   : > { %v1375_v21 = vpack.c.bf16 %v1374_v20, %v1374_v20 }
 0x19d   : > { %8129 = vmatmul.mubr.msk.bf16.vlgmr.msra.gmra.mxu0 %vm1344_vm0, %v1375_v21 }
 0x19e   : > { %8140 = vmatprep.mubr.msk.bf16.mxu0 %vm9231_vm1, %v9230_v10 }
 0x25d   : > { %v1436_v23 = vpop.f32.mrf.mxu0 }
 0x25e   : > { %v1437_v24 = vadd.f32 %v7610_v22, %v1436_v23 }
 0x25f   : > { %v8130_v25 = vpop.f32.mrf.mxu0 }
 0x260   : > { %v1442_v26 = vmul.f32 0.35355338, %v1437_v24  ;;  %v9511_v27 = vpack.c.bf16 %v1437_v24, %v1437_v24 }
 0x261   : > { %v1439_v28 = vpop.f32.mrf.mxu0 }
 0x262   : > { %v9513_v29 = vpack.c.bf16 %v1442_v26, %v1442_v26  ;;  %1450 = vrot.lane.b32.xlu1 %v9511_v27, %s11321_s7 }
 0x263   : > { %v8131_v30 = vpop.f32.mrf.mxu0 }
 0x264   : > { %1562 = vrot.lane.b32.xlu0 %v9513_v29, %s9233_s10  ;;  %s11316_s10 = sshll.u32 %s11393_s1, 6 }
 0x266   : > { %1564 = vrot.lane.b32.xlu1 %v9511_v27, %s9234_s11  ;;  %s9622_s11 = scalar_lea.vmem %s9254_s5, %s11316_s10  ;;  %s11362_s10 = sld [smem:[#allocation7_spill]] }
 0x2d4   : > { %v1451_v31 = vpop.permute.xlu1 %1450 }
 0x2d5   : > { %v1457_v32 = vsel %vm1452_vm2, %v1451_v31, 0 }
 0x2d6   : > { %8133 = vmatpush3.bf16.xpose.msra.mxu1 %v1457_v32  ;;  %v1563_v35 = vpop.permute.xlu0 %1562 }
 0x2d7   : > { %8144 = vmatprep.subr.bf16.mxu1 %v9230_v10 }
 0x2d8   : > { %v1565_v33 = vpop.permute.xlu1 %1564 }
 0x2d9   : > { %v1570_v34 = vsel %vm1452_vm2, %v1565_v33, 0 }
 0x2dd   : > { %8135 = vmatmul.mubr.msk.bf16.vlgmr.msra.gmra.mxu1 %vm1452_vm2, %v9513_v29 }
 0x2de   : > { %8145 = vmatpush3.bf16.xpose.msra.mxu1 %v1570_v34  ;;  %8146 = vmatprep.mubr.msk.bf16.mxu1 %vm9231_vm1, %v9230_v10 }
 0x2df   : > { %8156 = vmatprep.subr.bf16.mxu1 %v9230_v10 }
 0x2e5   : > { %8147 = vmatmul.mubr.msk.bf16.vlgmr.msra.gmra.mxu1 %vm1452_vm2, %v1563_v35 }
 0x2e6   : > { %8158 = vmatprep.mubr.msk.bf16.mxu1 %vm9231_vm1, %v9230_v10  ;;  %8157 = vmatpush3.bf16.msra.mxu1 %v1677_v8 }
 0x2e7   : > { %8168 = vmatprep.subr.bf16.mxu1 %v9230_v10 }
 0x39d   : > { %v1493_v36 = vpop.f32.mrf.mxu1 }
 0x39e   : > { %v1499_v37 = vsel %vm1452_vm2, %v1493_v36, -inf }
 0x39f   : > { %1500 = vmax.xlane.f32.xlu1 %v1499_v37  ;;  %v8136_v38 = vpop.f32.mrf.mxu1 }
 0x3a1   : > { %v1496_v39 = vpop.f32.mrf.mxu1 }
 0x3a3   : > { %v8137_v40 = vpop.f32.mrf.mxu1 }
 0x3a5   : > { %v1606_v41 = vpop.f32.mrf.mxu1 }
 0x3a6   : > { %v1612_v42 = vsel %vm1452_vm2, %v1606_v41, -inf }
 0x3a7   : > { %1613 = vmax.xlane.f32.xlu0 %v1612_v42  ;;  %v8148_v43 = vpop.f32.mrf.mxu1 }
 0x3a9   : > { %v1609_v44 = vpop.f32.mrf.mxu1 }
 0x3ab   : > { %v8149_v45 = vpop.f32.mrf.mxu1 }
 0x3bd   : > { %1624 = vrot.lane.b32.xlu0 %v9511_v27, %s9235_s15  ;;  %s11357_s15 = sld [smem:[#allocation4_spill]] }
 0x428   : > { %v1501_v46 = vpop.xlane.xlu1 %1500 }
 0x429   : > { %v1502_v47 = vsub.f32 %v1493_v36, %v1501_v46 }
 0x42b   : > { %v1503_v48 = vmul.f32 1.442695, %v1502_v47 }
 0x42d   : > { %8812 = vpow2.f32 %v1503_v48 }
 0x430   : > { %v1614_v49 = vpop.xlane.xlu0 %1613 }
 0x431   : > { %v1615_v50 = vsub.f32 %v1606_v41, %v1614_v49 }
 0x433   : > { %v1616_v51 = vmul.f32 1.442695, %v1615_v50 }
 0x434   : > { %v1625_v62 = vpop.permute.xlu0 %1624 }
 0x435   : > { %8814 = vpow2.f32 %v1616_v51  ;;  %v1630_v0 = vsel %vm1516_vm3, %v1625_v62, 0 }
 0x43a   : > { %v8813_v52 = vpop.eup %8812 }
 0x43b   : > { %v1505_v53 = vsel %vm1452_vm2, %v8813_v52, 0.0 }
 0x43c   : > { %1506 = vadd.xlane.f32.xlu1 %v1505_v53 }
 0x442   : > { %v8815_v54 = vpop.eup %8814 }
 0x443   : > { %v1618_v55 = vsel %vm1452_vm2, %v8815_v54, 0.0 }
 0x444   : > { %1619 = vadd.xlane.f32.xlu1 %v1618_v55 }
 0x455   : > { %1511 = vrot.lane.b32.xlu1 %v9511_v27, %s11323_s16 }
 0x459   : > { %1767 = vrot.lane.b32.xlu1 %v9511_v27, %s11317_s18  ;;  %s11366_s18 = sld [smem:[#allocation12_spill]] }
 0x45d   : > { %1765 = vrot.lane.b32.xlu1 %v9513_v29, %s11325_s22 }
 0x4c5   : > { %v1507_v56 = vpop.xlane.xlu1 %1506 }
 0x4c6   : > { %8816 = vrcp.f32 %v1507_v56 }
 0x4cd   : > { %v1620_v57 = vpop.xlane.xlu1 %1619 }
 0x4ce   : > { %8818 = vrcp.f32 %v1620_v57 }
 0x4d1   : > { %v1512_v58 = vpop.permute.xlu1 %1511 }
 0x4d2   : > { %v1518_v59 = vsel %vm1516_vm3, %v1512_v58, 0 }
 0x4d3   : > { %v8817_v60 = vpop.eup %8816  ;;  %8139 = vmatpush3.bf16.msra.mxu0 %v1518_v59 }
 0x4d4   : > { %8150 = vmatprep.subr.bf16.mxu0 %v9230_v10  ;;  %v1509_v61 = vmul.f32 %v8817_v60, %v8813_v52  ;;  %v1447_v52 = vld [vmem:[%s9294_s8 + $0x8] sm:$0xf] }
 0x4d5   : > { %v1768_v15 = vpop.permute.xlu1 %1767  ;;  %v1880_v53 = vsel %vm1516_vm3, %v1447_v52, 0  ;;  %v2326_v52 = vld [vmem:[%s9622_s11 + $0x18] sm:$0xff] }
 0x4d6   : > { %v1510_v63 = vpack.c.bf16 %v1509_v61, %v1509_v61  ;;  %v1773_v19 = vsel %vm1452_vm2, %v1768_v15, 0 }
 0x4d8   : > { %8141 = vmatmul.mubr.msk.bf16.vlgmr.msra.gmra.mxu0 %vm1452_vm2, %v1510_v63 }
 0x4d9   : > { %8151 = vmatpush3.bf16.msra.mxu0 %v1630_v0  ;;  %8152 = vmatprep.mubr.msk.bf16.mxu0 %vm9231_vm1, %v9230_v10  ;;  %v1766_v22 = vpop.permute.xlu1 %1765 }
 0x4da   : > { %8162 = vmatprep.subr.bf16.mxu0 %v9230_v10 }
 0x4db   : > { %v8819_v1 = vpop.eup %8818 }
 0x4dc   : > { %v1622_v3 = vmul.f32 %v8819_v1, %v8815_v54 }
 0x4de   : > { %v1623_v4 = vpack.c.bf16 %v1622_v3, %v1622_v3 }
 0x4e0   : > { %8153 = vmatmul.mubr.msk.bf16.vlgmr.msra.gmra.mxu0 %vm1452_vm2, %v1623_v4 }
 0x4e1   : > { %8164 = vmatprep.mubr.msk.bf16.mxu0 %vm9231_vm1, %v9230_v10  ;;  %8163 = vmatpush3.bf16.msra.mxu0 %v1723_v6 }
 0x4e2   : > { %8174 = vmatprep.subr.bf16.mxu0 %v9230_v10 }
 0x598   : > { %v1554_v9 = vpop.f32.mrf.mxu0 }
 0x599   : > { %v1560_v11 = vpack.c.bf16 %v1554_v9, %v1554_v9 }
 0x59a   : > { %v8142_v12 = vpop.f32.mrf.mxu0 }
 0x59b   : > { %8165 = vmatmul.mubr.msk.bf16.vlgmr.msra.gmra.mxu0 %vm1452_vm2, %v1560_v11 }
 0x59c   : > { %v1557_v13 = vpop.f32.mrf.mxu0  ;;  %8176 = vmatprep.mubr.msk.bf16.mxu0 %vm9231_vm1, %v9230_v10 }
 0x59e   : > { %v8143_v14 = vpop.f32.mrf.mxu0 }
 0x5a0   : > { %v1666_v16 = vpop.f32.mrf.mxu0 }
 0x5a1   : > { %v1672_v17 = vpack.c.bf16 %v1666_v16, %v1666_v16 }
 0x5a2   : > { %v8154_v18 = vpop.f32.mrf.mxu0 }
 0x5a3   : > { %8159 = vmatmul.mubr.msk.bf16.vlgmr.msra.gmra.mxu1 %vm1452_vm2, %v1672_v17  ;;  %v1448_v18 = vld [vmem:[%s9294_s8 + $0xc] sm:$0xf] }
 0x5a4   : > { %8169 = vmatpush3.bf16.xpose.msra.mxu1 %v1773_v19  ;;  %v1669_v20 = vpop.f32.mrf.mxu0  ;;  %8170 = vmatprep.mubr.msk.bf16.mxu1 %vm9231_vm1, %v9230_v10 }
 0x5a5   : > { %8180 = vmatprep.subr.bf16.mxu1 %v9230_v10 }
 0x5a6   : > { %v8155_v21 = vpop.f32.mrf.mxu0 }
 0x5ab   : > { %8171 = vmatmul.mubr.msk.bf16.vlgmr.msra.gmra.mxu1 %vm1452_vm2, %v1766_v22 }
 0x5ac   : > { %8182 = vmatprep.mubr.msk.bf16.mxu1 %vm9231_vm1, %v9230_v10  ;;  %8181 = vmatpush3.bf16.msra.mxu1 %v1880_v53  ;;  %v2334_v53 = vld [vmem:[%s9264_s13 + $0x18] sm:$0xff] }
 0x5ad   : > { %8192 = vmatprep.subr.bf16.mxu1 %v9230_v10 }
 0x65b   : > { %v1759_v23 = vpop.f32.mrf.mxu0 }
 0x65d   : > { %v8166_v24 = vpop.f32.mrf.mxu0 }
 0x65f   : > { %v1762_v25 = vpop.f32.mrf.mxu0 }
 0x661   : > { %v8167_v26 = vpop.f32.mrf.mxu0 }
 0x662   : > { %v7626_v26 = vld [vmem:[%s9299_s14] ss:$0 sm:$0xff] }
 0x663   : > { %v1713_v28 = vpop.f32.mrf.mxu1 }
 0x664   : > { %v9568_v30 = vadd.f32 %v1759_v23, %v1713_v28 }
 0x665   : > { %v8160_v31 = vpop.f32.mrf.mxu1 }
 0x667   : > { %v1716_v32 = vpop.f32.mrf.mxu1 }
 0x669   : > { %v8161_v33 = vpop.f32.mrf.mxu1 }
 0x66b   : > { %v1809_v34 = vpop.f32.mrf.mxu1 }
 0x66c   : > { %v1815_v35 = vsel %vm1452_vm2, %v1809_v34, -inf }
 0x66d   : > { %1816 = vmax.xlane.f32.xlu1 %v1815_v35  ;;  %v8172_v36 = vpop.f32.mrf.mxu1 }
 0x66f   : > { %v1812_v37 = vpop.f32.mrf.mxu1 }
 0x671   : > { %v8173_v38 = vpop.f32.mrf.mxu1 }
 0x67e   : > { %1827 = vrot.lane.b32.xlu1 %v9511_v27, %s11324_s23 }
 0x682   : > { %1923 = vrot.lane.b32.xlu1 %v9513_v29, %s9240_s26  ;;  %s11358_s26 = sld [smem:[#allocation8_spill]] }
 0x6f6   : > { %v1817_v39 = vpop.xlane.xlu1 %1816 }
 0x6f7   : > { %v1818_v40 = vsub.f32 %v1809_v34, %v1817_v39 }
 0x6f9   : > { %v1819_v41 = vmul.f32 1.442695, %v1818_v40  ;;  %v8724_v40 = vld [vmem:[%s9314_s30 + $0x14] ss:$8 sps:$4 sm:$0xff]  }
 0x6fa   : > { %v1828_v42 = vpop.permute.xlu1 %1827 }
 0x6fb   : > { %8820 = vpow2.f32 %v1819_v41  ;;  %v1833_v43 = vsel %vm1516_vm3, %v1828_v42, 0  ;;  %v8727_v41 = vld [vmem:[%s9314_s30 + $0x4] ss:$8 sps:$4 sm:$0xff]   ;;  %v9243_v42 = vmov 0  }
 0x6fc   : > { %8175 = vmatpush3.bf16.msra.mxu0 %v1833_v43  ;;  %v8725_v43 = vld [vmem:[%s9314_s30] ss:$8 sps:$4 sm:$0xff]  }
 0x6fd   : > { %8186 = vmatprep.subr.bf16.mxu0 %v9230_v10 }
 0x6fe   : > { %v1924_v51 = vpop.permute.xlu1 %1923 }
 0x708   : > { %v8821_v44 = vpop.eup %8820 }
 0x709   : > { %v1821_v45 = vsel %vm1452_vm2, %v8821_v44, 0.0 }
 0x70a   : > { %1822 = vadd.xlane.f32.xlu0 %v1821_v45  ;;  %v2331_v45 = vld [vmem:[%s9264_s13] sm:$0xff] }
 0x720   : > { %1925 = vrot.lane.b32.xlu0 %v9511_v27, %s9241_s0  ;;  %s11359_s0 = sld [smem:[#allocation3_spill]] }
 0x793   : > { %v1823_v46 = vpop.xlane.xlu0 %1822 }
 0x794   : > { %8822 = vrcp.f32 %v1823_v46 }
 0x797   : > { %v1926_v48 = vpop.permute.xlu0 %1925 }
 0x798   : > { %v1931_v50 = vsel %vm1452_vm2, %v1926_v48, 0 }
 0x7a1   : > { %v8823_v29 = vpop.eup %8822 }
 0x7a2   : > { %v1825_v47 = vmul.f32 %v8823_v29, %v8821_v44  ;;  %v2323_v44 = vld [vmem:[%s9622_s11] sm:$0xff]  ;;  %v2324_v29 = vld [vmem:[%s9622_s11 + $0x8] sm:$0xff] }
 0x7a3   : > { %v2339_v46 = vadd.f32 %v2331_v45, %v2323_v44 }
 0x7a4   : > { %v1826_v49 = vpack.c.bf16 %v1825_v47, %v1825_v47  ;;  %v2332_v47 = vld [vmem:[%s9264_s13 + $0x8] sm:$0xff] }
 0x7a5   : > { %v2340_v48 = vadd.f32 %v2332_v47, %v2324_v29 }
 0x7a6   : > { %8177 = vmatmul.mubr.msk.bf16.vlgmr.msra.gmra.mxu0 %vm1452_vm2, %v1826_v49  ;;  %v2325_v49 = vld [vmem:[%s9622_s11 + $0x10] sm:$0xff] }
 0x7a7   : > { %8187 = vmatpush3.bf16.xpose.msra.mxu0 %v1931_v50  ;;  %8188 = vmatprep.mubr.msk.bf16.mxu0 %vm9231_vm1, %v9230_v10  ;;  %v2333_v50 = vld [vmem:[%s9264_s13 + $0x10] sm:$0xff] }
 0x7a8   : > { %8198 = vmatprep.subr.bf16.mxu0 %v9230_v10 }
 0x7ae   : > { %8189 = vmatmul.mubr.msk.bf16.vlgmr.msra.gmra.mxu0 %vm1452_vm2, %v1924_v51  ;;  %v2341_v51 = vadd.f32 %v2333_v50, %v2325_v49 }
 0x7af   : > { %8200 = vmatprep.mubr.msk.bf16.mxu0 %vm9231_vm1, %v9230_v10 }
 0x866   : > { %v1869_v54 = vpop.f32.mrf.mxu0 }
 0x867   : > { %v1875_v55 = vpack.c.bf16 %v1869_v54, %v1869_v54  ;;  %v2342_v54 = vadd.f32 %v2334_v53, %v2326_v52  ;;  %v8728_v53 = vld [vmem:[%s11357_s15 + $0x38] sm:$0xff]  }
 0x868   : > { %v8178_v56 = vpop.f32.mrf.mxu0 }
 0x869   : > { %8183 = vmatmul.mubr.msk.bf16.vlgmr.msra.gmra.mxu1 %vm1452_vm2, %v1875_v55  ;;  %v2327_v55 = vld [vmem:[%s9622_s11 + $0x20] sm:$0xff] }
 0x86a   : > { %v1872_v57 = vpop.f32.mrf.mxu0  ;;  %8194 = vmatprep.mubr.msk.bf16.mxu1 %vm9231_vm1, %v9230_v10  ;;  %v2335_v56 = vld [vmem:[%s9264_s13 + $0x20] sm:$0xff] }
 0x86b   : > { %v2343_v57 = vadd.f32 %v2335_v56, %v2327_v55  ;;  %v8730_v55 = vld [vmem:[%s11357_s15 + $0x28] sm:$0xff]   ;;  %v8731_v56 = vld [vmem:[%s11357_s15 + $0x20] sm:$0xff]  }
 0x86c   : > { %v8179_v58 = vpop.f32.mrf.mxu0 }
 0x86d   : > { %v2328_v58 = vld [vmem:[%s9622_s11 + $0x28] sm:$0xff] }
 0x86e   : > { %v1967_v59 = vpop.f32.mrf.mxu0 }
 0x86f   : > { %v1973_v60 = vsel %vm1452_vm2, %v1967_v59, -inf }
 0x870   : > { %1974 = vmax.xlane.f32.xlu1 %v1973_v60  ;;  %v8190_v61 = vpop.f32.mrf.mxu0 }
 0x871   : > { %v2329_v61 = vld [vmem:[%s9622_s11 + $0x30] sm:$0xff] }
 0x872   : > { %v1970_v62 = vpop.f32.mrf.mxu0 }
 0x873   : > { %v2337_v62 = vld [vmem:[%s9264_s13 + $0x30] sm:$0xff] }
 0x874   : > { %v8191_v63 = vpop.f32.mrf.mxu0 }
 0x875   : > { %v2345_v63 = vadd.f32 %v2337_v62, %v2329_v61  ;;  %v2487_v61 = vld [vmem:[%s11358_s26 + $0x18] sm:$0xff]  ;;  %v2486_v62 = vld [vmem:[%s11358_s26 + $0x10] sm:$0xff] }
 0x8f9   : > { %v1975_v0 = vpop.xlane.xlu1 %1974 }
 0x8fa   : > { %v1976_v1 = vsub.f32 %v1967_v59, %v1975_v0  ;;  %v2336_v59 = vld [vmem:[%s9264_s13 + $0x28] sm:$0xff]  ;;  %v2330_v0 = vld [vmem:[%s9622_s11 + $0x38] sm:$0xff] }
 0x8fb   : > { %v2344_v60 = vadd.f32 %v2336_v59, %v2328_v58  ;;  %v8733_v58 = vld [vmem:[%s11357_s15 + $0x10] sm:$0xff]   ;;  %v8734_v59 = vld [vmem:[%s11357_s15 + $0x8] sm:$0xff]  }
 0x8fc   : > { %v1977_v3 = vmul.f32 1.442695, %v1976_v1  ;;  %v2338_v1 = vld [vmem:[%s9264_s13 + $0x38] sm:$0xff] }
 0x8fe   : > { %8824 = vpow2.f32 %v1977_v3  ;;  %v2346_v3 = vadd.f32 %v2338_v1, %v2330_v0  ;;  %v2484_v0 = vld [vmem:[%s11358_s26] sm:$0xff]  ;;  %v2126_v1 = vlaneseq }
 0x90b   : > { %v8825_v4 = vpop.eup %8824 }
 0x90c   : > { %v1979_v5 = vsel %vm1452_vm2, %v8825_v4, 0.0 }
 0x90d   : > { %1980 = vadd.xlane.f32.xlu0 %v1979_v5 }
 0x923   : > { %1985 = vrot.lane.b32.xlu0 %v9511_v27, %s9242_s2  ;;  %v2038_v27 = vsel %vm1516_vm3, %v1448_v18, 0  ;;  %v9659_v18 = vld [vmem:[%s9344_s6 + $0x20] sm:$0xff]  ;;  %s11360_s2 = sld [smem:[#allocation9_spill]] }
 0x924   : > { %8199 = vmatpush3.bf16.msra.mxu0 %v2038_v27  ;;  %v9664_v27 = vld [vmem:[%s9344_s6 + $0x18] sm:$0xff] }
 0x925   : > { %8204 = vmatprep.subr.bf16.mxu0 %v9230_v10 }
 0x929   : > { %v1916_v6 = vpop.f32.mrf.mxu1 }
 0x92a   : > { %v1922_v7 = vadd.f32 %v1916_v6, %v9568_v30 }
 0x92b   : > { %v8184_v8 = vpop.f32.mrf.mxu1 }
 0x92c   : > { %v7627_v8 = vld [vmem:[%s9304_s19] ss:$0 sm:$0xff] }
 0x92d   : > { %v1919_v9 = vpop.f32.mrf.mxu1 }
 0x92f   : > { %v8185_v11 = vpop.f32.mrf.mxu1 }
 0x930   : > { %v7628_v11 = vld [vmem:[%s9309_s24] ss:$0 sm:$0xff] }
 0x996   : > { %v1981_v12 = vpop.xlane.xlu0 %1980 }
 0x997   : > { %8826 = vrcp.f32 %v1981_v12 }
 0x99a   : > { %v1986_v13 = vpop.permute.xlu0 %1985 }
 0x99b   : > { %v1991_v14 = vsel %vm1516_vm3, %v1986_v13, 0 }
 0x99c   : > { %8193 = vmatpush3.bf16.msra.mxu1 %v1991_v14 }
 0x99d   : > { %2171 = vmatprep.subr.bf16.mxu1 %v8724_v40 }
 0x9a4   : > { %v8827_v15 = vpop.eup %8826 }
 0x9a5   : > { %v1983_v16 = vmul.f32 %v8827_v15, %v8825_v4  ;;  %v9643_v15 = vld [vmem:[%s9344_s6 + $0x38] sm:$0xff] }
 0x9a7   : > { %v1984_v17 = vpack.c.bf16 %v1983_v16, %v1983_v16  ;;  %v9647_v16 = vld [vmem:[%s9344_s6 + $0x30] sm:$0xff] }
 0x9a9   : > { %8195 = vmatmul.mubr.msk.bf16.vlgmr.msra.gmra.mxu1 %vm1452_vm2, %v1984_v17  ;;  %v9654_v17 = vld [vmem:[%s9344_s6 + $0x28] sm:$0xff] }
 0x9aa   : > { %2191 = vmatprep.mubr.bf16.mxu1 %v9243_v42 }
 0xa69   : > { %v2027_v19 = vpop.f32.mrf.mxu1 }
 0xa6a   : > { %v2033_v20 = vpack.c.bf16 %v2027_v19, %v2027_v19  ;;  %v9669_v19 = vld [vmem:[%s9344_s6 + $0x10] sm:$0xff] }
 0xa6b   : > { %v8196_v21 = vpop.f32.mrf.mxu1 }
 0xa6c   : > { %8201 = vmatmul.mubr.msk.bf16.vlgmr.msra.gmra.mxu0 %vm1452_vm2, %v2033_v20  ;;  %v9674_v20 = vld [vmem:[%s9344_s6 + $0x8] sm:$0xff] }
 0xa6d   : > { %v2030_v22 = vpop.f32.mrf.mxu1  ;;  %8220 = vmatprep.mubr.msk.bf16.mxu0 %vm9231_vm1, %v9230_v10  ;;  %8205 = vmatpush3.bf16.msra.mxu0 %v8728_v53 }
 0xa6e   : > { %v9681_v22 = vld [vmem:[%s9344_s6] sm:$0xff]  ;;  %8206 = vmatprep.subr.bf16.mxu0 %v9230_v10 }
 0xa6f   : > { %v8197_v23 = vpop.f32.mrf.mxu1 }
 0xb2c   : > { %v2074_v24 = vpop.f32.mrf.mxu0 }
 0xb2d   : > { %v2080_v25 = vadd.f32 %v2074_v24, %v1922_v7 }
 0xb2e   : > { %v8202_v28 = vpop.f32.mrf.mxu0 }
 0xb2f   : > { %v2081_v30 = vadd.f32 %v2080_v25, %v9489_v2  ;;  %v8722_v2 = vld [vmem:[%s9314_s30 + $0x10] ss:$8 sps:$4 sm:$0xff]  }
 0xb30   : > { %v2077_v31 = vpop.f32.mrf.mxu0  ;;  %2172 = vmatpush1.bf16.msra.mxu1 %v8722_v2 }
 0xb31   : > { %v9606_v32 = vadd.f32 %v7626_v26, %v2081_v30  ;;  %2173 = vmatprep.subr.bf16.mxu1 %v8727_v41 }
 0xb32   : > { %v8203_v33 = vpop.f32.mrf.mxu0 }
 0xb33   : > { %v2090_v34 = vsel %vm1344_vm0, %v9606_v32, 0.0 }
 0xb34   : > { %2091 = vadd.xlane.f32.xlu1 %v2090_v34  ;;  %2174 = vmatpush1.bf16.msra.mxu1 %v8725_v43 }
 0xb35   : > { %8224 = vmatprep.subr.mxu1 %v9230_v10 }
 0xbbd   : > { %v2092_v35 = vpop.xlane.xlu1 %2091 }
 0xbbe   : > { %v2093_v36 = vmul.f32 0.03125, %v2092_v35 }
 0xbc0   : > { %v2094_v37 = vsub.f32 %v9606_v32, %v2093_v36 }
 0xbc2   : > { %v2095_v38 = vmul.f32 %v2094_v37, %v2094_v37 }
 0xbc4   : > { %v2096_v39 = vsel %vm1344_vm0, %v2095_v38, 0.0 }
 0xbc5   : > { %2097 = vadd.xlane.f32.xlu1 %v2096_v39 }
 0xbf8   : > { %2347 = vxpose.xlu1.b32.start [1/8] (short) (narrow) %v2339_v46, 64 }
 0xbfc   : > { %2348 = vxpose.xlu1.b32.cont [2/8] (short) (narrow) %v2340_v48, 64 }
 0xc00   : > { %2349 = vxpose.xlu1.b32.cont [3/8] (short) (narrow) %v2341_v51, 64 }
 0xc04   : > { %2350 = vxpose.xlu1.b32.cont [4/8] (short) (narrow) %v2342_v54, 64  ;;  %v8729_v54 = vld [vmem:[%s11357_s15 + $0x30] sm:$0xff]  }
 0xc05   : > { %8207 = vmatpush3.bf16.msra.mxu0 %v8729_v54 }
 0xc06   : > { %8208 = vmatprep.subr.bf16.mxu0 %v9230_v10 }
 0xc08   : > { %2351 = vxpose.xlu1.b32.cont [5/8] (short) (narrow) %v2343_v57, 64  ;;  %v8732_v57 = vld [vmem:[%s11357_s15 + $0x18] sm:$0xff]  }
 0xc09   : > { %8209 = vmatpush3.bf16.msra.mxu0 %v8730_v55 }
 0xc0a   : > { %8210 = vmatprep.subr.bf16.mxu0 %v9230_v10 }
 0xc0c   : > { %2352 = vxpose.xlu1.b32.cont [6/8] (short) (narrow) %v2344_v60, 64  ;;  %v8735_v60 = vld [vmem:[%s11357_s15] sm:$0xff]  }
 0xc0d   : > { %8211 = vmatpush3.bf16.msra.mxu0 %v8731_v56 }
 0xc0e   : > { %8212 = vmatprep.subr.bf16.mxu0 %v9230_v10 }
 0xc10   : > { %2353 = vxpose.xlu1.b32.cont [7/8] (short) (narrow) %v2345_v63, 64  ;;  %v2485_v63 = vld [vmem:[%s11358_s26 + $0x8] sm:$0xff] }
 0xc11   : > { %8213 = vmatpush3.bf16.msra.mxu0 %v8732_v57 }
 0xc12   : > { %8214 = vmatprep.subr.bf16.mxu0 %v9230_v10 }
 0xc14   : > { %2354 = vxpose.xlu1.b32.end [8/8] (short) (narrow) %v2346_v3, 64  ;;  %v9744_v3 = vshrl.u32 %v2126_v1, 7 }
 0xc15   : > { %8215 = vmatpush3.bf16.msra.mxu0 %v8733_v58 }
 0xc16   : > { %8216 = vmatprep.subr.bf16.mxu0 %v9230_v10 }
 0xc19   : > { %8217 = vmatpush3.bf16.msra.mxu0 %v8734_v59 }
 0xc1a   : > { %8218 = vmatprep.subr.bf16.mxu0 %v9230_v10 }
 0xc1d   : > { %8219 = vmatpush3.bf16.msra.mxu0 %v8735_v60 }
 0xc1e   : > { %8273 = vmatprep.subr.mxu0 %v9230_v10 }
 0xc4e   : > { %v2098_v4 = vpop.xlane.xlu1 %2097 }
 0xc4f   : > { %v2099_v5 = vmul.f32 0.03125, %v2098_v4  ;;  %v9747_v4 = vsub.s32 1, %v9744_v3 }
 0xc51   : > { %v2100_v6 = vadd.f32 1e-05, %v2099_v5  ;;  %v2124_v5 = vld [vmem:[%s11359_s0] sm:$0x3]  ;;  %s11361_s0 = sld [smem:[#allocation6_spill]] }
 0xc53   : > { %8828 = vrsqrt.f32 %v2100_v6  ;;  %v2133_v6 = vrot.slane %v2124_v5, %v9747_v4 }
 0xc60   : > { %v8829_v7 = vpop.eup %8828 }
 0xc61   : > { %v2102_v9 = vmul.f32 %v8829_v7, %v2094_v37 }
 0xc63   : > { %v2110_v12 = vmul.f32 %v7627_v8, %v2102_v9 }
 0xc65   : > { %v2118_v13 = vadd.f32 %v7628_v11, %v2110_v12 }
 0xc67   : > { %v2119_v14 = vpack.c.bf16 %v2118_v13, %v2118_v13 }
 0xc69   : > { %7633 = vmatmul.mubr.msk.bf16.vlgmr.msra.gmra.mxu1 %vm1344_vm0, %v2119_v14 }
 0xc6a   : > { %8225 = vmatpush3.msra.mxu1 %v9643_v15  ;;  %8240 = vmatprep.mubr.msk.f32.mxu1 %vm9231_vm1, %v9230_v10 }
 0xc6b   : > { %8226 = vmatprep.subr.mxu1 %v9230_v10 }
 0xc6c   : > { %8227 = vmatpush3.msra.mxu1 %v9647_v16 }
 0xc6d   : > { %8228 = vmatprep.subr.mxu1 %v9230_v10 }
 0xc6e   : > { %8229 = vmatpush3.msra.mxu1 %v9654_v17 }
 0xc6f   : > { %8230 = vmatprep.subr.mxu1 %v9230_v10 }
 0xc70   : > { %8231 = vmatpush3.msra.mxu1 %v9659_v18 }
 0xc71   : > { %8232 = vmatprep.subr.mxu1 %v9230_v10 }
 0xc72   : > { %8233 = vmatpush3.msra.mxu1 %v9664_v27 }
 0xc73   : > { %8234 = vmatprep.subr.mxu1 %v9230_v10 }
 0xc74   : > { %v9676_v21 = vpop.trf.xlu1  ;;  %8235 = vmatpush3.msra.mxu1 %v9669_v19 }
 0xc75   : > { %8236 = vmatprep.subr.mxu1 %v9230_v10  ;;  %v2380_v30 = vsel %vm2379_vm4, %v9676_v21, 0.0 }
 0xc76   : > { %8237 = vmatpush3.msra.mxu1 %v9674_v20 }
 0xc77   : > { %8238 = vmatprep.subr.mxu1 %v9230_v10 }
 0xc78   : > { %v9685_v23 = vpop.trf.xlu1  ;;  %8239 = vmatpush3.msra.mxu1 %v9681_v22 }
 0xc79   : > { %8243 = vmatprep.subr.mxu1 %v9230_v10  ;;  %v2381_v26 = vsel %vm2379_vm4, %v9685_v23, 0.0 }
 0xc7a   : > { %v2382_v33 = vadd.f32 %v2381_v26, %v2380_v30 }
 0xc7c   : > { %v9689_v24 = vpop.trf.xlu1 }
 0xc7d   : > { %v2383_v31 = vsel %vm2379_vm4, %v9689_v24, 0.0 }
 0xc7e   : > { %v2384_v35 = vadd.f32 %v2383_v31, %v2382_v33  ;;  %v9752_v33 = vsub.s32 0, %v9744_v3 }
 0xc80   : > { %v9691_v25 = vpop.trf.xlu1 }
 0xc81   : > { %v2385_v34 = vsel %vm2379_vm4, %v9691_v25, 0.0 }
 0xc82   : > { %v2386_v38 = vadd.f32 %v2385_v34, %v2384_v35  ;;  %v2129_v34 = vrot.slane %v2124_v5, %v9752_v33 }
 0xc84   : > { %v9695_v28 = vpop.trf.xlu1 }
 0xc85   : > { %v2387_v37 = vsel %vm2379_vm4, %v9695_v28, 0.0 }
 0xc86   : > { %v2388_v2 = vadd.f32 %v2387_v37, %v2386_v38 }
 0xc88   : > { %v9703_v36 = vpop.trf.xlu1 }
 0xc89   : > { %v2389_v39 = vsel %vm2379_vm4, %v9703_v36, 0.0 }
 0xc8a   : > { %v2390_v43 = vadd.f32 %v2389_v39, %v2388_v2 }
 0xc8c   : > { %v9709_v40 = vpop.trf.xlu1 }
 0xc8d   : > { %v2391_v41 = vsel %vm2379_vm4, %v9709_v40, 0.0 }
 0xc8e   : > { %v2392_v44 = vadd.f32 %v2391_v41, %v2390_v43 }
 0xc90   : > { %v9713_v45 = vpop.trf.xlu1 }
 0xc91   : > { %v2393_v46 = vsel %vm2379_vm4, %v9713_v45, 0.0 }
 0xc92   : > { %v2394_v29 = vadd.f32 %v2393_v46, %v2392_v44 }
 0xc94   : > { %v2395_v47 = vrot.slane %v2394_v29, 4 }
 0xc96   : > { %v2396_v48 = vadd.f32 %v2395_v47, %v2394_v29 }
 0xc98   : > { %v2397_v49 = vrot.slane %v2396_v48, 2 }
 0xc9a   : > { %v2398_v50 = vadd.f32 %v2397_v49, %v2396_v48 }
 0xc9c   : > { %v2399_v51 = vrot.slane %v2398_v50, 1 }
 0xc9e   : > { %v2400_v52 = vadd.f32 %v2399_v51, %v2398_v50 }
 0xca0   : > { %8241 = vmatmul.mubr.msk.f32.vlgmr.msra.gmra.mxu1 %vm2379_vm4, %v2400_v52 }
 0xca1   : > { %8251 = vmatprep.mubr.msk.f32.mxu1 %vm9231_vm1, %v9230_v10  ;;  %8244 = vmatpush3.msra.mxu1 %v2487_v61 }
 0xca2   : > { %8245 = vmatprep.subr.mxu1 %v9230_v10 }
 0xca3   : > { %8246 = vmatpush3.msra.mxu1 %v2486_v62 }
 0xca4   : > { %8247 = vmatprep.subr.mxu1 %v9230_v10 }
 0xca5   : > { %8248 = vmatpush3.msra.mxu1 %v2485_v63 }
 0xca6   : > { %8249 = vmatprep.subr.mxu1 %v9230_v10 }
 0xca7   : > { %8250 = vmatpush3.msra.mxu1 %v2484_v0 }
 0xca8   : > { %8254 = vmatprep.subr.mxu1 %v9230_v10 }
 0xd29   : > { %v2193_v7 = vpop.f32.mrf.mxu1 }
 0xd2a   : > { %v2194_v39 = vadd.f32 %v2193_v7, %v2129_v34 }
 0xd2b   : > { %v2195_v8 = vpop.f32.mrf.mxu1 }
 0xd2c   : > { %v2196_v9 = vadd.f32 %v2195_v8, %v2133_v6 }
 0xd2d   : > { %v2197_v11 = vpop.f32.mrf.mxu1 }
 0xd2e   : > { %v2201_v12 = vmul.f32 0.044715, %v2196_v9  ;;  %v2200_v37 = vmul.f32 0.5, %v2196_v9 }
 0xd2f   : > { %v2198_v13 = vpop.f32.mrf.mxu1 }
 0xd30   : > { %v2202_v14 = vmul.f32 %v2201_v12, %v2196_v9 }
 0xd32   : > { %v2203_v26 = vmul.f32 %v2202_v14, %v2196_v9 }
 0xd34   : > { %v2204_v30 = vadd.f32 %v2203_v26, %v2196_v9  ;;  %v8736_v26 = vld [vmem:[%s11360_s2 + $0x18] sm:$0xff]  }
 0xd36   : > { %v2205_v31 = vmul.f32 0.7978846, %v2204_v30 }
 0xd38   : > { %8830 = vtanh.f32 %v2205_v31 }
 0xd45   : > { %v8831_v35 = vpop.eup %8830 }
 0xd46   : > { %v2207_v38 = vadd.f32 1.0, %v8831_v35 }
 0xd48   : > { %v2208_v2 = vmul.f32 %v2207_v38, %v2200_v37  ;;  %v8737_v38 = vld [vmem:[%s11360_s2 + $0x10] sm:$0xff]  }
 0xd4a   : > { %v2209_v41 = vmul.f32 %v2208_v2, %v2194_v39  ;;  %v8738_v39 = vld [vmem:[%s11360_s2 + $0x8] sm:$0xff]   ;;  %v8739_v2 = vld [vmem:[%s11360_s2] sm:$0xff]   ;;  %s11381_s2 = smov 64  }
 0xd4c   : > { %v2210_v43 = vpack.c.bf16 %v2209_v41, %v2209_v41 }
 0xd4e   : > { %8221 = vmatmul.mubr.bf16.vlgmr.msra.gmra.mxu0 %v2210_v43 }
 0xd4f   : > { %8274 = vmatpush3.msra.mxu0 %v2487_v61  ;;  %8281 = vmatprep.mubr.msk.f32.mxu0 %vm9231_vm1, %v9230_v10 }
 0xd50   : > { %8275 = vmatprep.subr.mxu0 %v9230_v10 }
 0xd51   : > { %8276 = vmatpush3.msra.mxu0 %v2486_v62 }
 0xd52   : > { %8277 = vmatprep.subr.mxu0 %v9230_v10 }
 0xd53   : > { %8278 = vmatpush3.msra.mxu0 %v2485_v63 }
 0xd54   : > { %8279 = vmatprep.subr.mxu0 %v9230_v10 }
 0xd55   : > { %8280 = vmatpush3.msra.mxu0 %v2484_v0 }
 0xd56   : > { %8284 = vmatprep.subr.bf16.mxu0 %v8736_v26 }
 0xd60   : > { %v2478_v44 = vpop.f32.mrf.mxu1 }
 0xd61   : > { %v2483_v46 = vmul.f32 0.0078125, %v2478_v44 }
 0xd62   : > { %v8242_v29 = vpop.f32.mrf.mxu1 }
 0xd63   : > { %8252 = vmatmul.mubr.msk.f32.vlgmr.msra.gmra.mxu1 %vm1344_vm0, %v2483_v46  ;;  %v7647_v46 = vld [vmem:[%s11361_s0] ss:$0 sm:$0xff]  ;;  %s11363_s0 = sld [smem:[#allocation10_spill]] }
 0xd64   : > { %8255 = vmatpush3.msra.mxu1 %v9643_v15  ;;  %8270 = vmatprep.mubr.msk.f32.mxu1 %vm9231_vm1, %v9230_v10 }
 0xd65   : > { %8256 = vmatprep.subr.mxu1 %v9230_v10 }
 0xd66   : > { %8257 = vmatpush3.msra.mxu1 %v9647_v16 }
 0xd67   : > { %8258 = vmatprep.subr.mxu1 %v9230_v10 }
 0xd68   : > { %8259 = vmatpush3.msra.mxu1 %v9654_v17 }
 0xd69   : > { %8260 = vmatprep.subr.mxu1 %v9230_v10 }
 0xd6a   : > { %8261 = vmatpush3.msra.mxu1 %v9659_v18 }
 0xd6b   : > { %8262 = vmatprep.subr.mxu1 %v9230_v10 }
 0xd6c   : > { %8263 = vmatpush3.msra.mxu1 %v9664_v27 }
 0xd6d   : > { %8264 = vmatprep.subr.mxu1 %v9230_v10 }
 0xd6e   : > { %8265 = vmatpush3.msra.mxu1 %v9669_v19 }
 0xd6f   : > { %8266 = vmatprep.subr.mxu1 %v9230_v10 }
 0xd70   : > { %8267 = vmatpush3.msra.mxu1 %v9674_v20 }
 0xd71   : > { %8268 = vmatprep.subr.mxu1 %v9230_v10 }
 0xd72   : > { %8269 = vmatpush3.msra.mxu1 %v9681_v22 }
 0xe0e   : > { %v9778_v15 = vpop.f32.mrf.mxu0 }
 0xe10   : > { %v8222_v16 = vpop.f32.mrf.mxu0 }
 0xe12   : > { %v2319_v17 = vpop.f32.mrf.mxu0 }
 0xe14   : > { %v8223_v18 = vpop.f32.mrf.mxu0 }
 0xe23   : > { %v2557_v47 = vpop.f32.mrf.mxu1 }
 0xe24   : > { %v2564_v27 = vrot.slane %v2557_v47, %v9752_v33  ;;  %v7648_v47 = vld [vmem:[%s11362_s10] ss:$0 sm:$0xff]  ;;  %s11364_s10 = sld [smem:[#allocation13_spill]] }
 0xe25   : > { %v8253_v48 = vpop.f32.mrf.mxu1 }
 0xe26   : > { %v2565_v49 = vsub.f32 %v9676_v21, %v2564_v27  ;;  %v2566_v19 = vsub.f32 %v9685_v23, %v2564_v27  ;;  %v2567_v50 = vsub.f32 %v9689_v24, %v2564_v27  ;;  %v2568_v20 = vsub.f32 %v9691_v25, %v2564_v27 }
 0xe27   : > { %v9786_v51 = vsub.f32 %v9695_v28, %v2564_v27  ;;  %v2570_v54 = vsub.f32 %v9703_v36, %v2564_v27  ;;  %v2571_v23 = vsub.f32 %v9709_v40, %v2564_v27  ;;  %v2572_v58 = vsub.f32 %v9713_v45, %v2564_v27 }
 0xe28   : > { %v2573_v22 = vmul.f32 %v2565_v49, %v2565_v49  ;;  %v2574_v52 = vmul.f32 %v2566_v19, %v2566_v19  ;;  %v2575_v53 = vmul.f32 %v2567_v50, %v2567_v50  ;;  %v2576_v55 = vmul.f32 %v2568_v20, %v2568_v20 }
 0xe29   : > { %v2577_v24 = vmul.f32 %v9786_v51, %v9786_v51  ;;  %v2578_v59 = vmul.f32 %v2570_v54, %v2570_v54  ;;  %v2579_v61 = vmul.f32 %v2571_v23, %v2571_v23  ;;  %v2580_v0 = vmul.f32 %v2572_v58, %v2572_v58 }
 0xe2a   : > { %v2581_v56 = vsel %vm2379_vm4, %v2573_v22, 0.0  ;;  %v2582_v57 = vsel %vm2379_vm4, %v2574_v52, 0.0  ;;  %v2584_v25 = vsel %vm2379_vm4, %v2575_v53, 0.0  ;;  %v2586_v60 = vsel %vm2379_vm4, %v2576_v55, 0.0 }
 0xe2b   : > { %v2583_v21 = vadd.f32 %v2582_v57, %v2581_v56  ;;  %v2588_v62 = vsel %vm2379_vm4, %v2577_v24, 0.0  ;;  %v2590_v40 = vsel %vm2379_vm4, %v2578_v59, 0.0  ;;  %v2592_v5 = vsel %vm2379_vm4, %v2579_v61, 0.0 }
 0xe2c   : > { %v2594_v7 = vsel %vm2379_vm4, %v2580_v0, 0.0 }
 0xe2d   : > { %v2585_v28 = vadd.f32 %v2584_v25, %v2583_v21 }
 0xe2f   : > { %v2587_v36 = vadd.f32 %v2586_v60, %v2585_v28 }
 0xe31   : > { %v2589_v63 = vadd.f32 %v2588_v62, %v2587_v36 }
 0xe33   : > { %v2591_v1 = vadd.f32 %v2590_v40, %v2589_v63  ;;  %v7649_v63 = vld [vmem:[%s11363_s0] ss:$0 sm:$0xff]  ;;  %s11365_s0 = sld [smem:[#allocation11_spill]] }
 0xe35   : > { %v2593_v6 = vadd.f32 %v2592_v5, %v2591_v1 }
 0xe37   : > { %v2595_v8 = vadd.f32 %v2594_v7, %v2593_v6 }
 0xe39   : > { %v2596_v45 = vrot.slane %v2595_v8, 4 }
 0xe3b   : > { %v2597_v9 = vadd.f32 %v2596_v45, %v2595_v8 }
 0xe3d   : > { %v2598_v11 = vrot.slane %v2597_v9, 2 }
 0xe3f   : > { %v2599_v12 = vadd.f32 %v2598_v11, %v2597_v9 }
 0xe41   : > { %v2600_v13 = vrot.slane %v2599_v12, 1 }
 0xe43   : > { %v2601_v14 = vadd.f32 %v2600_v13, %v2599_v12 }
 0xe45   : > { %8271 = vmatmul.mubr.msk.f32.vlgmr.msra.gmra.mxu1 %vm2379_vm4, %v2601_v14 }
 0xe46   : > { %3156 = vmatprep.mubr.bf16.mxu1 %v9243_v42 }
 0xf05   : > { %v2671_v30 = vpop.f32.mrf.mxu1 }
 0xf06   : > { %v2675_v31 = vmul.f32 0.0078125, %v2671_v30 }
 0xf07   : > { %v8272_v34 = vpop.f32.mrf.mxu1 }
 0xf08   : > { %v2676_v35 = vadd.f32 1e-05, %v2675_v31 }
 0xf0a   : > { %8832 = vrsqrt.f32 %v2676_v35 }
 0xf17   : > { %v8833_v37 = vpop.eup %8832 }
 0xf18   : > { %8282 = vmatmul.mubr.msk.f32.vlgmr.msra.gmra.mxu0 %vm1344_vm0, %v8833_v37 }
 0xf19   : > { %8285 = vmatpush3.bf16.msra.mxu0 %v8736_v26 }
 0xf1a   : > { %8286 = vmatprep.subr.bf16.mxu0 %v8737_v38 }
 0xf1d   : > { %8287 = vmatpush3.bf16.msra.mxu0 %v8737_v38 }
 0xf1e   : > { %8288 = vmatprep.subr.bf16.mxu0 %v8738_v39 }
 0xf21   : > { %8289 = vmatpush3.bf16.msra.mxu0 %v8738_v39 }
 0xf22   : > { %8290 = vmatprep.subr.bf16.mxu0 %v8739_v2 }
 0xf25   : > { %8291 = vmatpush3.bf16.msra.mxu0 %v8739_v2 }
 0xfd8   : > { %v2747_v41 = vpop.f32.mrf.mxu0 }
 0xfd9   : > { %v2754_v43 = vrot.slane %v2747_v41, %v9752_v33 }
 0xfda   : > { %v8283_v44 = vpop.f32.mrf.mxu0 }
 0xfdb   : > { %v2755_v29 = vmul.f32 %v2754_v43, %v2565_v49  ;;  %v2756_v16 = vmul.f32 %v2754_v43, %v2566_v19  ;;  %v2757_v17 = vmul.f32 %v2754_v43, %v2567_v50  ;;  %v2758_v18 = vmul.f32 %v2754_v43, %v2568_v20 }
 0xfdc   : > { %v2759_v27 = vmul.f32 %v2754_v43, %v9786_v51  ;;  %v2760_v48 = vmul.f32 %v2754_v43, %v2570_v54  ;;  %v2761_v21 = vmul.f32 %v2754_v43, %v2571_v23  ;;  %v2762_v24 = vmul.f32 %v2754_v43, %v2572_v58 }
 0xfdd   : > { %v2770_v22 = vmul.f32 %v7647_v46, %v2755_v29  ;;  %v2771_v52 = vmul.f32 %v7647_v46, %v2756_v16  ;;  %v2772_v53 = vmul.f32 %v7647_v46, %v2757_v17  ;;  %v2773_v55 = vmul.f32 %v7647_v46, %v2758_v18 }
 0xfde   : > { %v2774_v56 = vmul.f32 %v7647_v46, %v2759_v27  ;;  %v2775_v57 = vmul.f32 %v7647_v46, %v2760_v48  ;;  %v2776_v36 = vmul.f32 %v7647_v46, %v2761_v21  ;;  %v2777_v51 = vmul.f32 %v7647_v46, %v2762_v24 }
 0xfdf   : > { %v2785_v25 = vadd.f32 %v7648_v47, %v2770_v22  ;;  %v2786_v28 = vadd.f32 %v7648_v47, %v2771_v52  ;;  %v2787_v59 = vadd.f32 %v7648_v47, %v2772_v53  ;;  %v2788_v60 = vadd.f32 %v7648_v47, %v2773_v55 }
 0xfe0   : > { %v2789_v49 = vadd.f32 %v7648_v47, %v2774_v56  ;;  %v2790_v19 = vadd.f32 %v7648_v47, %v2775_v57  ;;  %v2791_v23 = vadd.f32 %v7648_v47, %v2776_v36  ;;  %v2792_v58 = vadd.f32 %v7648_v47, %v2777_v51 }
 0xfe1   : > { %v2793_v50 = vpack.c.bf16 %v2786_v28, %v2785_v25  ;;  %v2794_v20 = vpack.c.bf16 %v2788_v60, %v2787_v59 }
 0xfe2   : > { %v2795_v54 = vpack.c.bf16 %v2790_v19, %v2789_v49  ;;  %v2796_v61 = vpack.c.bf16 %v2792_v58, %v2791_v23 }
 0xfe3   : > { %8292 = vmatprep.mubr.msk.bf16.mxu0 %vm2379_vm4, %v2793_v50 }
 0xfe4   : > { %8293 = vmatmul.mubr.msk.bf16.vlgmr.msra.gmra.mxu0 %vm2379_vm4, %v2794_v20 }
 0xfe5   : > { %8296 = vmatprep.mubr.msk.bf16.mxu0 %vm2379_vm4, %v2795_v54 }
 0xfec   : > { %8297 = vmatmul.mubr.msk.bf16.gmra.mxu0 %vm2379_vm4, %v2796_v61 }
0x10a4   : > { %v8294_v62 = vpop.f32.mrf.mxu0 }
0x10a5   : > { %v9823_v45 = vadd.f32 %v8294_v62, %v7649_v63 }
0x10a6   : > { %v2882_v0 = vpop.f32.mrf.mxu0 }
0x10a7   : > { %v9817_v40 = vadd.f32 %v7649_v63, %v2882_v0  ;;  %v2919_v13 = vsel %vm2379_vm4, %v9823_v45, 0.0 }
0x10a8   : > { %v8295_v1 = vpop.f32.mrf.mxu0 }
0x10a9   : > { %v2913_v5 = vsel %vm2379_vm4, %v9817_v40, 0.0  ;;  %v9827_v12 = vadd.f32 %v8295_v1, %v7649_v63 }
0x10aa   : > { %v2885_v6 = vpop.f32.mrf.mxu0  ;;  %2914 = vadd.xlane.f32.xlu0 %v2913_v5 }
0x10ab   : > { %v9821_v7 = vadd.f32 %v7649_v63, %v2885_v6  ;;  %v2922_v30 = vsel %vm2379_vm4, %v9827_v12, 0.0 }
0x10ac   : > { %v8298_v8 = vpop.f32.mrf.mxu0 }
0x10ad   : > { %v2916_v9 = vsel %vm2379_vm4, %v9821_v7, 0.0  ;;  %v9839_v37 = vadd.f32 %v8298_v8, %v7649_v63  ;;  %v8742_v8 = vld [vmem:[%s11364_s10 + $0x34] ss:$8 sps:$4 sm:$0xff]  }
0x10ae   : > { %v2898_v11 = vpop.f32.mrf.mxu0  ;;  %2917 = vadd.xlane.f32.xlu0 %v2916_v9  ;;  %3132 = vmatprep.subr.bf16.mxu1 %v8742_v8 }
0x10af   : > { %v9831_v26 = vadd.f32 %v7649_v63, %v2898_v11  ;;  %v2931_v2 = vsel %vm2379_vm4, %v9839_v37, 0.0  ;;  %v8740_v11 = vld [vmem:[%s11364_s10 + $0x30] ss:$8 sps:$4 sm:$0xff]  }
0x10b0   : > { %v8299_v14 = vpop.f32.mrf.mxu0  ;;  %3133 = vmatpush1.bf16.msra.mxu1 %v8740_v11 }
0x10b1   : > { %v2925_v35 = vsel %vm2379_vm4, %v9831_v26, 0.0  ;;  %v9843_v39 = vadd.f32 %v8299_v14, %v7649_v63  ;;  %v8745_v14 = vld [vmem:[%s11364_s10 + $0x24] ss:$8 sps:$4 sm:$0xff]  }
0x10b2   : > { %2920 = vadd.xlane.f32.xlu0 %v2919_v13  ;;  %v2901_v31 = vpop.f32.mrf.mxu0  ;;  %3134 = vmatprep.subr.bf16.mxu1 %v8745_v14 }
0x10b3   : > { %v9835_v34 = vadd.f32 %v7649_v63, %v2901_v31  ;;  %v2934_v41 = vsel %vm2379_vm4, %v9843_v39, 0.0  ;;  %v8748_v31 = vld [vmem:[%s11364_s10 + $0x14] ss:$8 sps:$4 sm:$0xff]  }
0x10b5   : > { %v2928_v38 = vsel %vm2379_vm4, %v9835_v34, 0.0 }
0x10b6   : > { %2923 = vadd.xlane.f32.xlu0 %v2922_v30  ;;  %v8743_v30 = vld [vmem:[%s11364_s10 + $0x20] ss:$8 sps:$4 sm:$0xff]  }
0x10b7   : > { %3135 = vmatpush1.bf16.msra.mxu1 %v8743_v30 }
0x10b8   : > { %3136 = vmatprep.subr.bf16.mxu1 %v8748_v31 }
0x10ba   : > { %2926 = vadd.xlane.f32.xlu0 %v2925_v35  ;;  %v8746_v35 = vld [vmem:[%s11364_s10 + $0x10] ss:$8 sps:$4 sm:$0xff]  }
0x10bb   : > { %3137 = vmatpush1.bf16.msra.mxu1 %v8746_v35 }
0x10be   : > { %2929 = vadd.xlane.f32.xlu0 %v2928_v38  ;;  %v8751_v38 = vld [vmem:[%s11364_s10 + $0x4] ss:$8 sps:$4 sm:$0xff]  }
0x10bf   : > { %3138 = vmatprep.subr.bf16.mxu1 %v8751_v38 }
0x10c2   : > { %2932 = vadd.xlane.f32.xlu0 %v2931_v2  ;;  %v8749_v2 = vld [vmem:[%s11364_s10] ss:$8 sps:$4 sm:$0xff]  }
0x10c3   : > { %3139 = vmatpush1.bf16.msra.mxu1 %v8749_v2 }
0x10c6   : > { %2935 = vadd.xlane.f32.xlu0 %v2934_v41 }
0x1133   : > { %v2915_v43 = vpop.xlane.xlu0 %2914 }
0x1134   : > { %v2938_v44 = vmul.f32 0.015625, %v2915_v43 }
0x1136   : > { %v9850_v46 = vsub.f32 %v9817_v40, %v2938_v44 }
0x1137   : > { %v2918_v29 = vpop.xlane.xlu0 %2917 }
0x1138   : > { %v2939_v16 = vmul.f32 0.015625, %v2918_v29  ;;  %v2954_v17 = vmul.f32 %v9850_v46, %v9850_v46 }
0x113a   : > { %v9855_v18 = vsub.f32 %v9821_v7, %v2939_v16  ;;  %v2962_v47 = vsel %vm2379_vm4, %v2954_v17, 0.0 }
0x113b   : > { %2963 = vadd.xlane.f32.xlu0 %v2962_v47  ;;  %v2921_v27 = vpop.xlane.xlu0 %2920 }
0x113c   : > { %v2940_v48 = vmul.f32 0.015625, %v2921_v27  ;;  %v2955_v22 = vmul.f32 %v9855_v18, %v9855_v18 }
0x113e   : > { %v9861_v52 = vsub.f32 %v9823_v45, %v2940_v48  ;;  %v2965_v53 = vsel %vm2379_vm4, %v2955_v22, 0.0 }
0x113f   : > { %2966 = vadd.xlane.f32.xlu0 %v2965_v53  ;;  %v2924_v55 = vpop.xlane.xlu0 %2923 }
0x1140   : > { %v2941_v56 = vmul.f32 0.015625, %v2924_v55  ;;  %v2956_v57 = vmul.f32 %v9861_v52, %v9861_v52 }
0x1142   : > { %v9867_v21 = vsub.f32 %v9827_v12, %v2941_v56  ;;  %v2968_v24 = vsel %vm2379_vm4, %v2956_v57, 0.0 }
0x1143   : > { %2969 = vadd.xlane.f32.xlu0 %v2968_v24  ;;  %v2927_v25 = vpop.xlane.xlu0 %2926 }
0x1144   : > { %v2942_v28 = vmul.f32 0.015625, %v2927_v25  ;;  %v2957_v59 = vmul.f32 %v9867_v21, %v9867_v21 }
0x1146   : > { %v9873_v60 = vsub.f32 %v9831_v26, %v2942_v28  ;;  %v2971_v49 = vsel %vm2379_vm4, %v2957_v59, 0.0 }
0x1147   : > { %2972 = vadd.xlane.f32.xlu1 %v2971_v49  ;;  %v2930_v19 = vpop.xlane.xlu0 %2929  ;;  %v7658_v49 = vld [vmem:[%s11365_s0] ss:$0 sm:$0xff]  ;;  %s11319_s0 = smov 32  }
0x1148   : > { %v2943_v50 = vmul.f32 0.015625, %v2930_v19  ;;  %v2958_v20 = vmul.f32 %v9873_v60, %v9873_v60 }
0x114a   : > { %v9879_v36 = vsub.f32 %v9835_v34, %v2943_v50  ;;  %v2974_v51 = vsel %vm2379_vm4, %v2958_v20, 0.0 }
0x114b   : > { %2975 = vadd.xlane.f32.xlu0 %v2974_v51  ;;  %v2933_v54 = vpop.xlane.xlu0 %2932 }
0x114c   : > { %v2944_v23 = vmul.f32 0.015625, %v2933_v54  ;;  %v2959_v58 = vmul.f32 %v9879_v36, %v9879_v36 }
0x114e   : > { %v9885_v61 = vsub.f32 %v9839_v37, %v2944_v23  ;;  %v2977_v62 = vsel %vm2379_vm4, %v2959_v58, 0.0  ;;  %v7659_v58 = vld [vmem:[%s11366_s18] ss:$0 sm:$0xff]  ;;  %s11367_s18 = sld [smem:[#allocation14_spill]] }
0x114f   : > { %2978 = vadd.xlane.f32.xlu0 %v2977_v62  ;;  %v2936_v63 = vpop.xlane.xlu0 %2935 }
0x1150   : > { %v2945_v0 = vmul.f32 0.015625, %v2936_v63  ;;  %v2960_v1 = vmul.f32 %v9885_v61, %v9885_v61 }
0x1152   : > { %v9891_v5 = vsub.f32 %v9843_v39, %v2945_v0  ;;  %v2980_v6 = vsel %vm2379_vm4, %v2960_v1, 0.0 }
0x1153   : > { %2981 = vadd.xlane.f32.xlu0 %v2980_v6 }
0x1154   : > { %v2961_v9 = vmul.f32 %v9891_v5, %v9891_v5 }
0x1156   : > { %v2983_v13 = vsel %vm2379_vm4, %v2961_v9, 0.0 }
0x1157   : > { %2984 = vadd.xlane.f32.xlu0 %v2983_v13 }
0x11c4   : > { %v2964_v41 = vpop.xlane.xlu0 %2963 }
0x11c5   : > { %v2986_v43 = vmul.f32 0.015625, %v2964_v41 }
0x11c7   : > { %v2994_v44 = vadd.f32 1e-05, %v2986_v43 }
0x11c8   : > { %v2967_v29 = vpop.xlane.xlu0 %2966 }
0x11c9   : > { %8834 = vrsqrt.f32 %v2994_v44  ;;  %v2987_v16 = vmul.f32 0.015625, %v2967_v29 }
0x11cb   : > { %v2995_v17 = vadd.f32 1e-05, %v2987_v16 }
0x11cc   : > { %v2970_v47 = vpop.xlane.xlu0 %2969 }
0x11cd   : > { %8836 = vrsqrt.f32 %v2995_v17  ;;  %v2988_v27 = vmul.f32 0.015625, %v2970_v47 }
0x11cf   : > { %v2996_v48 = vadd.f32 1e-05, %v2988_v27 }
0x11d0   : > { %v2973_v22 = vpop.xlane.xlu1 %2972 }
0x11d1   : > { %8838 = vrsqrt.f32 %v2996_v48  ;;  %v2989_v53 = vmul.f32 0.015625, %v2973_v22 }
0x11d3   : > { %v2997_v55 = vadd.f32 1e-05, %v2989_v53 }
0x11d4   : > { %v2976_v56 = vpop.xlane.xlu0 %2975 }
0x11d5   : > { %8840 = vrsqrt.f32 %v2997_v55  ;;  %v2990_v57 = vmul.f32 0.015625, %v2976_v56 }
0x11d6   : > { %v8835_v24 = vpop.eup %8834 }
0x11d7   : > { %v3010_v25 = vmul.f32 %v8835_v24, %v9850_v46  ;;  %v2998_v28 = vadd.f32 1e-05, %v2990_v57 }
0x11d8   : > { %v2979_v59 = vpop.xlane.xlu0 %2978 }
0x11d9   : > { %8842 = vrsqrt.f32 %v2998_v28  ;;  %v2991_v19 = vmul.f32 0.015625, %v2979_v59  ;;  %v3025_v54 = vmul.f32 %v7658_v49, %v3010_v25  ;;  %v3060_v25 = vld [vmem:[%s11367_s18] sm:$0x3]  ;;  %s11320_s18 = smov 16  }
0x11da   : > { %v8837_v50 = vpop.eup %8836  ;;  %v3065_v28 = vrot.slane %v3060_v25, %v9752_v33 }
0x11db   : > { %v3011_v20 = vmul.f32 %v8837_v50, %v9855_v18  ;;  %v2999_v51 = vadd.f32 1e-05, %v2991_v19  ;;  %v3040_v6 = vadd.f32 %v7659_v58, %v3025_v54 }
0x11dc   : > { %v2982_v23 = vpop.xlane.xlu0 %2981 }
0x11dd   : > { %8844 = vrsqrt.f32 %v2999_v51  ;;  %v2992_v62 = vmul.f32 0.015625, %v2982_v23  ;;  %v3026_v63 = vmul.f32 %v7658_v49, %v3011_v20 }
0x11de   : > { %v8839_v0 = vpop.eup %8838 }
0x11df   : > { %v3000_v1 = vadd.f32 1e-05, %v2992_v62  ;;  %v3041_v8 = vadd.f32 %v7659_v58, %v3026_v63  ;;  %v3012_v46 = vmul.f32 %v8839_v0, %v9861_v52 }
0x11e0   : > { %v2985_v9 = vpop.xlane.xlu0 %2984 }
0x11e1   : > { %8846 = vrsqrt.f32 %v3000_v1  ;;  %v2993_v11 = vmul.f32 0.015625, %v2985_v9  ;;  %v3048_v13 = vpack.c.bf16 %v3041_v8, %v3040_v6  ;;  %v3027_v31 = vmul.f32 %v7658_v49, %v3012_v46 }
0x11e2   : > { %v8841_v14 = vpop.eup %8840 }
0x11e3   : > { %v3001_v30 = vadd.f32 1e-05, %v2993_v11  ;;  %7668 = vmatmul.mubr.msk.bf16.vlgmr.msra.gmra.mxu1 %vm2379_vm4, %v3048_v13  ;;  %v3013_v18 = vmul.f32 %v8841_v14, %v9867_v21  ;;  %v3042_v2 = vadd.f32 %v7659_v58, %v3027_v31 }
0x11e4   : > { %3166 = vmatprep.mubr.bf16.mxu1 %v9243_v42 }
0x11e5   : > { %8848 = vrsqrt.f32 %v3001_v30  ;;  %v3028_v35 = vmul.f32 %v7658_v49, %v3013_v18 }
0x11e6   : > { %v8843_v38 = vpop.eup %8842 }
0x11e7   : > { %v3043_v41 = vadd.f32 %v7659_v58, %v3028_v35  ;;  %v3014_v52 = vmul.f32 %v8843_v38, %v9873_v60  ;;  %v3069_v38 = vrot.slane %v3060_v25, %v9747_v4 }
0x11e9   : > { %v3049_v43 = vpack.c.bf16 %v3043_v41, %v3042_v2  ;;  %v3029_v16 = vmul.f32 %v7658_v49, %v3014_v52 }
0x11ea   : > { %v8845_v44 = vpop.eup %8844 }
0x11eb   : > { %7669 = vmatmul.mubr.msk.bf16.gmra.mxu1 %vm2379_vm4, %v3049_v43  ;;  %v3015_v29 = vmul.f32 %v8845_v44, %v9879_v36  ;;  %v3044_v47 = vadd.f32 %v7659_v58, %v3029_v16 }
0x11ec   : > { %3176 = vmatprep.mubr.bf16.mxu1 %v9243_v42 }
0x11ed   : > { %v3030_v21 = vmul.f32 %v7658_v49, %v3015_v29 }
0x11ee   : > { %v8847_v17 = vpop.eup %8846 }
0x11ef   : > { %v3045_v27 = vadd.f32 %v7659_v58, %v3030_v21  ;;  %v3016_v48 = vmul.f32 %v8847_v17, %v9885_v61 }
0x11f1   : > { %v3050_v22 = vpack.c.bf16 %v3045_v27, %v3044_v47  ;;  %v3031_v55 = vmul.f32 %v7658_v49, %v3016_v48 }
0x11f2   : > { %v8849_v53 = vpop.eup %8848 }
0x11f3   : > { %7670 = vmatmul.mubr.msk.bf16.gmra.mxu1 %vm2379_vm4, %v3050_v22  ;;  %v3017_v60 = vmul.f32 %v8849_v53, %v9891_v5  ;;  %v3046_v56 = vadd.f32 %v7659_v58, %v3031_v55 }
0x11f4   : > { %3186 = vmatprep.mubr.bf16.mxu1 %v9243_v42 }
0x11f5   : > { %v3032_v36 = vmul.f32 %v7658_v49, %v3017_v60 }
0x11f7   : > { %v3047_v57 = vadd.f32 %v7659_v58, %v3032_v36 }
0x11f9   : > { %v3051_v24 = vpack.c.bf16 %v3047_v57, %v3046_v56 }
0x11fb   : > { %7671 = vmatmul.mubr.msk.bf16.gmra.mxu1 %vm2379_vm4, %v3051_v24 }
0x12a3   : > { %v3158_v59 = vpop.f32.mrf.mxu1 }
0x12a4   : > { %v3159_v19 = vadd.f32 %v3158_v59, %v3065_v28 }
0x12a5   : > { %v3160_v61 = vpop.f32.mrf.mxu1 }
0x12a6   : > { %v3197_v54 = vmul.f32 0.25, %v3159_v19  ;;  %v3161_v57 = vadd.f32 %v3160_v61, %v3069_v38 }
0x12a7   : > { %v3162_v50 = vpop.f32.mrf.mxu1 }
0x12a8   : > { %v3163_v20 = vadd.f32 %v3162_v50, %v3065_v28 }
0x12a9   : > { %v3164_v51 = vpop.f32.mrf.mxu1 }
0x12aa   : > { %v3198_v5 = vmul.f32 0.25, %v3163_v20  ;;  %v9956_v55 = vpack.c.bf16 %v3163_v20, %v3159_v19  ;;  %v3165_v36 = vadd.f32 %v3164_v51, %v3069_v38 }
0x12ab   : > { %v3168_v23 = vpop.f32.mrf.mxu1 }
0x12ac   : > { %v9924_v62 = vpack.c.bf16 %v3198_v5, %v3197_v54  ;;  %v3169_v30 = vadd.f32 %v3168_v23, %v3065_v28  ;;  %v9964_v24 = vpack.c.bf16 %v3165_v36, %v3161_v57 }
0x12ad   : > { %v3170_v49 = vpop.f32.mrf.mxu1 }
0x12ae   : > { %8308 = vmatprep.mubr.msk.bf16.mxu0 %vm3237_vm5, %v9924_v62  ;;  %v3171_v60 = vadd.f32 %v3170_v49, %v3069_v38 }
0x12af   : > { %v3172_v58 = vpop.f32.mrf.mxu1 }
0x12b0   : > { %v3173_v11 = vadd.f32 %v3172_v58, %v3065_v28 }
0x12b1   : > { %v3174_v63 = vpop.f32.mrf.mxu1 }
0x12b2   : > { %v9932_v31 = vpack.c.bf16 %v3173_v11, %v3169_v30  ;;  %v3175_v48 = vadd.f32 %v3174_v63, %v3069_v38  ;;  %v3200_v25 = vmul.f32 0.25, %v3173_v11 }
0x12b3   : > { %v3178_v0 = vpop.f32.mrf.mxu1 }
0x12b4   : > { %v3179_v8 = vadd.f32 %v3178_v0, %v3065_v28  ;;  %v9958_v56 = vpack.c.bf16 %v3175_v48, %v3171_v60 }
0x12b5   : > { %v3180_v1 = vpop.f32.mrf.mxu1 }
0x12b6   : > { %v3181_v17 = vadd.f32 %v3180_v1, %v3069_v38  ;;  %v3201_v27 = vmul.f32 0.25, %v3179_v8 }
0x12b7   : > { %v3182_v6 = vpop.f32.mrf.mxu1 }
0x12b8   : > { %v3183_v46 = vadd.f32 %v3182_v6, %v3065_v28 }
0x12b9   : > { %v3184_v9 = vpop.f32.mrf.mxu1 }
0x12ba   : > { %v9928_v13 = vpack.c.bf16 %v3183_v46, %v3179_v8  ;;  %v3185_v43 = vadd.f32 %v3184_v9, %v3069_v38  ;;  %v3202_v21 = vmul.f32 0.25, %v3183_v46 }
0x12bb   : > { %v3188_v14 = vpop.f32.mrf.mxu1 }
0x12bc   : > { %3233 = vrot.lane.b32.xlu1 %v9928_v13, %s11323_s16  ;;  %v3189_v2 = vadd.f32 %v3188_v14, %v3065_v28  ;;  %v9945_v22 = vpack.c.bf16 %v3185_v43, %v3181_v17  ;;  %v9948_v53 = vpack.c.bf16 %v3202_v21, %v3201_v27 }
0x12bd   : > { %v3190_v18 = vpop.f32.mrf.mxu1 }
0x12be   : > { %v3191_v44 = vadd.f32 %v3190_v18, %v3069_v38  ;;  %v3203_v19 = vmul.f32 0.25, %v3189_v2 }
0x12bf   : > { %v3192_v35 = vpop.f32.mrf.mxu1 }
0x12c0   : > { %v3193_v41 = vadd.f32 %v3192_v35, %v3065_v28  ;;  %3514 = vrot.lane.b32.xlu1 %v9932_v31, %s11324_s23  ;;  %v3199_v28 = vmul.f32 0.25, %v3169_v30 }
0x12c1   : > { %v3194_v52 = vpop.f32.mrf.mxu1 }
0x12c2   : > { %v9937_v29 = vpack.c.bf16 %v3193_v41, %v3189_v2  ;;  %v3195_v16 = vadd.f32 %v3194_v52, %v3069_v38  ;;  %v9975_v59 = vpack.c.bf16 %v3200_v25, %v3199_v28  ;;  %v3204_v61 = vmul.f32 0.25, %v3193_v41 }
0x12c4   : > { %v9939_v47 = vpack.c.bf16 %v3195_v16, %v3191_v44  ;;  %3235 = vrot.lane.b32.xlu0 %v9937_v29, %s11323_s16  ;;  %3504 = vrot.lane.b32.xlu1 %v9924_v62, %s11325_s22  ;;  %v9979_v50 = vpack.c.bf16 %v3204_v61, %v3203_v19 }
0x12c6   : > { %8316 = vmatprep.subr.bf16.mxu1 %v9939_v47 }
0x12c7   : > { %8317 = vmatpush3.bf16.msra.mxu1 %v9939_v47 }
0x12c8   : > { %8318 = vmatprep.subr.bf16.mxu1 %v9945_v22  ;;  %3231 = vrot.lane.b32.xlu0 %v9932_v31, %s11323_s16 }
0x12c9   : > { %3508 = vrot.lane.b32.xlu1 %v9948_v53, %s11325_s22 }
0x12cb   : > { %8319 = vmatpush3.bf16.msra.mxu1 %v9945_v22 }
0x12cc   : > { %8320 = vmatprep.subr.bf16.mxu1 %v9958_v56  ;;  %3229 = vrot.lane.b32.xlu0 %v9956_v55, %s11323_s16  ;;  %s11371_s16 = sld [smem:[#allocation5_spill]] }
0x12cf   : > { %8321 = vmatpush3.bf16.msra.mxu1 %v9958_v56 }
0x12d0   : > { %8322 = vmatprep.subr.bf16.mxu1 %v9964_v24  ;;  %3518 = vrot.lane.b32.xlu0 %v9937_v29, %s11324_s23 }
0x12d3   : > { %8323 = vmatpush3.bf16.msra.mxu1 %v9964_v24 }
0x12d4   : > { %3516 = vrot.lane.b32.xlu0 %v9928_v13, %s11324_s23 }
0x12d8   : > { %3512 = vrot.lane.b32.xlu0 %v9956_v55, %s11324_s23  ;;  %s11372_s23 = sld [smem:[#allocation19_spill]] }
0x12dc   : > { %3506 = vrot.lane.b32.xlu0 %v9975_v59, %s11325_s22 }
0x12e0   : > { %3510 = vrot.lane.b32.xlu0 %v9979_v50, %s11325_s22 }
0x132e   : > { %v3234_v54 = vpop.permute.xlu1 %3233 }
0x132f   : > { %v3257_v5 = vsel %vm3237_vm5, %v3234_v54, 0 }
0x1332   : > { %v3515_v8 = vpop.permute.xlu1 %3514 }
0x1333   : > { %v3536_v11 = vsel %vm3237_vm5, %v3515_v8, 0 }
0x1336   : > { %v3236_v20 = vpop.permute.xlu0 %3235  ;;  %v3505_v46 = vpop.permute.xlu1 %3504 }
0x1337   : > { %8628 = vmatprep.subr.msk.bf16.mxu0 %vm3237_vm5, %v3236_v20  ;;  %v3260_v51 = vsel %vm3237_vm5, %v3236_v20, 0 }
0x1338   : > { %8301 = vmatpush3.bf16.xpose.msra.mxu0 %v3260_v51 }
0x1339   : > { %8629 = vmatprep.subr.msk.bf16.mxu0 %vm3237_vm5, %v3234_v54 }
0x133a   : > { %v3232_v23 = vpop.permute.xlu0 %3231 }
0x133b   : > { %v3254_v49 = vsel %vm3237_vm5, %v3232_v23, 0  ;;  %v3509_v35 = vpop.permute.xlu1 %3508 }
0x133e   : > { %v3230_v58 = vpop.permute.xlu0 %3229 }
0x133f   : > { %v3251_v63 = vsel %vm3237_vm5, %v3230_v58, 0 }
0x1340   : > { %8303 = vmatpush3.bf16.xpose.msra.mxu0 %v3257_v5 }
0x1341   : > { %8630 = vmatprep.subr.msk.bf16.mxu0 %vm3237_vm5, %v3232_v23 }
0x1342   : > { %v3519_v0 = vpop.permute.xlu0 %3518 }
0x1343   : > { %v3542_v1 = vsel %vm3237_vm5, %v3519_v0, 0 }
0x1346   : > { %v3517_v6 = vpop.permute.xlu0 %3516 }
0x1347   : > { %v3539_v9 = vsel %vm3237_vm5, %v3517_v6, 0 }
0x1348   : > { %8305 = vmatpush3.bf16.xpose.msra.mxu0 %v3254_v49 }
0x1349   : > { %8631 = vmatprep.subr.msk.bf16.mxu0 %vm3237_vm5, %v3230_v58 }
0x134a   : > { %v3513_v14 = vpop.permute.xlu0 %3512 }
0x134b   : > { %v3533_v30 = vsel %vm3237_vm5, %v3513_v14, 0 }
0x134e   : > { %v3507_v18 = vpop.permute.xlu0 %3506 }
0x1350   : > { %8307 = vmatpush3.bf16.xpose.msra.mxu0 %v3251_v63 }
0x1351   : > { %8632 = vmatprep.subr.msk.bf16.mxu0 %vm3237_vm5, %v3519_v0 }
0x1352   : > { %v3511_v38 = vpop.permute.xlu0 %3510 }
0x1357   : > { %8309 = vmatmul.mubr.msk.bf16.vlgmr.msra.gmra.mxu0 %vm3237_vm5, %v9975_v59 }
0x1358   : > { %8312 = vmatprep.mubr.msk.bf16.mxu0 %vm3237_vm5, %v9948_v53  ;;  %8333 = vmatpush3.bf16.xpose.msra.mxu0 %v3542_v1 }
0x1359   : > { %8633 = vmatprep.subr.msk.bf16.mxu0 %vm3237_vm5, %v3517_v6 }
0x135f   : > { %8313 = vmatmul.mubr.msk.bf16.gmra.mxu0 %vm3237_vm5, %v9979_v50 }
0x1360   : > { %8335 = vmatpush3.bf16.xpose.msra.mxu0 %v3539_v9  ;;  %8340 = vmatprep.mubr.msk.bf16.mxu0 %vm3237_vm5, %v3505_v46 }
0x1361   : > { %8634 = vmatprep.subr.msk.bf16.mxu0 %vm3237_vm5, %v3515_v8 }
0x1368   : > { %8337 = vmatpush3.bf16.xpose.msra.mxu0 %v3536_v11 }
0x1369   : > { %8635 = vmatprep.subr.msk.bf16.mxu0 %vm3237_vm5, %v3513_v14 }
0x1370   : > { %8339 = vmatpush3.bf16.xpose.msra.mxu0 %v3533_v30 }
0x1377   : > { %8341 = vmatmul.mubr.msk.bf16.vlgmr.msra.gmra.mxu0 %vm3237_vm5, %v3507_v18 }
0x1378   : > { %8344 = vmatprep.mubr.msk.bf16.mxu0 %vm3237_vm5, %v3509_v35 }
0x137f   : > { %8345 = vmatmul.mubr.msk.bf16.gmra.mxu0 %vm3237_vm5, %v3511_v38 }
0x1417   : > { %v8310_v2 = vpop.f32.mrf.mxu0 }
0x1418   : > { %v3333_v41 = vsel %vm2379_vm4, %v8310_v2, -inf }
0x1419   : > { %3334 = vmax.xlane.f32.xlu0 %v3333_v41  ;;  %v3296_v52 = vpop.f32.mrf.mxu0 }
0x141a   : > { %v3327_v43 = vsel %vm2379_vm4, %v3296_v52, -inf }
0x141b   : > { %3328 = vmax.xlane.f32.xlu1 %v3327_v43  ;;  %v8311_v44 = vpop.f32.mrf.mxu0 }
0x141c   : > { %v3336_v16 = vsel %vm2379_vm4, %v8311_v44, -inf }
0x141d   : > { %3337 = vmax.xlane.f32.xlu0 %v3336_v16  ;;  %v3299_v21 = vpop.f32.mrf.mxu0 }
0x141e   : > { %v3330_v27 = vsel %vm2379_vm4, %v3299_v21, -inf }
0x141f   : > { %v8314_v17 = vpop.f32.mrf.mxu0 }
0x1420   : > { %v3345_v48 = vsel %vm2379_vm4, %v8314_v17, -inf }
0x1421   : > { %3331 = vmax.xlane.f32.xlu0 %v3330_v27  ;;  %3346 = vmax.xlane.f32.xlu1 %v3345_v48  ;;  %v3312_v60 = vpop.f32.mrf.mxu0 }
0x1422   : > { %v3339_v57 = vsel %vm2379_vm4, %v3312_v60, -inf }
0x1423   : > { %v8315_v36 = vpop.f32.mrf.mxu0 }
0x1424   : > { %v3348_v25 = vsel %vm2379_vm4, %v8315_v36, -inf }
0x1425   : > { %3340 = vmax.xlane.f32.xlu1 %v3339_v57  ;;  %3349 = vmax.xlane.f32.xlu0 %v3348_v25  ;;  %v3315_v28 = vpop.f32.mrf.mxu0 }
0x1426   : > { %v3342_v61 = vsel %vm2379_vm4, %v3315_v28, -inf }
0x1429   : > { %3343 = vmax.xlane.f32.xlu0 %v3342_v61 }
0x1437   : > { %v10017_v19 = vpop.f32.mrf.mxu0 }
0x1438   : > { %v3615_v20 = vsel %vm2379_vm4, %v10017_v19, -inf }
0x1439   : > { %3616 = vmax.xlane.f32.xlu1 %v3615_v20  ;;  %v10021_v51 = vpop.f32.mrf.mxu0 }
0x143a   : > { %v3609_v5 = vsel %vm2379_vm4, %v10021_v51, -inf }
0x143b   : > { %v10023_v54 = vpop.f32.mrf.mxu0 }
0x143c   : > { %v3618_v23 = vsel %vm2379_vm4, %v10023_v54, -inf }
0x143d   : > { %3610 = vmax.xlane.f32.xlu1 %v3609_v5  ;;  %v10029_v49 = vpop.f32.mrf.mxu0  ;;  %3619 = vmax.xlane.f32.xlu0 %v3618_v23 }
0x143e   : > { %v3612_v0 = vsel %vm2379_vm4, %v10029_v49, -inf }
0x143f   : > { %v10031_v58 = vpop.f32.mrf.mxu0 }
0x1440   : > { %v3627_v63 = vsel %vm2379_vm4, %v10031_v58, -inf }
0x1441   : > { %3628 = vmax.xlane.f32.xlu1 %v3627_v63  ;;  %v10037_v1 = vpop.f32.mrf.mxu0  ;;  %3613 = vmax.xlane.f32.xlu0 %v3612_v0 }
0x1442   : > { %v3621_v8 = vsel %vm2379_vm4, %v10037_v1, -inf }
0x1443   : > { %v10039_v6 = vpop.f32.mrf.mxu0 }
0x1444   : > { %v3630_v46 = vsel %vm2379_vm4, %v10039_v6, -inf }
0x1445   : > { %3622 = vmax.xlane.f32.xlu1 %v3621_v8  ;;  %v10045_v9 = vpop.f32.mrf.mxu0  ;;  %3631 = vmax.xlane.f32.xlu0 %v3630_v46 }
0x1446   : > { %v3624_v11 = vsel %vm2379_vm4, %v10045_v9, -inf }
0x1449   : > { %3625 = vmax.xlane.f32.xlu0 %v3624_v11 }
0x1456   : > { %3711 = vrot.lane.b32.xlu1 %v9939_v47, %s11325_s22 }
0x145f   : > { %3709 = vrot.lane.b32.xlu0 %v9945_v22, %s11325_s22 }
0x14a2   : > { %v3335_v14 = vpop.xlane.xlu0 %3334 }
0x14a3   : > { %v3353_v30 = vsub.f32 %v8310_v2, %v3335_v14 }
0x14a4   : > { %v3329_v18 = vpop.xlane.xlu1 %3328 }
0x14a5   : > { %v3363_v35 = vmul.f32 1.442695, %v3353_v30  ;;  %v3351_v38 = vsub.f32 %v3296_v52, %v3329_v18 }
0x14a6   : > { %v3338_v41 = vpop.xlane.xlu0 %3337 }
0x14a7   : > { %8850 = vpow2.f32 %v3363_v35  ;;  %v3359_v43 = vmul.f32 1.442695, %v3351_v38  ;;  %v3354_v16 = vsub.f32 %v8311_v44, %v3338_v41 }
0x14a9   : > { %8852 = vpow2.f32 %v3359_v43  ;;  %v3365_v27 = vmul.f32 1.442695, %v3354_v16 }
0x14aa   : > { %v3332_v48 = vpop.xlane.xlu0 %3331  ;;  %v3347_v57 = vpop.xlane.xlu1 %3346 }
0x14ab   : > { %8854 = vpow2.f32 %v3365_v27  ;;  %v3352_v25 = vsub.f32 %v3299_v21, %v3332_v48  ;;  %v3357_v61 = vsub.f32 %v8314_v17, %v3347_v57 }
0x14ad   : > { %v3361_v20 = vmul.f32 1.442695, %v3352_v25  ;;  %v3371_v5 = vmul.f32 1.442695, %v3357_v61 }
0x14ae   : > { %v3341_v23 = vpop.xlane.xlu1 %3340  ;;  %v3350_v63 = vpop.xlane.xlu0 %3349 }
0x14af   : > { %8856 = vpow2.f32 %v3361_v20  ;;  %v3355_v2 = vsub.f32 %v3312_v60, %v3341_v23  ;;  %v3358_v0 = vsub.f32 %v8315_v36, %v3350_v63 }
0x14b0   : > { %8858 = vpow2.f32 %v3371_v5 }
0x14b1   : > { %v3367_v52 = vmul.f32 1.442695, %v3355_v2  ;;  %v3373_v8 = vmul.f32 1.442695, %v3358_v0 }
0x14b2   : > { %v3344_v46 = vpop.xlane.xlu0 %3343 }
0x14b3   : > { %8860 = vpow2.f32 %v3367_v52  ;;  %v3356_v44 = vsub.f32 %v3315_v28, %v3344_v46 }
0x14b4   : > { %v10053_v11 = vpop.eup %8850  ;;  %8862 = vpow2.f32 %v3373_v8 }
0x14b5   : > { %v3369_v14 = vmul.f32 1.442695, %v3356_v44  ;;  %v3381_v21 = vsel %vm2379_vm4, %v10053_v11, 0.0 }
0x14b6   : > { %v10057_v17 = vpop.eup %8852  ;;  %3382 = vadd.xlane.f32.xlu1 %v3381_v21 }
0x14b7   : > { %8864 = vpow2.f32 %v3369_v14  ;;  %v3375_v60 = vsel %vm2379_vm4, %v10057_v17, 0.0 }
0x14b8   : > { %v10059_v30 = vpop.eup %8854 }
0x14b9   : > { %v3384_v36 = vsel %vm2379_vm4, %v10059_v30, 0.0 }
0x14ba   : > { %3376 = vadd.xlane.f32.xlu1 %v3375_v60  ;;  %3385 = vadd.xlane.f32.xlu0 %v3384_v36 }
0x14bc   : > { %v10065_v28 = vpop.eup %8856 }
0x14bd   : > { %v10067_v18 = vpop.eup %8858  ;;  %v3378_v35 = vsel %vm2379_vm4, %v10065_v28, 0.0 }
0x14be   : > { %v3393_v38 = vsel %vm2379_vm4, %v10067_v18, 0.0  ;;  %3379 = vadd.xlane.f32.xlu0 %v3378_v35 }
0x14bf   : > { %3394 = vadd.xlane.f32.xlu1 %v3393_v38 }
0x14c0   : > { %v10073_v41 = vpop.eup %8860 }
0x14c1   : > { %v10075_v43 = vpop.eup %8862  ;;  %v3387_v16 = vsel %vm2379_vm4, %v10073_v41, 0.0 }
0x14c2   : > { %v3617_v27 = vpop.xlane.xlu1 %3616  ;;  %v3396_v48 = vsel %vm2379_vm4, %v10075_v43, 0.0 }
0x14c3   : > { %v3635_v57 = vsub.f32 %v10017_v19, %v3617_v27  ;;  %3388 = vadd.xlane.f32.xlu1 %v3387_v16  ;;  %3397 = vadd.xlane.f32.xlu0 %v3396_v48 }
0x14c4   : > { %v10082_v25 = vpop.eup %8864 }
0x14c5   : > { %v3645_v61 = vmul.f32 1.442695, %v3635_v57  ;;  %v3390_v20 = vsel %vm2379_vm4, %v10082_v25, 0.0 }
0x14c6   : > { %v3611_v5 = vpop.xlane.xlu1 %3610  ;;  %v3620_v23 = vpop.xlane.xlu0 %3619 }
0x14c7   : > { %8866 = vpow2.f32 %v3645_v61  ;;  %v3633_v63 = vsub.f32 %v10021_v51, %v3611_v5  ;;  %3391 = vadd.xlane.f32.xlu0 %v3390_v20  ;;  %v3636_v2 = vsub.f32 %v10023_v54, %v3620_v23 }
0x14c9   : > { %v3641_v0 = vmul.f32 1.442695, %v3633_v63  ;;  %v3647_v52 = vmul.f32 1.442695, %v3636_v2 }
0x14ca   : > { %v3629_v8 = vpop.xlane.xlu1 %3628  ;;  %v3614_v19 = vpop.xlane.xlu0 %3613 }
0x14cb   : > { %8868 = vpow2.f32 %v3641_v0  ;;  %v3639_v46 = vsub.f32 %v10031_v58, %v3629_v8  ;;  %v3634_v44 = vsub.f32 %v10029_v49, %v3614_v19 }
0x14cc   : > { %8870 = vpow2.f32 %v3647_v52 }
0x14cd   : > { %v3643_v14 = vmul.f32 1.442695, %v3634_v44  ;;  %v3653_v21 = vmul.f32 1.442695, %v3639_v46 }
0x14ce   : > { %v3623_v60 = vpop.xlane.xlu1 %3622  ;;  %v3632_v36 = vpop.xlane.xlu0 %3631 }
0x14cf   : > { %v3637_v35 = vsub.f32 %v10037_v1, %v3623_v60  ;;  %v3640_v51 = vsub.f32 %v10039_v6, %v3632_v36  ;;  %8872 = vpow2.f32 %v3643_v14 }
0x14d0   : > { %8874 = vpow2.f32 %v3653_v21 }
0x14d1   : > { %v3649_v54 = vmul.f32 1.442695, %v3637_v35  ;;  %v3655_v38 = vmul.f32 1.442695, %v3640_v51 }
0x14d2   : > { %v10092_v16 = vpop.permute.xlu1 %3711  ;;  %v3626_v27 = vpop.xlane.xlu0 %3625 }
0x14d3   : > { %8876 = vpow2.f32 %v3649_v54  ;;  %v3638_v58 = vsub.f32 %v10045_v9, %v3626_v27  ;;  %8348 = vmatprep.subr.bf16.mxu1 %v10092_v16 }
0x14d4   : > { %v10096_v49 = vpop.eup %8866  ;;  %8878 = vpow2.f32 %v3655_v38 }
0x14d5   : > { %v3663_v48 = vsel %vm2379_vm4, %v10096_v49, 0.0  ;;  %v3651_v1 = vmul.f32 1.442695, %v3638_v58 }
0x14d6   : > { %3664 = vadd.xlane.f32.xlu1 %v3663_v48 }
0x14d7   : > { %8880 = vpow2.f32 %v3651_v1 }
0x14d8   : > { %v10100_v6 = vpop.eup %8868 }
0x14d9   : > { %v10102_v57 = vpop.eup %8870  ;;  %v3657_v61 = vsel %vm2379_vm4, %v10100_v6, 0.0 }
0x14da   : > { %3658 = vadd.xlane.f32.xlu1 %v3657_v61  ;;  %v3666_v9 = vsel %vm2379_vm4, %v10102_v57, 0.0 }
0x14db   : > { %3667 = vadd.xlane.f32.xlu0 %v3666_v9 }
0x14dc   : > { %v10108_v20 = vpop.eup %8872 }
0x14dd   : > { %v3660_v5 = vsel %vm2379_vm4, %v10108_v20, 0.0  ;;  %v10112_v23 = vpop.eup %8874 }
0x14de   : > { %v3675_v0 = vsel %vm2379_vm4, %v10112_v23, 0.0 }
0x14df   : > { %3661 = vadd.xlane.f32.xlu0 %v3660_v5 }
0x14e0   : > { %v10114_v63 = vpop.eup %8876 }
0x14e1   : > { %v3669_v2 = vsel %vm2379_vm4, %v10114_v63, 0.0  ;;  %v10120_v52 = vpop.eup %8878 }
0x14e2   : > { %3670 = vadd.xlane.f32.xlu1 %v3669_v2  ;;  %v3678_v8 = vsel %vm2379_vm4, %v10120_v52, 0.0 }
0x14e3   : > { %3676 = vadd.xlane.f32.xlu0 %v3675_v0 }
0x14e4   : > { %v10124_v19 = vpop.eup %8880 }
0x14e5   : > { %v3672_v46 = vsel %vm2379_vm4, %v10124_v19, 0.0 }
0x14e7   : > { %3679 = vadd.xlane.f32.xlu0 %v3678_v8 }
0x14eb   : > { %3673 = vadd.xlane.f32.xlu0 %v3672_v46 }
0x14f3   : > { %3707 = vrot.lane.b32.xlu1 %v9958_v56, %s11325_s22 }
0x14f7   : > { %3978 = vrot.lane.b32.xlu1 %v9937_v29, %s11319_s0 }
0x14fb   : > { %3976 = vrot.lane.b32.xlu1 %v9928_v13, %s11319_s0 }
0x14ff   : > { %3974 = vrot.lane.b32.xlu1 %v9932_v31, %s11319_s0 }
0x1501   : > { %3705 = vrot.lane.b32.xlu0 %v9964_v24, %s11325_s22 }
0x1503   : > { %3972 = vrot.lane.b32.xlu1 %v9956_v55, %s11319_s0  ;;  %s11368_s0 = smov 80  }
0x1505   : > { %3966 = vrot.lane.b32.xlu0 %v9975_v59, %s11321_s7 }
0x1507   : > { %3964 = vrot.lane.b32.xlu1 %v9924_v62, %s11321_s7 }
0x1509   : > { %3970 = vrot.lane.b32.xlu0 %v9979_v50, %s11321_s7 }
0x150b   : > { %3968 = vrot.lane.b32.xlu1 %v9948_v53, %s11321_s7 }
0x150d   : > { %4357 = vrot.lane.b32.xlu0 %v9928_v13, %s11320_s18  ;;  %v3710_v13 = vpop.permute.xlu0 %3709 }
0x150f   : > { %4359 = vrot.lane.b32.xlu1 %v9937_v29, %s11320_s18 }
0x1511   : > { %4353 = vrot.lane.b32.xlu0 %v9956_v55, %s11320_s18 }
0x1513   : > { %4355 = vrot.lane.b32.xlu1 %v9932_v31, %s11320_s18  ;;  %s11369_s18 = sld [smem:[#allocation15_spill]] }
0x1515   : > { %4347 = vrot.lane.b32.xlu0 %v9975_v59, %s11368_s0 }
0x1517   : > { %4345 = vrot.lane.b32.xlu1 %v9924_v62, %s11368_s0 }
0x1519   : > { %4351 = vrot.lane.b32.xlu0 %v9979_v50, %s11368_s0 }
0x151b   : > { %4349 = vrot.lane.b32.xlu1 %v9948_v53, %s11368_s0 }
0x153f   : > { %v3383_v29 = vpop.xlane.xlu1 %3382 }
0x1543   : > { %v3377_v44 = vpop.xlane.xlu1 %3376  ;;  %v3386_v14 = vpop.xlane.xlu0 %3385 }
0x1544   : > { %8882 = vrcp.f32 %v3386_v14 }
0x1545   : > { %8884 = vrcp.f32 %v3377_v44 }
0x1546   : > { %8886 = vrcp.f32 %v3383_v29 }
0x1547   : > { %v3380_v31 = vpop.xlane.xlu0 %3379 }
0x1548   : > { %v3395_v55 = vpop.xlane.xlu1 %3394  ;;  %8888 = vrcp.f32 %v3380_v31 }
0x154c   : > { %v3389_v59 = vpop.xlane.xlu1 %3388  ;;  %v3398_v21 = vpop.xlane.xlu0 %3397 }
0x154d   : > { %8890 = vrcp.f32 %v3398_v21 }
0x154e   : > { %8892 = vrcp.f32 %v3389_v59 }
0x154f   : > { %8894 = vrcp.f32 %v3395_v55 }
0x1550   : > { %v3392_v62 = vpop.xlane.xlu0 %3391 }
0x1551   : > { %8896 = vrcp.f32 %v3392_v62  ;;  %v8883_v50 = vpop.eup %8882  ;;  %v8752_v62 = vld [vmem:[%s11369_s18 + $0x8] sm:$0xff]  }
0x1552   : > { %v8885_v60 = vpop.eup %8884  ;;  %v3410_v35 = vmul.f32 %v8883_v50, %v10059_v30 }
0x1553   : > { %v8887_v53 = vpop.eup %8886  ;;  %v3407_v51 = vmul.f32 %v8885_v60, %v10057_v17 }
0x1554   : > { %v3409_v38 = vmul.f32 %v8887_v53, %v10053_v11 }
0x1555   : > { %v8889_v36 = vpop.eup %8888 }
0x1556   : > { %v3408_v54 = vmul.f32 %v8889_v36, %v10065_v28  ;;  %v3416_v58 = vpack.c.bf16 %v3410_v35, %v3409_v38 }
0x1558   : > { %v3415_v27 = vpack.c.bf16 %v3408_v54, %v3407_v51 }
0x155a   : > { %8324 = vmatprep.mubr.msk.bf16.mxu1 %vm2379_vm4, %v3415_v27  ;;  %v8891_v48 = vpop.eup %8890 }
0x155b   : > { %8325 = vmatmul.mubr.msk.bf16.vlgmr.msra.gmra.mxu1 %vm2379_vm4, %v3416_v58  ;;  %v8893_v1 = vpop.eup %8892  ;;  %v3414_v30 = vmul.f32 %v8891_v48, %v10075_v43 }
0x155c   : > { %8349 = vmatpush3.bf16.msra.mxu1 %v10092_v16  ;;  %v8895_v61 = vpop.eup %8894  ;;  %v3411_v28 = vmul.f32 %v8893_v1, %v10073_v41  ;;  %v8753_v1 = vld [vmem:[%s11369_s18] sm:$0xff]  }
0x155d   : > { %8350 = vmatprep.subr.bf16.mxu1 %v3710_v13  ;;  %v3413_v5 = vmul.f32 %v8895_v61, %v10067_v18  ;;  %8374 = vmatprep.subr.bf16.mxu0 %v8753_v1 }
0x155e   : > { %v8897_v9 = vpop.eup %8896  ;;  %8375 = vmatpush3.bf16.msra.mxu0 %v8753_v1 }
0x155f   : > { %v3665_v17 = vpop.xlane.xlu1 %3664  ;;  %v3412_v11 = vmul.f32 %v8897_v9, %v10082_v25  ;;  %v3418_v0 = vpack.c.bf16 %v3414_v30, %v3413_v5 }
0x1560   : > { %8351 = vmatpush3.bf16.msra.mxu1 %v3710_v13 }
0x1561   : > { %v3417_v2 = vpack.c.bf16 %v3412_v11, %v3411_v28 }
0x1563   : > { %8328 = vmatprep.mubr.msk.bf16.mxu1 %vm2379_vm4, %v3417_v2  ;;  %v3659_v8 = vpop.xlane.xlu1 %3658 }
0x1564   : > { %8329 = vmatmul.mubr.msk.bf16.gmra.mxu1 %vm2379_vm4, %v3418_v0  ;;  %v3668_v16 = vpop.xlane.xlu0 %3667  ;;  %8898 = vrcp.f32 %v3659_v8 }
0x1565   : > { %8900 = vrcp.f32 %v3668_v16 }
0x1566   : > { %8902 = vrcp.f32 %v3665_v17 }
0x1568   : > { %v3662_v43 = vpop.xlane.xlu0 %3661 }
0x1569   : > { %8904 = vrcp.f32 %v3662_v43 }
0x156b   : > { %v3671_v46 = vpop.xlane.xlu1 %3670 }
0x156c   : > { %v3677_v41 = vpop.xlane.xlu0 %3676 }
0x156f   : > { %v3708_v29 = vpop.permute.xlu1 %3707 }
0x1570   : > { %v3680_v25 = vpop.xlane.xlu0 %3679  ;;  %8352 = vmatprep.subr.bf16.mxu1 %v3708_v29 }
0x1571   : > { %8353 = vmatpush3.bf16.msra.mxu1 %v3708_v29  ;;  %8906 = vrcp.f32 %v3680_v25  ;;  %v8899_v18 = vpop.eup %8898 }
0x1572   : > { %8908 = vrcp.f32 %v3671_v46  ;;  %v8901_v13 = vpop.eup %8900  ;;  %v3689_v59 = vmul.f32 %v8899_v18, %v10100_v6 }
0x1573   : > { %8910 = vrcp.f32 %v3677_v41  ;;  %v8903_v14 = vpop.eup %8902  ;;  %v3692_v55 = vmul.f32 %v8901_v13, %v10102_v57  ;;  %v3979_v35 = vpop.permute.xlu1 %3978 }
0x1574   : > { %v3674_v44 = vpop.xlane.xlu0 %3673  ;;  %v3691_v60 = vmul.f32 %v8903_v14, %v10096_v49  ;;  %v4002_v18 = vsel %vm3237_vm5, %v3979_v35, 0 }
0x1575   : > { %8912 = vrcp.f32 %v3674_v44 }
0x1576   : > { %v8905_v31 = vpop.eup %8904  ;;  %v3698_v36 = vpack.c.bf16 %v3692_v55, %v3691_v60 }
0x1577   : > { %v3690_v21 = vmul.f32 %v8905_v31, %v10108_v20  ;;  %v3977_v16 = vpop.permute.xlu1 %3976 }
0x1578   : > { %v3706_v50 = vpop.permute.xlu0 %3705 }
0x1579   : > { %8354 = vmatprep.subr.bf16.mxu1 %v3706_v50  ;;  %v3697_v53 = vpack.c.bf16 %v3690_v21, %v3689_v59  ;;  %v3999_v21 = vsel %vm3237_vm5, %v3977_v16, 0 }
0x157a   : > { %8355 = vmatpush3.bf16.msra.mxu1 %v3706_v50 }
0x157b   : > { %8356 = vmatprep.mubr.msk.bf16.mxu1 %vm2379_vm4, %v3697_v53  ;;  %8364 = vmatprep.subr.bf16.mxu1 %v8752_v62  ;;  %v3975_v25 = vpop.permute.xlu1 %3974 }
0x157c   : > { %v3996_v60 = vsel %vm3237_vm5, %v3975_v25, 0 }
0x157d   : > { %8357 = vmatmul.mubr.msk.bf16.vlgmr.msra.gmra.mxu1 %vm2379_vm4, %v3698_v36  ;;  %v3967_v36 = vpop.permute.xlu0 %3966 }
0x157e   : > { %8365 = vmatpush3.bf16.msra.mxu1 %v8752_v62  ;;  %v8907_v57 = vpop.eup %8906 }
0x157f   : > { %8636 = vmatprep.subr.msk.bf16.mxu1 %vm3237_vm5, %v3979_v35  ;;  %v8909_v6 = vpop.eup %8908  ;;  %v3696_v49 = vmul.f32 %v8907_v57, %v10120_v52  ;;  %v3973_v14 = vpop.permute.xlu1 %3972 }
0x1580   : > { %v8911_v20 = vpop.eup %8910  ;;  %v3693_v54 = vmul.f32 %v8909_v6, %v10114_v63  ;;  %v3993_v35 = vsel %vm3237_vm5, %v3973_v14, 0 }
0x1581   : > { %v3695_v27 = vmul.f32 %v8911_v20, %v10112_v23  ;;  %v3971_v6 = vpop.permute.xlu0 %3970 }
0x1582   : > { %v8913_v51 = vpop.eup %8912 }
0x1583   : > { %v3694_v38 = vmul.f32 %v8913_v51, %v10124_v19  ;;  %v3700_v48 = vpack.c.bf16 %v3696_v49, %v3695_v27  ;;  %v3965_v50 = vpop.permute.xlu1 %3964 }
0x1585   : > { %v3699_v58 = vpack.c.bf16 %v3694_v38, %v3693_v54  ;;  %v4358_v51 = vpop.permute.xlu0 %4357 }
0x1586   : > { %v4380_v38 = vsel %vm3237_vm5, %v4358_v51, 0 }
0x1587   : > { %8360 = vmatprep.mubr.msk.bf16.mxu1 %vm2379_vm4, %v3699_v58  ;;  %v3969_v53 = vpop.permute.xlu1 %3968 }
0x1588   : > { %8361 = vmatmul.mubr.msk.bf16.gmra.mxu1 %vm2379_vm4, %v3700_v48 }
0x1589   : > { %v4354_v58 = vpop.permute.xlu0 %4353 }
0x158a   : > { %v4374_v48 = vsel %vm3237_vm5, %v4354_v58, 0 }
0x158b   : > { %v4360_v57 = vpop.permute.xlu1 %4359 }
0x158c   : > { %v4383_v20 = vsel %vm3237_vm5, %v4360_v57, 0 }
0x158d   : > { %v4348_v1 = vpop.permute.xlu0 %4347 }
0x158f   : > { %v4356_v49 = vpop.permute.xlu1 %4355 }
0x1590   : > { %v4377_v27 = vsel %vm3237_vm5, %v4356_v49, 0 }
0x1593   : > { %v4346_v54 = vpop.permute.xlu1 %4345 }
0x161b   : > { %v8326_v61 = vpop.f32.mrf.mxu1 }
0x161d   : > { %v3465_v9 = vpop.f32.mrf.mxu1 }
0x161f   : > { %v8327_v30 = vpop.f32.mrf.mxu1 }
0x1620   : > { %v3497_v28 = vpack.c.bf16 %v8327_v30, %v8326_v61  ;;  %v4350_v61 = vpop.permute.xlu1 %4349 }
0x1621   : > { %v3468_v17 = vpop.f32.mrf.mxu1 }
0x1622   : > { %v3496_v52 = vpack.c.bf16 %v3468_v17, %v3465_v9  ;;  %v4352_v9 = vpop.permute.xlu0 %4351 }
0x1624   : > { %v8330_v63 = vpop.f32.mrf.mxu1  ;;  %8376 = vmatprep.mubr.msk.bf16.mxu0 %vm3237_vm5, %v3496_v52 }
0x1625   : > { %8377 = vmatmul.mubr.msk.bf16.vlgmr.msra.gmra.mxu0 %vm3237_vm5, %v3497_v28 }
0x1626   : > { %v3481_v23 = vpop.f32.mrf.mxu1 }
0x1628   : > { %v8331_v19 = vpop.f32.mrf.mxu1 }
0x1629   : > { %v3499_v2 = vpack.c.bf16 %v8331_v19, %v8330_v63 }
0x162a   : > { %v3484_v11 = vpop.f32.mrf.mxu1 }
0x162b   : > { %v3498_v5 = vpack.c.bf16 %v3484_v11, %v3481_v23 }
0x162d   : > { %8380 = vmatprep.mubr.msk.bf16.mxu0 %vm3237_vm5, %v3498_v5 }
0x162e   : > { %8381 = vmatmul.mubr.msk.bf16.gmra.mxu0 %vm3237_vm5, %v3499_v2 }
0x163d   : > { %v8358_v0 = vpop.f32.mrf.mxu1 }
0x163f   : > { %v3763_v8 = vpop.f32.mrf.mxu1 }
0x1641   : > { %v8359_v43 = vpop.f32.mrf.mxu1 }
0x1642   : > { %v3795_v29 = vpack.c.bf16 %v8359_v43, %v8358_v0 }
0x1643   : > { %v3766_v46 = vpop.f32.mrf.mxu1 }
0x1644   : > { %v3794_v41 = vpack.c.bf16 %v3766_v46, %v3763_v8 }
0x1646   : > { %8366 = vmatprep.mubr.msk.bf16.mxu1 %vm3237_vm5, %v3794_v41 }
0x1647   : > { %8367 = vmatmul.mubr.msk.bf16.vlgmr.msra.gmra.mxu1 %vm3237_vm5, %v3795_v29 }
0x1648   : > { %8385 = vmatpush3.bf16.xpose.msra.mxu1 %v4002_v18  ;;  %v8362_v13 = vpop.f32.mrf.mxu1 }
0x1649   : > { %8637 = vmatprep.subr.msk.bf16.mxu1 %vm3237_vm5, %v3977_v16 }
0x164a   : > { %v3779_v44 = vpop.f32.mrf.mxu1 }
0x164c   : > { %v8363_v31 = vpop.f32.mrf.mxu1 }
0x164d   : > { %v3797_v62 = vpack.c.bf16 %v8363_v31, %v8362_v13 }
0x164e   : > { %v3782_v55 = vpop.f32.mrf.mxu1 }
0x164f   : > { %v3796_v59 = vpack.c.bf16 %v3782_v55, %v3779_v44 }
0x1650   : > { %8387 = vmatpush3.bf16.xpose.msra.mxu1 %v3999_v21 }
0x1651   : > { %8638 = vmatprep.subr.msk.bf16.mxu1 %vm3237_vm5, %v3975_v25  ;;  %8370 = vmatprep.mubr.msk.bf16.mxu1 %vm3237_vm5, %v3796_v59 }
0x1652   : > { %8371 = vmatmul.mubr.msk.bf16.gmra.mxu1 %vm3237_vm5, %v3797_v62 }
0x1653   : > { %8392 = vmatprep.mubr.msk.bf16.mxu1 %vm3237_vm5, %v3965_v50 }
0x1658   : > { %8389 = vmatpush3.bf16.xpose.msra.mxu1 %v3996_v60 }
0x1659   : > { %8639 = vmatprep.subr.msk.bf16.mxu1 %vm3237_vm5, %v3973_v14 }
0x1660   : > { %8391 = vmatpush3.bf16.xpose.msra.mxu1 %v3993_v35 }
0x1661   : > { %8640 = vmatprep.subr.msk.bf16.mxu1 %vm3237_vm5, %v4360_v57 }
0x1667   : > { %8393 = vmatmul.mubr.msk.bf16.vlgmr.msra.gmra.mxu1 %vm3237_vm5, %v3967_v36 }
0x1668   : > { %8396 = vmatprep.mubr.msk.bf16.mxu1 %vm3237_vm5, %v3969_v53  ;;  %8427 = vmatpush3.bf16.xpose.msra.mxu1 %v4383_v20 }
0x1669   : > { %8641 = vmatprep.subr.msk.bf16.mxu1 %vm3237_vm5, %v4358_v51 }
0x166f   : > { %8397 = vmatmul.mubr.msk.bf16.gmra.mxu1 %vm3237_vm5, %v3971_v6 }
0x1670   : > { %8429 = vmatpush3.bf16.xpose.msra.mxu1 %v4380_v38  ;;  %8434 = vmatprep.mubr.msk.bf16.mxu1 %vm3237_vm5, %v4346_v54 }
0x1671   : > { %8642 = vmatprep.subr.msk.bf16.mxu1 %vm3237_vm5, %v4356_v49 }
0x1678   : > { %8431 = vmatpush3.bf16.xpose.msra.mxu1 %v4377_v27 }
0x1679   : > { %8643 = vmatprep.subr.msk.bf16.mxu1 %vm3237_vm5, %v4354_v58 }
0x1680   : > { %8433 = vmatpush3.bf16.xpose.msra.mxu1 %v4374_v48 }
0x1687   : > { %8435 = vmatmul.mubr.msk.bf16.vlgmr.msra.gmra.mxu1 %vm3237_vm5, %v4348_v1 }
0x1688   : > { %8438 = vmatprep.mubr.msk.bf16.mxu1 %vm3237_vm5, %v4350_v61 }
0x168f   : > { %8439 = vmatmul.mubr.msk.bf16.gmra.mxu1 %vm3237_vm5, %v4352_v9 }
0x16e5   : > { %v8378_v30 = vpop.f32.mrf.mxu0 }
0x16e7   : > { %v3933_v17 = vpop.f32.mrf.mxu0 }
0x16e9   : > { %v8379_v52 = vpop.f32.mrf.mxu0 }
0x16eb   : > { %v10225_v19 = vpop.f32.mrf.mxu0 }
0x16ee   : > { %v8382_v0 = vpop.f32.mrf.mxu0 }
0x16f0   : > { %v3949_v16 = vpop.f32.mrf.mxu0 }
0x16f2   : > { %v8383_v25 = vpop.f32.mrf.mxu0 }
0x1707   : > { %v8368_v28 = vpop.f32.mrf.mxu1 }
0x1708   : > { %v10223_v63 = vadd.f32 %v8378_v30, %v8368_v28 }
0x1709   : > { %v3850_v23 = vpop.f32.mrf.mxu1 }
0x170a   : > { %v10227_v11 = vadd.f32 %v3933_v17, %v3850_v23 }
0x170b   : > { %v8369_v5 = vpop.f32.mrf.mxu1 }
0x170c   : > { %v10229_v2 = vadd.f32 %v8379_v52, %v8369_v5 }
0x170d   : > { %v10231_v8 = vpop.f32.mrf.mxu1 }
0x1712   : > { %v8372_v43 = vpop.f32.mrf.mxu1 }
0x1713   : > { %v10233_v46 = vadd.f32 %v8382_v0, %v8372_v43 }
0x1714   : > { %v3866_v41 = vpop.f32.mrf.mxu1 }
0x1715   : > { %v10235_v29 = vadd.f32 %v3949_v16, %v3866_v41 }
0x1716   : > { %v8373_v18 = vpop.f32.mrf.mxu1 }
0x1717   : > { %v10237_v13 = vadd.f32 %v8383_v25, %v8373_v18 }
0x1718   : > { %v10239_v44 = vpop.f32.mrf.mxu1 }
0x1727   : > { %v8394_v14 = vpop.f32.mrf.mxu1 }
0x1728   : > { %v4075_v31 = vsel %vm2379_vm4, %v8394_v14, -inf }
0x1729   : > { %4076 = vmax.xlane.f32.xlu0 %v4075_v31  ;;  %v4038_v55 = vpop.f32.mrf.mxu1 }
0x172a   : > { %v4069_v59 = vsel %vm2379_vm4, %v4038_v55, -inf }
0x172b   : > { %4070 = vmax.xlane.f32.xlu1 %v4069_v59  ;;  %v8395_v21 = vpop.f32.mrf.mxu1 }
0x172c   : > { %v4078_v36 = vsel %vm2379_vm4, %v8395_v21, -inf }
0x172d   : > { %v4041_v62 = vpop.f32.mrf.mxu1 }
0x172e   : > { %v4072_v50 = vsel %vm2379_vm4, %v4041_v62, -inf }
0x172f   : > { %4073 = vmax.xlane.f32.xlu0 %v4072_v50  ;;  %v8398_v60 = vpop.f32.mrf.mxu1 }
0x1730   : > { %v4087_v20 = vsel %vm2379_vm4, %v8398_v60, -inf }
0x1731   : > { %v4054_v53 = vpop.f32.mrf.mxu1 }
0x1732   : > { %v4081_v35 = vsel %vm2379_vm4, %v4054_v53, -inf }
0x1733   : > { %4079 = vmax.xlane.f32.xlu0 %v4078_v36  ;;  %4082 = vmax.xlane.f32.xlu1 %v4081_v35  ;;  %v8399_v57 = vpop.f32.mrf.mxu1 }
0x1734   : > { %v4090_v49 = vsel %vm2379_vm4, %v8399_v57, -inf }
0x1735   : > { %v4057_v6 = vpop.f32.mrf.mxu1 }
0x1736   : > { %v4084_v51 = vsel %vm2379_vm4, %v4057_v6, -inf }
0x1737   : > { %4088 = vmax.xlane.f32.xlu1 %v4087_v20  ;;  %4085 = vmax.xlane.f32.xlu0 %v4084_v51 }
0x173b   : > { %4091 = vmax.xlane.f32.xlu0 %v4090_v49 }
0x1748   : > { %4167 = vrot.lane.b32.xlu1 %v9939_v47, %s11321_s7 }
0x17b2   : > { %v4077_v54 = vpop.xlane.xlu0 %4076 }
0x17b3   : > { %v4095_v38 = vsub.f32 %v8394_v14, %v4077_v54 }
0x17b4   : > { %v4071_v27 = vpop.xlane.xlu1 %4070 }
0x17b5   : > { %v4105_v58 = vmul.f32 1.442695, %v4095_v38  ;;  %v4093_v48 = vsub.f32 %v4038_v55, %v4071_v27 }
0x17b7   : > { %8914 = vpow2.f32 %v4105_v58  ;;  %v4101_v1 = vmul.f32 1.442695, %v4093_v48 }
0x17b8   : > { %v4074_v61 = vpop.xlane.xlu0 %4073 }
0x17b9   : > { %8916 = vpow2.f32 %v4101_v1  ;;  %v4094_v9 = vsub.f32 %v4041_v62, %v4074_v61  ;;  %v10289_v1 = vpop.f32.mrf.mxu1 }
0x17bb   : > { %v4103_v5 = vmul.f32 1.442695, %v4094_v9  ;;  %v10291_v61 = vpop.f32.mrf.mxu1 }
0x17bc   : > { %v4083_v30 = vpop.xlane.xlu1 %4082  ;;  %v4080_v17 = vpop.xlane.xlu0 %4079 }
0x17bd   : > { %v4096_v52 = vsub.f32 %v8395_v21, %v4080_v17  ;;  %v4097_v28 = vsub.f32 %v4054_v53, %v4083_v30  ;;  %v10293_v9 = vpop.f32.mrf.mxu1 }
0x17bf   : > { %v4107_v23 = vmul.f32 1.442695, %v4096_v52  ;;  %v4109_v41 = vmul.f32 1.442695, %v4097_v28  ;;  %v10295_v30 = vpop.f32.mrf.mxu1  ;;  %v4450_v52 = vsel %vm2379_vm4, %v10291_v61, -inf }
0x17c0   : > { %v4089_v0 = vpop.xlane.xlu1 %4088  ;;  %v4086_v16 = vpop.xlane.xlu0 %4085 }
0x17c1   : > { %v4099_v43 = vsub.f32 %v8398_v60, %v4089_v0  ;;  %8918 = vpow2.f32 %v4107_v23  ;;  %v4098_v14 = vsub.f32 %v4057_v6, %v4086_v16  ;;  %v10297_v17 = vpop.f32.mrf.mxu1  ;;  %v4453_v23 = vsel %vm2379_vm4, %v10295_v30, -inf }
0x17c2   : > { %8920 = vpow2.f32 %v4103_v5  ;;  %v4456_v0 = vsel %vm2379_vm4, %v10289_v1, -inf }
0x17c3   : > { %v4113_v25 = vmul.f32 1.442695, %v4099_v43  ;;  %v4111_v60 = vmul.f32 1.442695, %v4098_v14  ;;  %v10301_v28 = vpop.f32.mrf.mxu1  ;;  %v4468_v43 = vsel %vm2379_vm4, %v10297_v17, -inf }
0x17c4   : > { %v10251_v18 = vpop.eup %8914  ;;  %v4168_v31 = vpop.permute.xlu1 %4167  ;;  %v4462_v5 = vsel %vm2379_vm4, %v10301_v28, -inf }
0x17c5   : > { %v4092_v55 = vpop.xlane.xlu0 %4091  ;;  %8922 = vpow2.f32 %v4113_v25  ;;  %8400 = vmatprep.subr.bf16.mxu0 %v4168_v31  ;;  %v4123_v21 = vsel %vm2379_vm4, %v10251_v18, 0.0  ;;  %v10309_v16 = vpop.f32.mrf.mxu1 }
0x17c6   : > { %v4100_v59 = vsub.f32 %v8399_v57, %v4092_v55  ;;  %v10255_v62 = vpop.eup %8916  ;;  %8401 = vmatpush3.bf16.msra.mxu0 %v4168_v31  ;;  %4124 = vadd.xlane.f32.xlu1 %v4123_v21  ;;  %8924 = vpow2.f32 %v4109_v41  ;;  %v4459_v41 = vsel %vm2379_vm4, %v10293_v9, -inf  ;;  %v4471_v31 = vsel %vm2379_vm4, %v10309_v16, -inf }
0x17c7   : > { %v4117_v53 = vsel %vm2379_vm4, %v10255_v62, 0.0  ;;  %v10315_v25 = vpop.f32.mrf.mxu1 }
0x17c8   : > { %v4115_v50 = vmul.f32 1.442695, %v4100_v59  ;;  %v4465_v14 = vsel %vm2379_vm4, %v10315_v25, -inf }
0x17ca   : > { %8926 = vpow2.f32 %v4115_v50  ;;  %4118 = vadd.xlane.f32.xlu1 %v4117_v53 }
0x17cb   : > { %8928 = vpow2.f32 %v4111_v60 }
0x17ce   : > { %v10259_v36 = vpop.eup %8918 }
0x17cf   : > { %v4126_v35 = vsel %vm2379_vm4, %v10259_v36, 0.0  ;;  %v10263_v57 = vpop.eup %8920 }
0x17d0   : > { %4127 = vadd.xlane.f32.xlu0 %v4126_v35  ;;  %v4120_v49 = vsel %vm2379_vm4, %v10263_v57, 0.0 }
0x17d2   : > { %v10265_v6 = vpop.eup %8922 }
0x17d3   : > { %v4135_v20 = vsel %vm2379_vm4, %v10265_v6, 0.0  ;;  %v10269_v51 = vpop.eup %8924 }
0x17d4   : > { %4136 = vadd.xlane.f32.xlu1 %v4135_v20  ;;  %4121 = vadd.xlane.f32.xlu0 %v4120_v49  ;;  %v4129_v38 = vsel %vm2379_vm4, %v10269_v51, 0.0 }
0x17d7   : > { %v10273_v54 = vpop.eup %8926 }
0x17d8   : > { %v4138_v27 = vsel %vm2379_vm4, %v10273_v54, 0.0  ;;  %4130 = vadd.xlane.f32.xlu1 %v4129_v38  ;;  %v10279_v58 = vpop.eup %8928 }
0x17d9   : > { %4139 = vadd.xlane.f32.xlu0 %v4138_v27  ;;  %v4132_v48 = vsel %vm2379_vm4, %v10279_v58, 0.0 }
0x17dd   : > { %4133 = vadd.xlane.f32.xlu0 %v4132_v48 }
0x17e9   : > { %4163 = vrot.lane.b32.xlu1 %v9958_v56, %s11321_s7 }
0x17ed   : > { %4161 = vrot.lane.b32.xlu1 %v9964_v24, %s11321_s7 }
0x17f3   : > { %4165 = vrot.lane.b32.xlu0 %v9945_v22, %s11321_s7  ;;  %s11370_s7 = sld [smem:[#allocation21_spill]] }
0x1811   : > { %4451 = vmax.xlane.f32.xlu1 %v4450_v52 }
0x1812   : > { %4454 = vmax.xlane.f32.xlu0 %v4453_v23 }
0x1815   : > { %4463 = vmax.xlane.f32.xlu1 %v4462_v5 }
0x1816   : > { %4457 = vmax.xlane.f32.xlu0 %v4456_v0 }
0x1819   : > { %4469 = vmax.xlane.f32.xlu1 %v4468_v43 }
0x181a   : > { %4460 = vmax.xlane.f32.xlu0 %v4459_v41 }
0x181e   : > { %4466 = vmax.xlane.f32.xlu0 %v4465_v14  ;;  %v8754_v14 = vld [vmem:[%s11369_s18 + $0x10] sm:$0xff]  }
0x1822   : > { %4472 = vmax.xlane.f32.xlu0 %v4471_v31 }
0x182a   : > { %4548 = vrot.lane.b32.xlu1 %v9939_v47, %s11368_s0 }
0x184f   : > { %v4125_v55 = vpop.xlane.xlu1 %4124 }
0x1853   : > { %v4119_v59 = vpop.xlane.xlu1 %4118 }
0x1854   : > { %8930 = vrcp.f32 %v4119_v59 }
0x1859   : > { %v4128_v21 = vpop.xlane.xlu0 %4127 }
0x185d   : > { %v4137_v50 = vpop.xlane.xlu1 %4136  ;;  %v4122_v60 = vpop.xlane.xlu0 %4121 }
0x185e   : > { %8932 = vrcp.f32 %v4122_v60 }
0x185f   : > { %8934 = vrcp.f32 %v4128_v21 }
0x1860   : > { %8936 = vrcp.f32 %v4125_v55 }
0x1861   : > { %v4131_v53 = vpop.xlane.xlu1 %4130  ;;  %v8931_v49 = vpop.eup %8930 }
0x1862   : > { %v4140_v35 = vpop.xlane.xlu0 %4139  ;;  %8938 = vrcp.f32 %v4131_v53  ;;  %v4149_v48 = vmul.f32 %v8931_v49, %v10255_v62 }
0x1865   : > { %v4164_v38 = vpop.permute.xlu1 %4163 }
0x1866   : > { %v4134_v20 = vpop.xlane.xlu0 %4133 }
0x1867   : > { %8940 = vrcp.f32 %v4134_v20 }
0x1868   : > { %8942 = vrcp.f32 %v4140_v35 }
0x1869   : > { %8944 = vrcp.f32 %v4137_v50  ;;  %v4162_v43 = vpop.permute.xlu1 %4161 }
0x186a   : > { %v4166_v27 = vpop.permute.xlu0 %4165 }
0x186b   : > { %8402 = vmatprep.subr.bf16.mxu0 %v4166_v27  ;;  %v8933_v47 = vpop.eup %8932 }
0x186c   : > { %8403 = vmatpush3.bf16.msra.mxu0 %v4166_v27  ;;  %v4150_v52 = vmul.f32 %v8933_v47, %v10263_v57  ;;  %v8935_v23 = vpop.eup %8934 }
0x186d   : > { %8404 = vmatprep.subr.bf16.mxu0 %v4164_v38  ;;  %v8937_v0 = vpop.eup %8936  ;;  %v4152_v41 = vmul.f32 %v8935_v23, %v10259_v36 }
0x186e   : > { %v4157_v5 = vpack.c.bf16 %v4150_v52, %v4149_v48  ;;  %v4151_v55 = vmul.f32 %v8937_v0, %v10251_v18 }
0x186f   : > { %v8939_v31 = vpop.eup %8938 }
0x1870   : > { %8405 = vmatpush3.bf16.msra.mxu0 %v4164_v38  ;;  %8408 = vmatprep.mubr.msk.bf16.mxu0 %vm2379_vm4, %v4157_v5  ;;  %v4158_v21 = vpack.c.bf16 %v4152_v41, %v4151_v55  ;;  %v4153_v62 = vmul.f32 %v8939_v31, %v10269_v51 }
0x1871   : > { %8406 = vmatprep.subr.bf16.mxu0 %v4162_v43 }
0x1874   : > { %v8941_v59 = vpop.eup %8940  ;;  %8407 = vmatpush3.bf16.msra.mxu0 %v4162_v43 }
0x1875   : > { %v4154_v57 = vmul.f32 %v8941_v59, %v10279_v58  ;;  %8416 = vmatprep.subr.bf16.mxu0 %v8754_v14  ;;  %v8943_v50 = vpop.eup %8942 }
0x1876   : > { %v8945_v36 = vpop.eup %8944  ;;  %v4156_v53 = vmul.f32 %v8943_v50, %v10273_v54 }
0x1877   : > { %8409 = vmatmul.mubr.msk.bf16.vlgmr.msra.gmra.mxu0 %vm2379_vm4, %v4158_v21  ;;  %v4159_v60 = vpack.c.bf16 %v4154_v57, %v4153_v62  ;;  %v4155_v18 = vmul.f32 %v8945_v36, %v10265_v6 }
0x1878   : > { %8417 = vmatpush3.bf16.msra.mxu0 %v8754_v14 }
0x1879   : > { %8412 = vmatprep.mubr.msk.bf16.mxu0 %vm2379_vm4, %v4159_v60  ;;  %v4160_v35 = vpack.c.bf16 %v4156_v53, %v4155_v18 }
0x187f   : > { %8413 = vmatmul.mubr.msk.bf16.gmra.mxu0 %vm2379_vm4, %v4160_v35 }
0x189a   : > { %v4452_v20 = vpop.xlane.xlu1 %4451 }
0x189b   : > { %v4455_v51 = vpop.xlane.xlu0 %4454  ;;  %v4474_v58 = vsub.f32 %v10291_v61, %v4452_v20 }
0x189c   : > { %v4475_v47 = vsub.f32 %v10295_v30, %v4455_v51 }
0x189d   : > { %v4482_v48 = vmul.f32 1.442695, %v4474_v58 }
0x189e   : > { %v4464_v49 = vpop.xlane.xlu1 %4463  ;;  %v4484_v0 = vmul.f32 1.442695, %v4475_v47 }
0x189f   : > { %v4458_v38 = vpop.xlane.xlu0 %4457  ;;  %v4478_v43 = vsub.f32 %v10301_v28, %v4464_v49 }
0x18a0   : > { %v4476_v27 = vsub.f32 %v10289_v1, %v4458_v38  ;;  %v10382_v38 = vpop.f32.mrf.mxu0 }
0x18a1   : > { %v4490_v1 = vmul.f32 1.442695, %v4478_v43 }
0x18a2   : > { %v4486_v52 = vmul.f32 1.442695, %v4476_v27  ;;  %v4470_v23 = vpop.xlane.xlu1 %4469 }
0x18a3   : > { %v4480_v54 = vsub.f32 %v10297_v17, %v4470_v23  ;;  %v4461_v5 = vpop.xlane.xlu0 %4460 }
0x18a4   : > { %8946 = vpow2.f32 %v4486_v52  ;;  %v4477_v6 = vsub.f32 %v10293_v9, %v4461_v5 }
0x18a5   : > { %8948 = vpow2.f32 %v4482_v48  ;;  %v4494_v61 = vmul.f32 1.442695, %v4480_v54 }
0x18a6   : > { %v4488_v41 = vmul.f32 1.442695, %v4477_v6  ;;  %v4549_v14 = vpop.permute.xlu1 %4548 }
0x18a7   : > { %v4467_v31 = vpop.xlane.xlu0 %4466  ;;  %8442 = vmatprep.subr.bf16.mxu0 %v4549_v14 }
0x18a8   : > { %8950 = vpow2.f32 %v4488_v41  ;;  %v4479_v30 = vsub.f32 %v10315_v25, %v4467_v31 }
0x18a9   : > { %8952 = vpow2.f32 %v4484_v0 }
0x18aa   : > { %8954 = vpow2.f32 %v4494_v61  ;;  %v4492_v9 = vmul.f32 1.442695, %v4479_v30 }
0x18ab   : > { %v4473_v17 = vpop.xlane.xlu0 %4472  ;;  %8956 = vpow2.f32 %v4490_v1 }
0x18ac   : > { %v4481_v55 = vsub.f32 %v10309_v16, %v4473_v17 }
0x18ae   : > { %v4496_v59 = vmul.f32 1.442695, %v4481_v55 }
0x18b0   : > { %8958 = vpow2.f32 %v4496_v59 }
0x18b1   : > { %v10344_v21 = vpop.eup %8946  ;;  %8960 = vpow2.f32 %v4492_v9 }
0x18b2   : > { %v4504_v28 = vsel %vm2379_vm4, %v10344_v21, 0.0  ;;  %v10348_v62 = vpop.eup %8948 }
0x18b3   : > { %4505 = vadd.xlane.f32.xlu1 %v4504_v28  ;;  %v4498_v16 = vsel %vm2379_vm4, %v10348_v62, 0.0 }
0x18b5   : > { %v10350_v57 = vpop.eup %8950 }
0x18b6   : > { %v10352_v50 = vpop.eup %8952  ;;  %v4507_v25 = vsel %vm2379_vm4, %v10350_v57, 0.0 }
0x18b7   : > { %v10358_v60 = vpop.eup %8954  ;;  %4499 = vadd.xlane.f32.xlu1 %v4498_v16  ;;  %4508 = vadd.xlane.f32.xlu0 %v4507_v25  ;;  %v4501_v53 = vsel %vm2379_vm4, %v10352_v50, 0.0 }
0x18b8   : > { %v4516_v36 = vsel %vm2379_vm4, %v10358_v60, 0.0  ;;  %v10364_v18 = vpop.eup %8956 }
0x18b9   : > { %v4510_v20 = vsel %vm2379_vm4, %v10364_v18, 0.0 }
0x18bb   : > { %4517 = vadd.xlane.f32.xlu1 %v4516_v36  ;;  %4502 = vadd.xlane.f32.xlu0 %v4501_v53 }
0x18bd   : > { %v10366_v35 = vpop.eup %8958 }
0x18be   : > { %v4519_v51 = vsel %vm2379_vm4, %v10366_v35, 0.0  ;;  %v10372_v58 = vpop.eup %8960 }
0x18bf   : > { %4511 = vadd.xlane.f32.xlu1 %v4510_v20  ;;  %4520 = vadd.xlane.f32.xlu0 %v4519_v51  ;;  %v4513_v49 = vsel %vm2379_vm4, %v10372_v58, 0.0 }
0x18c3   : > { %4514 = vadd.xlane.f32.xlu0 %v4513_v49 }
0x18d0   : > { %4544 = vrot.lane.b32.xlu1 %v9958_v56, %s11368_s0 }
0x18d4   : > { %4542 = vrot.lane.b32.xlu1 %v9964_v24, %s11368_s0 }
0x18d9   : > { %4546 = vrot.lane.b32.xlu0 %v9945_v22, %s11368_s0 }
0x1937   : > { %v8410_v27 = vpop.f32.mrf.mxu0 }
0x1939   : > { %v4219_v47 = vpop.f32.mrf.mxu0 }
0x193b   : > { %v8411_v48 = vpop.f32.mrf.mxu0 }
0x193c   : > { %v4506_v52 = vpop.xlane.xlu1 %4505  ;;  %v4251_v5 = vpack.c.bf16 %v8411_v48, %v8410_v27 }
0x193d   : > { %v4222_v23 = vpop.f32.mrf.mxu0 }
0x193e   : > { %v4250_v54 = vpack.c.bf16 %v4222_v23, %v4219_v47 }
0x193f   : > { %v8414_v6 = vpop.f32.mrf.mxu0 }
0x1940   : > { %8418 = vmatprep.mubr.msk.bf16.mxu0 %vm3237_vm5, %v4250_v54  ;;  %v4500_v0 = vpop.xlane.xlu1 %4499  ;;  %v4509_v56 = vpop.xlane.xlu0 %4508 }
0x1941   : > { %v4235_v43 = vpop.f32.mrf.mxu0  ;;  %8419 = vmatmul.mubr.msk.bf16.vlgmr.msra.gmra.mxu0 %vm3237_vm5, %v4251_v5  ;;  %8962 = vrcp.f32 %v4500_v0 }
0x1942   : > { %8443 = vmatpush3.bf16.msra.mxu0 %v4549_v14 }
0x1943   : > { %v8415_v24 = vpop.f32.mrf.mxu0 }
0x1944   : > { %v4518_v22 = vpop.xlane.xlu1 %4517  ;;  %v4503_v61 = vpop.xlane.xlu0 %4502  ;;  %v4253_v1 = vpack.c.bf16 %v8415_v24, %v8414_v6 }
0x1945   : > { %v4238_v41 = vpop.f32.mrf.mxu0  ;;  %8964 = vrcp.f32 %v4503_v61 }
0x1946   : > { %v4252_v31 = vpack.c.bf16 %v4238_v41, %v4235_v43  ;;  %8966 = vrcp.f32 %v4509_v56 }
0x1947   : > { %8968 = vrcp.f32 %v4506_v52 }
0x1948   : > { %8422 = vmatprep.mubr.msk.bf16.mxu0 %vm3237_vm5, %v4252_v31  ;;  %v4512_v30 = vpop.xlane.xlu1 %4511  ;;  %v4521_v17 = vpop.xlane.xlu0 %4520 }
0x1949   : > { %8423 = vmatmul.mubr.msk.bf16.gmra.mxu0 %vm3237_vm5, %v4253_v1  ;;  %8970 = vrcp.f32 %v4512_v30 }
0x194c   : > { %v4515_v55 = vpop.xlane.xlu0 %4514  ;;  %v4545_v14 = vpop.permute.xlu1 %4544 }
0x194d   : > { %8972 = vrcp.f32 %v4515_v55 }
0x194e   : > { %8974 = vrcp.f32 %v4521_v17  ;;  %v8963_v59 = vpop.eup %8962 }
0x194f   : > { %8976 = vrcp.f32 %v4518_v22  ;;  %v4530_v25 = vmul.f32 %v8963_v59, %v10348_v62  ;;  %v8756_v59 = vld [vmem:[%s11370_s7 + $0x8] sm:$0xff]  }
0x1950   : > { %v4547_v9 = vpop.permute.xlu0 %4546  ;;  %v4543_v20 = vpop.permute.xlu1 %4542 }
0x1951   : > { %8444 = vmatprep.subr.bf16.mxu0 %v4547_v9 }
0x1952   : > { %8445 = vmatpush3.bf16.msra.mxu0 %v4547_v9  ;;  %v8965_v28 = vpop.eup %8964 }
0x1953   : > { %8446 = vmatprep.subr.bf16.mxu0 %v4545_v14  ;;  %v8967_v16 = vpop.eup %8966  ;;  %v4531_v36 = vmul.f32 %v8965_v28, %v10352_v50 }
0x1954   : > { %v8969_v53 = vpop.eup %8968  ;;  %v4533_v49 = vmul.f32 %v8967_v16, %v10350_v57 }
0x1955   : > { %v4538_v51 = vpack.c.bf16 %v4531_v36, %v4530_v25  ;;  %v4532_v47 = vmul.f32 %v8969_v53, %v10344_v21  ;;  %v8755_v21 = vld [vmem:[%s11369_s18 + $0x18] sm:$0xff]  }
0x1956   : > { %8447 = vmatpush3.bf16.msra.mxu0 %v4545_v14  ;;  %v8971_v27 = vpop.eup %8970 }
0x1957   : > { %8448 = vmatprep.subr.bf16.mxu0 %v4543_v20  ;;  %8450 = vmatprep.mubr.msk.bf16.mxu0 %vm2379_vm4, %v4538_v51  ;;  %v4539_v52 = vpack.c.bf16 %v4533_v49, %v4532_v47  ;;  %v4534_v62 = vmul.f32 %v8971_v27, %v10364_v18  ;;  %v8758_v27 = vld [vmem:[%s11372_s23 + $0x18] sm:$0xff]   ;;  %v8759_v47 = vld [vmem:[%s11372_s23 + $0x10] sm:$0xff]  }
0x1958   : > { %8468 = vmatprep.subr.bf16.mxu1 %v8758_v27 }
0x1959   : > { %8469 = vmatpush3.bf16.msra.mxu1 %v8758_v27 }
0x195a   : > { %v8973_v48 = vpop.eup %8972  ;;  %8449 = vmatpush3.bf16.msra.mxu0 %v4543_v20  ;;  %8470 = vmatprep.subr.bf16.mxu1 %v8759_v47 }
0x195b   : > { %v4535_v50 = vmul.f32 %v8973_v48, %v10372_v58  ;;  %v8975_v23 = vpop.eup %8974  ;;  %8458 = vmatprep.subr.bf16.mxu0 %v8755_v21  ;;  %v8761_v48 = vld [vmem:[%s11372_s23] sm:$0xff]  }
0x195c   : > { %v8977_v5 = vpop.eup %8976  ;;  %v4537_v57 = vmul.f32 %v8975_v23, %v10366_v35  ;;  %v3937_v35 = vadd.f32 %v10225_v19, %v10231_v8 }
0x195d   : > { %8451 = vmatmul.mubr.msk.bf16.vlgmr.msra.gmra.mxu0 %vm2379_vm4, %v4539_v52  ;;  %v4540_v54 = vpack.c.bf16 %v4535_v50, %v4534_v62  ;;  %v4536_v6 = vmul.f32 %v8977_v5, %v10358_v60  ;;  %8471 = vmatpush3.bf16.msra.mxu1 %v8759_v47 }
0x195e   : > { %8459 = vmatpush3.bf16.msra.mxu0 %v8755_v21 }
0x195f   : > { %8454 = vmatprep.mubr.msk.bf16.mxu0 %vm2379_vm4, %v4540_v54  ;;  %v4541_v0 = vpack.c.bf16 %v4537_v57, %v4536_v6  ;;  %8484 = vmatprep.subr.bf16.mxu0 %v9230_v10 }
0x1965   : > { %8455 = vmatmul.mubr.msk.bf16.gmra.mxu0 %vm2379_vm4, %v4541_v0 }
0x1a01   : > { %v8420_v18 = vpop.f32.mrf.mxu0 }
0x1a02   : > { %v4339_v58 = vadd.f32 %v8420_v18, %v10223_v63 }
0x1a03   : > { %v4306_v56 = vpop.f32.mrf.mxu0 }
0x1a04   : > { %v4337_v43 = vadd.f32 %v4306_v56, %v10227_v11  ;;  %v3953_v11 = vadd.f32 %v10382_v38, %v10239_v44  ;;  %v7634_v38 = vld [vmem:[%s11371_s16] ss:$0 sm:$0xff]  ;;  %s11373_s16 = sld [smem:[#allocation16_spill]] }
0x1a05   : > { %v8421_v24 = vpop.f32.mrf.mxu0  ;;  %v2317_v53 = vadd.f32 %v7634_v38, %v9778_v15  ;;  %v8760_v15 = vld [vmem:[%s11372_s23 + $0x8] sm:$0xff]  }
0x1a06   : > { %v4340_v60 = vadd.f32 %v8421_v24, %v10229_v2  ;;  %8472 = vmatprep.subr.bf16.mxu1 %v8760_v15 }
0x1a07   : > { %v4309_v22 = vpop.f32.mrf.mxu0  ;;  %v2322_v51 = vadd.f32 %v2317_v53, %v9606_v32  ;;  %8473 = vmatpush3.bf16.msra.mxu1 %v8760_v15 }
0x1a08   : > { %v4338_v61 = vadd.f32 %v4309_v22, %v3937_v35  ;;  %8474 = vmatprep.subr.bf16.mxu1 %v8761_v48 }
0x1a09   : > { %v8424_v41 = vpop.f32.mrf.mxu0  ;;  %v5003_v49 = vpack.c.bf16 %v2322_v51, %v2322_v51 }
0x1a0a   : > { %v10408_v31 = vadd.f32 %v8424_v41, %v10233_v46  ;;  %v7724_v62 = vld [vmem:[%s11373_s16] ss:$0 sm:$0xff]  ;;  %s11374_s16 = sld [smem:[#allocation22_spill]] }
0x1a0b   : > { %v4322_v1 = vpop.f32.mrf.mxu0  ;;  %8475 = vmatpush3.bf16.msra.mxu1 %v8761_v48 }
0x1a0c   : > { %v10411_v30 = vadd.f32 %v4322_v1, %v10235_v29 }
0x1a0d   : > { %v8425_v63 = vpop.f32.mrf.mxu0 }
0x1a0e   : > { %v10416_v19 = vadd.f32 %v8425_v63, %v10237_v13  ;;  %v8757_v13 = vld [vmem:[%s11370_s7] sm:$0xff]  }
0x1a0f   : > { %v4325_v2 = vpop.f32.mrf.mxu0 }
0x1a10   : > { %v10418_v8 = vadd.f32 %v4325_v2, %v3953_v11  ;;  %v7736_v11 = vld [vmem:[%s11374_s16] ss:$0 sm:$0xff]  ;;  %s11375_s16 = sld [smem:[#allocation17_spill]] }
0x1a1d   : > { %v8452_v17 = vpop.f32.mrf.mxu0 }
0x1a1f   : > { %v4600_v55 = vpop.f32.mrf.mxu0 }
0x1a21   : > { %v8453_v46 = vpop.f32.mrf.mxu0 }
0x1a22   : > { %v4632_v29 = vpack.c.bf16 %v8453_v46, %v8452_v17 }
0x1a23   : > { %v4603_v14 = vpop.f32.mrf.mxu0 }
0x1a24   : > { %v4631_v9 = vpack.c.bf16 %v4603_v14, %v4600_v55 }
0x1a25   : > { %v8456_v28 = vpop.f32.mrf.mxu0 }
0x1a26   : > { %8460 = vmatprep.mubr.msk.bf16.mxu0 %vm3237_vm5, %v4631_v9 }
0x1a27   : > { %v4616_v16 = vpop.f32.mrf.mxu0  ;;  %8461 = vmatmul.mubr.msk.bf16.vlgmr.msra.gmra.mxu0 %vm3237_vm5, %v4632_v29 }
0x1a28   : > { %8485 = vmatpush3.bf16.msra.mxu0 %v8756_v59 }
0x1a29   : > { %v8457_v44 = vpop.f32.mrf.mxu0  ;;  %8486 = vmatprep.subr.bf16.mxu0 %v9230_v10 }
0x1a2a   : > { %v4634_v20 = vpack.c.bf16 %v8457_v44, %v8456_v28 }
0x1a2b   : > { %v4619_v25 = vpop.f32.mrf.mxu0 }
0x1a2c   : > { %v4633_v36 = vpack.c.bf16 %v4619_v25, %v4616_v16  ;;  %8487 = vmatpush3.bf16.msra.mxu0 %v8757_v13 }
0x1a2e   : > { %8464 = vmatprep.mubr.msk.bf16.mxu0 %vm3237_vm5, %v4633_v36 }
0x1a2f   : > { %8465 = vmatmul.mubr.msk.bf16.gmra.mxu0 %vm3237_vm5, %v4634_v20 }
0x1a30   : > { %8488 = vmatprep.mubr.msk.bf16.mxu0 %vm9231_vm1, %v9230_v10 }
0x1a37   : > { %8489 = vmatmul.mubr.msk.bf16.vlgmr.msra.gmra.mxu0 %vm1344_vm0, %v5003_v49 }
0x1ae7   : > { %v8462_v52 = vpop.f32.mrf.mxu0 }
0x1ae8   : > { %v4720_v10 = vadd.f32 %v8462_v52, %v4339_v58 }
0x1ae9   : > { %v4687_v32 = vpop.f32.mrf.mxu0 }
0x1aea   : > { %v4728_v50 = vadd.f32 %v4720_v10, %v9823_v45  ;;  %v4718_v23 = vadd.f32 %v4687_v32, %v4337_v43 }
0x1aeb   : > { %v8463_v54 = vpop.f32.mrf.mxu0 }
0x1aec   : > { %v10439_v5 = vadd.f32 %v7724_v62, %v4728_v50  ;;  %v4726_v57 = vadd.f32 %v4718_v23, %v9817_v40  ;;  %v4721_v6 = vadd.f32 %v8463_v54, %v4340_v60 }
0x1aed   : > { %v4690_v0 = vpop.f32.mrf.mxu0 }
0x1aee   : > { %v10442_v21 = vadd.f32 %v7724_v62, %v4726_v57  ;;  %v4719_v18 = vadd.f32 %v4690_v0, %v4338_v61  ;;  %v4755_v56 = vsel %vm2379_vm4, %v10439_v5, 0.0  ;;  %v4729_v58 = vadd.f32 %v4721_v6, %v9827_v12 }
0x1aef   : > { %4756 = vadd.xlane.f32.xlu0 %v4755_v56  ;;  %v8466_v24 = vpop.f32.mrf.mxu0 }
0x1af0   : > { %v4727_v45 = vadd.f32 %v4719_v18, %v9821_v7  ;;  %v4724_v43 = vadd.f32 %v8466_v24, %v10408_v31  ;;  %v4749_v40 = vsel %vm2379_vm4, %v10442_v21, 0.0  ;;  %v10454_v61 = vadd.f32 %v7724_v62, %v4729_v58 }
0x1af1   : > { %4750 = vadd.xlane.f32.xlu1 %v4749_v40  ;;  %v4703_v35 = vpop.f32.mrf.mxu0 }
0x1af2   : > { %v10451_v60 = vadd.f32 %v7724_v62, %v4727_v45  ;;  %v4722_v22 = vadd.f32 %v4703_v35, %v10411_v30  ;;  %v4732_v12 = vadd.f32 %v4724_v43, %v9839_v37  ;;  %v4758_v37 = vsel %vm2379_vm4, %v10454_v61, 0.0 }
0x1af3   : > { %v8467_v41 = vpop.f32.mrf.mxu0 }
0x1af4   : > { %v4730_v1 = vadd.f32 %v4722_v22, %v9831_v26  ;;  %v4725_v7 = vadd.f32 %v8467_v41, %v10416_v19  ;;  %v4752_v31 = vsel %vm2379_vm4, %v10451_v60, 0.0  ;;  %v10465_v30 = vadd.f32 %v7724_v62, %v4732_v12 }
0x1af5   : > { %4753 = vadd.xlane.f32.xlu0 %v4752_v31  ;;  %v4706_v63 = vpop.f32.mrf.mxu0 }
0x1af6   : > { %v10462_v2 = vadd.f32 %v7724_v62, %v4730_v1  ;;  %v4723_v17 = vadd.f32 %v4706_v63, %v10418_v8  ;;  %v4733_v26 = vadd.f32 %v4725_v7, %v9843_v39 }
0x1af7   : > { %v5064_v55 = vpop.f32.mrf.mxu0 }
0x1af8   : > { %v4731_v19 = vadd.f32 %v4723_v17, %v9835_v34  ;;  %v5065_v46 = vadd.f32 %v7736_v11, %v5064_v55  ;;  %v4761_v14 = vsel %vm2379_vm4, %v10462_v2, 0.0  ;;  %v10477_v28 = vadd.f32 %v7724_v62, %v4733_v26 }
0x1af9   : > { %4759 = vadd.xlane.f32.xlu0 %v4758_v37  ;;  %4762 = vadd.xlane.f32.xlu1 %v4761_v14  ;;  %v8490_v9 = vpop.f32.mrf.mxu0  ;;  %v4767_v34 = vsel %vm2379_vm4, %v10465_v30, 0.0 }
0x1afa   : > { %v10473_v59 = vadd.f32 %v7724_v62, %v4731_v19  ;;  %v10475_v8 = vpack.c.bf16 %v5065_v46, %v5065_v46  ;;  %v4770_v13 = vsel %vm2379_vm4, %v10477_v28, 0.0 }
0x1afb   : > { %v5067_v29 = vpop.f32.mrf.mxu0 }
0x1afc   : > { %8644 = vmatprep.subr.msk.bf16.mxu1 %vm3237_vm5, %v10475_v8  ;;  %v4764_v39 = vsel %vm2379_vm4, %v10473_v59, 0.0 }
0x1afd   : > { %4768 = vadd.xlane.f32.xlu1 %v4767_v34  ;;  %v8491_v16 = vpop.f32.mrf.mxu0  ;;  %4765 = vadd.xlane.f32.xlu0 %v4764_v39 }
0x1b01   : > { %4771 = vadd.xlane.f32.xlu0 %v4770_v13 }
0x1b78   : > { %v4757_v44 = vpop.xlane.xlu0 %4756 }
0x1b79   : > { %v4775_v38 = vmul.f32 0.015625, %v4757_v44 }
0x1b7a   : > { %v4751_v25 = vpop.xlane.xlu1 %4750 }
0x1b7b   : > { %v4773_v36 = vmul.f32 0.015625, %v4751_v25  ;;  %v10488_v53 = vsub.f32 %v10439_v5, %v4775_v38 }
0x1b7d   : > { %v10491_v20 = vsub.f32 %v10442_v21, %v4773_v36  ;;  %v4791_v48 = vmul.f32 %v10488_v53, %v10488_v53 }
0x1b7e   : > { %v4754_v51 = vpop.xlane.xlu0 %4753 }
0x1b7f   : > { %v4774_v49 = vmul.f32 0.015625, %v4754_v51  ;;  %v4789_v27 = vmul.f32 %v10491_v20, %v10491_v20  ;;  %v4803_v57 = vsel %vm2379_vm4, %v4791_v48, 0.0 }
0x1b81   : > { %v10496_v47 = vsub.f32 %v10451_v60, %v4774_v49  ;;  %v4797_v15 = vsel %vm2379_vm4, %v4789_v27, 0.0 }
0x1b82   : > { %v4760_v52 = vpop.xlane.xlu0 %4759  ;;  %4798 = vadd.xlane.f32.xlu1 %v4797_v15  ;;  %v4763_v10 = vpop.xlane.xlu1 %4762 }
0x1b83   : > { %v4776_v62 = vmul.f32 0.015625, %v4760_v52  ;;  %v4777_v32 = vmul.f32 0.015625, %v4763_v10  ;;  %v4790_v50 = vmul.f32 %v10496_v47, %v10496_v47 }
0x1b85   : > { %v10504_v23 = vsub.f32 %v10454_v61, %v4776_v62  ;;  %v10507_v54 = vsub.f32 %v10462_v2, %v4777_v32  ;;  %v4800_v6 = vsel %vm2379_vm4, %v4790_v50, 0.0 }
0x1b86   : > { %4804 = vadd.xlane.f32.xlu1 %v4803_v57  ;;  %v4769_v0 = vpop.xlane.xlu1 %4768  ;;  %4801 = vadd.xlane.f32.xlu0 %v4800_v6  ;;  %v4766_v18 = vpop.xlane.xlu0 %4765  ;;  %v7725_v6 = vld [vmem:[%s11375_s16] ss:$0 sm:$0xff]  ;;  %s11378_s16 = smov 112  }
0x1b87   : > { %v4779_v56 = vmul.f32 0.015625, %v4769_v0  ;;  %v4778_v58 = vmul.f32 0.015625, %v4766_v18  ;;  %v4793_v24 = vmul.f32 %v10507_v54, %v10507_v54  ;;  %v4792_v45 = vmul.f32 %v10504_v23, %v10504_v23 }
0x1b89   : > { %v10516_v43 = vsub.f32 %v10465_v30, %v4779_v56  ;;  %v10519_v40 = vsub.f32 %v10473_v59, %v4778_v58  ;;  %v4809_v35 = vsel %vm2379_vm4, %v4793_v24, 0.0  ;;  %v4806_v22 = vsel %vm2379_vm4, %v4792_v45, 0.0 }
0x1b8a   : > { %4810 = vadd.xlane.f32.xlu1 %v4809_v35  ;;  %4807 = vadd.xlane.f32.xlu0 %v4806_v22  ;;  %v4772_v12 = vpop.xlane.xlu0 %4771 }
0x1b8b   : > { %v4780_v41 = vmul.f32 0.015625, %v4772_v12  ;;  %v4795_v1 = vmul.f32 %v10516_v43, %v10516_v43  ;;  %v4794_v7 = vmul.f32 %v10519_v40, %v10519_v40 }
0x1b8d   : > { %v10528_v31 = vsub.f32 %v10477_v28, %v4780_v41  ;;  %v4815_v63 = vsel %vm2379_vm4, %v4795_v1, 0.0  ;;  %v4812_v11 = vsel %vm2379_vm4, %v4794_v7, 0.0 }
0x1b8e   : > { %4816 = vadd.xlane.f32.xlu1 %v4815_v63  ;;  %4813 = vadd.xlane.f32.xlu0 %v4812_v11 }
0x1b8f   : > { %v4796_v17 = vmul.f32 %v10528_v31, %v10528_v31 }
0x1b91   : > { %v4818_v55 = vsel %vm2379_vm4, %v4796_v17, 0.0 }
0x1b92   : > { %4819 = vadd.xlane.f32.xlu0 %v4818_v55 }
0x1b9f   : > { %5362 = vrot.lane.b32.xlu1 %v10475_v8, %s11325_s22  ;;  %s11376_s22 = sld [smem:[#allocation18_spill]] }
0x1ba5   : > { %v7726_v45 = vld [vmem:[%s11376_s22] ss:$0 sm:$0xff]  ;;  %s11377_s22 = sld [smem:[#allocation20_spill]] }
0x1c0b   : > { %v4799_v37 = vpop.xlane.xlu1 %4798 }
0x1c0c   : > { %v4821_v26 = vmul.f32 0.015625, %v4799_v37 }
0x1c0e   : > { %v4829_v19 = vadd.f32 1e-05, %v4821_v26 }
0x1c0f   : > { %v4805_v46 = vpop.xlane.xlu1 %4804  ;;  %v4802_v14 = vpop.xlane.xlu0 %4801 }
0x1c10   : > { %8978 = vrsqrt.f32 %v4829_v19  ;;  %v4823_v9 = vmul.f32 0.015625, %v4805_v46  ;;  %v4822_v29 = vmul.f32 0.015625, %v4802_v14 }
0x1c12   : > { %v4831_v34 = vadd.f32 1e-05, %v4823_v9  ;;  %v4830_v39 = vadd.f32 1e-05, %v4822_v29 }
0x1c13   : > { %v4811_v16 = vpop.xlane.xlu1 %4810  ;;  %v4808_v13 = vpop.xlane.xlu0 %4807 }
0x1c14   : > { %8980 = vrsqrt.f32 %v4831_v34  ;;  %v4825_v44 = vmul.f32 0.015625, %v4811_v16  ;;  %v4824_v38 = vmul.f32 0.015625, %v4808_v13 }
0x1c15   : > { %8982 = vrsqrt.f32 %v4830_v39 }
0x1c16   : > { %v4833_v25 = vadd.f32 1e-05, %v4825_v44  ;;  %v4832_v36 = vadd.f32 1e-05, %v4824_v38 }
0x1c17   : > { %v4817_v51 = vpop.xlane.xlu1 %4816  ;;  %v4814_v49 = vpop.xlane.xlu0 %4813 }
0x1c18   : > { %8984 = vrsqrt.f32 %v4833_v25  ;;  %v4827_v27 = vmul.f32 0.015625, %v4817_v51  ;;  %v4826_v15 = vmul.f32 0.015625, %v4814_v49 }
0x1c19   : > { %8986 = vrsqrt.f32 %v4832_v36  ;;  %v7727_v36 = vld [vmem:[%s11377_s22] ss:$0 sm:$0xff]  ;;  %s11379_s22 = sld [smem:[#allocation23_spill]] }
0x1c1a   : > { %v4835_v48 = vadd.f32 1e-05, %v4827_v27  ;;  %v4834_v52 = vadd.f32 1e-05, %v4826_v15 }
0x1c1b   : > { %v4820_v10 = vpop.xlane.xlu0 %4819  ;;  %v5363_v16 = vpop.permute.xlu1 %5362 }
0x1c1c   : > { %8988 = vrsqrt.f32 %v4835_v48  ;;  %v4828_v62 = vmul.f32 0.015625, %v4820_v10 }
0x1c1d   : > { %v8979_v32 = vpop.eup %8978  ;;  %8990 = vrsqrt.f32 %v4834_v52 }
0x1c1e   : > { %v4836_v50 = vadd.f32 1e-05, %v4828_v62  ;;  %v4845_v57 = vmul.f32 %v8979_v32, %v10491_v20 }
0x1c20   : > { %8992 = vrsqrt.f32 %v4836_v50  ;;  %v4860_v56 = vmul.f32 %v7725_v6, %v4845_v57 }
0x1c21   : > { %v8981_v0 = vpop.eup %8980 }
0x1c22   : > { %v8983_v18 = vpop.eup %8982  ;;  %v4847_v58 = vmul.f32 %v8981_v0, %v10488_v53  ;;  %v4875_v41 = vadd.f32 %v7726_v45, %v4860_v56 }
0x1c23   : > { %v4846_v24 = vmul.f32 %v8983_v18, %v10496_v47 }
0x1c24   : > { %v4862_v1 = vmul.f32 %v7725_v6, %v4847_v58 }
0x1c25   : > { %v8985_v35 = vpop.eup %8984  ;;  %v4861_v22 = vmul.f32 %v7725_v6, %v4846_v24 }
0x1c26   : > { %v8987_v12 = vpop.eup %8986  ;;  %v4849_v20 = vmul.f32 %v8985_v35, %v10507_v54  ;;  %v4877_v53 = vadd.f32 %v7726_v45, %v4862_v1  ;;  %v5104_v54 = vsel %vm3237_vm5, %v10475_v8, 0  ;;  %v5377_v35 = vsel %vm3237_vm5, %v5363_v16, 0 }
0x1c27   : > { %v4848_v7 = vmul.f32 %v8987_v12, %v10504_v23  ;;  %v4876_v63 = vadd.f32 %v7726_v45, %v4861_v22 }
0x1c28   : > { %v4864_v46 = vmul.f32 %v7725_v6, %v4849_v20 }
0x1c29   : > { %v8989_v11 = vpop.eup %8988  ;;  %v4863_v17 = vmul.f32 %v7725_v6, %v4848_v7  ;;  %v4883_v55 = vpack.c.bf16 %v4876_v63, %v4875_v41 }
0x1c2a   : > { %v8991_v37 = vpop.eup %8990  ;;  %v4851_v26 = vmul.f32 %v8989_v11, %v10516_v43  ;;  %v4879_v43 = vadd.f32 %v7726_v45, %v4864_v46 }
0x1c2b   : > { %8476 = vmatprep.mubr.msk.bf16.mxu1 %vm2379_vm4, %v4883_v55  ;;  %v4878_v47 = vadd.f32 %v7726_v45, %v4863_v17  ;;  %v4850_v19 = vmul.f32 %v8991_v37, %v10519_v40 }
0x1c2c   : > { %v4866_v34 = vmul.f32 %v7725_v6, %v4851_v26 }
0x1c2d   : > { %v8993_v14 = vpop.eup %8992  ;;  %v4884_v9 = vpack.c.bf16 %v4878_v47, %v4877_v53  ;;  %v4865_v29 = vmul.f32 %v7725_v6, %v4850_v19 }
0x1c2e   : > { %v4852_v23 = vmul.f32 %v8993_v14, %v10528_v31  ;;  %v4881_v44 = vadd.f32 %v7726_v45, %v4866_v34 }
0x1c2f   : > { %8477 = vmatmul.mubr.msk.bf16.vlgmr.msra.gmra.mxu1 %vm2379_vm4, %v4884_v9  ;;  %v4880_v39 = vadd.f32 %v7726_v45, %v4865_v29 }
0x1c30   : > { %8493 = vmatpush3.bf16.xpose.msra.mxu1 %v5104_v54  ;;  %v4867_v13 = vmul.f32 %v7725_v6, %v4852_v23 }
0x1c31   : > { %8646 = vmatprep.subr.msk.bf16.mxu1 %vm3237_vm5, %v5363_v16  ;;  %v4885_v40 = vpack.c.bf16 %v4880_v39, %v4879_v43 }
0x1c32   : > { %v4882_v38 = vadd.f32 %v7726_v45, %v4867_v13 }
0x1c33   : > { %8480 = vmatprep.mubr.msk.bf16.mxu1 %vm2379_vm4, %v4885_v40 }
0x1c34   : > { %v4886_v31 = vpack.c.bf16 %v4882_v38, %v4881_v44 }
0x1c37   : > { %8481 = vmatmul.mubr.msk.bf16.gmra.mxu1 %vm2379_vm4, %v4886_v31 }
0x1cef   : > { %v8478_v25 = vpop.f32.mrf.mxu1 }
0x1cf0   : > { %v4981_v49 = vadd.f32 %v8478_v25, %v7727_v36 }
0x1cf1   : > { %v4972_v51 = vpop.f32.mrf.mxu1 }
0x1cf2   : > { %v4973_v15 = vadd.f32 %v7727_v36, %v4972_v51  ;;  %v5072_v10 = vmul.f32 0.25, %v4981_v49 }
0x1cf3   : > { %v8479_v27 = vpop.f32.mrf.mxu1 }
0x1cf4   : > { %v4984_v48 = vadd.f32 %v8479_v27, %v7727_v36  ;;  %v5070_v57 = vmul.f32 0.25, %v4973_v15 }
0x1cf5   : > { %v4975_v52 = vpop.f32.mrf.mxu1 }
0x1cf6   : > { %v5073_v62 = vmul.f32 0.25, %v4984_v48  ;;  %v4976_v32 = vadd.f32 %v7727_v36, %v4975_v52 }
0x1cf7   : > { %v8482_v50 = vpop.f32.mrf.mxu1 }
0x1cf8   : > { %v10555_v6 = vpack.c.bf16 %v5073_v62, %v5072_v10  ;;  %v5071_v0 = vmul.f32 0.25, %v4976_v32  ;;  %v4997_v22 = vadd.f32 %v8482_v50, %v7727_v36 }
0x1cf9   : > { %v4988_v18 = vpop.f32.mrf.mxu1 }
0x1cfa   : > { %v10557_v56 = vpack.c.bf16 %v5071_v0, %v5070_v57  ;;  %5356 = vrot.lane.b32.xlu1 %v10555_v6, %s11378_s16  ;;  %v4989_v24 = vadd.f32 %v7727_v36, %v4988_v18  ;;  %v5076_v20 = vmul.f32 0.25, %v4997_v22 }
0x1cfb   : > { %v8483_v58 = vpop.f32.mrf.mxu1 }
0x1cfc   : > { %v5000_v45 = vadd.f32 %v8483_v58, %v7727_v36  ;;  %5354 = vrot.lane.b32.xlu0 %v10557_v56, %s11378_s16  ;;  %8494 = vmatprep.mubr.msk.bf16.mxu1 %vm3237_vm5, %v10557_v56  ;;  %v5074_v7 = vmul.f32 0.25, %v4989_v24 }
0x1cfd   : > { %v4991_v12 = vpop.f32.mrf.mxu1  ;;  %8495 = vmatmul.mubr.msk.bf16.vlgmr.msra.gmra.mxu1 %vm3237_vm5, %v10555_v6 }
0x1cfe   : > { %v4992_v41 = vadd.f32 %v7727_v36, %v4991_v12  ;;  %8513 = vmatpush3.bf16.xpose.msra.mxu1 %v5377_v35  ;;  %v5077_v1 = vmul.f32 0.25, %v5000_v45 }
0x1d00   : > { %v5075_v63 = vmul.f32 0.25, %v4992_v41  ;;  %v10570_v17 = vpack.c.bf16 %v5077_v1, %v5076_v20 }
0x1d02   : > { %v10568_v11 = vpack.c.bf16 %v5075_v63, %v5074_v7 }
0x1d04   : > { %5358 = vrot.lane.b32.xlu1 %v10568_v11, %s11378_s16  ;;  %8498 = vmatprep.mubr.msk.bf16.mxu1 %vm3237_vm5, %v10568_v11 }
0x1d05   : > { %8499 = vmatmul.mubr.msk.bf16.gmra.mxu1 %vm3237_vm5, %v10570_v17 }
0x1d08   : > { %5360 = vrot.lane.b32.xlu1 %v10570_v17, %s11378_s16  ;;  %s11380_s16 = smov 48  }
0x1d6c   : > { %v5357_v37 = vpop.permute.xlu1 %5356 }
0x1d6e   : > { %v5355_v55 = vpop.permute.xlu0 %5354 }
0x1d6f   : > { %8514 = vmatprep.mubr.msk.bf16.mxu1 %vm3237_vm5, %v5355_v55 }
0x1d70   : > { %8515 = vmatmul.mubr.msk.bf16.vlgmr.msra.gmra.mxu1 %vm3237_vm5, %v5357_v37 }
0x1d76   : > { %v5359_v26 = vpop.permute.xlu1 %5358 }
0x1d77   : > { %8518 = vmatprep.mubr.msk.bf16.mxu1 %vm3237_vm5, %v5359_v26 }
0x1d7a   : > { %v5361_v53 = vpop.permute.xlu1 %5360 }
0x1d7b   : > { %8519 = vmatmul.mubr.msk.bf16.gmra.mxu1 %vm3237_vm5, %v5361_v53 }
0x1dbd   : > { %v8496_v47 = vpop.f32.mrf.mxu1 }
0x1dbe   : > { %v5177_v29 = vsel %vm1452_vm2, %v8496_v47, -inf }
0x1dbf   : > { %v5140_v19 = vpop.f32.mrf.mxu1 }
0x1dc0   : > { %v5171_v46 = vsel %vm1452_vm2, %v5140_v19, -inf }
0x1dc1   : > { %5172 = vmax.xlane.f32.xlu0 %v5171_v46  ;;  %v8497_v14 = vpop.f32.mrf.mxu1 }
0x1dc2   : > { %v5180_v43 = vsel %vm1452_vm2, %v8497_v14, -inf }
0x1dc3   : > { %v5143_v9 = vpop.f32.mrf.mxu1 }
0x1dc4   : > { %v5174_v23 = vsel %vm1452_vm2, %v5143_v9, -inf }
0x1dc5   : > { %5178 = vmax.xlane.f32.xlu0 %v5177_v29  ;;  %5175 = vmax.xlane.f32.xlu1 %v5174_v23  ;;  %v10587_v34 = vpop.f32.mrf.mxu1 }
0x1dc6   : > { %v5189_v44 = vsel %vm1452_vm2, %v10587_v34, -inf }
0x1dc7   : > { %v10589_v54 = vpop.f32.mrf.mxu1 }
0x1dc8   : > { %v5183_v13 = vsel %vm1452_vm2, %v10589_v54, -inf }
0x1dc9   : > { %5181 = vmax.xlane.f32.xlu0 %v5180_v43  ;;  %v8501_v39 = vpop.f32.mrf.mxu1 }
0x1dca   : > { %v5192_v38 = vsel %vm1452_vm2, %v8501_v39, -inf }
0x1dcb   : > { %v5159_v16 = vpop.f32.mrf.mxu1 }
0x1dcc   : > { %v5186_v40 = vsel %vm1452_vm2, %v5159_v16, -inf }
0x1dcd   : > { %5184 = vmax.xlane.f32.xlu0 %v5183_v13  ;;  %5187 = vmax.xlane.f32.xlu1 %v5186_v40 }
0x1dd1   : > { %5190 = vmax.xlane.f32.xlu0 %v5189_v44  ;;  %5193 = vmax.xlane.f32.xlu1 %v5192_v38 }
0x1e30   : > { %v10598_v31 = vpop.f32.mrf.mxu1 }
0x1e31   : > { %v5450_v27 = vsel %vm1452_vm2, %v10598_v31, -inf }
0x1e32   : > { %v10600_v25 = vpop.f32.mrf.mxu1 }
0x1e33   : > { %v5444_v36 = vsel %vm1452_vm2, %v10600_v25, -inf }
0x1e34   : > { %5445 = vmax.xlane.f32.xlu0 %v5444_v36  ;;  %v10604_v51 = vpop.f32.mrf.mxu1 }
0x1e35   : > { %v5453_v52 = vsel %vm1452_vm2, %v10604_v51, -inf }
0x1e36   : > { %v10606_v49 = vpop.f32.mrf.mxu1 }
0x1e37   : > { %v5447_v15 = vsel %vm1452_vm2, %v10606_v49, -inf }
0x1e38   : > { %5451 = vmax.xlane.f32.xlu0 %v5450_v27  ;;  %5448 = vmax.xlane.f32.xlu1 %v5447_v15 }
0x1e3b   : > { %v10612_v48 = vpop.f32.mrf.mxu1 }
0x1e3c   : > { %5454 = vmax.xlane.f32.xlu1 %v5453_v52  ;;  %v5462_v57 = vsel %vm1452_vm2, %v10612_v48, -inf }
0x1e3d   : > { %v10616_v10 = vpop.f32.mrf.mxu1 }
0x1e3e   : > { %v5456_v62 = vsel %vm1452_vm2, %v10616_v10, -inf }
0x1e3f   : > { %5457 = vmax.xlane.f32.xlu0 %v5456_v62  ;;  %v10620_v32 = vpop.f32.mrf.mxu1 }
0x1e40   : > { %v5465_v18 = vsel %vm1452_vm2, %v10620_v32, -inf }
0x1e41   : > { %v10622_v50 = vpop.f32.mrf.mxu1 }
0x1e42   : > { %v5459_v0 = vsel %vm1452_vm2, %v10622_v50, -inf }
0x1e43   : > { %5463 = vmax.xlane.f32.xlu0 %v5462_v57  ;;  %5460 = vmax.xlane.f32.xlu1 %v5459_v0 }
0x1e47   : > { %5466 = vmax.xlane.f32.xlu1 %v5465_v18 }
0x1e4a   : > { %v5173_v58 = vpop.xlane.xlu0 %5172 }
0x1e4b   : > { %v5195_v24 = vsub.f32 %v5140_v19, %v5173_v58 }
0x1e4d   : > { %v5203_v1 = vmul.f32 1.442695, %v5195_v24 }
0x1e4e   : > { %v5176_v45 = vpop.xlane.xlu1 %5175  ;;  %v5179_v35 = vpop.xlane.xlu0 %5178 }
0x1e4f   : > { %v5197_v22 = vsub.f32 %v8496_v47, %v5179_v35  ;;  %v5196_v12 = vsub.f32 %v5143_v9, %v5176_v45 }
0x1e51   : > { %v5207_v41 = vmul.f32 1.442695, %v5197_v22  ;;  %v5205_v20 = vmul.f32 1.442695, %v5196_v12 }
0x1e52   : > { %v5182_v7 = vpop.xlane.xlu0 %5181 }
0x1e53   : > { %v5198_v63 = vsub.f32 %v8497_v14, %v5182_v7  ;;  %8994 = vpow2.f32 %v5207_v41 }
0x1e54   : > { %8996 = vpow2.f32 %v5203_v1 }
0x1e55   : > { %v5209_v55 = vmul.f32 1.442695, %v5198_v63 }
0x1e56   : > { %v5188_v37 = vpop.xlane.xlu1 %5187  ;;  %v5185_v26 = vpop.xlane.xlu0 %5184 }
0x1e57   : > { %8998 = vpow2.f32 %v5209_v55  ;;  %v5200_v53 = vsub.f32 %v5159_v16, %v5188_v37  ;;  %v5199_v46 = vsub.f32 %v10589_v54, %v5185_v26 }
0x1e58   : > { %9000 = vpow2.f32 %v5205_v20 }
0x1e59   : > { %v5213_v9 = vmul.f32 1.442695, %v5200_v53  ;;  %v5211_v14 = vmul.f32 1.442695, %v5199_v46 }
0x1e5a   : > { %v5194_v19 = vpop.xlane.xlu1 %5193  ;;  %v5191_v29 = vpop.xlane.xlu0 %5190 }
0x1e5b   : > { %v5202_v23 = vsub.f32 %v8501_v39, %v5194_v19  ;;  %v5201_v47 = vsub.f32 %v10587_v34, %v5191_v29 }
0x1e5d   : > { %v5217_v43 = vmul.f32 1.442695, %v5202_v23  ;;  %v5215_v13 = vmul.f32 1.442695, %v5201_v47 }
0x1e5f   : > { %9002 = vpow2.f32 %v5217_v43 }
0x1e60   : > { %9004 = vpow2.f32 %v5215_v13  ;;  %v10632_v40 = vpop.eup %8994 }
0x1e61   : > { %9006 = vpow2.f32 %v5213_v9  ;;  %v5225_v16 = vsel %vm1452_vm2, %v10632_v40, 0.0  ;;  %v10636_v44 = vpop.eup %8996 }
0x1e62   : > { %9008 = vpow2.f32 %v5211_v14  ;;  %5226 = vadd.xlane.f32.xlu0 %v5225_v16  ;;  %v5219_v38 = vsel %vm1452_vm2, %v10636_v44, 0.0 }
0x1e64   : > { %v10638_v54 = vpop.eup %8998 }
0x1e65   : > { %v5228_v34 = vsel %vm1452_vm2, %v10638_v54, 0.0  ;;  %v10642_v39 = vpop.eup %9000 }
0x1e66   : > { %5229 = vadd.xlane.f32.xlu1 %v5228_v34  ;;  %5220 = vadd.xlane.f32.xlu0 %v5219_v38  ;;  %v5222_v36 = vsel %vm1452_vm2, %v10642_v39, 0.0 }
0x1e6a   : > { %5223 = vadd.xlane.f32.xlu1 %v5222_v36 }
0x1e6c   : > { %v10648_v27 = vpop.eup %9002 }
0x1e6d   : > { %v10650_v15 = vpop.eup %9004  ;;  %v5240_v52 = vsel %vm1452_vm2, %v10648_v27, 0.0 }
0x1e6e   : > { %v10654_v62 = vpop.eup %9006  ;;  %5241 = vadd.xlane.f32.xlu1 %v5240_v52  ;;  %v5237_v57 = vsel %vm1452_vm2, %v10650_v15, 0.0 }
0x1e6f   : > { %v10658_v0 = vpop.eup %9008  ;;  %5238 = vadd.xlane.f32.xlu0 %v5237_v57  ;;  %v5234_v18 = vsel %vm1452_vm2, %v10654_v62, 0.0 }
0x1e70   : > { %v5231_v58 = vsel %vm1452_vm2, %v10658_v0, 0.0 }
0x1e72   : > { %5235 = vadd.xlane.f32.xlu1 %v5234_v18 }
0x1e73   : > { %5232 = vadd.xlane.f32.xlu0 %v5231_v58 }
0x1ebd   : > { %v5446_v24 = vpop.xlane.xlu0 %5445 }
0x1ebe   : > { %v5468_v45 = vsub.f32 %v10600_v25, %v5446_v24 }
0x1ec0   : > { %v5476_v7 = vmul.f32 1.442695, %v5468_v45 }
0x1ec1   : > { %v5449_v35 = vpop.xlane.xlu1 %5448  ;;  %v5452_v22 = vpop.xlane.xlu0 %5451 }
0x1ec2   : > { %v5470_v12 = vsub.f32 %v10598_v31, %v5452_v22  ;;  %v5469_v41 = vsub.f32 %v10606_v49, %v5449_v35 }
0x1ec4   : > { %v5480_v1 = vmul.f32 1.442695, %v5470_v12  ;;  %v5478_v55 = vmul.f32 1.442695, %v5469_v41  ;;  %v8762_v41 = vld [vmem:[%s11379_s22 + $0x8] sm:$0xff]  }
0x1ec5   : > { %v5455_v63 = vpop.xlane.xlu1 %5454  ;;  %8532 = vmatprep.subr.bf16.mxu1 %v8762_v41 }
0x1ec6   : > { %v5471_v20 = vsub.f32 %v10604_v51, %v5455_v63  ;;  %9010 = vpow2.f32 %v5480_v1  ;;  %8533 = vmatpush3.bf16.msra.mxu1 %v8762_v41 }
0x1ec7   : > { %9012 = vpow2.f32 %v5476_v7 }
0x1ec8   : > { %v5482_v37 = vmul.f32 1.442695, %v5471_v20  ;;  %v5458_v26 = vpop.xlane.xlu0 %5457 }
0x1ec9   : > { %v5472_v25 = vsub.f32 %v10616_v10, %v5458_v26 }
0x1eca   : > { %9014 = vpow2.f32 %v5482_v37 }
0x1ecb   : > { %9016 = vpow2.f32 %v5478_v55  ;;  %v5484_v29 = vmul.f32 1.442695, %v5472_v25 }
0x1ecc   : > { %v5461_v53 = vpop.xlane.xlu1 %5460  ;;  %v5464_v46 = vpop.xlane.xlu0 %5463 }
0x1ecd   : > { %v5474_v31 = vsub.f32 %v10612_v48, %v5464_v46  ;;  %v5473_v49 = vsub.f32 %v10622_v50, %v5461_v53 }
0x1ecf   : > { %v5488_v19 = vmul.f32 1.442695, %v5474_v31  ;;  %v5486_v47 = vmul.f32 1.442695, %v5473_v49 }
0x1ed0   : > { %v5467_v23 = vpop.xlane.xlu1 %5466 }
0x1ed1   : > { %v5475_v51 = vsub.f32 %v10620_v32, %v5467_v23  ;;  %9018 = vpow2.f32 %v5488_v19 }
0x1ed2   : > { %9020 = vpow2.f32 %v5484_v29 }
0x1ed3   : > { %v5490_v9 = vmul.f32 1.442695, %v5475_v51  ;;  %v10672_v43 = vpop.eup %9010 }
0x1ed4   : > { %v5498_v10 = vsel %vm1452_vm2, %v10672_v43, 0.0  ;;  %v10676_v13 = vpop.eup %9012 }
0x1ed5   : > { %9022 = vpow2.f32 %v5490_v9  ;;  %5499 = vadd.xlane.f32.xlu0 %v5498_v10  ;;  %v5492_v14 = vsel %vm1452_vm2, %v10676_v13, 0.0 }
0x1ed6   : > { %9024 = vpow2.f32 %v5486_v47 }
0x1ed7   : > { %v10678_v48 = vpop.eup %9014 }
0x1ed8   : > { %v5501_v50 = vsel %vm1452_vm2, %v10678_v48, 0.0  ;;  %v10682_v32 = vpop.eup %9016 }
0x1ed9   : > { %5502 = vadd.xlane.f32.xlu1 %v5501_v50  ;;  %5493 = vadd.xlane.f32.xlu0 %v5492_v14  ;;  %v5495_v16 = vsel %vm1452_vm2, %v10682_v32, 0.0 }
0x1edd   : > { %5496 = vadd.xlane.f32.xlu1 %v5495_v16 }
0x1ede   : > { %v10688_v34 = vpop.eup %9018 }
0x1edf   : > { %v5510_v38 = vsel %vm1452_vm2, %v10688_v34, 0.0  ;;  %v10692_v36 = vpop.eup %9020 }
0x1ee0   : > { %5511 = vadd.xlane.f32.xlu0 %v5510_v38  ;;  %v5504_v58 = vsel %vm1452_vm2, %v10692_v36, 0.0 }
0x1ee2   : > { %v10694_v52 = vpop.eup %9022 }
0x1ee3   : > { %v5513_v57 = vsel %vm1452_vm2, %v10694_v52, 0.0  ;;  %v10698_v18 = vpop.eup %9024 }
0x1ee4   : > { %5514 = vadd.xlane.f32.xlu1 %v5513_v57  ;;  %5505 = vadd.xlane.f32.xlu0 %v5504_v58  ;;  %v5507_v24 = vsel %vm1452_vm2, %v10698_v18, 0.0 }
0x1ee8   : > { %5508 = vadd.xlane.f32.xlu1 %v5507_v24 }
0x1eeb   : > { %v5227_v45 = vpop.xlane.xlu0 %5226 }
0x1eec   : > { %9026 = vrcp.f32 %v5227_v45 }
0x1eef   : > { %v5230_v35 = vpop.xlane.xlu1 %5229  ;;  %v5221_v22 = vpop.xlane.xlu0 %5220 }
0x1ef0   : > { %9028 = vrcp.f32 %v5230_v35 }
0x1ef1   : > { %9030 = vrcp.f32 %v5221_v22 }
0x1ef3   : > { %v5224_v12 = vpop.xlane.xlu1 %5223 }
0x1ef4   : > { %9032 = vrcp.f32 %v5224_v12 }
0x1ef9   : > { %5536 = vrot.lane.b32.xlu1 %v10475_v8, %s11380_s16  ;;  %v9027_v1 = vpop.eup %9026  ;;  %s11386_s16 = sld [smem:[#allocation27_spill]] }
0x1efa   : > { %5264 = vrot.lane.b32.xlu0 %v10475_v8, %s11381_s2  ;;  %v5253_v63 = vmul.f32 %v9027_v1, %v10632_v40  ;;  %v5239_v40 = vpop.xlane.xlu0 %5238  ;;  %s11384_s2 = smov 16  }
0x1efd   : > { %v9029_v7 = vpop.eup %9028  ;;  %5796 = vrot.lane.b32.xlu1 %v10475_v8, %s11382_s3 }
0x1efe   : > { %v5254_v20 = vmul.f32 %v9029_v7, %v10638_v54  ;;  %v9031_v55 = vpop.eup %9030  ;;  %5790 = vrot.lane.b32.xlu0 %v10555_v6, %s11382_s3  ;;  %v5242_v54 = vpop.xlane.xlu1 %5241 }
0x1eff   : > { %v5251_v25 = vmul.f32 %v9031_v55, %v10636_v44  ;;  %v5233_v31 = vpop.xlane.xlu0 %5232 }
0x1f00   : > { %v5260_v37 = vpack.c.bf16 %v5254_v20, %v5253_v63 }
0x1f01   : > { %v9033_v26 = vpop.eup %9032  ;;  %5788 = vrot.lane.b32.xlu1 %v10557_v56, %s11382_s3 }
0x1f02   : > { %v5252_v53 = vmul.f32 %v9033_v26, %v10642_v39  ;;  %5794 = vrot.lane.b32.xlu0 %v10570_v17, %s11382_s3  ;;  %v5236_v49 = vpop.xlane.xlu1 %5235 }
0x1f03   : > { %9034 = vrcp.f32 %v5236_v49 }
0x1f04   : > { %v5259_v46 = vpack.c.bf16 %v5252_v53, %v5251_v25  ;;  %9036 = vrcp.f32 %v5233_v31 }
0x1f05   : > { %5792 = vrot.lane.b32.xlu1 %v10568_v11, %s11382_s3  ;;  %9038 = vrcp.f32 %v5242_v54  ;;  %s11383_s3 = smov 32  }
0x1f06   : > { %8504 = vmatprep.mubr.msk.bf16.mxu0 %vm1452_vm2, %v5259_v46  ;;  %9040 = vrcp.f32 %v5239_v40 }
0x1f10   : > { %v9035_v47 = vpop.eup %9034 }
0x1f11   : > { %v9037_v10 = vpop.eup %9036  ;;  %v5256_v38 = vmul.f32 %v9035_v47, %v10654_v62 }
0x1f12   : > { %v5255_v16 = vmul.f32 %v9037_v10, %v10658_v0  ;;  %v9039_v58 = vpop.eup %9038 }
0x1f13   : > { %v9041_v45 = vpop.eup %9040  ;;  %v5258_v1 = vmul.f32 %v9039_v58, %v10648_v27 }
0x1f14   : > { %v5261_v22 = vpack.c.bf16 %v5256_v38, %v5255_v16  ;;  %v5257_v41 = vmul.f32 %v9041_v45, %v10650_v15 }
0x1f16   : > { %v5262_v20 = vpack.c.bf16 %v5258_v1, %v5257_v41 }
0x1f5e   : > { %v5500_v19 = vpop.xlane.xlu0 %5499 }
0x1f62   : > { %v5503_v29 = vpop.xlane.xlu1 %5502  ;;  %v5494_v44 = vpop.xlane.xlu0 %5493 }
0x1f66   : > { %v5497_v23 = vpop.xlane.xlu1 %5496 }
0x1f67   : > { %9042 = vrcp.f32 %v5497_v23 }
0x1f68   : > { %9044 = vrcp.f32 %v5494_v44 }
0x1f69   : > { %v5512_v39 = vpop.xlane.xlu0 %5511  ;;  %9046 = vrcp.f32 %v5503_v29 }
0x1f6d   : > { %v5515_v51 = vpop.xlane.xlu1 %5514  ;;  %v5506_v9 = vpop.xlane.xlu0 %5505 }
0x1f71   : > { %v5509_v50 = vpop.xlane.xlu1 %5508  ;;  %v5265_v14 = vpop.permute.xlu0 %5264 }
0x1f72   : > { %9048 = vrcp.f32 %v5509_v50  ;;  %v5279_v57 = vsel %vm1516_vm3, %v5265_v14, 0  ;;  %8645 = vmatprep.subr.msk.bf16.mxu0 %vm1516_vm3, %v5265_v14 }
0x1f73   : > { %9050 = vrcp.f32 %v5500_v19  ;;  %8503 = vmatpush3.bf16.msra.mxu0 %v5279_v57 }
0x1f74   : > { %9052 = vrcp.f32 %v5506_v9  ;;  %v9043_v12 = vpop.eup %9042 }
0x1f75   : > { %v5537_v24 = vpop.permute.xlu1 %5536  ;;  %v9045_v62 = vpop.eup %9044  ;;  %9054 = vrcp.f32 %v5515_v51  ;;  %v5525_v7 = vmul.f32 %v9043_v12, %v10682_v32 }
0x1f76   : > { %v5551_v35 = vsel %vm1516_vm3, %v5537_v24, 0  ;;  %8647 = vmatprep.subr.msk.bf16.mxu0 %vm1516_vm3, %v5537_v24  ;;  %8505 = vmatmul.mubr.msk.bf16.vlgmr.msra.gmra.mxu0 %vm1452_vm2, %v5260_v37  ;;  %9056 = vrcp.f32 %v5512_v39  ;;  %v5524_v63 = vmul.f32 %v9045_v62, %v10676_v13  ;;  %v9047_v55 = vpop.eup %9046 }
0x1f77   : > { %8508 = vmatprep.mubr.msk.bf16.mxu0 %vm1452_vm2, %v5261_v22  ;;  %8523 = vmatpush3.bf16.msra.mxu0 %v5551_v35  ;;  %v5527_v27 = vmul.f32 %v9047_v55, %v10678_v48  ;;  %v8763_v48 = vld [vmem:[%s11379_s22] sm:$0xff]  }
0x1f78   : > { %v5532_v37 = vpack.c.bf16 %v5525_v7, %v5524_v63  ;;  %8542 = vmatprep.subr.bf16.mxu0 %v8763_v48  ;;  %v5791_v7 = vpop.permute.xlu0 %5790 }
0x1f79   : > { %v5797_v0 = vpop.permute.xlu1 %5796 }
0x1f7a   : > { %8648 = vmatprep.subr.msk.bf16.mxu1 %vm3237_vm5, %v5797_v0  ;;  %v5811_v45 = vsel %vm3237_vm5, %v5797_v0, 0 }
0x1f7c   : > { %v5795_v0 = vpop.permute.xlu0 %5794 }
0x1f7d   : > { %v5789_v1 = vpop.permute.xlu1 %5788 }
0x1f7e   : > { %8509 = vmatmul.mubr.msk.bf16.gmra.mxu0 %vm1452_vm2, %v5262_v20 }
0x1f7f   : > { %v9049_v26 = vpop.eup %9048  ;;  %8524 = vmatprep.mubr.msk.bf16.mxu0 %vm1452_vm2, %v5532_v37 }
0x1f80   : > { %v9051_v25 = vpop.eup %9050  ;;  %v5529_v53 = vmul.f32 %v9049_v26, %v10698_v18 }
0x1f81   : > { %v9053_v15 = vpop.eup %9052  ;;  %v5526_v32 = vmul.f32 %v9051_v25, %v10672_v43  ;;  %v5793_v63 = vpop.permute.xlu1 %5792 }
0x1f82   : > { %v5528_v46 = vmul.f32 %v9053_v15, %v10692_v36  ;;  %v9055_v40 = vpop.eup %9054 }
0x1f83   : > { %v5533_v13 = vpack.c.bf16 %v5527_v27, %v5526_v32  ;;  %v9057_v31 = vpop.eup %9056  ;;  %v5531_v49 = vmul.f32 %v9055_v40, %v10694_v52 }
0x1f84   : > { %v5534_v54 = vpack.c.bf16 %v5529_v53, %v5528_v46  ;;  %v5530_v19 = vmul.f32 %v9057_v31, %v10688_v34 }
0x1f86   : > { %8525 = vmatmul.mubr.msk.bf16.vlgmr.msra.gmra.mxu0 %vm1452_vm2, %v5533_v13  ;;  %v5535_v29 = vpack.c.bf16 %v5531_v49, %v5530_v19 }
0x1f87   : > { %8528 = vmatprep.mubr.msk.bf16.mxu0 %vm1452_vm2, %v5534_v54  ;;  %8543 = vmatpush3.bf16.msra.mxu0 %v8763_v48 }
0x1f8e   : > { %8529 = vmatmul.mubr.msk.bf16.gmra.mxu0 %vm1452_vm2, %v5535_v29 }
0x2036   : > { %v8506_v43 = vpop.f32.mrf.mxu0 }
0x2038   : > { %v5315_v36 = vpop.f32.mrf.mxu0 }
0x203a   : > { %v8507_v18 = vpop.f32.mrf.mxu0 }
0x203b   : > { %v5347_v39 = vpack.c.bf16 %v8507_v18, %v8506_v43 }
0x203c   : > { %v5318_v44 = vpop.f32.mrf.mxu0 }
0x203d   : > { %v5346_v23 = vpack.c.bf16 %v5318_v44, %v5315_v36 }
0x203e   : > { %v8510_v51 = vpop.f32.mrf.mxu0 }
0x203f   : > { %8544 = vmatprep.mubr.msk.bf16.mxu0 %vm3237_vm5, %v5346_v23 }
0x2040   : > { %v5331_v47 = vpop.f32.mrf.mxu0  ;;  %8545 = vmatmul.mubr.msk.bf16.vlgmr.msra.gmra.mxu0 %vm3237_vm5, %v5347_v39 }
0x2042   : > { %v8511_v52 = vpop.f32.mrf.mxu0 }
0x2043   : > { %v5349_v10 = vpack.c.bf16 %v8511_v52, %v8510_v51 }
0x2044   : > { %v5334_v34 = vpop.f32.mrf.mxu0 }
0x2045   : > { %v5348_v9 = vpack.c.bf16 %v5334_v34, %v5331_v47 }
0x2046   : > { %v8526_v50 = vpop.f32.mrf.mxu0 }
0x2047   : > { %8548 = vmatprep.mubr.msk.bf16.mxu0 %vm3237_vm5, %v5348_v9 }
0x2048   : > { %v5587_v14 = vpop.f32.mrf.mxu0  ;;  %8549 = vmatmul.mubr.msk.bf16.gmra.mxu0 %vm3237_vm5, %v5349_v10 }
0x204a   : > { %v8527_v16 = vpop.f32.mrf.mxu0 }
0x204b   : > { %v5619_v58 = vpack.c.bf16 %v8527_v16, %v8526_v50 }
0x204c   : > { %v5590_v38 = vpop.f32.mrf.mxu0 }
0x204d   : > { %v5618_v57 = vpack.c.bf16 %v5590_v38, %v5587_v14 }
0x204e   : > { %v8530_v24 = vpop.f32.mrf.mxu0 }
0x204f   : > { %8534 = vmatprep.mubr.msk.bf16.mxu1 %vm3237_vm5, %v5618_v57 }
0x2050   : > { %v5603_v35 = vpop.f32.mrf.mxu0  ;;  %8535 = vmatmul.mubr.msk.bf16.vlgmr.msra.gmra.mxu1 %vm3237_vm5, %v5619_v58 }
0x2051   : > { %8553 = vmatpush3.bf16.xpose.msra.mxu1 %v5811_v45 }
0x2052   : > { %v8531_v22 = vpop.f32.mrf.mxu0 }
0x2053   : > { %v5621_v41 = vpack.c.bf16 %v8531_v22, %v8530_v24 }
0x2054   : > { %v5606_v12 = vpop.f32.mrf.mxu0 }
0x2055   : > { %v5620_v62 = vpack.c.bf16 %v5606_v12, %v5603_v35 }
0x2057   : > { %8538 = vmatprep.mubr.msk.bf16.mxu1 %vm3237_vm5, %v5620_v62 }
0x2058   : > { %8539 = vmatmul.mubr.msk.bf16.gmra.mxu1 %vm3237_vm5, %v5621_v41 }
0x2059   : > { %8554 = vmatprep.mubr.msk.bf16.mxu1 %vm3237_vm5, %v5789_v1 }
0x2060   : > { %8555 = vmatmul.mubr.msk.bf16.vlgmr.msra.gmra.mxu1 %vm3237_vm5, %v5791_v7 }
0x2061   : > { %8558 = vmatprep.mubr.msk.bf16.mxu1 %vm3237_vm5, %v5793_v63 }
0x2068   : > { %8559 = vmatmul.mubr.msk.bf16.gmra.mxu1 %vm3237_vm5, %v5795_v0 }
0x2100   : > { %v8546_v20 = vpop.f32.mrf.mxu0 }
0x2102   : > { %v5757_v55 = vpop.f32.mrf.mxu0 }
0x2104   : > { %v8547_v37 = vpop.f32.mrf.mxu0 }
0x2106   : > { %v5760_v26 = vpop.f32.mrf.mxu0 }
0x2108   : > { %v8550_v32 = vpop.f32.mrf.mxu0 }
0x210a   : > { %v5773_v31 = vpop.f32.mrf.mxu0 }
0x210c   : > { %v8551_v43 = vpop.f32.mrf.mxu0 }
0x2110   : > { %v8536_v25 = vpop.f32.mrf.mxu1 }
0x2111   : > { %v10762_v15 = vadd.f32 %v8546_v20, %v8536_v25 }
0x2112   : > { %v5674_v27 = vpop.f32.mrf.mxu1 }
0x2113   : > { %v10764_v53 = vadd.f32 %v5757_v55, %v5674_v27 }
0x2114   : > { %v8537_v46 = vpop.f32.mrf.mxu1 }
0x2115   : > { %v10766_v13 = vadd.f32 %v8547_v37, %v8537_v46 }
0x2116   : > { %v5677_v40 = vpop.f32.mrf.mxu1 }
0x2117   : > { %v10768_v54 = vadd.f32 %v5760_v26, %v5677_v40 }
0x2118   : > { %v8540_v49 = vpop.f32.mrf.mxu1 }
0x2119   : > { %v10770_v19 = vadd.f32 %v8550_v32, %v8540_v49 }
0x211a   : > { %v5690_v29 = vpop.f32.mrf.mxu1 }
0x211b   : > { %v10772_v48 = vadd.f32 %v5773_v31, %v5690_v29 }
0x211c   : > { %v8541_v36 = vpop.f32.mrf.mxu1 }
0x211d   : > { %v10774_v18 = vadd.f32 %v8551_v43, %v8541_v36 }
0x211e   : > { %v10776_v44 = vpop.f32.mrf.mxu1 }
0x2120   : > { %v8556_v23 = vpop.f32.mrf.mxu1 }
0x2121   : > { %v5884_v39 = vsel %vm1452_vm2, %v8556_v23, -inf }
0x2122   : > { %5885 = vmax.xlane.f32.xlu0 %v5884_v39  ;;  %v5847_v51 = vpop.f32.mrf.mxu1 }
0x2123   : > { %v5878_v47 = vsel %vm1452_vm2, %v5847_v51, -inf }
0x2124   : > { %5879 = vmax.xlane.f32.xlu1 %v5878_v47  ;;  %v8557_v52 = vpop.f32.mrf.mxu1 }
0x2125   : > { %v5887_v14 = vsel %vm1452_vm2, %v8557_v52, -inf }
0x2126   : > { %v5850_v34 = vpop.f32.mrf.mxu1 }
0x2127   : > { %v5881_v9 = vsel %vm1452_vm2, %v5850_v34, -inf }
0x2128   : > { %5882 = vmax.xlane.f32.xlu0 %v5881_v9  ;;  %v8560_v10 = vpop.f32.mrf.mxu1 }
0x2129   : > { %v5896_v58 = vsel %vm1452_vm2, %v8560_v10, -inf }
0x212a   : > { %v5863_v50 = vpop.f32.mrf.mxu1 }
0x212b   : > { %v5890_v16 = vsel %vm1452_vm2, %v5863_v50, -inf }
0x212c   : > { %5888 = vmax.xlane.f32.xlu0 %v5887_v14  ;;  %5891 = vmax.xlane.f32.xlu1 %v5890_v16  ;;  %v8561_v38 = vpop.f32.mrf.mxu1 }
0x212d   : > { %v5899_v45 = vsel %vm1452_vm2, %v8561_v38, -inf }
0x212e   : > { %v5866_v57 = vpop.f32.mrf.mxu1 }
0x212f   : > { %v5893_v24 = vsel %vm1452_vm2, %v5866_v57, -inf }
0x2130   : > { %5897 = vmax.xlane.f32.xlu1 %v5896_v58  ;;  %5894 = vmax.xlane.f32.xlu0 %v5893_v24 }
0x2134   : > { %5900 = vmax.xlane.f32.xlu0 %v5899_v45 }
0x2141   : > { %5970 = vrot.lane.b32.xlu1 %v10475_v8, %s11383_s3  ;;  %s11387_s3 = sld [smem:[#allocation25_spill]] }
0x21ab   : > { %v5886_v35 = vpop.xlane.xlu0 %5885 }
0x21ac   : > { %v5904_v22 = vsub.f32 %v8556_v23, %v5886_v35 }
0x21ad   : > { %v5880_v12 = vpop.xlane.xlu1 %5879 }
0x21ae   : > { %v5914_v62 = vmul.f32 1.442695, %v5904_v22  ;;  %v5902_v41 = vsub.f32 %v5847_v51, %v5880_v12 }
0x21b0   : > { %9058 = vpow2.f32 %v5914_v62  ;;  %v5910_v1 = vmul.f32 1.442695, %v5902_v41 }
0x21b1   : > { %v5883_v7 = vpop.xlane.xlu0 %5882 }
0x21b2   : > { %9060 = vpow2.f32 %v5910_v1  ;;  %v5903_v63 = vsub.f32 %v5850_v34, %v5883_v7 }
0x21b4   : > { %v5912_v25 = vmul.f32 1.442695, %v5903_v63 }
0x21b5   : > { %v5892_v0 = vpop.xlane.xlu1 %5891  ;;  %v5889_v20 = vpop.xlane.xlu0 %5888 }
0x21b6   : > { %v5905_v55 = vsub.f32 %v8557_v52, %v5889_v20  ;;  %v5906_v37 = vsub.f32 %v5863_v50, %v5892_v0 }
0x21b8   : > { %v5916_v26 = vmul.f32 1.442695, %v5905_v55  ;;  %v5918_v40 = vmul.f32 1.442695, %v5906_v37 }
0x21b9   : > { %v5898_v27 = vpop.xlane.xlu1 %5897  ;;  %v5895_v32 = vpop.xlane.xlu0 %5894 }
0x21ba   : > { %v5908_v46 = vsub.f32 %v8560_v10, %v5898_v27  ;;  %9062 = vpow2.f32 %v5916_v26  ;;  %v5907_v29 = vsub.f32 %v5866_v57, %v5895_v32 }
0x21bb   : > { %9064 = vpow2.f32 %v5912_v25 }
0x21bc   : > { %v5922_v31 = vmul.f32 1.442695, %v5908_v46  ;;  %v5920_v34 = vmul.f32 1.442695, %v5907_v29 }
0x21bd   : > { %v10788_v49 = vpop.eup %9058  ;;  %v5971_v43 = vpop.permute.xlu1 %5970 }
0x21be   : > { %v5901_v36 = vpop.xlane.xlu0 %5900  ;;  %9066 = vpow2.f32 %v5922_v31  ;;  %v5985_v23 = vsel %vm1516_vm3, %v5971_v43, 0  ;;  %8649 = vmatprep.subr.msk.bf16.mxu0 %vm1516_vm3, %v5971_v43  ;;  %v5932_v51 = vsel %vm1452_vm2, %v10788_v49, 0.0 }
0x21bf   : > { %v5909_v39 = vsub.f32 %v8561_v38, %v5901_v36  ;;  %v9061_v47 = vpop.eup %9060  ;;  %8563 = vmatpush3.bf16.msra.mxu0 %v5985_v23  ;;  %5933 = vadd.xlane.f32.xlu1 %v5932_v51  ;;  %9068 = vpow2.f32 %v5918_v40 }
0x21c0   : > { %v5926_v9 = vsel %vm1452_vm2, %v9061_v47, 0.0 }
0x21c1   : > { %v5924_v52 = vmul.f32 1.442695, %v5909_v39 }
0x21c3   : > { %9070 = vpow2.f32 %v5924_v52  ;;  %5927 = vadd.xlane.f32.xlu1 %v5926_v9 }
0x21c4   : > { %9072 = vpow2.f32 %v5920_v34 }
0x21c7   : > { %v9063_v10 = vpop.eup %9062 }
0x21c8   : > { %v5935_v50 = vsel %vm1452_vm2, %v9063_v10, 0.0  ;;  %v9065_v14 = vpop.eup %9064 }
0x21c9   : > { %5936 = vadd.xlane.f32.xlu0 %v5935_v50  ;;  %v5929_v58 = vsel %vm1452_vm2, %v9065_v14, 0.0 }
0x21cb   : > { %v9067_v16 = vpop.eup %9066 }
0x21cc   : > { %v5944_v38 = vsel %vm1452_vm2, %v9067_v16, 0.0  ;;  %v9069_v57 = vpop.eup %9068 }
0x21cd   : > { %5945 = vadd.xlane.f32.xlu1 %v5944_v38  ;;  %5930 = vadd.xlane.f32.xlu0 %v5929_v58  ;;  %v5938_v45 = vsel %vm1452_vm2, %v9069_v57, 0.0  ;;  %v8764_v38 = vld [vmem:[%s11379_s22 + $0x10] sm:$0xff]  }
0x21ce   : > { %8572 = vmatprep.subr.bf16.mxu1 %v8764_v38 }
0x21cf   : > { %8573 = vmatpush3.bf16.msra.mxu1 %v8764_v38 }
0x21d0   : > { %v9071_v24 = vpop.eup %9070 }
0x21d1   : > { %v5947_v35 = vsel %vm1452_vm2, %v9071_v24, 0.0  ;;  %5939 = vadd.xlane.f32.xlu1 %v5938_v45  ;;  %v9073_v22 = vpop.eup %9072 }
0x21d2   : > { %5948 = vadd.xlane.f32.xlu0 %v5947_v35  ;;  %v5941_v12 = vsel %vm1452_vm2, %v9073_v22, 0.0 }
0x21d6   : > { %5942 = vadd.xlane.f32.xlu0 %v5941_v12 }
0x21e2   : > { %6147 = vrot.lane.b32.xlu1 %v10557_v56, %s11368_s0 }
0x21e6   : > { %6149 = vrot.lane.b32.xlu1 %v10555_v6, %s11368_s0 }
0x21ea   : > { %6151 = vrot.lane.b32.xlu1 %v10568_v11, %s11368_s0 }
0x21ec   : > { %6155 = vrot.lane.b32.xlu0 %v10475_v8, %s11368_s0 }
0x21f0   : > { %6153 = vrot.lane.b32.xlu0 %v10570_v17, %s11368_s0  ;;  %s11385_s0 = sld [smem:[#allocation24_spill]] }
0x2248   : > { %v5934_v62 = vpop.xlane.xlu1 %5933 }
0x224c   : > { %v5928_v41 = vpop.xlane.xlu1 %5927 }
0x2252   : > { %v5937_v1 = vpop.xlane.xlu0 %5936 }
0x2253   : > { %9074 = vrcp.f32 %v5937_v1 }
0x2254   : > { %9076 = vrcp.f32 %v5928_v41 }
0x2255   : > { %9078 = vrcp.f32 %v5934_v62 }
0x2256   : > { %v5946_v7 = vpop.xlane.xlu1 %5945  ;;  %v5931_v56 = vpop.xlane.xlu0 %5930 }
0x2257   : > { %9080 = vrcp.f32 %v5931_v56 }
0x225a   : > { %v5940_v63 = vpop.xlane.xlu1 %5939 }
0x225b   : > { %v5949_v6 = vpop.xlane.xlu0 %5948 }
0x225c   : > { %9082 = vrcp.f32 %v5949_v6 }
0x225d   : > { %9084 = vrcp.f32 %v5940_v63 }
0x225e   : > { %9086 = vrcp.f32 %v5946_v7  ;;  %v6148_v52 = vpop.permute.xlu1 %6147 }
0x225f   : > { %v5943_v11 = vpop.xlane.xlu0 %5942 }
0x2260   : > { %9088 = vrcp.f32 %v5943_v11  ;;  %v9075_v0 = vpop.eup %9074 }
0x2261   : > { %v9077_v20 = vpop.eup %9076  ;;  %v5961_v26 = vmul.f32 %v9075_v0, %v9063_v10 }
0x2262   : > { %v9079_v17 = vpop.eup %9078  ;;  %v5958_v25 = vmul.f32 %v9077_v20, %v9061_v47  ;;  %v6150_v10 = vpop.permute.xlu1 %6149 }
0x2263   : > { %v6156_v55 = vpop.permute.xlu0 %6155  ;;  %v5960_v32 = vmul.f32 %v9079_v17, %v10788_v49 }
0x2264   : > { %8650 = vmatprep.subr.msk.bf16.mxu0 %vm3237_vm5, %v6156_v55  ;;  %v9081_v37 = vpop.eup %9080  ;;  %v6170_v43 = vsel %vm3237_vm5, %v6156_v55, 0 }
0x2265   : > { %v5959_v27 = vmul.f32 %v9081_v37, %v9065_v14  ;;  %v5967_v40 = vpack.c.bf16 %v5961_v26, %v5960_v32 }
0x2266   : > { %v6152_v50 = vpop.permute.xlu1 %6151 }
0x2267   : > { %v5966_v46 = vpack.c.bf16 %v5959_v27, %v5958_v25  ;;  %v6154_v14 = vpop.permute.xlu0 %6153 }
0x2269   : > { %v9083_v31 = vpop.eup %9082  ;;  %8564 = vmatprep.mubr.msk.bf16.mxu0 %vm1452_vm2, %v5966_v46 }
0x226a   : > { %v9085_v29 = vpop.eup %9084  ;;  %8565 = vmatmul.mubr.msk.bf16.vlgmr.msra.gmra.mxu0 %vm1452_vm2, %v5967_v40  ;;  %v5965_v39 = vmul.f32 %v9083_v31, %v9071_v24 }
0x226b   : > { %v9087_v36 = vpop.eup %9086  ;;  %8583 = vmatpush3.bf16.xpose.msra.mxu0 %v6170_v43  ;;  %v5962_v51 = vmul.f32 %v9085_v29, %v9069_v57 }
0x226c   : > { %v5964_v34 = vmul.f32 %v9087_v36, %v9067_v16  ;;  %v10823_v16 = vpop.f32.mrf.mxu0 }
0x226d   : > { %v9089_v23 = vpop.eup %9088 }
0x226e   : > { %v5963_v47 = vmul.f32 %v9089_v23, %v9073_v22  ;;  %v5969_v9 = vpack.c.bf16 %v5965_v39, %v5964_v34 }
0x2270   : > { %v5968_v49 = vpack.c.bf16 %v5963_v47, %v5962_v51 }
0x2272   : > { %8568 = vmatprep.mubr.msk.bf16.mxu0 %vm1452_vm2, %v5968_v49 }
0x2273   : > { %8569 = vmatmul.mubr.msk.bf16.gmra.mxu0 %vm1452_vm2, %v5969_v9 }
0x2274   : > { %8584 = vmatprep.mubr.msk.bf16.mxu0 %vm3237_vm5, %v6148_v52 }
0x227b   : > { %8585 = vmatmul.mubr.msk.bf16.vlgmr.msra.gmra.mxu0 %vm3237_vm5, %v6150_v10 }
0x227c   : > { %8588 = vmatprep.mubr.msk.bf16.mxu0 %vm3237_vm5, %v6152_v50 }
0x2283   : > { %8589 = vmatmul.mubr.msk.bf16.gmra.mxu0 %vm3237_vm5, %v6154_v14 }
0x232a   : > { %v8566_v57 = vpop.f32.mrf.mxu0 }
0x232c   : > { %v6021_v58 = vpop.f32.mrf.mxu0 }
0x232e   : > { %v8567_v24 = vpop.f32.mrf.mxu0 }
0x232f   : > { %v6053_v22 = vpack.c.bf16 %v8567_v24, %v8566_v57 }
0x2330   : > { %v6024_v45 = vpop.f32.mrf.mxu0 }
0x2331   : > { %v6052_v35 = vpack.c.bf16 %v6024_v45, %v6021_v58 }
0x2333   : > { %v8570_v12 = vpop.f32.mrf.mxu0  ;;  %8574 = vmatprep.mubr.msk.bf16.mxu1 %vm3237_vm5, %v6052_v35 }
0x2334   : > { %8575 = vmatmul.mubr.msk.bf16.vlgmr.msra.gmra.mxu1 %vm3237_vm5, %v6053_v22 }
0x2335   : > { %v6037_v62 = vpop.f32.mrf.mxu0 }
0x2337   : > { %v8571_v41 = vpop.f32.mrf.mxu0 }
0x2338   : > { %v6055_v56 = vpack.c.bf16 %v8571_v41, %v8570_v12 }
0x2339   : > { %v6040_v1 = vpop.f32.mrf.mxu0 }
0x233a   : > { %v6054_v7 = vpack.c.bf16 %v6040_v1, %v6037_v62 }
0x233b   : > { %v8586_v63 = vpop.f32.mrf.mxu0 }
0x233c   : > { %8578 = vmatprep.mubr.msk.bf16.mxu1 %vm3237_vm5, %v6054_v7  ;;  %v6243_v6 = vsel %vm1452_vm2, %v8586_v63, -inf }
0x233d   : > { %8579 = vmatmul.mubr.msk.bf16.gmra.mxu1 %vm3237_vm5, %v6055_v56  ;;  %6244 = vmax.xlane.f32.xlu0 %v6243_v6  ;;  %v6206_v11 = vpop.f32.mrf.mxu0 }
0x233e   : > { %v6237_v0 = vsel %vm1452_vm2, %v6206_v11, -inf }
0x233f   : > { %6238 = vmax.xlane.f32.xlu1 %v6237_v0  ;;  %v8587_v20 = vpop.f32.mrf.mxu0 }
0x2340   : > { %v6246_v25 = vsel %vm1452_vm2, %v8587_v20, -inf }
0x2341   : > { %v6209_v55 = vpop.f32.mrf.mxu0 }
0x2342   : > { %v6240_v17 = vsel %vm1452_vm2, %v6209_v55, -inf }
0x2343   : > { %6241 = vmax.xlane.f32.xlu0 %v6240_v17  ;;  %v8590_v37 = vpop.f32.mrf.mxu0 }
0x2344   : > { %v6255_v40 = vsel %vm1452_vm2, %v8590_v37, -inf }
0x2345   : > { %v6222_v26 = vpop.f32.mrf.mxu0 }
0x2346   : > { %v6249_v27 = vsel %vm1452_vm2, %v6222_v26, -inf }
0x2347   : > { %6247 = vmax.xlane.f32.xlu0 %v6246_v25  ;;  %6250 = vmax.xlane.f32.xlu1 %v6249_v27  ;;  %v8591_v32 = vpop.f32.mrf.mxu0 }
0x2348   : > { %v6258_v29 = vsel %vm1452_vm2, %v8591_v32, -inf }
0x2349   : > { %v6225_v46 = vpop.f32.mrf.mxu0 }
0x234a   : > { %v6252_v31 = vsel %vm1452_vm2, %v6225_v46, -inf }
0x234b   : > { %6256 = vmax.xlane.f32.xlu1 %v6255_v40  ;;  %6253 = vmax.xlane.f32.xlu0 %v6252_v31 }
0x234f   : > { %6259 = vmax.xlane.f32.xlu0 %v6258_v29 }
0x23c6   : > { %v6245_v43 = vpop.xlane.xlu0 %6244 }
0x23c7   : > { %v6263_v36 = vsub.f32 %v8586_v63, %v6245_v43 }
0x23c8   : > { %v6239_v23 = vpop.xlane.xlu1 %6238 }
0x23c9   : > { %v6273_v39 = vmul.f32 1.442695, %v6263_v36  ;;  %v6261_v51 = vsub.f32 %v6206_v11, %v6239_v23 }
0x23cb   : > { %9090 = vpow2.f32 %v6273_v39  ;;  %v6269_v47 = vmul.f32 1.442695, %v6261_v51 }
0x23cc   : > { %v6242_v52 = vpop.xlane.xlu0 %6241 }
0x23cd   : > { %9092 = vpow2.f32 %v6269_v47  ;;  %v6262_v34 = vsub.f32 %v6209_v55, %v6242_v52 }
0x23cf   : > { %v6271_v49 = vmul.f32 1.442695, %v6262_v34 }
0x23d0   : > { %v6251_v9 = vpop.xlane.xlu1 %6250  ;;  %v6248_v10 = vpop.xlane.xlu0 %6247 }
0x23d1   : > { %9094 = vpow2.f32 %v6271_v49  ;;  %v6264_v50 = vsub.f32 %v8587_v20, %v6248_v10  ;;  %v6265_v14 = vsub.f32 %v6222_v26, %v6251_v9 }
0x23d3   : > { %v6275_v38 = vmul.f32 1.442695, %v6264_v50  ;;  %v6277_v35 = vmul.f32 1.442695, %v6265_v14 }
0x23d4   : > { %v6257_v57 = vpop.xlane.xlu1 %6256  ;;  %v6254_v58 = vpop.xlane.xlu0 %6253 }
0x23d5   : > { %v6267_v24 = vsub.f32 %v8590_v37, %v6257_v57  ;;  %v6266_v45 = vsub.f32 %v6225_v46, %v6254_v58  ;;  %9096 = vpow2.f32 %v6275_v38 }
0x23d7   : > { %v6281_v22 = vmul.f32 1.442695, %v6267_v24  ;;  %v6279_v12 = vmul.f32 1.442695, %v6266_v45 }
0x23d8   : > { %v10837_v62 = vpop.eup %9090  ;;  %v6260_v41 = vpop.xlane.xlu0 %6259 }
0x23d9   : > { %9098 = vpow2.f32 %v6281_v22  ;;  %v6268_v1 = vsub.f32 %v8591_v32, %v6260_v41  ;;  %v6291_v7 = vsel %vm1452_vm2, %v10837_v62, 0.0 }
0x23da   : > { %v9093_v56 = vpop.eup %9092  ;;  %9100 = vpow2.f32 %v6279_v12  ;;  %6292 = vadd.xlane.f32.xlu1 %v6291_v7 }
0x23db   : > { %9102 = vpow2.f32 %v6277_v35  ;;  %v6283_v63 = vmul.f32 1.442695, %v6268_v1  ;;  %v6285_v6 = vsel %vm1452_vm2, %v9093_v56, 0.0 }
0x23dd   : > { %9104 = vpow2.f32 %v6283_v63 }
0x23de   : > { %v9095_v11 = vpop.eup %9094  ;;  %6286 = vadd.xlane.f32.xlu1 %v6285_v6 }
0x23df   : > { %v6288_v0 = vsel %vm1452_vm2, %v9095_v11, 0.0 }
0x23e0   : > { %6289 = vadd.xlane.f32.xlu0 %v6288_v0 }
0x23e2   : > { %v9097_v20 = vpop.eup %9096 }
0x23e3   : > { %v6294_v55 = vsel %vm1452_vm2, %v9097_v20, 0.0 }
0x23e4   : > { %6295 = vadd.xlane.f32.xlu0 %v6294_v55 }
0x23e6   : > { %v10844_v17 = vpop.eup %9098 }
0x23e7   : > { %v10846_v37 = vpop.eup %9100  ;;  %v6303_v26 = vsel %vm1452_vm2, %v10844_v17, 0.0 }
0x23e8   : > { %v9103_v25 = vpop.eup %9102  ;;  %6304 = vadd.xlane.f32.xlu1 %v6303_v26  ;;  %v6300_v27 = vsel %vm1452_vm2, %v10846_v37, 0.0 }
0x23e9   : > { %6301 = vadd.xlane.f32.xlu0 %v6300_v27  ;;  %v6297_v46 = vsel %vm1452_vm2, %v9103_v25, 0.0 }
0x23ea   : > { %v9105_v32 = vpop.eup %9104 }
0x23eb   : > { %v6306_v40 = vsel %vm1452_vm2, %v9105_v32, 0.0 }
0x23ec   : > { %6298 = vadd.xlane.f32.xlu1 %v6297_v46 }
0x23ed   : > { %6307 = vadd.xlane.f32.xlu0 %v6306_v40 }
0x23f4   : > { %v8576_v31 = vpop.f32.mrf.mxu1 }
0x23f5   : > { %v10855_v29 = vadd.f32 %v8576_v31, %v10762_v15 }
0x23f6   : > { %v6108_v43 = vpop.f32.mrf.mxu1 }
0x23f7   : > { %v10858_v36 = vadd.f32 %v6108_v43, %v10764_v53 }
0x23f8   : > { %v8577_v23 = vpop.f32.mrf.mxu1 }
0x23f9   : > { %v10861_v39 = vadd.f32 %v8577_v23, %v10766_v13 }
0x23fa   : > { %v6111_v51 = vpop.f32.mrf.mxu1 }
0x23fb   : > { %v10864_v47 = vadd.f32 %v6111_v51, %v10768_v54 }
0x23fd   : > { %v8580_v52 = vpop.f32.mrf.mxu1  ;;  %6329 = vrot.lane.b32.xlu1 %v10475_v8, %s11384_s2  ;;  %s11388_s2 = sld [smem:[#allocation26_spill]] }
0x23fe   : > { %v10869_v34 = vadd.f32 %v8580_v52, %v10770_v19 }
0x23ff   : > { %v6124_v15 = vpop.f32.mrf.mxu1 }
0x2400   : > { %v10872_v49 = vadd.f32 %v6124_v15, %v10772_v48 }
0x2401   : > { %v8581_v53 = vpop.f32.mrf.mxu1 }
0x2402   : > { %v10875_v9 = vadd.f32 %v8581_v53, %v10774_v18 }
0x2463   : > { %v6293_v13 = vpop.xlane.xlu1 %6292 }
0x2467   : > { %v6287_v10 = vpop.xlane.xlu1 %6286 }
0x2468   : > { %9106 = vrcp.f32 %v6287_v10 }
0x2469   : > { %v6290_v54 = vpop.xlane.xlu0 %6289 }
0x246a   : > { %9108 = vrcp.f32 %v6290_v54 }
0x246b   : > { %9110 = vrcp.f32 %v6293_v13 }
0x246d   : > { %v6296_v50 = vpop.xlane.xlu0 %6295 }
0x246e   : > { %9112 = vrcp.f32 %v6296_v50 }
0x2471   : > { %v6305_v8 = vpop.xlane.xlu1 %6304 }
0x2472   : > { %v6302_v14 = vpop.xlane.xlu0 %6301 }
0x2473   : > { %9114 = vrcp.f32 %v6302_v14 }
0x2474   : > { %9116 = vrcp.f32 %v6305_v8 }
0x2475   : > { %v9107_v19 = vpop.eup %9106  ;;  %v6299_v38 = vpop.xlane.xlu1 %6298 }
0x2476   : > { %9118 = vrcp.f32 %v6299_v38  ;;  %v6308_v48 = vpop.xlane.xlu0 %6307  ;;  %v6317_v18 = vmul.f32 %v9107_v19, %v9093_v56  ;;  %v7792_v38 = vld [vmem:[%s11385_s0] ss:$0 sm:$0xff]  ;;  %s11389_s0 = sld [smem:[#allocation29_spill]] }
0x2477   : > { %v9109_v57 = vpop.eup %9108  ;;  %9120 = vrcp.f32 %v6308_v48 }
0x2478   : > { %v6318_v58 = vmul.f32 %v9109_v57, %v9095_v11  ;;  %v9111_v45 = vpop.eup %9110 }
0x2479   : > { %v6330_v24 = vpop.permute.xlu1 %6329  ;;  %v6319_v41 = vmul.f32 %v9111_v45, %v10837_v62  ;;  %v8765_v62 = vld [vmem:[%s11379_s22 + $0x18] sm:$0xff]  }
0x247a   : > { %v6344_v35 = vsel %vm1516_vm3, %v6330_v24, 0  ;;  %8651 = vmatprep.subr.msk.bf16.mxu1 %vm1516_vm3, %v6330_v24  ;;  %v6325_v22 = vpack.c.bf16 %v6318_v58, %v6317_v18  ;;  %8602 = vmatprep.subr.bf16.mxu0 %v8765_v62 }
0x247b   : > { %8593 = vmatpush3.bf16.msra.mxu1 %v6344_v35  ;;  %v9113_v12 = vpop.eup %9112  ;;  %8603 = vmatpush3.bf16.msra.mxu0 %v8765_v62 }
0x247c   : > { %8594 = vmatprep.mubr.msk.bf16.mxu1 %vm1452_vm2, %v6325_v22  ;;  %v6320_v1 = vmul.f32 %v9113_v12, %v9097_v20  ;;  %v6127_v20 = vpop.f32.mrf.mxu1 }
0x247e   : > { %v6326_v7 = vpack.c.bf16 %v6320_v1, %v6319_v41 }
0x2480   : > { %v9115_v63 = vpop.eup %9114  ;;  %8595 = vmatmul.mubr.msk.bf16.vlgmr.msra.gmra.mxu1 %vm1452_vm2, %v6326_v7 }
0x2481   : > { %v9117_v56 = vpop.eup %9116  ;;  %v6322_v55 = vmul.f32 %v9115_v63, %v10846_v37 }
0x2482   : > { %v6323_v26 = vmul.f32 %v9117_v56, %v10844_v17 }
0x2483   : > { %v9119_v6 = vpop.eup %9118 }
0x2484   : > { %v9121_v11 = vpop.eup %9120  ;;  %v6321_v0 = vmul.f32 %v9119_v6, %v9103_v25 }
0x2485   : > { %v6324_v27 = vmul.f32 %v9121_v11, %v9105_v32 }
0x2486   : > { %v6327_v46 = vpack.c.bf16 %v6322_v55, %v6321_v0 }
0x2487   : > { %v6328_v40 = vpack.c.bf16 %v6324_v27, %v6323_v26 }
0x2488   : > { %8598 = vmatprep.mubr.msk.bf16.mxu1 %vm1452_vm2, %v6327_v46 }
0x2489   : > { %8599 = vmatmul.mubr.msk.bf16.gmra.mxu1 %vm1452_vm2, %v6328_v40 }
0x248a   : > { %6829 = vmatprep.mubr.bf16.mxu1 %v9243_v42 }
0x2540   : > { %v8596_v31 = vpop.f32.mrf.mxu1 }
0x2542   : > { %v6380_v43 = vpop.f32.mrf.mxu1 }
0x2544   : > { %v8597_v25 = vpop.f32.mrf.mxu1 }
0x2545   : > { %v6412_v51 = vpack.c.bf16 %v8597_v25, %v8596_v31 }
0x2546   : > { %v6383_v23 = vpop.f32.mrf.mxu1 }
0x2547   : > { %v6411_v37 = vpack.c.bf16 %v6383_v23, %v6380_v43 }
0x2549   : > { %v8600_v17 = vpop.f32.mrf.mxu1  ;;  %8604 = vmatprep.mubr.msk.bf16.mxu0 %vm3237_vm5, %v6411_v37 }
0x254a   : > { %8605 = vmatmul.mubr.msk.bf16.vlgmr.msra.gmra.mxu0 %vm3237_vm5, %v6412_v51 }
0x254b   : > { %v6396_v32 = vpop.f32.mrf.mxu1 }
0x254d   : > { %v8601_v52 = vpop.f32.mrf.mxu1 }
0x254e   : > { %v6414_v13 = vpack.c.bf16 %v8601_v52, %v8600_v17 }
0x254f   : > { %v6399_v15 = vpop.f32.mrf.mxu1 }
0x2550   : > { %v6413_v53 = vpack.c.bf16 %v6399_v15, %v6396_v32 }
0x2552   : > { %8608 = vmatprep.mubr.msk.bf16.mxu0 %vm3237_vm5, %v6413_v53 }
0x2553   : > { %8609 = vmatmul.mubr.msk.bf16.gmra.mxu0 %vm3237_vm5, %v6414_v13 }
0x2554   : > { %6902 = vmatprep.mubr.bf16.mxu0 %v9243_v42 }
0x260a   : > { %v8606_v10 = vpop.f32.mrf.mxu0 }
0x260b   : > { %v6500_v8 = vadd.f32 %v8606_v10, %v10855_v29 }
0x260c   : > { %v6467_v54 = vpop.f32.mrf.mxu0 }
0x260d   : > { %v6498_v50 = vadd.f32 %v6467_v54, %v10858_v36  ;;  %v6508_v58 = vadd.f32 %v6500_v8, %v10439_v5 }
0x260e   : > { %v8607_v14 = vpop.f32.mrf.mxu0 }
0x260f   : > { %v6506_v19 = vadd.f32 %v6498_v50, %v10442_v21  ;;  %v6501_v45 = vadd.f32 %v8607_v14, %v10861_v39  ;;  %v5777_v21 = vadd.f32 %v10823_v16, %v10776_v44 }
0x2610   : > { %v6470_v48 = vpop.f32.mrf.mxu0 }
0x2611   : > { %v10897_v57 = vadd.f32 %v7792_v38, %v6506_v19  ;;  %v6499_v18 = vadd.f32 %v6470_v48, %v10864_v47  ;;  %v10910_v47 = vadd.f32 %v7792_v38, %v6508_v58  ;;  %v6144_v41 = vadd.f32 %v6127_v20, %v5777_v21 }
0x2612   : > { %v6509_v39 = vadd.f32 %v6501_v45, %v10454_v61 }
0x2613   : > { %v8610_v24 = vpop.f32.mrf.mxu0  ;;  %v6507_v35 = vadd.f32 %v6499_v18, %v10451_v60  ;;  %v6529_v36 = vsel %vm2379_vm4, %v10897_v57, 0.0  ;;  %v6535_v16 = vsel %vm2379_vm4, %v10910_v47, 0.0 }
0x2614   : > { %6530 = vadd.xlane.f32.xlu0 %v6529_v36  ;;  %v6504_v56 = vadd.f32 %v8610_v24, %v10869_v34 }
0x2615   : > { %v6483_v29 = vpop.f32.mrf.mxu0  ;;  %v10907_v22 = vadd.f32 %v7792_v38, %v6507_v35 }
0x2616   : > { %v6502_v12 = vadd.f32 %v6483_v29, %v10872_v49  ;;  %v10920_v49 = vadd.f32 %v7792_v38, %v6509_v39 }
0x2617   : > { %v8611_v5 = vpop.f32.mrf.mxu0  ;;  %v6532_v1 = vsel %vm2379_vm4, %v10907_v22, 0.0 }
0x2618   : > { %v6510_v60 = vadd.f32 %v6502_v12, %v10462_v2  ;;  %6533 = vadd.xlane.f32.xlu0 %v6532_v1  ;;  %v6512_v2 = vadd.f32 %v6504_v56, %v10465_v30  ;;  %v6505_v11 = vadd.f32 %v8611_v5, %v10875_v9  ;;  %v6538_v55 = vsel %vm2379_vm4, %v10920_v49, 0.0  ;;  %v8766_v56 = vld [vmem:[%s11386_s16 + $0x60] ss:$16 sps:$4 sm:$0xff]  }
0x2619   : > { %v6486_v7 = vpop.f32.mrf.mxu0 }
0x261a   : > { %v10916_v63 = vadd.f32 %v7792_v38, %v6510_v60  ;;  %v6503_v44 = vadd.f32 %v6486_v7, %v6144_v41  ;;  %v10932_v26 = vadd.f32 %v7792_v38, %v6512_v2  ;;  %v6513_v34 = vadd.f32 %v6505_v11, %v10477_v28  ;;  %v8768_v7 = vld [vmem:[%s11386_s16 + $0x64] ss:$16 sps:$4 sm:$0xff]   ;;  %v8777_v2 = vld [vmem:[%s11386_s16 + $0x4c] ss:$16 sps:$4 sm:$0xff]   ;;  %v8772_v11 = vld [vmem:[%s11386_s16 + $0x40] ss:$16 sps:$4 sm:$0xff]  }
0x261b   : > { %6805 = vmatprep.subr.bf16.mxu1 %v8768_v7 }
0x261c   : > { %v6511_v6 = vadd.f32 %v6503_v44, %v10473_v59  ;;  %v6541_v61 = vsel %vm2379_vm4, %v10916_v63, 0.0  ;;  %6536 = vadd.xlane.f32.xlu0 %v6535_v16  ;;  %v10937_v27 = vadd.f32 %v7792_v38, %v6513_v34  ;;  %v6547_v30 = vsel %vm2379_vm4, %v10932_v26, 0.0  ;;  %v8771_v44 = vld [vmem:[%s11386_s16 + $0x6c] ss:$16 sps:$4 sm:$0xff]   ;;  %6806 = vmatpush1.bf16.msra.mxu1 %v8766_v56  ;;  %v8780_v34 = vld [vmem:[%s11386_s16 + $0x24] ss:$16 sps:$4 sm:$0xff]  }
0x261d   : > { %6542 = vadd.xlane.f32.xlu1 %v6541_v61  ;;  %6878 = vmatprep.subr.bf16.mxu0 %v8771_v44  ;;  %v8774_v61 = vld [vmem:[%s11386_s16 + $0x44] ss:$16 sps:$4 sm:$0xff]  }
0x261e   : > { %v10928_v0 = vadd.f32 %v7792_v38, %v6511_v6  ;;  %v6550_v9 = vsel %vm2379_vm4, %v10937_v27, 0.0  ;;  %v8769_v6 = vld [vmem:[%s11386_s16 + $0x68] ss:$16 sps:$4 sm:$0xff]   ;;  %6807 = vmatprep.subr.bf16.mxu1 %v8774_v61 }
0x261f   : > { %6879 = vmatpush1.bf16.msra.mxu0 %v8769_v6 }
0x2620   : > { %6539 = vadd.xlane.f32.xlu0 %v6538_v55  ;;  %v6544_v59 = vsel %vm2379_vm4, %v10928_v0, 0.0  ;;  %v8775_v55 = vld [vmem:[%s11386_s16 + $0x48] ss:$16 sps:$4 sm:$0xff]   ;;  %6880 = vmatprep.subr.bf16.mxu0 %v8777_v2 }
0x2621   : > { %6808 = vmatpush1.bf16.msra.mxu1 %v8772_v11 }
0x2622   : > { %6809 = vmatprep.subr.bf16.mxu1 %v8780_v34 }
0x2623   : > { %6881 = vmatpush1.bf16.msra.mxu0 %v8775_v55 }
0x2624   : > { %6545 = vadd.xlane.f32.xlu0 %v6544_v59  ;;  %v8783_v59 = vld [vmem:[%s11386_s16 + $0x2c] ss:$16 sps:$4 sm:$0xff]  }
0x2625   : > { %6882 = vmatprep.subr.bf16.mxu0 %v8783_v59 }
0x2628   : > { %6548 = vadd.xlane.f32.xlu0 %v6547_v30  ;;  %v8778_v30 = vld [vmem:[%s11386_s16 + $0x20] ss:$16 sps:$4 sm:$0xff]  }
0x2629   : > { %6810 = vmatpush1.bf16.msra.mxu1 %v8778_v30 }
0x262c   : > { %6551 = vadd.xlane.f32.xlu0 %v6550_v9  ;;  %v8781_v9 = vld [vmem:[%s11386_s16 + $0x28] ss:$16 sps:$4 sm:$0xff]  }
0x262d   : > { %6883 = vmatpush1.bf16.msra.mxu0 %v8781_v9 }
0x269d   : > { %v6531_v46 = vpop.xlane.xlu0 %6530 }
0x269e   : > { %v6553_v40 = vmul.f32 0.015625, %v6531_v46  ;;  %v8786_v46 = vld [vmem:[%s11386_s16 + $0x4] ss:$16 sps:$4 sm:$0xff]  }
0x269f   : > { %6811 = vmatprep.subr.bf16.mxu1 %v8786_v46 }
0x26a0   : > { %v10944_v62 = vsub.f32 %v10897_v57, %v6553_v40  ;;  %v8789_v40 = vld [vmem:[%s11386_s16 + $0xc] ss:$16 sps:$4 sm:$0xff]  }
0x26a1   : > { %v6534_v28 = vpop.xlane.xlu0 %6533  ;;  %6884 = vmatprep.subr.bf16.mxu0 %v8789_v40 }
0x26a2   : > { %v6554_v20 = vmul.f32 0.015625, %v6534_v28  ;;  %v6569_v31 = vmul.f32 %v10944_v62, %v10944_v62  ;;  %v8784_v28 = vld [vmem:[%s11386_s16] ss:$16 sps:$4 sm:$0xff]  }
0x26a3   : > { %6812 = vmatpush1.bf16.msra.mxu1 %v8784_v28 }
0x26a4   : > { %v10949_v43 = vsub.f32 %v10907_v22, %v6554_v20  ;;  %v6577_v25 = vsel %vm2379_vm4, %v6569_v31, 0.0  ;;  %v8787_v20 = vld [vmem:[%s11386_s16 + $0x8] ss:$16 sps:$4 sm:$0xff]  }
0x26a5   : > { %6578 = vadd.xlane.f32.xlu0 %v6577_v25  ;;  %v6537_v23 = vpop.xlane.xlu0 %6536  ;;  %6885 = vmatpush1.bf16.msra.mxu0 %v8787_v20 }
0x26a6   : > { %v6543_v37 = vpop.xlane.xlu1 %6542  ;;  %v6555_v51 = vmul.f32 0.015625, %v6537_v23  ;;  %v6570_v17 = vmul.f32 %v10949_v43, %v10949_v43 }
0x26a7   : > { %v6557_v52 = vmul.f32 0.015625, %v6543_v37 }
0x26a8   : > { %v10955_v32 = vsub.f32 %v10910_v47, %v6555_v51  ;;  %v6580_v15 = vsel %vm2379_vm4, %v6570_v17, 0.0 }
0x26a9   : > { %6581 = vadd.xlane.f32.xlu0 %v6580_v15  ;;  %v6540_v53 = vpop.xlane.xlu0 %6539  ;;  %v10961_v54 = vsub.f32 %v10916_v63, %v6557_v52 }
0x26aa   : > { %v6556_v13 = vmul.f32 0.015625, %v6540_v53  ;;  %v6571_v10 = vmul.f32 %v10955_v32, %v10955_v32 }
0x26ab   : > { %v6573_v58 = vmul.f32 %v10961_v54, %v10961_v54 }
0x26ac   : > { %v10964_v50 = vsub.f32 %v10920_v49, %v6556_v13  ;;  %v6583_v8 = vsel %vm2379_vm4, %v6571_v10, 0.0 }
0x26ad   : > { %6584 = vadd.xlane.f32.xlu0 %v6583_v8  ;;  %v6546_v14 = vpop.xlane.xlu0 %6545  ;;  %v6589_v36 = vsel %vm2379_vm4, %v6573_v58, 0.0 }
0x26ae   : > { %v6558_v19 = vmul.f32 0.015625, %v6546_v14  ;;  %v6572_v38 = vmul.f32 %v10964_v50, %v10964_v50 }
0x26b0   : > { %v10970_v48 = vsub.f32 %v10928_v0, %v6558_v19  ;;  %v6586_v18 = vsel %vm2379_vm4, %v6572_v38, 0.0 }
0x26b1   : > { %6587 = vadd.xlane.f32.xlu0 %v6586_v18  ;;  %v6549_v24 = vpop.xlane.xlu0 %6548 }
0x26b2   : > { %v6559_v45 = vmul.f32 0.015625, %v6549_v24  ;;  %v6574_v29 = vmul.f32 %v10970_v48, %v10970_v48  ;;  %v7793_v24 = vld [vmem:[%s11387_s3] ss:$0 sm:$0xff]  ;;  %s11390_s3 = sld [smem:[#allocation28_spill]] }
0x26b4   : > { %v10976_v35 = vsub.f32 %v10932_v26, %v6559_v45  ;;  %v6592_v39 = vsel %vm2379_vm4, %v6574_v29, 0.0 }
0x26b5   : > { %6590 = vadd.xlane.f32.xlu0 %v6589_v36  ;;  %v6552_v21 = vpop.xlane.xlu0 %6551 }
0x26b6   : > { %v6560_v12 = vmul.f32 0.015625, %v6552_v21  ;;  %v6575_v5 = vmul.f32 %v10976_v35, %v10976_v35 }
0x26b8   : > { %v10984_v41 = vsub.f32 %v10937_v27, %v6560_v12  ;;  %v6595_v60 = vsel %vm2379_vm4, %v6575_v5, 0.0 }
0x26b9   : > { %6593 = vadd.xlane.f32.xlu0 %v6592_v39  ;;  %6596 = vadd.xlane.f32.xlu1 %v6595_v60 }
0x26ba   : > { %v6576_v1 = vmul.f32 %v10984_v41, %v10984_v41 }
0x26bc   : > { %v6598_v16 = vsel %vm2379_vm4, %v6576_v1, 0.0  ;;  %v7794_v1 = vld [vmem:[%s11388_s2] ss:$0 sm:$0xff]  ;;  %s11391_s2 = sshll.u32 %s11393_s1, 6 }
0x26bd   : > { %6599 = vadd.xlane.f32.xlu0 %v6598_v16 }
0x272e   : > { %v6579_v31 = vpop.xlane.xlu0 %6578 }
0x272f   : > { %v6601_v25 = vmul.f32 0.015625, %v6579_v31 }
0x2731   : > { %v6609_v23 = vadd.f32 1e-05, %v6601_v25 }
0x2732   : > { %v6582_v37 = vpop.xlane.xlu0 %6581 }
0x2733   : > { %9122 = vrsqrt.f32 %v6609_v23  ;;  %v6602_v51 = vmul.f32 0.015625, %v6582_v37 }
0x2735   : > { %v6610_v17 = vadd.f32 1e-05, %v6602_v51 }
0x2736   : > { %v6585_v52 = vpop.xlane.xlu0 %6584 }
0x2737   : > { %9124 = vrsqrt.f32 %v6610_v17  ;;  %v6603_v15 = vmul.f32 0.015625, %v6585_v52 }
0x2739   : > { %v6611_v53 = vadd.f32 1e-05, %v6603_v15 }
0x273a   : > { %v6588_v13 = vpop.xlane.xlu0 %6587 }
0x273b   : > { %9126 = vrsqrt.f32 %v6611_v53  ;;  %v6604_v10 = vmul.f32 0.015625, %v6588_v13 }
0x273d   : > { %v6612_v8 = vadd.f32 1e-05, %v6604_v10  ;;  %v8790_v10 = vld [vmem:[%s11389_s0 + $0x78] sm:$0xff]  }
0x273e   : > { %v6591_v14 = vpop.xlane.xlu0 %6590  ;;  %8076 = vmatprep.subr.bf16.mxu1 %v8790_v10 }
0x273f   : > { %9128 = vrsqrt.f32 %v6612_v8  ;;  %v6605_v19 = vmul.f32 0.015625, %v6591_v14  ;;  %v8791_v8 = vld [vmem:[%s11389_s0 + $0x38] sm:$0xff]   ;;  %v8792_v14 = vld [vmem:[%s11389_s0 + $0x70] sm:$0xff]  }
0x2740   : > { %v9123_v38 = vpop.eup %9122 }
0x2741   : > { %v6625_v18 = vmul.f32 %v9123_v38, %v10944_v62  ;;  %v6613_v58 = vadd.f32 1e-05, %v6605_v19  ;;  %v8793_v19 = vld [vmem:[%s11389_s0 + $0x30] sm:$0xff]   ;;  %v8795_v38 = vld [vmem:[%s11389_s0 + $0x28] sm:$0xff]  }
0x2742   : > { %v6597_v45 = vpop.xlane.xlu1 %6596  ;;  %v6594_v36 = vpop.xlane.xlu0 %6593 }
0x2743   : > { %9130 = vrsqrt.f32 %v6613_v58  ;;  %v6607_v29 = vmul.f32 0.015625, %v6597_v45  ;;  %v6606_v21 = vmul.f32 0.015625, %v6594_v36  ;;  %v6640_v5 = vmul.f32 %v7793_v24, %v6625_v18  ;;  %v8796_v18 = vld [vmem:[%s11389_s0 + $0x60] sm:$0xff]   ;;  %v8799_v45 = vld [vmem:[%s11389_s0 + $0x18] sm:$0xff]   ;;  %v8800_v36 = vld [vmem:[%s11389_s0 + $0x50] sm:$0xff]  }
0x2744   : > { %v9125_v12 = vpop.eup %9124  ;;  %v8797_v58 = vld [vmem:[%s11389_s0 + $0x20] sm:$0xff]  }
0x2745   : > { %v6626_v39 = vmul.f32 %v9125_v12, %v10949_v43  ;;  %v6614_v60 = vadd.f32 1e-05, %v6606_v21  ;;  %v6615_v7 = vadd.f32 1e-05, %v6607_v29  ;;  %v6655_v62 = vadd.f32 %v7794_v1, %v6640_v5  ;;  %v8801_v29 = vld [vmem:[%s11389_s0 + $0x10] sm:$0xff]   ;;  %v8802_v21 = vld [vmem:[%s11389_s0 + $0x48] sm:$0xff]  }
0x2746   : > { %v6600_v44 = vpop.xlane.xlu0 %6599  ;;  %v8803_v12 = vld [vmem:[%s11389_s0 + $0x8] sm:$0xff]   ;;  %v8804_v5 = vld [vmem:[%s11389_s0 + $0x40] sm:$0xff]  }
0x2747   : > { %v6641_v16 = vmul.f32 %v7793_v24, %v6626_v39  ;;  %v6608_v56 = vmul.f32 0.015625, %v6600_v44  ;;  %9132 = vrsqrt.f32 %v6614_v60  ;;  %v8805_v39 = vld [vmem:[%s11389_s0] sm:$0xff]   ;;  %v6695_v60 = vsub.s32 2, %v9744_v3 }
0x2748   : > { %v9127_v6 = vpop.eup %9126  ;;  %9134 = vrsqrt.f32 %v6615_v7  ;;  %v6699_v7 = vsub.s32 3, %v9744_v3 }
0x2749   : > { %v6656_v61 = vadd.f32 %v7794_v1, %v6641_v16  ;;  %v6627_v2 = vmul.f32 %v9127_v6, %v10955_v32  ;;  %v6616_v11 = vadd.f32 1e-05, %v6608_v56 }
0x274b   : > { %v6663_v55 = vpack.c.bf16 %v6656_v61, %v6655_v62  ;;  %9136 = vrsqrt.f32 %v6616_v11  ;;  %v6642_v43 = vmul.f32 %v7793_v24, %v6627_v2 }
0x274c   : > { %v9129_v34 = vpop.eup %9128 }
0x274d   : > { %v6628_v59 = vmul.f32 %v9129_v34, %v10964_v50  ;;  %7811 = vmatmul.mubr.msk.bf16.vlgmr.msra.gmra.mxu1 %vm2379_vm4, %v6663_v55  ;;  %7815 = vmatmul.mubr.msk.bf16.vlgmr.msra.gmra.mxu0 %vm2379_vm4, %v6663_v55  ;;  %v6657_v46 = vadd.f32 %v7794_v1, %v6642_v43 }
0x274e   : > { %6839 = vmatprep.mubr.bf16.mxu1 %v9243_v42  ;;  %6912 = vmatprep.mubr.bf16.mxu0 %v9243_v42 }
0x274f   : > { %v6643_v30 = vmul.f32 %v7793_v24, %v6628_v59  ;;  %8077 = vmatpush3.bf16.msra.mxu1 %v8791_v8 }
0x2750   : > { %v9131_v9 = vpop.eup %9130  ;;  %8078 = vmatprep.subr.bf16.mxu1 %v8792_v14 }
0x2751   : > { %v6658_v32 = vadd.f32 %v7794_v1, %v6643_v30  ;;  %v6629_v40 = vmul.f32 %v9131_v9, %v10961_v54 }
0x2753   : > { %v6664_v28 = vpack.c.bf16 %v6658_v32, %v6657_v46  ;;  %v6644_v31 = vmul.f32 %v7793_v24, %v6629_v40  ;;  %8079 = vmatpush3.bf16.msra.mxu1 %v8793_v19 }
0x2754   : > { %v9133_v20 = vpop.eup %9132 }
0x2755   : > { %7812 = vmatmul.mubr.msk.bf16.gmra.mxu1 %vm2379_vm4, %v6664_v28  ;;  %7816 = vmatmul.mubr.msk.bf16.gmra.mxu0 %vm2379_vm4, %v6664_v28  ;;  %v6630_v50 = vmul.f32 %v9133_v20, %v10970_v48  ;;  %v9135_v25 = vpop.eup %9134  ;;  %v6659_v17 = vadd.f32 %v7794_v1, %v6644_v31 }
0x2756   : > { %6849 = vmatprep.mubr.bf16.mxu1 %v9243_v42  ;;  %6922 = vmatprep.mubr.bf16.mxu0 %v9243_v42  ;;  %v6631_v54 = vmul.f32 %v9135_v25, %v10976_v35 }
0x2757   : > { %v6645_v37 = vmul.f32 %v7793_v24, %v6630_v50 }
0x2758   : > { %v9137_v23 = vpop.eup %9136  ;;  %v6646_v48 = vmul.f32 %v7793_v24, %v6631_v54 }
0x2759   : > { %v6632_v51 = vmul.f32 %v9137_v23, %v10984_v41  ;;  %v6660_v52 = vadd.f32 %v7794_v1, %v6645_v37 }
0x275a   : > { %v6661_v35 = vadd.f32 %v7794_v1, %v6646_v48 }
0x275b   : > { %v6665_v15 = vpack.c.bf16 %v6660_v52, %v6659_v17  ;;  %v6647_v53 = vmul.f32 %v7793_v24, %v6632_v51  ;;  %v8798_v24 = vld [vmem:[%s11389_s0 + $0x58] sm:$0xff]  }
0x275d   : > { %7813 = vmatmul.mubr.msk.bf16.gmra.mxu1 %vm2379_vm4, %v6665_v15  ;;  %7817 = vmatmul.mubr.msk.bf16.gmra.mxu0 %vm2379_vm4, %v6665_v15  ;;  %v6662_v41 = vadd.f32 %v7794_v1, %v6647_v53  ;;  %v11049_v1 = vld [vmem:[%s11390_s3] sm:$0xf]  ;;  %s11276_s3 = scalar_lea.vmem %s9474_s27, %s11391_s2 }
0x275e   : > { %6859 = vmatprep.mubr.bf16.mxu1 %v9243_v42  ;;  %6932 = vmatprep.mubr.bf16.mxu0 %v9243_v42  ;;  %v8794_v42 = vld [vmem:[%s11389_s0 + $0x68] sm:$0xff]   ;;  %v11053_v44 = vrot.slane %v11049_v1, %v6695_v60  ;;  %v11056_v16 = vrot.slane %v11049_v1, %v6699_v7 }
0x275f   : > { %v6666_v13 = vpack.c.bf16 %v6662_v41, %v6661_v35  ;;  %8080 = vmatprep.subr.bf16.mxu1 %v8794_v42 }
0x2760   : > { %8081 = vmatpush3.bf16.msra.mxu1 %v8795_v38 }
0x2761   : > { %8082 = vmatprep.subr.bf16.mxu1 %v8796_v18 }
0x2764   : > { %8083 = vmatpush3.bf16.msra.mxu1 %v8797_v58 }
0x2765   : > { %7814 = vmatmul.mubr.msk.bf16.gmra.mxu1 %vm2379_vm4, %v6666_v13  ;;  %7818 = vmatmul.mubr.msk.bf16.gmra.mxu0 %vm2379_vm4, %v6666_v13 }
0x2766   : > { %8084 = vmatprep.subr.bf16.mxu1 %v8798_v24 }
0x2768   : > { %8085 = vmatpush3.bf16.msra.mxu1 %v8799_v45 }
0x2769   : > { %8086 = vmatprep.subr.bf16.mxu1 %v8800_v36 }
0x276c   : > { %8087 = vmatpush3.bf16.msra.mxu1 %v8801_v29 }
0x276d   : > { %8088 = vmatprep.subr.bf16.mxu1 %v8802_v21 }
0x2770   : > { %8089 = vmatpush3.bf16.msra.mxu1 %v8803_v12 }
0x2771   : > { %8090 = vmatprep.subr.bf16.mxu1 %v8804_v5 }
0x2774   : > { %8091 = vmatpush3.bf16.msra.mxu1 %v8805_v39 }
0x280d   : > { %v11058_v56 = vpop.f32.mrf.mxu1  ;;  %v6904_v6 = vpop.f32.mrf.mxu0 }
0x280e   : > { %v11061_v62 = vadd.f32 %v6904_v6, %v11053_v44 }
0x280f   : > { %v6906_v61 = vpop.f32.mrf.mxu0  ;;  %v11067_v55 = vpop.f32.mrf.mxu1 }
0x2810   : > { %v6959_v2 = vmul.f32 0.044715, %v11061_v62  ;;  %v11065_v11 = vadd.f32 %v6906_v61, %v11056_v16 }
0x2811   : > { %v6908_v3 = vpop.f32.mrf.mxu0  ;;  %v11077_v40 = vpop.f32.mrf.mxu1 }
0x2812   : > { %v6975_v34 = vmul.f32 %v6959_v2, %v11061_v62  ;;  %v6960_v59 = vmul.f32 0.044715, %v11065_v11  ;;  %v11072_v43 = vadd.f32 %v6908_v3, %v11053_v44  ;;  %v11126_v3 = vrot.slane %v11049_v1, %v9752_v33 }
0x2813   : > { %v6910_v30 = vpop.f32.mrf.mxu0  ;;  %v11091_v52 = vpop.f32.mrf.mxu1 }
0x2814   : > { %v6991_v9 = vmul.f32 %v6975_v34, %v11061_v62  ;;  %v6976_v46 = vmul.f32 %v6960_v59, %v11065_v11  ;;  %v6961_v32 = vmul.f32 0.044715, %v11072_v43  ;;  %v11080_v28 = vadd.f32 %v6910_v30, %v11056_v16 }
0x2815   : > { %v6914_v20 = vpop.f32.mrf.mxu0  ;;  %v11107_v58 = vpop.f32.mrf.mxu1 }
0x2816   : > { %v6992_v50 = vmul.f32 %v6976_v46, %v11065_v11  ;;  %v6977_v31 = vmul.f32 %v6961_v32, %v11072_v43  ;;  %v7007_v25 = vadd.f32 %v6991_v9, %v11061_v62  ;;  %v6962_v23 = vmul.f32 0.044715, %v11080_v28 }
0x2817   : > { %v11087_v37 = vadd.f32 %v6914_v20, %v11053_v44  ;;  %v6916_v51 = vpop.f32.mrf.mxu0  ;;  %v11118_v6 = vpop.f32.mrf.mxu1  ;;  %v11133_v46 = vrot.slane %v11049_v1, %v9747_v4  ;;  %v11148_v4 = vadd.f32 %v11058_v56, %v11126_v3  ;;  %v11162_v56 = vadd.f32 %v11077_v40, %v11126_v3 }
0x2818   : > { %v7008_v54 = vadd.f32 %v6992_v50, %v11065_v11  ;;  %v6993_v17 = vmul.f32 %v6977_v31, %v11072_v43  ;;  %v6978_v15 = vmul.f32 %v6962_v23, %v11080_v28  ;;  %v11096_v48 = vadd.f32 %v6916_v51, %v11056_v16 }
0x2819   : > { %v6963_v53 = vmul.f32 0.044715, %v11087_v37  ;;  %v6918_v41 = vpop.f32.mrf.mxu0  ;;  %v7023_v13 = vmul.f32 0.7978846, %v7007_v25  ;;  %v11141_v25 = vpop.f32.mrf.mxu1 }
0x281a   : > { %v7009_v35 = vadd.f32 %v6993_v17, %v11072_v43  ;;  %v6994_v10 = vmul.f32 %v6978_v15, %v11080_v28  ;;  %v11101_v8 = vadd.f32 %v6918_v41, %v11053_v44  ;;  %v7024_v19 = vmul.f32 0.7978846, %v7008_v54 }
0x281b   : > { %v6920_v14 = vpop.f32.mrf.mxu0  ;;  %v6979_v24 = vmul.f32 %v6963_v53, %v11087_v37  ;;  %v6964_v45 = vmul.f32 0.044715, %v11096_v48  ;;  %v6943_v17 = vmul.f32 0.5, %v11061_v62 }
0x281c   : > { %v7025_v42 = vmul.f32 0.7978846, %v7009_v35  ;;  %v11104_v38 = vadd.f32 %v6920_v14, %v11056_v16  ;;  %v7010_v18 = vadd.f32 %v6994_v10, %v11080_v28  ;;  %v6965_v36 = vmul.f32 0.044715, %v11101_v8 }
0x281d   : > { %v6924_v21 = vpop.f32.mrf.mxu0  ;;  %v6995_v7 = vmul.f32 %v6979_v24, %v11087_v37  ;;  %v6980_v61 = vmul.f32 %v6964_v45, %v11096_v48  ;;  %v11158_v35 = vadd.f32 %v11067_v55, %v11133_v46  ;;  %v6945_v24 = vmul.f32 0.5, %v11072_v43 }
0x281e   : > { %9138 = vtanh.f32 %v7025_v42  ;;  %v6966_v29 = vmul.f32 0.044715, %v11104_v38  ;;  %v6981_v12 = vmul.f32 %v6965_v36, %v11101_v8  ;;  %v11115_v5 = vadd.f32 %v6924_v21, %v11053_v44  ;;  %v11169_v42 = vpop.f32.mrf.mxu1 }
0x281f   : > { %9140 = vtanh.f32 %v7023_v13  ;;  %v6926_v39 = vpop.f32.mrf.mxu0  ;;  %v7026_v60 = vmul.f32 0.7978846, %v7010_v18  ;;  %v7011_v33 = vadd.f32 %v6995_v7, %v11087_v37  ;;  %v6996_v31 = vmul.f32 %v6980_v61, %v11096_v48 }
0x2820   : > { %9142 = vtanh.f32 %v7024_v19  ;;  %v11122_v2 = vadd.f32 %v6926_v39, %v11056_v16  ;;  %v6982_v34 = vmul.f32 %v6966_v29, %v11104_v38  ;;  %v6997_v30 = vmul.f32 %v6981_v12, %v11101_v8 }
0x2821   : > { %v6928_v59 = vpop.f32.mrf.mxu0  ;;  %v6967_v32 = vmul.f32 0.044715, %v11115_v5  ;;  %9144 = vtanh.f32 %v7026_v60  ;;  %v7027_v14 = vmul.f32 0.7978846, %v7011_v33  ;;  %v7012_v19 = vadd.f32 %v6996_v31, %v11096_v48 }
0x2822   : > { %v6968_v9 = vmul.f32 0.044715, %v11122_v2  ;;  %v11137_v20 = vadd.f32 %v6928_v59, %v11053_v44  ;;  %v6998_v1 = vmul.f32 %v6982_v34, %v11104_v38  ;;  %v7013_v15 = vadd.f32 %v6997_v30, %v11101_v8 }
0x2823   : > { %v6930_v50 = vpop.f32.mrf.mxu0  ;;  %v6983_v13 = vmul.f32 %v6967_v32, %v11115_v5  ;;  %v6944_v29 = vmul.f32 0.5, %v11065_v11  ;;  %v6838_v12 = vadd.f32 %v11091_v52, %v11133_v46  ;;  %v6946_v11 = vmul.f32 0.5, %v11080_v28  ;;  %v11187_v52 = vpop.f32.mrf.mxu1 }
0x2824   : > { %v11144_v23 = vadd.f32 %v6930_v50, %v11056_v16  ;;  %v6984_v51 = vmul.f32 %v6968_v9, %v11122_v2  ;;  %v6969_v53 = vmul.f32 0.044715, %v11137_v20  ;;  %v7014_v40 = vadd.f32 %v6998_v1, %v11104_v38 }
0x2825   : > { %v6934_v54 = vpop.f32.mrf.mxu0  ;;  %v7029_v39 = vmul.f32 0.7978846, %v7013_v15  ;;  %v6999_v43 = vmul.f32 %v6983_v13, %v11115_v5  ;;  %9146 = vtanh.f32 %v7027_v14  ;;  %v7028_v32 = vmul.f32 0.7978846, %v7012_v19  ;;  %v11203_v19 = vpop.f32.mrf.mxu1 }
0x2826   : > { %v6970_v41 = vmul.f32 0.044715, %v11144_v23  ;;  %v11166_v10 = vadd.f32 %v6934_v54, %v11053_v44  ;;  %v6985_v18 = vmul.f32 %v6969_v53, %v11137_v20  ;;  %v7000_v45 = vmul.f32 %v6984_v51, %v11122_v2 }
0x2827   : > { %v6936_v62 = vpop.f32.mrf.mxu0  ;;  %v7030_v1 = vmul.f32 0.7978846, %v7014_v40  ;;  %9148 = vtanh.f32 %v7029_v39 }
0x2828   : > { %v6986_v55 = vmul.f32 %v6970_v41, %v11144_v23  ;;  %v7001_v60 = vmul.f32 %v6985_v18, %v11137_v20  ;;  %v11181_v7 = vadd.f32 %v6936_v62, %v11056_v16  ;;  %v6971_v59 = vmul.f32 0.044715, %v11166_v10 }
0x2829   : > { %v6938_v36 = vpop.f32.mrf.mxu0  ;;  %v7016_v51 = vadd.f32 %v7000_v45, %v11122_v2  ;;  %v7015_v41 = vadd.f32 %v6999_v43, %v11115_v5  ;;  %9150 = vtanh.f32 %v7028_v32 }
0x282a   : > { %v7002_v34 = vmul.f32 %v6986_v55, %v11144_v23  ;;  %v7017_v50 = vadd.f32 %v7001_v60, %v11137_v20  ;;  %v6972_v33 = vmul.f32 0.044715, %v11181_v7  ;;  %v11193_v54 = vadd.f32 %v6938_v36, %v11053_v44 }
0x282b   : > { %v9139_v21 = vpop.eup %9138  ;;  %v6940_v30 = vpop.f32.mrf.mxu0  ;;  %v6987_v62 = vmul.f32 %v6971_v59, %v11166_v10  ;;  %v7031_v59 = vmul.f32 0.7978846, %v7015_v41 }
0x282c   : > { %v9141_v61 = vpop.eup %9140  ;;  %v7057_v31 = vadd.f32 1.0, %v9139_v21  ;;  %v6988_v28 = vmul.f32 %v6972_v33, %v11181_v7  ;;  %v11197_v53 = vadd.f32 %v6940_v30, %v11056_v16  ;;  %v7018_v13 = vadd.f32 %v7002_v34, %v11144_v23  ;;  %v11211_v33 = vpop.f32.mrf.mxu1 }
0x282d   : > { %v9143_v9 = vpop.eup %9142  ;;  %v7055_v15 = vadd.f32 1.0, %v9141_v61  ;;  %v6973_v14 = vmul.f32 0.044715, %v11193_v54  ;;  %v7033_v18 = vmul.f32 0.7978846, %v7017_v50 }
0x282e   : > { %v7004_v44 = vmul.f32 %v6988_v28, %v11181_v7  ;;  %v6974_v55 = vmul.f32 0.044715, %v11197_v53  ;;  %v7056_v40 = vadd.f32 1.0, %v9143_v9  ;;  %v9145_v45 = vpop.eup %9144  ;;  %v7073_v36 = vmul.f32 %v7057_v31, %v6945_v24 }
0x282f   : > { %v7032_v16 = vmul.f32 0.7978846, %v7016_v51  ;;  %v6989_v21 = vmul.f32 %v6973_v14, %v11193_v54  ;;  %v7058_v61 = vadd.f32 1.0, %v9145_v45  ;;  %v7071_v34 = vmul.f32 %v7055_v15, %v6943_v17 }
0x2830   : > { %v7020_v39 = vadd.f32 %v7004_v44, %v11181_v7  ;;  %v6990_v60 = vmul.f32 %v6974_v55, %v11197_v53  ;;  %v7072_v43 = vmul.f32 %v7056_v40, %v6944_v29  ;;  %v7034_v30 = vmul.f32 0.7978846, %v7018_v13  ;;  %v6857_v13 = vpop.f32.mrf.mxu1 }
0x2831   : > { %v7005_v50 = vmul.f32 %v6989_v21, %v11193_v54  ;;  %9152 = vtanh.f32 %v7033_v18  ;;  %v7003_v24 = vmul.f32 %v6987_v62, %v11166_v10  ;;  %v7074_v31 = vmul.f32 %v7058_v61, %v6946_v11 }
0x2832   : > { %v7006_v9 = vmul.f32 %v6990_v60, %v11197_v53  ;;  %v7089_v32 = vmul.f32 %v7073_v36, %v11162_v56  ;;  %v7036_v51 = vmul.f32 0.7978846, %v7020_v39  ;;  %v7088_v28 = vmul.f32 %v7072_v43, %v11158_v35  ;;  %v9147_v56 = vpop.eup %9146 }
0x2833   : > { %9154 = vtanh.f32 %v7030_v1  ;;  %v7021_v17 = vadd.f32 %v7005_v50, %v11193_v54  ;;  %v7090_v15 = vmul.f32 %v7074_v31, %v6838_v12  ;;  %v7087_v41 = vmul.f32 %v7071_v34, %v11148_v4  ;;  %v11221_v1 = vpop.f32.mrf.mxu1 }
0x2834   : > { %v7022_v29 = vadd.f32 %v7006_v9, %v11197_v53  ;;  %9156 = vtanh.f32 %v7032_v16  ;;  %v7019_v62 = vadd.f32 %v7003_v24, %v11166_v10  ;;  %v9149_v35 = vpop.eup %9148  ;;  %v7059_v45 = vadd.f32 1.0, %v9147_v56 }
0x2835   : > { %9158 = vtanh.f32 %v7034_v30  ;;  %v7104_v14 = vpack.c.bf16 %v7090_v15, %v7088_v28  ;;  %v7103_v18 = vpack.c.bf16 %v7089_v32, %v7087_v41  ;;  %v7037_v44 = vmul.f32 0.7978846, %v7021_v17  ;;  %v6863_v16 = vpop.f32.mrf.mxu1 }
0x2836   : > { %9160 = vtanh.f32 %v7031_v59  ;;  %v7038_v11 = vmul.f32 0.7978846, %v7022_v29  ;;  %v7035_v12 = vmul.f32 0.7978846, %v7019_v62  ;;  %v9151_v55 = vpop.eup %9150  ;;  %v7061_v4 = vadd.f32 1.0, %v9149_v35 }
0x2837   : > { %7278 = vmatprep.mubr.bf16.mxu1 %v7104_v14  ;;  %9162 = vtanh.f32 %v7036_v51  ;;  %v7060_v40 = vadd.f32 1.0, %v9151_v55  ;;  %v6949_v36 = vmul.f32 0.5, %v11101_v8  ;;  %v6947_v39 = vmul.f32 0.5, %v11087_v37  ;;  %v6865_v32 = vpop.f32.mrf.mxu1 }
0x2838   : > { %7279 = vmatmul.mubr.bf16.vlgmr.msra.gmra.mxu1 %v7103_v18  ;;  %9164 = vtanh.f32 %v7038_v11  ;;  %v6948_v60 = vmul.f32 0.5, %v11096_v48  ;;  %v6842_v43 = vadd.f32 %v11107_v58, %v11126_v3  ;;  %v6844_v34 = vadd.f32 %v11118_v6, %v11133_v46 }
0x2839   : > { %9166 = vtanh.f32 %v7037_v44  ;;  %v6846_v59 = vadd.f32 %v11141_v25, %v11126_v3  ;;  %v7077_v30 = vmul.f32 %v7061_v4, %v6949_v36  ;;  %v6950_v8 = vmul.f32 0.5, %v11104_v38 }
0x283a   : > { %9168 = vtanh.f32 %v7035_v12  ;;  %v7076_v9 = vmul.f32 %v7060_v40, %v6948_v60  ;;  %v7075_v31 = vmul.f32 %v7059_v45, %v6947_v39  ;;  %v6848_v48 = vadd.f32 %v11169_v42, %v11133_v46 }
0x283b   : > { %v6854_v58 = vadd.f32 %v11203_v19, %v11133_v46  ;;  %v6952_v6 = vmul.f32 0.5, %v11122_v2  ;;  %v6858_v25 = vadd.f32 %v6857_v13, %v11133_v46  ;;  %v6954_v38 = vmul.f32 0.5, %v11144_v23  ;;  %v6867_v2 = vpop.f32.mrf.mxu1 }
0x283c   : > { %v6953_v15 = vmul.f32 0.5, %v11137_v20  ;;  %v7093_v41 = vmul.f32 %v7077_v30, %v6846_v59  ;;  %v7092_v14 = vmul.f32 %v7076_v9, %v6844_v34  ;;  %v7091_v19 = vmul.f32 %v7075_v31, %v6842_v43 }
0x283d   : > { %v6956_v12 = vmul.f32 0.5, %v11181_v7  ;;  %v6958_v13 = vmul.f32 0.5, %v11197_v53  ;;  %v6951_v45 = vmul.f32 0.5, %v11115_v5  ;;  %v6868_v60 = vadd.f32 %v6867_v2, %v11133_v46 }
0x283e   : > { %v9153_v21 = vpop.eup %9152  ;;  %v7105_v36 = vpack.c.bf16 %v7093_v41, %v7091_v19  ;;  %v6856_v7 = vadd.f32 %v11211_v33, %v11126_v3  ;;  %v6864_v30 = vadd.f32 %v6863_v16, %v11133_v46  ;;  %v6852_v5 = vadd.f32 %v11187_v52, %v11126_v3 }
0x283f   : > { %v7065_v11 = vadd.f32 1.0, %v9153_v21  ;;  %v6957_v31 = vmul.f32 0.5, %v11193_v54  ;;  %v6955_v33 = vmul.f32 0.5, %v11166_v10  ;;  %v6866_v46 = vadd.f32 %v6865_v32, %v11126_v3  ;;  %v8807_v10 = vld [vmem:[%s9464_s12 + $0x10] sm:$0xff]   ;;  %v8809_v32 = vld [vmem:[%s9464_s12] sm:$0xff]  }
0x2840   : > { %v9155_v61 = vpop.eup %9154  ;;  %v6862_v52 = vadd.f32 %v11221_v1, %v11126_v3  ;;  %v7819_v1 = vld [vmem:[%s9459_s4] ss:$0 sm:$0xff] }
0x2841   : > { %v9157_v50 = vpop.eup %9156  ;;  %v7062_v24 = vadd.f32 1.0, %v9155_v61  ;;  %v7081_v21 = vmul.f32 %v7065_v11, %v6953_v15 }
0x2842   : > { %v9159_v37 = vpop.eup %9158  ;;  %v7064_v51 = vadd.f32 1.0, %v9157_v50 }
0x2843   : > { %v9161_v28 = vpop.eup %9160  ;;  %v7078_v17 = vmul.f32 %v7062_v24, %v6950_v8  ;;  %v7066_v29 = vadd.f32 1.0, %v9159_v37  ;;  %v7097_v8 = vmul.f32 %v7081_v21, %v6856_v7 }
0x2844   : > { %v7080_v62 = vmul.f32 %v7064_v51, %v6952_v6  ;;  %v9163_v42 = vpop.eup %9162  ;;  %v7063_v35 = vadd.f32 1.0, %v9161_v28 }
0x2845   : > { %v7094_v56 = vmul.f32 %v7078_v17, %v6848_v48  ;;  %v7082_v18 = vmul.f32 %v7066_v29, %v6954_v38  ;;  %v9165_v44 = vpop.eup %9164  ;;  %v7068_v55 = vadd.f32 1.0, %v9163_v42  ;;  %v8806_v17 = vld [vmem:[%s9464_s12 + $0x18] sm:$0xff]   ;;  %v8808_v38 = vld [vmem:[%s9464_s12 + $0x8] sm:$0xff]  }
0x2846   : > { %v7096_v4 = vmul.f32 %v7080_v62, %v6854_v58  ;;  %v7070_v20 = vadd.f32 1.0, %v9165_v44  ;;  %v9167_v39 = vpop.eup %9166  ;;  %v7079_v53 = vmul.f32 %v7063_v35, %v6951_v45  ;;  %8612 = vmatprep.subr.bf16.mxu0 %v8806_v17 }
0x2847   : > { %v7106_v23 = vpack.c.bf16 %v7094_v56, %v7092_v14  ;;  %v7098_v40 = vmul.f32 %v7082_v18, %v6858_v25  ;;  %v7084_v43 = vmul.f32 %v7068_v55, %v6956_v12  ;;  %v9169_v59 = vpop.eup %9168  ;;  %v7069_v24 = vadd.f32 1.0, %v9167_v39  ;;  %8613 = vmatpush3.bf16.msra.mxu0 %v8806_v17 }
0x2848   : > { %v7086_v34 = vmul.f32 %v7070_v20, %v6958_v13  ;;  %v7095_v37 = vmul.f32 %v7079_v53, %v6852_v5  ;;  %v7067_v48 = vadd.f32 1.0, %v9169_v59  ;;  %8614 = vmatprep.subr.bf16.mxu0 %v8807_v10 }
0x2849   : > { %7286 = vmatprep.mubr.bf16.mxu1 %v7106_v23  ;;  %v7108_v61 = vpack.c.bf16 %v7098_v40, %v7096_v4  ;;  %v7100_v9 = vmul.f32 %v7084_v43, %v6864_v30  ;;  %v7085_v51 = vmul.f32 %v7069_v24, %v6957_v31 }
0x284a   : > { %7287 = vmatmul.mubr.bf16.gmra.mxu1 %v7105_v36  ;;  %v7102_v50 = vmul.f32 %v7086_v34, %v6868_v60  ;;  %v7107_v6 = vpack.c.bf16 %v7097_v8, %v7095_v37  ;;  %v7083_v16 = vmul.f32 %v7067_v48, %v6955_v33 }
0x284b   : > { %7294 = vmatprep.mubr.bf16.mxu1 %v7108_v61  ;;  %v7101_v54 = vmul.f32 %v7085_v51, %v6866_v46  ;;  %8615 = vmatpush3.bf16.msra.mxu0 %v8807_v10 }
0x284c   : > { %v7110_v58 = vpack.c.bf16 %v7102_v50, %v7100_v9  ;;  %v7099_v28 = vmul.f32 %v7083_v16, %v6862_v52  ;;  %8616 = vmatprep.subr.bf16.mxu0 %v8808_v38 }
0x284e   : > { %v7109_v25 = vpack.c.bf16 %v7101_v54, %v7099_v28 }
0x284f   : > { %8617 = vmatpush3.bf16.msra.mxu0 %v8808_v38 }
0x2850   : > { %8618 = vmatprep.subr.bf16.mxu0 %v8809_v32 }
0x2852   : > { %7295 = vmatmul.mubr.bf16.gmra.mxu1 %v7107_v6 }
0x2853   : > { %7302 = vmatprep.mubr.bf16.mxu1 %v7110_v58  ;;  %8619 = vmatpush3.bf16.msra.mxu0 %v8809_v32  ;;  %v9170_v32 = vld [vmem:[%s9622_s11] sm:$0xff] }
0x285a   : > { %7303 = vmatmul.mubr.bf16.gmra.mxu1 %v7109_v25 }
0x28f8   : > { %v8092_v29 = vpop.f32.mrf.mxu1 }
0x28fa   : > { %v8093_v15 = vpop.f32.mrf.mxu1 }
0x28fb   : > { %v8094_v3 = vadd.f32 %v8093_v15, %v8092_v29 }
0x28fc   : > { %v8095_v41 = vpop.f32.mrf.mxu1 }
0x28fd   : > { %v7281_v11 = vadd.f32 %v8094_v3, %v7819_v1  ;;  %v9171_v3 = vld [vmem:[%s9622_s11 + $0x8] sm:$0xff] }
0x28fe   : > { %v8096_v62 = vpop.f32.mrf.mxu1 }
0x28ff   : > { %v8097_v42 = vadd.f32 %v8096_v62, %v8095_v41  ;;  %v7311_v56 = vadd.f32 %v7281_v11, %v10897_v57  ;;  %v9172_v62 = vld [vmem:[%s9622_s11 + $0x10] sm:$0xff] }
0x2901   : > { %v7284_v14 = vadd.f32 %v8097_v42, %v7819_v1 }
0x2903   : > { %v7312_v19 = vadd.f32 %v7284_v14, %v10907_v22  ;;  %v9173_v14 = vld [vmem:[%s9622_s11 + $0x18] sm:$0xff] }
0x2905   : > { %v7319_v18 = vpack.c.bf16 %v7312_v19, %v7311_v56 }
0x2907   : > { %8620 = vmatprep.mubr.msk.bf16.mxu0 %vm2379_vm4, %v7319_v18  ;;  %v9174_v18 = vld [vmem:[%s9622_s11 + $0x20] sm:$0xff] }
0x290a   : > { %v8098_v44 = vpop.f32.mrf.mxu1 }
0x290c   : > { %v8099_v2 = vpop.f32.mrf.mxu1 }
0x290d   : > { %v8100_v35 = vadd.f32 %v8099_v2, %v8098_v44 }
0x290e   : > { %v8101_v12 = vpop.f32.mrf.mxu1 }
0x290f   : > { %v7289_v55 = vadd.f32 %v8100_v35, %v7819_v1  ;;  %v9175_v35 = vld [vmem:[%s9622_s11 + $0x28] sm:$0xff] }
0x2910   : > { %v8102_v13 = vpop.f32.mrf.mxu1 }
0x2911   : > { %v8103_v23 = vadd.f32 %v8102_v13, %v8101_v12  ;;  %v7313_v45 = vadd.f32 %v7289_v55, %v10910_v47  ;;  %v9176_v55 = vld [vmem:[%s9622_s11 + $0x30] sm:$0xff] }
0x2912   : > { %v8104_v4 = vpop.f32.mrf.mxu1 }
0x2913   : > { %v7292_v40 = vadd.f32 %v8103_v23, %v7819_v1 }
0x2914   : > { %v8105_v20 = vpop.f32.mrf.mxu1 }
0x2915   : > { %v7314_v36 = vadd.f32 %v7292_v40, %v10920_v49  ;;  %v8106_v57 = vadd.f32 %v8105_v20, %v8104_v4  ;;  %v9177_v40 = vld [vmem:[%s9622_s11 + $0x38] sm:$0xff] }
0x2916   : > { %v8107_v21 = vpop.f32.mrf.mxu1 }
0x2917   : > { %v7320_v22 = vpack.c.bf16 %v7314_v36, %v7313_v45  ;;  %v7297_v60 = vadd.f32 %v8106_v57, %v7819_v1 }
0x2918   : > { %v8108_v39 = vpop.f32.mrf.mxu1 }
0x2919   : > { %v8109_v61 = vadd.f32 %v8108_v39, %v8107_v21  ;;  %8621 = vmatmul.mubr.msk.bf16.vlgmr.msra.gmra.mxu0 %vm2379_vm4, %v7320_v22  ;;  %v7315_v53 = vadd.f32 %v7297_v60, %v10916_v63  ;;  %v7836_v63 = vld [vmem:[%s9469_s20] ss:$0 sm:$0xff] }
0x291a   : > { %v8110_v43 = vpop.f32.mrf.mxu1 }
0x291b   : > { %v7300_v34 = vadd.f32 %v8109_v61, %v7819_v1 }
0x291c   : > { %v8111_v7 = vpop.f32.mrf.mxu1 }
0x291d   : > { %v7316_v59 = vadd.f32 %v7300_v34, %v10928_v0  ;;  %v8112_v30 = vadd.f32 %v8111_v7, %v8110_v43 }
0x291e   : > { %v8113_v47 = vpop.f32.mrf.mxu1 }
0x291f   : > { %v7321_v50 = vpack.c.bf16 %v7316_v59, %v7315_v53  ;;  %v7305_v5 = vadd.f32 %v8112_v30, %v7819_v1 }
0x2920   : > { %v8114_v49 = vpop.f32.mrf.mxu1 }
0x2921   : > { %v8115_v8 = vadd.f32 %v8114_v49, %v8113_v47  ;;  %8624 = vmatprep.mubr.msk.bf16.mxu0 %vm2379_vm4, %v7321_v50  ;;  %v7317_v9 = vadd.f32 %v7305_v5, %v10932_v26 }
0x2923   : > { %v7308_v24 = vadd.f32 %v8115_v8, %v7819_v1 }
0x2925   : > { %v7318_v31 = vadd.f32 %v7308_v24, %v10937_v27 }
0x2927   : > { %v7322_v37 = vpack.c.bf16 %v7318_v31, %v7317_v9 }
0x2929   : > { %8625 = vmatmul.mubr.msk.bf16.gmra.mxu0 %vm2379_vm4, %v7322_v37 }
0x29d9   : > { %v8622_v48 = vpop.f32.mrf.mxu0 }
0x29da   : > { %v7417_v46 = vadd.f32 %v8622_v48, %v7836_v63 }
0x29db   : > { %v7408_v58 = vpop.f32.mrf.mxu0 }
0x29dc   : > { %v7409_v0 = vadd.f32 %v7836_v63, %v7408_v58 }
0x29dd   : > { %v8623_v33 = vpop.f32.mrf.mxu0 }
0x29de   : > { %7439 = vxpose.xlu1.b32.start [1/8] (short) (narrow) %v7409_v0, 64  ;;  %v7420_v16 = vadd.f32 %v8623_v33, %v7836_v63 }
0x29df   : > { %v7411_v6 = vpop.f32.mrf.mxu0 }
0x29e0   : > { %v7412_v51 = vadd.f32 %v7836_v63, %v7411_v6 }
0x29e2   : > { %7440 = vxpose.xlu1.b32.cont [2/8] (short) (narrow) %v7412_v51, 64 }
0x29e6   : > { %7441 = vxpose.xlu1.b32.cont [3/8] (short) (narrow) %v7417_v46, 64 }
0x29e9   : > { %v8626_v26 = vpop.f32.mrf.mxu0 }
0x29ea   : > { %7442 = vxpose.xlu1.b32.cont [4/8] (short) (narrow) %v7420_v16, 64  ;;  %v7433_v17 = vadd.f32 %v8626_v26, %v7836_v63 }
0x29eb   : > { %v7424_v27 = vpop.f32.mrf.mxu0 }
0x29ec   : > { %v7425_v52 = vadd.f32 %v7836_v63, %v7424_v27 }
0x29ed   : > { %v8627_v54 = vpop.f32.mrf.mxu0 }
0x29ee   : > { %7443 = vxpose.xlu1.b32.cont [5/8] (short) (narrow) %v7425_v52, 64  ;;  %v7436_v10 = vadd.f32 %v8627_v54, %v7836_v63 }
0x29ef   : > { %v7427_v28 = vpop.f32.mrf.mxu0 }
0x29f0   : > { %v7428_v25 = vadd.f32 %v7836_v63, %v7427_v28 }
0x29f2   : > { %7444 = vxpose.xlu1.b32.cont [6/8] (short) (narrow) %v7428_v25, 64 }
0x29f6   : > { %7445 = vxpose.xlu1.b32.cont [7/8] (short) (narrow) %v7433_v17, 64 }
0x29fa   : > { %7446 = vxpose.xlu1.b32.end [8/8] (short) (narrow) %v7436_v10, 64 }
0x2a5a   : > { %v7455_v38 = vpop.trf.xlu1 }
0x2a5b   : > { %v7471_v29 = vadd.f32 %v9170_v32, %v7455_v38 }
0x2a5d   : > { %7479 = vst.msk [vmem:[%s11276_s3] sm:$0xff] %vm2379_vm4, %v7471_v29 }
0x2a5e   : > { %v7456_v15 = vpop.trf.xlu1 }
0x2a5f   : > { %v7472_v1 = vadd.f32 %v9171_v3, %v7456_v15 }
0x2a61   : > { %7480 = vst.msk [vmem:[%s11276_s3 + $0x8] sm:$0xff] %vm2379_vm4, %v7472_v1 }
0x2a62   : > { %v7457_v41 = vpop.trf.xlu1 }
0x2a63   : > { %v7473_v11 = vadd.f32 %v9172_v62, %v7457_v41 }
0x2a65   : > { %7481 = vst.msk [vmem:[%s11276_s3 + $0x10] sm:$0xff] %vm2379_vm4, %v7473_v11 }
0x2a66   : > { %v7458_v42 = vpop.trf.xlu1 }
0x2a67   : > { %v7474_v56 = vadd.f32 %v9173_v14, %v7458_v42 }
0x2a69   : > { %7482 = vst.msk [vmem:[%s11276_s3 + $0x18] sm:$0xff] %vm2379_vm4, %v7474_v56 }
0x2a6a   : > { %v7459_v19 = vpop.trf.xlu1 }
0x2a6b   : > { %v7475_v44 = vadd.f32 %v9174_v18, %v7459_v19 }
0x2a6d   : > { %7483 = vst.msk [vmem:[%s11276_s3 + $0x20] sm:$0xff] %vm2379_vm4, %v7475_v44 }
0x2a6e   : > { %v7460_v2 = vpop.trf.xlu1 }
0x2a6f   : > { %v7476_v12 = vadd.f32 %v9175_v35, %v7460_v2 }
0x2a71   : > { %7484 = vst.msk [vmem:[%s11276_s3 + $0x28] sm:$0xff] %vm2379_vm4, %v7476_v12 }
0x2a72   : > { %v7461_v13 = vpop.trf.xlu1 }
0x2a73   : > { %v7477_v23 = vadd.f32 %v9176_v55, %v7461_v13 }
0x2a75   : > { %7485 = vst.msk [vmem:[%s11276_s3 + $0x30] sm:$0xff] %vm2379_vm4, %v7477_v23 }
0x2a76   : > { %v7462_v4 = vpop.trf.xlu1 }
0x2a77   : > { %v7478_v20 = vadd.f32 %v9177_v40, %v7462_v4 }
0x2a79   : > { %7486 = vst.msk [vmem:[%s11276_s3 + $0x38] sm:$0xff] %vm2379_vm4, %v7478_v20 }
0x2a7a PF: > { %s99_s28 = sadd.s32 1, %s9184_s28  }
0x2a7b   : > { %p96_p4 = scmp.ge.s32.totalorder %s99_s28, 4  }
0x2a7d   :  { %98 = sbr.rel (!%p96_p4) target bundleno = 87 (0x57), region = 273 }

</bundles_post_ra>
